<compile_context>
chip_gen: v6e
topology: v6e:2x2x1
jax: 0.10.0
libtpu: 0.0.40
codegen_flags: <defaults>
</compile_context>

<pallas_src>
import functools

import numpy as np
import jax
import jax.numpy as jnp
from jax.experimental import pallas as pl
from jax.experimental.pallas import tpu as pltpu  # noqa: F401  (kept for TPU lowering)


# ----------------------------- synthetic config ------------------------------------
CONFIG = dict(
    hidden_size=16,
    grid_size=8,
    time_lags=8,
    nb_rot_kernels=2,
    nb_rotations=4,
    rot_kernel_size=(2, 3, 3),
    conv_kernel_size=(2, 2, 2),
    nb_conv_units=[8],
    nb_spatial_units=[4, 4],
    nb_temporal_units=[4, 4],
    leaky_negative_slope=0.1,
    dropout=0.0,                       # Dropout == identity at inference
    regularization=None,               # Regularizer is not used in forward()
    decoder_init_grid_size=4,
    nb_decoder_units=[8, 4, 2],
    decoder_kernel_sizes=[2, 2],
    decoder_strides=[2, 2],
    rnn_hidden_size=16,
    useful_cells={"expt1": list(range(6))},
    layer_norm_eps=1e-5,
    initializer_range=0.02,
)


# ----------------------------- packing helpers (numpy, init time only) ---------------
def _rotation_mat(nb_rotations):
    thetas = np.deg2rad(np.arange(0, 360, 360 / nb_rotations))
    c, s = np.cos(thetas), np.sin(thetas)
    rot = np.zeros((nb_rotations, 2, 2), np.float32)
    rot[:, 0, 0] = c
    rot[:, 0, 1] = -s
    rot[:, 1, 0] = s
    rot[:, 1, 1] = c
    return rot


def _chomp_offsets(ksize):
    """Start offset of the Chomp(k-1)-surviving window inside the padded conv output.

    Matches the PyTorch Chomp module exactly: the leading (temporal) dim always keeps
    the first (size - (k-1)) positions (offset 0); trailing (spatial) dims keep a
    centered window when k-1 is even (offset (k-1)//2), otherwise the leading window."""
    offs = [0]
    for k in ksize[1:]:
        c = k - 1
        offs.append(c // 2 if c % 2 == 0 else 0)
    return tuple(offs)


def _avgpool_matrix(in_shape, out_shape):
    """AdaptiveAvgPool3d (evenly divisible) as a (prod(in), prod(out)) matmul operator."""
    ti, hi, wi = in_shape
    to, ho, wo = out_shape
    ft, fh, fw = ti // to, hi // ho, wi // wo
    m = np.zeros((ti * hi * wi, to * ho * wo), np.float32)
    scale = 1.0 / float(ft * fh * fw)
    for t in range(ti):
        for h in range(hi):
            for w in range(wi):
                src = (t * hi + h) * wi + w
                dst = ((t // ft) * ho + h // fh) * wo + w // fw
                m[src, dst] = scale
    return m


def _shift_matrix(shape, shift):
    """0/1 matrix S with (x @ S)[..., dst] = x[..., dst + shift] (zero outside volume)."""
    t_, h_, w_ = shape
    dt, dh, dw = shift
    m = np.zeros((t_ * h_ * w_, t_ * h_ * w_), np.float32)
    for t in range(t_):
        for h in range(h_):
            for w in range(w_):
                st, sh, sw = t + dt, h + dh, w + dw
                if 0 <= st < t_ and 0 <= sh < h_ and 0 <= sw < w_:
                    m[(st * h_ + sh) * w_ + sw, (t * h_ + h) * w_ + w] = 1.0
    return m


def _level_composite(ws, bs, wt, bt):
    """Compose spatial FC (over H*W) and temporal FC (over T) into ONE matrix acting on
    rows flattened as (t, h*w).  Valid because torch applies no nonlinearity between
    the two Linears; output columns are ordered (s, u) to match torch's flatten."""
    t, u = wt.shape
    hw, s = ws.shape
    w = np.einsum('tu,hs->thsu', wt, ws).reshape(t * hw, s * u)
    b = (np.outer(bs, wt.sum(axis=0)) + bt[None, :]).reshape(1, s * u)
    return w.astype(np.float32), b.astype(np.float32)


# ----------------------------- Pallas kernels ---------------------------------------
def _leaky(y, slope):
    return jnp.where(y >= 0.0, y, slope * y)


def _stim_enc_kernel(p_ref, w0_ref, b0_ref, wl0_ref, bl0_ref,
                     pmat_ref, ps_ref, w1_ref, b1_ref, wl1_ref, bl1_ref,
                     wfc0_ref, wfc1_ref, bfc_ref, out_ref,
                     *, slope, n_ch, batch, n_taps):
    """Entire RotationalConvEncoder in one kernel.

    Row layout everywhere is (channel, batch) channel-major; lane layout is the
    flattened (t, h, w) volume, so every stage is a plain 2-D matmul + elementwise."""
    f32 = jnp.float32
    # rot-conv + Chomp + bias + LeakyReLU (both batches via a batch-block-diag weight)
    x0 = jnp.dot(w0_ref[...], p_ref[...], preferred_element_type=f32) + b0_ref[...]
    x0 = _leaky(x0, slope)                                        # (C*B, T*H*W)

    # level-0 spatial∘temporal FC (composed at init) + trailing LeakyReLU
    flat0 = _leaky(jnp.dot(x0, wl0_ref[...], preferred_element_type=f32) + bl0_ref[...],
                   slope)                                         # (C*B, S*U)

    # AdaptiveAvgPool3d as a matmul; level-1 Conv3d + Chomp as 8 (pool∘shift) matmuls
    pooled = jnp.dot(x0, pmat_ref[...], preferred_element_type=f32)   # (C*B, T1*G1*G1)
    acc = jnp.zeros_like(pooled)
    for t in range(n_taps):
        shifted = jnp.dot(x0, ps_ref[t], preferred_element_type=f32)
        acc = acc + jnp.dot(w1_ref[t], shifted, preferred_element_type=f32)
    # identity residual (downsample is None: Cin == Cout) + bias + LeakyReLU, fused
    x1 = _leaky(acc + b1_ref[...] + pooled, slope)

    # level-1 spatial∘temporal FC + trailing LeakyReLU
    flat1 = _leaky(jnp.dot(x1, wl1_ref[...], preferred_element_type=f32) + bl1_ref[...],
                   slope)                                         # (C*B, S*U)

    # fused fc1|fc2 heads: accumulate per-(level, channel) partial matmuls so the
    # narrow per-level flats never have to be re-laid-out into a 256-lane row.
    mlv = jnp.zeros((batch, out_ref.shape[1]), f32)
    for c in range(n_ch):
        rows = slice(c * batch, (c + 1) * batch)
        mlv = mlv + jnp.dot(flat0[rows, :], wfc0_ref[c], preferred_element_type=f32)
        mlv = mlv + jnp.dot(flat1[rows, :], wfc1_ref[c], preferred_element_type=f32)
    out_ref[...] = mlv + bfc_ref[...]


def _spks_enc_kernel(x_ref, wih_f_ref, wih_b_ref, whh_ref, bg_ref,
                     wl_ref, bl_ref, wf_ref, bf_ref, out_ref, *, T, B, RH):
    """Entire SpksEncoder: bidirectional LSTM (gate projection folded in, per-gate
    weight split so no lane extraction sits on the recurrence critical path),
    post-LSTM Linear+ReLU and fused fc1|fc2 heads."""
    f32 = jnp.float32
    x = x_ref[...]                                                # (T*B, n), rows (t, b)
    # input->gate projections for both directions (off the serial chain)
    gxf = [jnp.dot(x, wih_f_ref[k], preferred_element_type=f32) for k in range(4)]
    gxb = [jnp.dot(x, wih_b_ref[k], preferred_element_type=f32) for k in range(4)]

    h = jnp.zeros((B, 2 * RH), f32)                               # [h_fwd | h_bwd]
    c = jnp.zeros((B, 2 * RH), f32)
    for t in range(T):                                            # static unroll, T tiny
        fr = slice(t * B, (t + 1) * B)                            # forward reads x_t
        br = slice((T - 1 - t) * B, (T - t) * B)                  # backward reads x_{T-1-t}
        pre = [gxf[k][fr, :] + gxb[k][br, :] + bg_ref[k]
               + jnp.dot(h, whh_ref[k], preferred_element_type=f32) for k in range(4)]
        i_g = jax.nn.sigmoid(pre[0])
        f_g = jax.nn.sigmoid(pre[1])
        g_g = jnp.tanh(pre[2])
        o_g = jax.nn.sigmoid(pre[3])
        c = f_g * c + i_g * g_g
        h = o_g * jnp.tanh(c)
    y = jnp.maximum(jnp.dot(h, wl_ref[...], preferred_element_type=f32) + bl_ref[...], 0.0)
    out_ref[...] = jnp.dot(y, wf_ref[...], preferred_element_type=f32) + bf_ref[...]


def _decoders_kernel(mu_ref, lv_ref, eps_ref,
                     wlin_ref, blin_ref, w1_ref, w2_ref,
                     wd1_ref, bd1_ref, lng_ref, lnb_ref, wh_ref, bh_ref,
                     z_ref, stim_ref, spks_ref, *, slope, eps_ln):
    """reparametrize + ConvDecoder (3 lane-dense matmuls over pre-blocked weights) +
    the whole SpksDecoder."""
    f32 = jnp.float32
    z = mu_ref[...] + jnp.exp(0.5 * lv_ref[...]) * eps_ref[...]
    z_ref[...] = z

    # ---- ConvDecoder: Linear -> (ConvT2d k==s -> LeakyReLU) x2; pixel shuffle deferred
    x = jnp.dot(z, wlin_ref[...], preferred_element_type=f32) + blin_ref[...]
    x = _leaky(jnp.dot(x, w1_ref[...], preferred_element_type=f32), slope)
    stim_ref[...] = _leaky(jnp.dot(x, w2_ref[...], preferred_element_type=f32), slope)

    # ---- SpksDecoder: Linear + ReLU -> LayerNorm -> head + Softplus (log1p form)
    s = jnp.maximum(jnp.dot(z, wd1_ref[...], preferred_element_type=f32) + bd1_ref[...], 0.0)
    m = jnp.mean(s, axis=-1, keepdims=True)
    v = jnp.mean(jnp.square(s - m), axis=-1, keepdims=True)
    s = (s - m) * jax.lax.rsqrt(v + eps_ln) * lng_ref[...] + lnb_ref[...]
    yy = jnp.dot(s, wh_ref[...], preferred_element_type=f32) + bh_ref[...]
    spks_ref[...] = jnp.maximum(yy, 0.0) + jnp.log1p(jnp.exp(-jnp.abs(yy)))


# ----------------------------- base parameter init -----------------------------------
def init_base_params(key, cfg):
    """Parameters in the same shapes / distributions the PyTorch module would use."""
    std = cfg["initializer_range"]
    kit = iter(jax.random.split(key, 64))

    def nrm(*shape):
        return std * jax.random.normal(next(kit), shape, jnp.float32)

    def unif(*shape, scale):
        return jax.random.uniform(next(kit), shape, jnp.float32, -scale, scale)

    G, T = cfg["grid_size"], cfg["time_lags"]
    H, RH = cfg["hidden_size"], cfg["rnn_hidden_size"]
    C0 = cfg["nb_rotations"] * cfg["nb_rot_kernels"]
    C1 = cfg["nb_conv_units"][0]
    S0, S1 = cfg["nb_spatial_units"]
    U0, U1 = cfg["nb_temporal_units"]
    out_sizes = C0 * S0 * U0 + C1 * S1 * U1

    enc_stim = dict(
        rot_conv_w=nrm(cfg["nb_rot_kernels"], 2, *cfg["rot_kernel_size"]),
        rot_conv_b=jnp.zeros((C0,), jnp.float32),
        conv1_w=nrm(C1, C0, *cfg["conv_kernel_size"]),
        conv1_b=jnp.zeros((C1,), jnp.float32),
        spatial_w=[nrm(G * G, S0), nrm((G // 2) ** 2, S1)],
        spatial_b=[jnp.zeros((S0,), jnp.float32), jnp.zeros((S1,), jnp.float32)],
        temporal_w=[nrm(T, U0), nrm(T // 2, U1)],
        temporal_b=[jnp.zeros((U0,), jnp.float32), jnp.zeros((U1,), jnp.float32)],
        fc12_w=jnp.concatenate([nrm(out_sizes, H), nrm(out_sizes, H)], axis=1),
        fc12_b=jnp.zeros((2 * H,), jnp.float32),
    )

    k0 = 1.0 / float(np.sqrt(RH))       # nn.LSTM default init (untouched by _init_weights)
    rnns = {}
    for expt, cells in cfg["useful_cells"].items():
        n = len(cells)
        rnns[expt] = dict(
            w_ih_f=unif(4 * RH, n, scale=k0), w_hh_f=unif(4 * RH, RH, scale=k0),
            b_ih_f=unif(4 * RH, scale=k0), b_hh_f=unif(4 * RH, scale=k0),
            w_ih_b=unif(4 * RH, n, scale=k0), w_hh_b=unif(4 * RH, RH, scale=k0),
            b_ih_b=unif(4 * RH, scale=k0), b_hh_b=unif(4 * RH, scale=k0),
        )
    enc_spks = dict(
        rnns=rnns,
        linear_w=nrm(2 * RH, 4 * RH), linear_b=jnp.zeros((4 * RH,), jnp.float32),
        fc12_w=jnp.concatenate([nrm(4 * RH, H), nrm(4 * RH, H)], axis=1),
        fc12_b=jnp.zeros((2 * H,), jnp.float32),
    )

    g0 = cfg["decoder_init_grid_size"]
    du = cfg["nb_decoder_units"]
    dec_stim = dict(
        linear_w=nrm(2 * H, du[0] * g0 * g0),
        linear_b=jnp.zeros((du[0] * g0 * g0,), jnp.float32),
        ct_w=[nrm(du[i - 1], du[i], cfg["decoder_kernel_sizes"][i - 1],
                  cfg["decoder_kernel_sizes"][i - 1]) for i in range(1, len(du))],
    )

    dec_spks = dict(
        linear_w=nrm(2 * H, 4 * H), linear_b=jnp.zeros((4 * H,), jnp.float32),
        ln_g=jnp.ones((4 * H,), jnp.float32), ln_b=jnp.zeros((4 * H,), jnp.float32),
        heads={e: (nrm(4 * H, len(c)), jnp.zeros((len(c),), jnp.float32))
               for e, c in cfg["useful_cells"].items()},
    )
    return dict(encoder_stim=enc_stim, encoder_spks=enc_spks,
                decoder_stim=dec_stim, decoder_spks=dec_spks)


# ----------------------------- weight packing (once, at init) ------------------------
def pack_params(base, cfg, batch):
    """Re-pack the module parameters into the fused-kernel layouts (pure weight-side
    preprocessing: block-diagonal batch expansion, composed FCs, pooling / conv-tap
    shift operators, per-gate LSTM split, pixel-shuffle-free ConvTranspose blocks)."""
    f32 = np.float32
    B = batch
    G, T = cfg["grid_size"], cfg["time_lags"]
    H, RH = cfg["hidden_size"], cfg["rnn_hidden_size"]
    kd, kh, kw = cfg["rot_kernel_size"]
    C0 = cfg["nb_rotations"] * cfg["nb_rot_kernels"]
    C1 = cfg["nb_conv_units"][0]
    S0, S1 = cfg["nb_spatial_units"]
    U0, U1 = cfg["nb_temporal_units"]
    assert len(cfg["nb_conv_units"]) == 1 and C0 == C1, "identity residual assumed"

    es = base["encoder_stim"]
    # rotation-augmented rot-conv weight -> (C0, Cin*kd*kh*kw) matmul form
    rot = _rotation_mat(cfg["nb_rotations"])
    w_rot = np.asarray(es["rot_conv_w"], f32)
    aug = np.einsum('jkn,inlmo->ijklmo', rot, w_rot).reshape(C0, 2, kd, kh, kw)
    w0m = aug.reshape(C0, -1)                                      # (8, 36)
    w0blk = np.zeros((C0 * B, B * w0m.shape[1]), f32)              # rows (c, b)
    for b in range(B):
        w0blk[b::B, b * w0m.shape[1]:(b + 1) * w0m.shape[1]] = w0m
    b0col = np.repeat(np.asarray(es["rot_conv_b"], f32), B).reshape(-1, 1)

    # composed spatial∘temporal FC per level
    wlev0, blev0 = _level_composite(np.asarray(es["spatial_w"][0], f32),
                                    np.asarray(es["spatial_b"][0], f32),
                                    np.asarray(es["temporal_w"][0], f32),
                                    np.asarray(es["temporal_b"][0], f32))
    wlev1, blev1 = _level_composite(np.asarray(es["spatial_w"][1], f32),
                                    np.asarray(es["spatial_b"][1], f32),
                                    np.asarray(es["temporal_w"][1], f32),
                                    np.asarray(es["temporal_b"][1], f32))

    # AdaptiveAvgPool3d as a matmul; level-1 Conv3d + Chomp taps as (pool∘shift) matmuls
    T1, G1 = T // 2, G // 2
    pmat = _avgpool_matrix((T, G, G), (T1, G1, G1))
    ka, ki, kj = cfg["conv_kernel_size"]
    off1 = _chomp_offsets((ka, ki, kj))
    w1c = np.asarray(es["conv1_w"], f32)                           # (C1, C0, ka, ki, kj)
    ps, w1blk = [], []
    for a in range(ka):
        for i in range(ki):
            for j in range(kj):
                s = _shift_matrix((T1, G1, G1),
                                  (a + off1[0] - (ka - 1),
                                   i + off1[1] - (ki - 1),
                                   j + off1[2] - (kj - 1)))
                ps.append(pmat @ s)
                w1blk.append(np.kron(w1c[:, :, a, i, j], np.eye(B, dtype=f32)))
    ps = np.stack(ps, axis=0)                                      # (taps, 512, 64)
    w1blk = np.stack(w1blk, axis=0)                                # (taps, C*B, C*B)
    b1col = np.repeat(np.asarray(es["conv1_b"], f32), B).reshape(-1, 1)

    # fused fc1|fc2 heads, split per (level, channel)
    wfc = np.asarray(es["fc12_w"], f32)
    wfc0 = wfc[:C0 * S0 * U0].reshape(C0, S0 * U0, 2 * H)
    wfc1 = wfc[C0 * S0 * U0:].reshape(C1, S1 * U1, 2 * H)
    bfc = np.asarray(es["fc12_b"], f32).reshape(1, -1)

    enc_stim = dict(w0blk=jnp.asarray(w0blk), b0col=jnp.asarray(b0col),
                    wlev0=jnp.asarray(wlev0), blev0=jnp.asarray(blev0),
                    pmat=jnp.asarray(pmat), ps=jnp.asarray(ps),
                    w1blk=jnp.asarray(w1blk), b1col=jnp.asarray(b1col),
                    wlev1=jnp.asarray(wlev1), blev1=jnp.asarray(blev1),
                    wfc0=jnp.asarray(wfc0), wfc1=jnp.asarray(wfc1),
                    bfc=jnp.asarray(bfc))

    # ---- spikes encoder: per-gate LSTM packing, both directions side by side --------
    enc_spks_rnns = {}
    for expt, r in base["encoder_spks"]["rnns"].items():
        n = np.asarray(r["w_ih_f"]).shape[1]
        wih_f = np.zeros((4, n, 2 * RH), f32)
        wih_b = np.zeros((4, n, 2 * RH), f32)
        whh = np.zeros((4, 2 * RH, 2 * RH), f32)
        bias = np.zeros((4, 1, 2 * RH), f32)
        for k in range(4):                                   # torch gate order i, f, g, o
            sl = slice(k * RH, (k + 1) * RH)
            wih_f[k, :, :RH] = np.asarray(r["w_ih_f"], f32)[sl].T
            wih_b[k, :, RH:] = np.asarray(r["w_ih_b"], f32)[sl].T
            whh[k, :RH, :RH] = np.asarray(r["w_hh_f"], f32)[sl].T
            whh[k, RH:, RH:] = np.asarray(r["w_hh_b"], f32)[sl].T
            bias[k, 0, :RH] = np.asarray(r["b_ih_f"], f32)[sl] + np.asarray(r["b_hh_f"], f32)[sl]
            bias[k, 0, RH:] = np.asarray(r["b_ih_b"], f32)[sl] + np.asarray(r["b_hh_b"], f32)[sl]
        enc_spks_rnns[expt] = dict(wih_f=jnp.asarray(wih_f), wih_b=jnp.asarray(wih_b),
                                   whh=jnp.asarray(whh), bias=jnp.asarray(bias))
    # post-LSTM linear consumes h = [h_fwd | h_bwd]; permute its input rows to match
    # torch's h_n.permute(1, 2, 0).reshape(B, -1) (unit-major, direction-minor) layout
    perm = np.concatenate([np.arange(0, 2 * RH, 2), np.arange(1, 2 * RH, 2)])
    enc_spks = dict(
        rnns=enc_spks_rnns,
        wlin=jnp.asarray(np.asarray(base["encoder_spks"]["linear_w"], f32)[perm]),
        blin=jnp.asarray(np.asarray(base["encoder_spks"]["linear_b"], f32).reshape(1, -1)),
        wfc=base["encoder_spks"]["fc12_w"],
        bfc=jnp.asarray(np.asarray(base["encoder_spks"]["fc12_b"], f32).reshape(1, -1)),
    )

    # ---- stimulus decoder: Linear + two stride==kernel ConvTranspose2d as three
    #      lane-dense matmuls (pixel shuffle deferred to one XLA transpose) -----------
    ds = base["decoder_stim"]
    du = cfg["nb_decoder_units"]
    g0 = cfg["decoder_init_grid_size"]
    assert len(du) == 3 and list(cfg["decoder_kernel_sizes"]) == list(cfg["decoder_strides"])
    s1, s2 = cfg["decoder_strides"]
    # re-order the linear's output features from (c0, h, w) to (h, w, c0)
    wlin = np.asarray(ds["linear_w"], f32)
    blin = np.asarray(ds["linear_b"], f32)
    col = np.arange(du[0] * g0 * g0).reshape(du[0], g0 * g0).T.reshape(-1)
    wlin_p = wlin[:, col]
    blin_p = blin[col].reshape(1, -1)
    w1d = np.asarray(ds["ct_w"][0], f32).reshape(du[0], du[1] * s1 * s1)
    w1blk_d = np.kron(np.eye(g0 * g0, dtype=f32), w1d)             # (128, 256)
    w2d = np.asarray(ds["ct_w"][1], f32)                           # (du1, du2, s2, s2)
    blk_out = du[2] * s2 * s2
    m = np.zeros((du[1] * s1 * s1, s1 * s1 * blk_out), f32)        # (16, 32)
    for co1 in range(du[1]):
        for dh in range(s1):
            for dw in range(s1):
                m[co1 * s1 * s1 + dh * s1 + dw,
                  (dh * s1 + dw) * blk_out:(dh * s1 + dw + 1) * blk_out] = w2d[co1].reshape(-1)
    w2blk_d = np.kron(np.eye(g0 * g0, dtype=f32), m)               # (256, 512)
    dec_stim = dict(wlin=jnp.asarray(wlin_p), blin=jnp.asarray(blin_p),
                    w1blk=jnp.asarray(w1blk_d), w2blk=jnp.asarray(w2blk_d))

    # ---- spikes decoder --------------------------------------------------------------
    dk = base["decoder_spks"]
    dec_spks = dict(
        w1=dk["linear_w"],
        b1=jnp.asarray(np.asarray(dk["linear_b"], f32).reshape(1, -1)),
        ln_g=jnp.asarray(np.asarray(dk["ln_g"], f32).reshape(1, -1)),
        ln_b=jnp.asarray(np.asarray(dk["ln_b"], f32).reshape(1, -1)),
        heads={e: (w, jnp.asarray(np.asarray(b, f32).reshape(1, -1)))
               for e, (w, b) in dk["heads"].items()},
    )
    return dict(encoder_stim=enc_stim, encoder_spks=enc_spks,
                decoder_stim=dec_stim, decoder_spks=dec_spks)


# ----------------------------- forward pass ------------------------------------------
def mtnet_forward(pp, cfg, src_stim, src_spks, experiment_name, eps_key):
    slope = cfg["leaky_negative_slope"]
    H = cfg["hidden_size"]
    B = src_stim.shape[0]
    T, G = cfg["time_lags"], cfg["grid_size"]
    kd, kh, kw = cfg["rot_kernel_size"]
    C0 = cfg["nb_rotations"] * cfg["nb_rot_kernels"]

    # ---------- stimulus encoder (1 pallas_call) ----------
    pe = pp["encoder_stim"]
    assert pe["w0blk"].shape[0] == C0 * B, "params were packed for a different batch size"
    x = jnp.transpose(src_stim, (0, 1, 4, 2, 3)).astype(jnp.float32)       # (B,2,T,G,G)
    pd_, ph_, pw_ = kd - 1, kh - 1, kw - 1
    od, oh, ow = _chomp_offsets((kd, kh, kw))
    xp = jnp.pad(x, ((0, 0), (0, 0), (pd_, pd_), (ph_, ph_), (pw_, pw_)))
    # TODO(synk): this rot-conv im2col gather (18 shifted slices, ~150 KiB) stays in XLA
    # as a single fused copy; moving it in-kernel needs strided-volume flattening that
    # Mosaic has no cheap layout for at these sizes.
    taps = [xp[:, :, od + a:od + a + T, oh + i:oh + i + G, ow + j:ow + j + G]
            for a in range(kd) for i in range(kh) for j in range(kw)]
    patches = jnp.stack(taps, axis=2).reshape(B * 2 * kd * kh * kw, T * G * G)
    mulv_stim = pl.pallas_call(
        functools.partial(_stim_enc_kernel, slope=slope, n_ch=C0, batch=B,
                          n_taps=pe["ps"].shape[0]),
        out_shape=jax.ShapeDtypeStruct((B, 2 * H), jnp.float32),
    )(patches, pe["w0blk"], pe["b0col"], pe["wlev0"], pe["blev0"],
      pe["pmat"], pe["ps"], pe["w1blk"], pe["b1col"], pe["wlev1"], pe["blev1"],
      pe["wfc0"], pe["wfc1"], pe["bfc"])

    # ---------- spikes encoder (1 pallas_call) ----------
    psk = pp["encoder_spks"]
    r = psk["rnns"][experiment_name]
    Bs, Ts, n = src_spks.shape
    xs = jnp.swapaxes(src_spks.astype(jnp.float32), 0, 1).reshape(Ts * Bs, n)
    mulv_spks = pl.pallas_call(
        functools.partial(_spks_enc_kernel, T=Ts, B=Bs, RH=cfg["rnn_hidden_size"]),
        out_shape=jax.ShapeDtypeStruct((Bs, 2 * H), jnp.float32),
    )(xs, r["wih_f"], r["wih_b"], r["whh"], r["bias"],
      psk["wlin"], psk["blin"], psk["wfc"], psk["bfc"])

    mu = jnp.concatenate([mulv_stim[:, :H], mulv_spks[:, :H]], axis=-1)
    logvar = jnp.concatenate([mulv_stim[:, H:], mulv_spks[:, H:]], axis=-1)
    # TODO(synk): reparametrize's randn is drawn with jax.random outside the kernels.
    eps = jax.random.normal(eps_key, mu.shape, mu.dtype)

    # ---------- reparametrize + both decoders (1 pallas_call) ----------
    pdst = pp["decoder_stim"]
    pdsp = pp["decoder_spks"]
    hw_, hb_ = pdsp["heads"][experiment_name]
    z, stim_lanes, recon_spks = pl.pallas_call(
        functools.partial(_decoders_kernel, slope=slope, eps_ln=cfg["layer_norm_eps"]),
        out_shape=(jax.ShapeDtypeStruct((B, 2 * H), jnp.float32),
                   jax.ShapeDtypeStruct((B, pdst["w2blk"].shape[1]), jnp.float32),
                   jax.ShapeDtypeStruct((B, hw_.shape[1]), jnp.float32)),
    )(mu, logvar, eps,
      pdst["wlin"], pdst["blin"], pdst["w1blk"], pdst["w2blk"],
      pdsp["w1"], pdsp["b1"], pdsp["ln_g"], pdsp["ln_b"], hw_, hb_)

    # pixel-shuffle the lane-dense ConvDecoder output back to (B, C, H, W) in XLA
    g0 = cfg["decoder_init_grid_size"]
    s1, s2 = cfg["decoder_strides"]
    cout = cfg["nb_decoder_units"][-1]
    recon_stim = stim_lanes.reshape(B, g0, g0, s1, s1, cout, s2, s2)
    recon_stim = recon_stim.transpose(0, 5, 1, 3, 6, 2, 4, 7).reshape(
        B, cout, g0 * s1 * s2, g0 * s1 * s2)
    return (z, mu, logvar), (recon_stim, recon_spks)


# ----------------------------- main ---------------------------------------------------
if __name__ == "__main__":
    cfg = CONFIG
    key = jax.random.PRNGKey(0)
    k_param, k_stim, k_spks, k_eps = jax.random.split(key, 4)

    B = 2
    base = init_base_params(k_param, cfg)
    params = pack_params(base, cfg, batch=B)

    src_stim = jax.random.normal(
        k_stim, (B, 2, cfg["grid_size"], cfg["grid_size"], cfg["time_lags"]), jnp.float32)
    n_cells = len(cfg["useful_cells"]["expt1"])
    seq_len = 8
    src_spks = jax.random.normal(k_spks, (B, seq_len, n_cells), jnp.float32)

    @jax.jit
    def run(params, src_stim, src_spks, eps_key):
        return mtnet_forward(params, cfg, src_stim, src_spks, "expt1", eps_key)

    (z, mu, logvar), (recon_stim, recon_spks) = run(params, src_stim, src_spks, k_eps)
    jax.block_until_ready((z, mu, logvar, recon_stim, recon_spks))

    assert z.shape == (B, 2 * cfg["hidden_size"])
    assert mu.shape == (B, 2 * cfg["hidden_size"])
    assert logvar.shape == (B, 2 * cfg["hidden_size"])
    assert recon_stim.shape == (B, cfg["nb_decoder_units"][-1], 16, 16)
    assert recon_spks.shape == (B, n_cells)
    print("KERNEL_OK")
</pallas_src>

<mosaic_0001>
module attributes {stable_mosaic.version = 11 : i64} {
  func.func @_stim_enc_kernel(%arg0: memref<72x512xf32, #tpu.memory_space<vmem>>, %arg1: memref<16x72xf32, #tpu.memory_space<vmem>>, %arg2: memref<16x1xf32, #tpu.memory_space<vmem>>, %arg3: memref<512x16xf32, #tpu.memory_space<vmem>>, %arg4: memref<1x16xf32, #tpu.memory_space<vmem>>, %arg5: memref<512x64xf32, #tpu.memory_space<vmem>>, %arg6: memref<8x512x64xf32, #tpu.memory_space<vmem>>, %arg7: memref<8x16x16xf32, #tpu.memory_space<vmem>>, %arg8: memref<16x1xf32, #tpu.memory_space<vmem>>, %arg9: memref<64x16xf32, #tpu.memory_space<vmem>>, %arg10: memref<1x16xf32, #tpu.memory_space<vmem>>, %arg11: memref<8x16x32xf32, #tpu.memory_space<vmem>>, %arg12: memref<8x16x32xf32, #tpu.memory_space<vmem>>, %arg13: memref<1x32xf32, #tpu.memory_space<vmem>>, %arg14: memref<2x32xf32, #tpu.memory_space<vmem>>) attributes {dimension_semantics = [], scalar_prefetch = 0 : i64, scratch_operands = 0 : i64, tpu.core_type = #tpu.core_type<tc>} {
    %c0 = arith.constant 0 : index
    %c0_0 = arith.constant 0 : index
    %0 = vector.load %arg1[%c0, %c0_0] : memref<16x72xf32, #tpu.memory_space<vmem>>, vector<16x72xf32>
    %c0_1 = arith.constant 0 : index
    %c0_2 = arith.constant 0 : index
    %1 = vector.load %arg0[%c0_1, %c0_2] : memref<72x512xf32, #tpu.memory_space<vmem>>, vector<72x512xf32>
    %cst = arith.constant dense<0.000000e+00> : vector<16x512xf32>
    %2 = tpu.matmul %0, %1, %cst {dimension_numbers = #tpu.dot_dimension_numbers<[1], [0], [0], [1], [0, 0, 1, 1], [], []>} : vector<16x72xf32>, vector<72x512xf32>, vector<16x512xf32> -> vector<16x512xf32>
    %c0_3 = arith.constant 0 : index
    %c0_4 = arith.constant 0 : index
    %3 = vector.load %arg2[%c0_3, %c0_4] : memref<16x1xf32, #tpu.memory_space<vmem>>, vector<16x1xf32>
    %4 = vector.broadcast %3 : vector<16x1xf32> to vector<16x512xf32>
    %5 = arith.addf %2, %4 : vector<16x512xf32>
    %cst_5 = arith.constant 0.000000e+00 : f32
    %6 = vector.broadcast %cst_5 : f32 to vector<16x512xf32>
    %7 = arith.cmpf oge, %5, %6 : vector<16x512xf32>
    %cst_6 = arith.constant 1.000000e-01 : f32
    %8 = vector.broadcast %cst_6 : f32 to vector<16x512xf32>
    %9 = arith.mulf %8, %5 : vector<16x512xf32>
    %10 = arith.select %7, %5, %9 : vector<16x512xi1>, vector<16x512xf32>
    %c0_7 = arith.constant 0 : index
    %c0_8 = arith.constant 0 : index
    %11 = vector.load %arg3[%c0_7, %c0_8] : memref<512x16xf32, #tpu.memory_space<vmem>>, vector<512x16xf32>
    %cst_9 = arith.constant dense<0.000000e+00> : vector<16x16xf32>
    %12 = tpu.matmul %10, %11, %cst_9 {dimension_numbers = #tpu.dot_dimension_numbers<[1], [0], [0], [1], [0, 0, 1, 1], [], []>} : vector<16x512xf32>, vector<512x16xf32>, vector<16x16xf32> -> vector<16x16xf32>
    %c0_10 = arith.constant 0 : index
    %c0_11 = arith.constant 0 : index
    %13 = vector.load %arg4[%c0_10, %c0_11] : memref<1x16xf32, #tpu.memory_space<vmem>>, vector<1x16xf32>
    %14 = vector.broadcast %13 : vector<1x16xf32> to vector<16x16xf32>
    %15 = arith.addf %12, %14 : vector<16x16xf32>
    %cst_12 = arith.constant 0.000000e+00 : f32
    %16 = vector.broadcast %cst_12 : f32 to vector<16x16xf32>
    %17 = arith.cmpf oge, %15, %16 : vector<16x16xf32>
    %cst_13 = arith.constant 1.000000e-01 : f32
    %18 = vector.broadcast %cst_13 : f32 to vector<16x16xf32>
    %19 = arith.mulf %18, %15 : vector<16x16xf32>
    %20 = arith.select %17, %15, %19 : vector<16x16xi1>, vector<16x16xf32>
    %c0_14 = arith.constant 0 : index
    %c0_15 = arith.constant 0 : index
    %21 = vector.load %arg5[%c0_14, %c0_15] : memref<512x64xf32, #tpu.memory_space<vmem>>, vector<512x64xf32>
    %cst_16 = arith.constant dense<0.000000e+00> : vector<16x64xf32>
    %22 = tpu.matmul %10, %21, %cst_16 {dimension_numbers = #tpu.dot_dimension_numbers<[1], [0], [0], [1], [0, 0, 1, 1], [], []>} : vector<16x512xf32>, vector<512x64xf32>, vector<16x64xf32> -> vector<16x64xf32>
    %cst_17 = arith.constant 0.000000e+00 : f32
    %23 = vector.broadcast %cst_17 : f32 to vector<16x64xf32>
    %c0_18 = arith.constant 0 : index
    %c0_19 = arith.constant 0 : index
    %c0_20 = arith.constant 0 : index
    %24 = vector.load %arg6[%c0_18, %c0_19, %c0_20] : memref<8x512x64xf32, #tpu.memory_space<vmem>>, vector<1x512x64xf32>
    %25 = vector.shape_cast %24 : vector<1x512x64xf32> to vector<512x64xf32>
    %cst_21 = arith.constant dense<0.000000e+00> : vector<16x64xf32>
    %26 = tpu.matmul %10, %25, %cst_21 {dimension_numbers = #tpu.dot_dimension_numbers<[1], [0], [0], [1], [0, 0, 1, 1], [], []>} : vector<16x512xf32>, vector<512x64xf32>, vector<16x64xf32> -> vector<16x64xf32>
    %c0_22 = arith.constant 0 : index
    %c0_23 = arith.constant 0 : index
    %c0_24 = arith.constant 0 : index
    %27 = vector.load %arg7[%c0_22, %c0_23, %c0_24] : memref<8x16x16xf32, #tpu.memory_space<vmem>>, vector<1x16x16xf32>
    %28 = vector.shape_cast %27 : vector<1x16x16xf32> to vector<16x16xf32>
    %cst_25 = arith.constant dense<0.000000e+00> : vector<16x64xf32>
    %29 = tpu.matmul %28, %26, %cst_25 {dimension_numbers = #tpu.dot_dimension_numbers<[1], [0], [0], [1], [0, 0, 1, 1], [], []>} : vector<16x16xf32>, vector<16x64xf32>, vector<16x64xf32> -> vector<16x64xf32>
    %30 = arith.addf %23, %29 : vector<16x64xf32>
    %c1 = arith.constant 1 : index
    %c0_26 = arith.constant 0 : index
    %c0_27 = arith.constant 0 : index
    %31 = vector.load %arg6[%c1, %c0_26, %c0_27] : memref<8x512x64xf32, #tpu.memory_space<vmem>>, vector<1x512x64xf32>
    %32 = vector.shape_cast %31 : vector<1x512x64xf32> to vector<512x64xf32>
    %cst_28 = arith.constant dense<0.000000e+00> : vector<16x64xf32>
    %33 = tpu.matmul %10, %32, %cst_28 {dimension_numbers = #tpu.dot_dimension_numbers<[1], [0], [0], [1], [0, 0, 1, 1], [], []>} : vector<16x512xf32>, vector<512x64xf32>, vector<16x64xf32> -> vector<16x64xf32>
    %c1_29 = arith.constant 1 : index
    %c0_30 = arith.constant 0 : index
    %c0_31 = arith.constant 0 : index
    %34 = vector.load %arg7[%c1_29, %c0_30, %c0_31] : memref<8x16x16xf32, #tpu.memory_space<vmem>>, vector<1x16x16xf32>
    %35 = vector.shape_cast %34 : vector<1x16x16xf32> to vector<16x16xf32>
    %cst_32 = arith.constant dense<0.000000e+00> : vector<16x64xf32>
    %36 = tpu.matmul %35, %33, %cst_32 {dimension_numbers = #tpu.dot_dimension_numbers<[1], [0], [0], [1], [0, 0, 1, 1], [], []>} : vector<16x16xf32>, vector<16x64xf32>, vector<16x64xf32> -> vector<16x64xf32>
    %37 = arith.addf %30, %36 : vector<16x64xf32>
    %c2 = arith.constant 2 : index
    %c0_33 = arith.constant 0 : index
    %c0_34 = arith.constant 0 : index
    %38 = vector.load %arg6[%c2, %c0_33, %c0_34] : memref<8x512x64xf32, #tpu.memory_space<vmem>>, vector<1x512x64xf32>
    %39 = vector.shape_cast %38 : vector<1x512x64xf32> to vector<512x64xf32>
    %cst_35 = arith.constant dense<0.000000e+00> : vector<16x64xf32>
    %40 = tpu.matmul %10, %39, %cst_35 {dimension_numbers = #tpu.dot_dimension_numbers<[1], [0], [0], [1], [0, 0, 1, 1], [], []>} : vector<16x512xf32>, vector<512x64xf32>, vector<16x64xf32> -> vector<16x64xf32>
    %c2_36 = arith.constant 2 : index
    %c0_37 = arith.constant 0 : index
    %c0_38 = arith.constant 0 : index
    %41 = vector.load %arg7[%c2_36, %c0_37, %c0_38] : memref<8x16x16xf32, #tpu.memory_space<vmem>>, vector<1x16x16xf32>
    %42 = vector.shape_cast %41 : vector<1x16x16xf32> to vector<16x16xf32>
    %cst_39 = arith.constant dense<0.000000e+00> : vector<16x64xf32>
    %43 = tpu.matmul %42, %40, %cst_39 {dimension_numbers = #tpu.dot_dimension_numbers<[1], [0], [0], [1], [0, 0, 1, 1], [], []>} : vector<16x16xf32>, vector<16x64xf32>, vector<16x64xf32> -> vector<16x64xf32>
    %44 = arith.addf %37, %43 : vector<16x64xf32>
    %c3 = arith.constant 3 : index
    %c0_40 = arith.constant 0 : index
    %c0_41 = arith.constant 0 : index
    %45 = vector.load %arg6[%c3, %c0_40, %c0_41] : memref<8x512x64xf32, #tpu.memory_space<vmem>>, vector<1x512x64xf32>
    %46 = vector.shape_cast %45 : vector<1x512x64xf32> to vector<512x64xf32>
    %cst_42 = arith.constant dense<0.000000e+00> : vector<16x64xf32>
    %47 = tpu.matmul %10, %46, %cst_42 {dimension_numbers = #tpu.dot_dimension_numbers<[1], [0], [0], [1], [0, 0, 1, 1], [], []>} : vector<16x512xf32>, vector<512x64xf32>, vector<16x64xf32> -> vector<16x64xf32>
    %c3_43 = arith.constant 3 : index
    %c0_44 = arith.constant 0 : index
    %c0_45 = arith.constant 0 : index
    %48 = vector.load %arg7[%c3_43, %c0_44, %c0_45] : memref<8x16x16xf32, #tpu.memory_space<vmem>>, vector<1x16x16xf32>
    %49 = vector.shape_cast %48 : vector<1x16x16xf32> to vector<16x16xf32>
    %cst_46 = arith.constant dense<0.000000e+00> : vector<16x64xf32>
    %50 = tpu.matmul %49, %47, %cst_46 {dimension_numbers = #tpu.dot_dimension_numbers<[1], [0], [0], [1], [0, 0, 1, 1], [], []>} : vector<16x16xf32>, vector<16x64xf32>, vector<16x64xf32> -> vector<16x64xf32>
    %51 = arith.addf %44, %50 : vector<16x64xf32>
    %c4 = arith.constant 4 : index
    %c0_47 = arith.constant 0 : index
    %c0_48 = arith.constant 0 : index
    %52 = vector.load %arg6[%c4, %c0_47, %c0_48] : memref<8x512x64xf32, #tpu.memory_space<vmem>>, vector<1x512x64xf32>
    %53 = vector.shape_cast %52 : vector<1x512x64xf32> to vector<512x64xf32>
    %cst_49 = arith.constant dense<0.000000e+00> : vector<16x64xf32>
    %54 = tpu.matmul %10, %53, %cst_49 {dimension_numbers = #tpu.dot_dimension_numbers<[1], [0], [0], [1], [0, 0, 1, 1], [], []>} : vector<16x512xf32>, vector<512x64xf32>, vector<16x64xf32> -> vector<16x64xf32>
    %c4_50 = arith.constant 4 : index
    %c0_51 = arith.constant 0 : index
    %c0_52 = arith.constant 0 : index
    %55 = vector.load %arg7[%c4_50, %c0_51, %c0_52] : memref<8x16x16xf32, #tpu.memory_space<vmem>>, vector<1x16x16xf32>
    %56 = vector.shape_cast %55 : vector<1x16x16xf32> to vector<16x16xf32>
    %cst_53 = arith.constant dense<0.000000e+00> : vector<16x64xf32>
    %57 = tpu.matmul %56, %54, %cst_53 {dimension_numbers = #tpu.dot_dimension_numbers<[1], [0], [0], [1], [0, 0, 1, 1], [], []>} : vector<16x16xf32>, vector<16x64xf32>, vector<16x64xf32> -> vector<16x64xf32>
    %58 = arith.addf %51, %57 : vector<16x64xf32>
    %c5 = arith.constant 5 : index
    %c0_54 = arith.constant 0 : index
    %c0_55 = arith.constant 0 : index
    %59 = vector.load %arg6[%c5, %c0_54, %c0_55] : memref<8x512x64xf32, #tpu.memory_space<vmem>>, vector<1x512x64xf32>
    %60 = vector.shape_cast %59 : vector<1x512x64xf32> to vector<512x64xf32>
    %cst_56 = arith.constant dense<0.000000e+00> : vector<16x64xf32>
    %61 = tpu.matmul %10, %60, %cst_56 {dimension_numbers = #tpu.dot_dimension_numbers<[1], [0], [0], [1], [0, 0, 1, 1], [], []>} : vector<16x512xf32>, vector<512x64xf32>, vector<16x64xf32> -> vector<16x64xf32>
    %c5_57 = arith.constant 5 : index
    %c0_58 = arith.constant 0 : index
    %c0_59 = arith.constant 0 : index
    %62 = vector.load %arg7[%c5_57, %c0_58, %c0_59] : memref<8x16x16xf32, #tpu.memory_space<vmem>>, vector<1x16x16xf32>
    %63 = vector.shape_cast %62 : vector<1x16x16xf32> to vector<16x16xf32>
    %cst_60 = arith.constant dense<0.000000e+00> : vector<16x64xf32>
    %64 = tpu.matmul %63, %61, %cst_60 {dimension_numbers = #tpu.dot_dimension_numbers<[1], [0], [0], [1], [0, 0, 1, 1], [], []>} : vector<16x16xf32>, vector<16x64xf32>, vector<16x64xf32> -> vector<16x64xf32>
    %65 = arith.addf %58, %64 : vector<16x64xf32>
    %c6 = arith.constant 6 : index
    %c0_61 = arith.constant 0 : index
    %c0_62 = arith.constant 0 : index
    %66 = vector.load %arg6[%c6, %c0_61, %c0_62] : memref<8x512x64xf32, #tpu.memory_space<vmem>>, vector<1x512x64xf32>
    %67 = vector.shape_cast %66 : vector<1x512x64xf32> to vector<512x64xf32>
    %cst_63 = arith.constant dense<0.000000e+00> : vector<16x64xf32>
    %68 = tpu.matmul %10, %67, %cst_63 {dimension_numbers = #tpu.dot_dimension_numbers<[1], [0], [0], [1], [0, 0, 1, 1], [], []>} : vector<16x512xf32>, vector<512x64xf32>, vector<16x64xf32> -> vector<16x64xf32>
    %c6_64 = arith.constant 6 : index
    %c0_65 = arith.constant 0 : index
    %c0_66 = arith.constant 0 : index
    %69 = vector.load %arg7[%c6_64, %c0_65, %c0_66] : memref<8x16x16xf32, #tpu.memory_space<vmem>>, vector<1x16x16xf32>
    %70 = vector.shape_cast %69 : vector<1x16x16xf32> to vector<16x16xf32>
    %cst_67 = arith.constant dense<0.000000e+00> : vector<16x64xf32>
    %71 = tpu.matmul %70, %68, %cst_67 {dimension_numbers = #tpu.dot_dimension_numbers<[1], [0], [0], [1], [0, 0, 1, 1], [], []>} : vector<16x16xf32>, vector<16x64xf32>, vector<16x64xf32> -> vector<16x64xf32>
    %72 = arith.addf %65, %71 : vector<16x64xf32>
    %c7 = arith.constant 7 : index
    %c0_68 = arith.constant 0 : index
    %c0_69 = arith.constant 0 : index
    %73 = vector.load %arg6[%c7, %c0_68, %c0_69] : memref<8x512x64xf32, #tpu.memory_space<vmem>>, vector<1x512x64xf32>
    %74 = vector.shape_cast %73 : vector<1x512x64xf32> to vector<512x64xf32>
    %cst_70 = arith.constant dense<0.000000e+00> : vector<16x64xf32>
    %75 = tpu.matmul %10, %74, %cst_70 {dimension_numbers = #tpu.dot_dimension_numbers<[1], [0], [0], [1], [0, 0, 1, 1], [], []>} : vector<16x512xf32>, vector<512x64xf32>, vector<16x64xf32> -> vector<16x64xf32>
    %c7_71 = arith.constant 7 : index
    %c0_72 = arith.constant 0 : index
    %c0_73 = arith.constant 0 : index
    %76 = vector.load %arg7[%c7_71, %c0_72, %c0_73] : memref<8x16x16xf32, #tpu.memory_space<vmem>>, vector<1x16x16xf32>
    %77 = vector.shape_cast %76 : vector<1x16x16xf32> to vector<16x16xf32>
    %cst_74 = arith.constant dense<0.000000e+00> : vector<16x64xf32>
    %78 = tpu.matmul %77, %75, %cst_74 {dimension_numbers = #tpu.dot_dimension_numbers<[1], [0], [0], [1], [0, 0, 1, 1], [], []>} : vector<16x16xf32>, vector<16x64xf32>, vector<16x64xf32> -> vector<16x64xf32>
    %79 = arith.addf %72, %78 : vector<16x64xf32>
    %c0_75 = arith.constant 0 : index
    %c0_76 = arith.constant 0 : index
    %80 = vector.load %arg8[%c0_75, %c0_76] : memref<16x1xf32, #tpu.memory_space<vmem>>, vector<16x1xf32>
    %81 = vector.broadcast %80 : vector<16x1xf32> to vector<16x64xf32>
    %82 = arith.addf %79, %81 : vector<16x64xf32>
    %83 = arith.addf %82, %22 : vector<16x64xf32>
    %cst_77 = arith.constant 0.000000e+00 : f32
    %84 = vector.broadcast %cst_77 : f32 to vector<16x64xf32>
    %85 = arith.cmpf oge, %83, %84 : vector<16x64xf32>
    %cst_78 = arith.constant 1.000000e-01 : f32
    %86 = vector.broadcast %cst_78 : f32 to vector<16x64xf32>
    %87 = arith.mulf %86, %83 : vector<16x64xf32>
    %88 = arith.select %85, %83, %87 : vector<16x64xi1>, vector<16x64xf32>
    %c0_79 = arith.constant 0 : index
    %c0_80 = arith.constant 0 : index
    %89 = vector.load %arg9[%c0_79, %c0_80] : memref<64x16xf32, #tpu.memory_space<vmem>>, vector<64x16xf32>
    %cst_81 = arith.constant dense<0.000000e+00> : vector<16x16xf32>
    %90 = tpu.matmul %88, %89, %cst_81 {dimension_numbers = #tpu.dot_dimension_numbers<[1], [0], [0], [1], [0, 0, 1, 1], [], []>} : vector<16x64xf32>, vector<64x16xf32>, vector<16x16xf32> -> vector<16x16xf32>
    %c0_82 = arith.constant 0 : index
    %c0_83 = arith.constant 0 : index
    %91 = vector.load %arg10[%c0_82, %c0_83] : memref<1x16xf32, #tpu.memory_space<vmem>>, vector<1x16xf32>
    %92 = vector.broadcast %91 : vector<1x16xf32> to vector<16x16xf32>
    %93 = arith.addf %90, %92 : vector<16x16xf32>
    %cst_84 = arith.constant 0.000000e+00 : f32
    %94 = vector.broadcast %cst_84 : f32 to vector<16x16xf32>
    %95 = arith.cmpf oge, %93, %94 : vector<16x16xf32>
    %cst_85 = arith.constant 1.000000e-01 : f32
    %96 = vector.broadcast %cst_85 : f32 to vector<16x16xf32>
    %97 = arith.mulf %96, %93 : vector<16x16xf32>
    %98 = arith.select %95, %93, %97 : vector<16x16xi1>, vector<16x16xf32>
    %cst_86 = arith.constant 0.000000e+00 : f32
    %99 = vector.broadcast %cst_86 : f32 to vector<2x32xf32>
    %100 = vector.extract_strided_slice %20 {offsets = [0, 0], sizes = [2, 16], strides = [1, 1]} : vector<16x16xf32> to vector<2x16xf32>
    %c0_87 = arith.constant 0 : index
    %c0_88 = arith.constant 0 : index
    %c0_89 = arith.constant 0 : index
    %101 = vector.load %arg11[%c0_87, %c0_88, %c0_89] : memref<8x16x32xf32, #tpu.memory_space<vmem>>, vector<1x16x32xf32>
    %102 = vector.shape_cast %101 : vector<1x16x32xf32> to vector<16x32xf32>
    %cst_90 = arith.constant dense<0.000000e+00> : vector<2x32xf32>
    %103 = tpu.matmul %100, %102, %cst_90 {dimension_numbers = #tpu.dot_dimension_numbers<[1], [0], [0], [1], [0, 0, 1, 1], [], []>} : vector<2x16xf32>, vector<16x32xf32>, vector<2x32xf32> -> vector<2x32xf32>
    %104 = arith.addf %99, %103 : vector<2x32xf32>
    %105 = vector.extract_strided_slice %98 {offsets = [0, 0], sizes = [2, 16], strides = [1, 1]} : vector<16x16xf32> to vector<2x16xf32>
    %c0_91 = arith.constant 0 : index
    %c0_92 = arith.constant 0 : index
    %c0_93 = arith.constant 0 : index
    %106 = vector.load %arg12[%c0_91, %c0_92, %c0_93] : memref<8x16x32xf32, #tpu.memory_space<vmem>>, vector<1x16x32xf32>
    %107 = vector.shape_cast %106 : vector<1x16x32xf32> to vector<16x32xf32>
    %cst_94 = arith.constant dense<0.000000e+00> : vector<2x32xf32>
    %108 = tpu.matmul %105, %107, %cst_94 {dimension_numbers = #tpu.dot_dimension_numbers<[1], [0], [0], [1], [0, 0, 1, 1], [], []>} : vector<2x16xf32>, vector<16x32xf32>, vector<2x32xf32> -> vector<2x32xf32>
    %109 = arith.addf %104, %108 : vector<2x32xf32>
    %110 = vector.extract_strided_slice %20 {offsets = [2, 0], sizes = [2, 16], strides = [1, 1]} : vector<16x16xf32> to vector<2x16xf32>
    %c1_95 = arith.constant 1 : index
    %c0_96 = arith.constant 0 : index
    %c0_97 = arith.constant 0 : index
    %111 = vector.load %arg11[%c1_95, %c0_96, %c0_97] : memref<8x16x32xf32, #tpu.memory_space<vmem>>, vector<1x16x32xf32>
    %112 = vector.shape_cast %111 : vector<1x16x32xf32> to vector<16x32xf32>
    %cst_98 = arith.constant dense<0.000000e+00> : vector<2x32xf32>
    %113 = tpu.matmul %110, %112, %cst_98 {dimension_numbers = #tpu.dot_dimension_numbers<[1], [0], [0], [1], [0, 0, 1, 1], [], []>} : vector<2x16xf32>, vector<16x32xf32>, vector<2x32xf32> -> vector<2x32xf32>
    %114 = arith.addf %109, %113 : vector<2x32xf32>
    %115 = vector.extract_strided_slice %98 {offsets = [2, 0], sizes = [2, 16], strides = [1, 1]} : vector<16x16xf32> to vector<2x16xf32>
    %c1_99 = arith.constant 1 : index
    %c0_100 = arith.constant 0 : index
    %c0_101 = arith.constant 0 : index
    %116 = vector.load %arg12[%c1_99, %c0_100, %c0_101] : memref<8x16x32xf32, #tpu.memory_space<vmem>>, vector<1x16x32xf32>
    %117 = vector.shape_cast %116 : vector<1x16x32xf32> to vector<16x32xf32>
    %cst_102 = arith.constant dense<0.000000e+00> : vector<2x32xf32>
    %118 = tpu.matmul %115, %117, %cst_102 {dimension_numbers = #tpu.dot_dimension_numbers<[1], [0], [0], [1], [0, 0, 1, 1], [], []>} : vector<2x16xf32>, vector<16x32xf32>, vector<2x32xf32> -> vector<2x32xf32>
    %119 = arith.addf %114, %118 : vector<2x32xf32>
    %120 = vector.extract_strided_slice %20 {offsets = [4, 0], sizes = [2, 16], strides = [1, 1]} : vector<16x16xf32> to vector<2x16xf32>
    %c2_103 = arith.constant 2 : index
    %c0_104 = arith.constant 0 : index
    %c0_105 = arith.constant 0 : index
    %121 = vector.load %arg11[%c2_103, %c0_104, %c0_105] : memref<8x16x32xf32, #tpu.memory_space<vmem>>, vector<1x16x32xf32>
    %122 = vector.shape_cast %121 : vector<1x16x32xf32> to vector<16x32xf32>
    %cst_106 = arith.constant dense<0.000000e+00> : vector<2x32xf32>
    %123 = tpu.matmul %120, %122, %cst_106 {dimension_numbers = #tpu.dot_dimension_numbers<[1], [0], [0], [1], [0, 0, 1, 1], [], []>} : vector<2x16xf32>, vector<16x32xf32>, vector<2x32xf32> -> vector<2x32xf32>
    %124 = arith.addf %119, %123 : vector<2x32xf32>
    %125 = vector.extract_strided_slice %98 {offsets = [4, 0], sizes = [2, 16], strides = [1, 1]} : vector<16x16xf32> to vector<2x16xf32>
    %c2_107 = arith.constant 2 : index
    %c0_108 = arith.constant 0 : index
    %c0_109 = arith.constant 0 : index
    %126 = vector.load %arg12[%c2_107, %c0_108, %c0_109] : memref<8x16x32xf32, #tpu.memory_space<vmem>>, vector<1x16x32xf32>
    %127 = vector.shape_cast %126 : vector<1x16x32xf32> to vector<16x32xf32>
    %cst_110 = arith.constant dense<0.000000e+00> : vector<2x32xf32>
    %128 = tpu.matmul %125, %127, %cst_110 {dimension_numbers = #tpu.dot_dimension_numbers<[1], [0], [0], [1], [0, 0, 1, 1], [], []>} : vector<2x16xf32>, vector<16x32xf32>, vector<2x32xf32> -> vector<2x32xf32>
    %129 = arith.addf %124, %128 : vector<2x32xf32>
    %130 = vector.extract_strided_slice %20 {offsets = [6, 0], sizes = [2, 16], strides = [1, 1]} : vector<16x16xf32> to vector<2x16xf32>
    %c3_111 = arith.constant 3 : index
    %c0_112 = arith.constant 0 : index
    %c0_113 = arith.constant 0 : index
    %131 = vector.load %arg11[%c3_111, %c0_112, %c0_113] : memref<8x16x32xf32, #tpu.memory_space<vmem>>, vector<1x16x32xf32>
    %132 = vector.shape_cast %131 : vector<1x16x32xf32> to vector<16x32xf32>
    %cst_114 = arith.constant dense<0.000000e+00> : vector<2x32xf32>
    %133 = tpu.matmul %130, %132, %cst_114 {dimension_numbers = #tpu.dot_dimension_numbers<[1], [0], [0], [1], [0, 0, 1, 1], [], []>} : vector<2x16xf32>, vector<16x32xf32>, vector<2x32xf32> -> vector<2x32xf32>
    %134 = arith.addf %129, %133 : vector<2x32xf32>
    %135 = vector.extract_strided_slice %98 {offsets = [6, 0], sizes = [2, 16], strides = [1, 1]} : vector<16x16xf32> to vector<2x16xf32>
    %c3_115 = arith.constant 3 : index
    %c0_116 = arith.constant 0 : index
    %c0_117 = arith.constant 0 : index
    %136 = vector.load %arg12[%c3_115, %c0_116, %c0_117] : memref<8x16x32xf32, #tpu.memory_space<vmem>>, vector<1x16x32xf32>
    %137 = vector.shape_cast %136 : vector<1x16x32xf32> to vector<16x32xf32>
    %cst_118 = arith.constant dense<0.000000e+00> : vector<2x32xf32>
    %138 = tpu.matmul %135, %137, %cst_118 {dimension_numbers = #tpu.dot_dimension_numbers<[1], [0], [0], [1], [0, 0, 1, 1], [], []>} : vector<2x16xf32>, vector<16x32xf32>, vector<2x32xf32> -> vector<2x32xf32>
    %139 = arith.addf %134, %138 : vector<2x32xf32>
    %140 = vector.extract_strided_slice %20 {offsets = [8, 0], sizes = [2, 16], strides = [1, 1]} : vector<16x16xf32> to vector<2x16xf32>
    %c4_119 = arith.constant 4 : index
    %c0_120 = arith.constant 0 : index
    %c0_121 = arith.constant 0 : index
    %141 = vector.load %arg11[%c4_119, %c0_120, %c0_121] : memref<8x16x32xf32, #tpu.memory_space<vmem>>, vector<1x16x32xf32>
    %142 = vector.shape_cast %141 : vector<1x16x32xf32> to vector<16x32xf32>
    %cst_122 = arith.constant dense<0.000000e+00> : vector<2x32xf32>
    %143 = tpu.matmul %140, %142, %cst_122 {dimension_numbers = #tpu.dot_dimension_numbers<[1], [0], [0], [1], [0, 0, 1, 1], [], []>} : vector<2x16xf32>, vector<16x32xf32>, vector<2x32xf32> -> vector<2x32xf32>
    %144 = arith.addf %139, %143 : vector<2x32xf32>
    %145 = vector.extract_strided_slice %98 {offsets = [8, 0], sizes = [2, 16], strides = [1, 1]} : vector<16x16xf32> to vector<2x16xf32>
    %c4_123 = arith.constant 4 : index
    %c0_124 = arith.constant 0 : index
    %c0_125 = arith.constant 0 : index
    %146 = vector.load %arg12[%c4_123, %c0_124, %c0_125] : memref<8x16x32xf32, #tpu.memory_space<vmem>>, vector<1x16x32xf32>
    %147 = vector.shape_cast %146 : vector<1x16x32xf32> to vector<16x32xf32>
    %cst_126 = arith.constant dense<0.000000e+00> : vector<2x32xf32>
    %148 = tpu.matmul %145, %147, %cst_126 {dimension_numbers = #tpu.dot_dimension_numbers<[1], [0], [0], [1], [0, 0, 1, 1], [], []>} : vector<2x16xf32>, vector<16x32xf32>, vector<2x32xf32> -> vector<2x32xf32>
    %149 = arith.addf %144, %148 : vector<2x32xf32>
    %150 = vector.extract_strided_slice %20 {offsets = [10, 0], sizes = [2, 16], strides = [1, 1]} : vector<16x16xf32> to vector<2x16xf32>
    %c5_127 = arith.constant 5 : index
    %c0_128 = arith.constant 0 : index
    %c0_129 = arith.constant 0 : index
    %151 = vector.load %arg11[%c5_127, %c0_128, %c0_129] : memref<8x16x32xf32, #tpu.memory_space<vmem>>, vector<1x16x32xf32>
    %152 = vector.shape_cast %151 : vector<1x16x32xf32> to vector<16x32xf32>
    %cst_130 = arith.constant dense<0.000000e+00> : vector<2x32xf32>
    %153 = tpu.matmul %150, %152, %cst_130 {dimension_numbers = #tpu.dot_dimension_numbers<[1], [0], [0], [1], [0, 0, 1, 1], [], []>} : vector<2x16xf32>, vector<16x32xf32>, vector<2x32xf32> -> vector<2x32xf32>
    %154 = arith.addf %149, %153 : vector<2x32xf32>
    %155 = vector.extract_strided_slice %98 {offsets = [10, 0], sizes = [2, 16], strides = [1, 1]} : vector<16x16xf32> to vector<2x16xf32>
    %c5_131 = arith.constant 5 : index
    %c0_132 = arith.constant 0 : index
    %c0_133 = arith.constant 0 : index
    %156 = vector.load %arg12[%c5_131, %c0_132, %c0_133] : memref<8x16x32xf32, #tpu.memory_space<vmem>>, vector<1x16x32xf32>
    %157 = vector.shape_cast %156 : vector<1x16x32xf32> to vector<16x32xf32>
    %cst_134 = arith.constant dense<0.000000e+00> : vector<2x32xf32>
    %158 = tpu.matmul %155, %157, %cst_134 {dimension_numbers = #tpu.dot_dimension_numbers<[1], [0], [0], [1], [0, 0, 1, 1], [], []>} : vector<2x16xf32>, vector<16x32xf32>, vector<2x32xf32> -> vector<2x32xf32>
    %159 = arith.addf %154, %158 : vector<2x32xf32>
    %160 = vector.extract_strided_slice %20 {offsets = [12, 0], sizes = [2, 16], strides = [1, 1]} : vector<16x16xf32> to vector<2x16xf32>
    %c6_135 = arith.constant 6 : index
    %c0_136 = arith.constant 0 : index
    %c0_137 = arith.constant 0 : index
    %161 = vector.load %arg11[%c6_135, %c0_136, %c0_137] : memref<8x16x32xf32, #tpu.memory_space<vmem>>, vector<1x16x32xf32>
    %162 = vector.shape_cast %161 : vector<1x16x32xf32> to vector<16x32xf32>
    %cst_138 = arith.constant dense<0.000000e+00> : vector<2x32xf32>
    %163 = tpu.matmul %160, %162, %cst_138 {dimension_numbers = #tpu.dot_dimension_numbers<[1], [0], [0], [1], [0, 0, 1, 1], [], []>} : vector<2x16xf32>, vector<16x32xf32>, vector<2x32xf32> -> vector<2x32xf32>
    %164 = arith.addf %159, %163 : vector<2x32xf32>
    %165 = vector.extract_strided_slice %98 {offsets = [12, 0], sizes = [2, 16], strides = [1, 1]} : vector<16x16xf32> to vector<2x16xf32>
    %c6_139 = arith.constant 6 : index
    %c0_140 = arith.constant 0 : index
    %c0_141 = arith.constant 0 : index
    %166 = vector.load %arg12[%c6_139, %c0_140, %c0_141] : memref<8x16x32xf32, #tpu.memory_space<vmem>>, vector<1x16x32xf32>
    %167 = vector.shape_cast %166 : vector<1x16x32xf32> to vector<16x32xf32>
    %cst_142 = arith.constant dense<0.000000e+00> : vector<2x32xf32>
    %168 = tpu.matmul %165, %167, %cst_142 {dimension_numbers = #tpu.dot_dimension_numbers<[1], [0], [0], [1], [0, 0, 1, 1], [], []>} : vector<2x16xf32>, vector<16x32xf32>, vector<2x32xf32> -> vector<2x32xf32>
    %169 = arith.addf %164, %168 : vector<2x32xf32>
    %170 = vector.extract_strided_slice %20 {offsets = [14, 0], sizes = [2, 16], strides = [1, 1]} : vector<16x16xf32> to vector<2x16xf32>
    %c7_143 = arith.constant 7 : index
    %c0_144 = arith.constant 0 : index
    %c0_145 = arith.constant 0 : index
    %171 = vector.load %arg11[%c7_143, %c0_144, %c0_145] : memref<8x16x32xf32, #tpu.memory_space<vmem>>, vector<1x16x32xf32>
    %172 = vector.shape_cast %171 : vector<1x16x32xf32> to vector<16x32xf32>
    %cst_146 = arith.constant dense<0.000000e+00> : vector<2x32xf32>
    %173 = tpu.matmul %170, %172, %cst_146 {dimension_numbers = #tpu.dot_dimension_numbers<[1], [0], [0], [1], [0, 0, 1, 1], [], []>} : vector<2x16xf32>, vector<16x32xf32>, vector<2x32xf32> -> vector<2x32xf32>
    %174 = arith.addf %169, %173 : vector<2x32xf32>
    %175 = vector.extract_strided_slice %98 {offsets = [14, 0], sizes = [2, 16], strides = [1, 1]} : vector<16x16xf32> to vector<2x16xf32>
    %c7_147 = arith.constant 7 : index
    %c0_148 = arith.constant 0 : index
    %c0_149 = arith.constant 0 : index
    %176 = vector.load %arg12[%c7_147, %c0_148, %c0_149] : memref<8x16x32xf32, #tpu.memory_space<vmem>>, vector<1x16x32xf32>
    %177 = vector.shape_cast %176 : vector<1x16x32xf32> to vector<16x32xf32>
    %cst_150 = arith.constant dense<0.000000e+00> : vector<2x32xf32>
    %178 = tpu.matmul %175, %177, %cst_150 {dimension_numbers = #tpu.dot_dimension_numbers<[1], [0], [0], [1], [0, 0, 1, 1], [], []>} : vector<2x16xf32>, vector<16x32xf32>, vector<2x32xf32> -> vector<2x32xf32>
    %179 = arith.addf %174, %178 : vector<2x32xf32>
    %c0_151 = arith.constant 0 : index
    %c0_152 = arith.constant 0 : index
    %180 = vector.load %arg13[%c0_151, %c0_152] : memref<1x32xf32, #tpu.memory_space<vmem>>, vector<1x32xf32>
    %181 = vector.broadcast %180 : vector<1x32xf32> to vector<2x32xf32>
    %182 = arith.addf %179, %181 : vector<2x32xf32>
    %c0_153 = arith.constant 0 : index
    %c0_154 = arith.constant 0 : index
    %183 = vector.load %arg14[%c0_153, %c0_154] : memref<2x32xf32, #tpu.memory_space<vmem>>, vector<2x32xf32>
    tpu.vector_store %arg14[%c0_153, %c0_154], %182 {strides = array<i32>} : memref<2x32xf32, #tpu.memory_space<vmem>>, vector<2x32xf32>,
    return
  }
}

module attributes {stable_mosaic.version = 11 : i64} {
  func.func @_spks_enc_kernel(%arg0: memref<16x6xf32, #tpu.memory_space<vmem>>, %arg1: memref<4x6x32xf32, #tpu.memory_space<vmem>>, %arg2: memref<4x6x32xf32, #tpu.memory_space<vmem>>, %arg3: memref<4x32x32xf32, #tpu.memory_space<vmem>>, %arg4: memref<4x1x32xf32, #tpu.memory_space<vmem>>, %arg5: memref<32x64xf32, #tpu.memory_space<vmem>>, %arg6: memref<1x64xf32, #tpu.memory_space<vmem>>, %arg7: memref<64x32xf32, #tpu.memory_space<vmem>>, %arg8: memref<1x32xf32, #tpu.memory_space<vmem>>, %arg9: memref<2x32xf32, #tpu.memory_space<vmem>>) attributes {dimension_semantics = [], scalar_prefetch = 0 : i64, scratch_operands = 0 : i64, tpu.core_type = #tpu.core_type<tc>} {
    %c0 = arith.constant 0 : index
    %c0_0 = arith.constant 0 : index
    %0 = vector.load %arg0[%c0, %c0_0] : memref<16x6xf32, #tpu.memory_space<vmem>>, vector<16x6xf32>
    %c0_1 = arith.constant 0 : index
    %c0_2 = arith.constant 0 : index
    %c0_3 = arith.constant 0 : index
    %1 = vector.load %arg1[%c0_1, %c0_2, %c0_3] : memref<4x6x32xf32, #tpu.memory_space<vmem>>, vector<1x6x32xf32>
    %2 = vector.shape_cast %1 : vector<1x6x32xf32> to vector<6x32xf32>
    %cst = arith.constant dense<0.000000e+00> : vector<16x32xf32>
    %3 = tpu.matmul %0, %2, %cst {dimension_numbers = #tpu.dot_dimension_numbers<[1], [0], [0], [1], [0, 0, 1, 1], [], []>} : vector<16x6xf32>, vector<6x32xf32>, vector<16x32xf32> -> vector<16x32xf32>
    %c1 = arith.constant 1 : index
    %c0_4 = arith.constant 0 : index
    %c0_5 = arith.constant 0 : index
    %4 = vector.load %arg1[%c1, %c0_4, %c0_5] : memref<4x6x32xf32, #tpu.memory_space<vmem>>, vector<1x6x32xf32>
    %5 = vector.shape_cast %4 : vector<1x6x32xf32> to vector<6x32xf32>
    %cst_6 = arith.constant dense<0.000000e+00> : vector<16x32xf32>
    %6 = tpu.matmul %0, %5, %cst_6 {dimension_numbers = #tpu.dot_dimension_numbers<[1], [0], [0], [1], [0, 0, 1, 1], [], []>} : vector<16x6xf32>, vector<6x32xf32>, vector<16x32xf32> -> vector<16x32xf32>
    %c2 = arith.constant 2 : index
    %c0_7 = arith.constant 0 : index
    %c0_8 = arith.constant 0 : index
    %7 = vector.load %arg1[%c2, %c0_7, %c0_8] : memref<4x6x32xf32, #tpu.memory_space<vmem>>, vector<1x6x32xf32>
    %8 = vector.shape_cast %7 : vector<1x6x32xf32> to vector<6x32xf32>
    %cst_9 = arith.constant dense<0.000000e+00> : vector<16x32xf32>
    %9 = tpu.matmul %0, %8, %cst_9 {dimension_numbers = #tpu.dot_dimension_numbers<[1], [0], [0], [1], [0, 0, 1, 1], [], []>} : vector<16x6xf32>, vector<6x32xf32>, vector<16x32xf32> -> vector<16x32xf32>
    %c3 = arith.constant 3 : index
    %c0_10 = arith.constant 0 : index
    %c0_11 = arith.constant 0 : index
    %10 = vector.load %arg1[%c3, %c0_10, %c0_11] : memref<4x6x32xf32, #tpu.memory_space<vmem>>, vector<1x6x32xf32>
    %11 = vector.shape_cast %10 : vector<1x6x32xf32> to vector<6x32xf32>
    %cst_12 = arith.constant dense<0.000000e+00> : vector<16x32xf32>
    %12 = tpu.matmul %0, %11, %cst_12 {dimension_numbers = #tpu.dot_dimension_numbers<[1], [0], [0], [1], [0, 0, 1, 1], [], []>} : vector<16x6xf32>, vector<6x32xf32>, vector<16x32xf32> -> vector<16x32xf32>
    %c0_13 = arith.constant 0 : index
    %c0_14 = arith.constant 0 : index
    %c0_15 = arith.constant 0 : index
    %13 = vector.load %arg2[%c0_13, %c0_14, %c0_15] : memref<4x6x32xf32, #tpu.memory_space<vmem>>, vector<1x6x32xf32>
    %14 = vector.shape_cast %13 : vector<1x6x32xf32> to vector<6x32xf32>
    %cst_16 = arith.constant dense<0.000000e+00> : vector<16x32xf32>
    %15 = tpu.matmul %0, %14, %cst_16 {dimension_numbers = #tpu.dot_dimension_numbers<[1], [0], [0], [1], [0, 0, 1, 1], [], []>} : vector<16x6xf32>, vector<6x32xf32>, vector<16x32xf32> -> vector<16x32xf32>
    %c1_17 = arith.constant 1 : index
    %c0_18 = arith.constant 0 : index
    %c0_19 = arith.constant 0 : index
    %16 = vector.load %arg2[%c1_17, %c0_18, %c0_19] : memref<4x6x32xf32, #tpu.memory_space<vmem>>, vector<1x6x32xf32>
    %17 = vector.shape_cast %16 : vector<1x6x32xf32> to vector<6x32xf32>
    %cst_20 = arith.constant dense<0.000000e+00> : vector<16x32xf32>
    %18 = tpu.matmul %0, %17, %cst_20 {dimension_numbers = #tpu.dot_dimension_numbers<[1], [0], [0], [1], [0, 0, 1, 1], [], []>} : vector<16x6xf32>, vector<6x32xf32>, vector<16x32xf32> -> vector<16x32xf32>
    %c2_21 = arith.constant 2 : index
    %c0_22 = arith.constant 0 : index
    %c0_23 = arith.constant 0 : index
    %19 = vector.load %arg2[%c2_21, %c0_22, %c0_23] : memref<4x6x32xf32, #tpu.memory_space<vmem>>, vector<1x6x32xf32>
    %20 = vector.shape_cast %19 : vector<1x6x32xf32> to vector<6x32xf32>
    %cst_24 = arith.constant dense<0.000000e+00> : vector<16x32xf32>
    %21 = tpu.matmul %0, %20, %cst_24 {dimension_numbers = #tpu.dot_dimension_numbers<[1], [0], [0], [1], [0, 0, 1, 1], [], []>} : vector<16x6xf32>, vector<6x32xf32>, vector<16x32xf32> -> vector<16x32xf32>
    %c3_25 = arith.constant 3 : index
    %c0_26 = arith.constant 0 : index
    %c0_27 = arith.constant 0 : index
    %22 = vector.load %arg2[%c3_25, %c0_26, %c0_27] : memref<4x6x32xf32, #tpu.memory_space<vmem>>, vector<1x6x32xf32>
    %23 = vector.shape_cast %22 : vector<1x6x32xf32> to vector<6x32xf32>
    %cst_28 = arith.constant dense<0.000000e+00> : vector<16x32xf32>
    %24 = tpu.matmul %0, %23, %cst_28 {dimension_numbers = #tpu.dot_dimension_numbers<[1], [0], [0], [1], [0, 0, 1, 1], [], []>} : vector<16x6xf32>, vector<6x32xf32>, vector<16x32xf32> -> vector<16x32xf32>
    %cst_29 = arith.constant 0.000000e+00 : f32
    %25 = vector.broadcast %cst_29 : f32 to vector<2x32xf32>
    %cst_30 = arith.constant 0.000000e+00 : f32
    %26 = vector.broadcast %cst_30 : f32 to vector<2x32xf32>
    %27 = vector.extract_strided_slice %3 {offsets = [0, 0], sizes = [2, 32], strides = [1, 1]} : vector<16x32xf32> to vector<2x32xf32>
    %28 = vector.extract_strided_slice %15 {offsets = [14, 0], sizes = [2, 32], strides = [1, 1]} : vector<16x32xf32> to vector<2x32xf32>
    %29 = arith.addf %27, %28 : vector<2x32xf32>
    %c0_31 = arith.constant 0 : index
    %c0_32 = arith.constant 0 : index
    %c0_33 = arith.constant 0 : index
    %30 = vector.load %arg4[%c0_31, %c0_32, %c0_33] : memref<4x1x32xf32, #tpu.memory_space<vmem>>, vector<1x1x32xf32>
    %31 = vector.shape_cast %30 : vector<1x1x32xf32> to vector<1x32xf32>
    %32 = vector.broadcast %31 : vector<1x32xf32> to vector<2x32xf32>
    %33 = arith.addf %29, %32 : vector<2x32xf32>
    %c0_34 = arith.constant 0 : index
    %c0_35 = arith.constant 0 : index
    %c0_36 = arith.constant 0 : index
    %34 = vector.load %arg3[%c0_34, %c0_35, %c0_36] : memref<4x32x32xf32, #tpu.memory_space<vmem>>, vector<1x32x32xf32>
    %35 = vector.shape_cast %34 : vector<1x32x32xf32> to vector<32x32xf32>
    %cst_37 = arith.constant dense<0.000000e+00> : vector<2x32xf32>
    %36 = tpu.matmul %25, %35, %cst_37 {dimension_numbers = #tpu.dot_dimension_numbers<[1], [0], [0], [1], [0, 0, 1, 1], [], []>} : vector<2x32xf32>, vector<32x32xf32>, vector<2x32xf32> -> vector<2x32xf32>
    %37 = arith.addf %33, %36 : vector<2x32xf32>
    %38 = vector.extract_strided_slice %6 {offsets = [0, 0], sizes = [2, 32], strides = [1, 1]} : vector<16x32xf32> to vector<2x32xf32>
    %39 = vector.extract_strided_slice %18 {offsets = [14, 0], sizes = [2, 32], strides = [1, 1]} : vector<16x32xf32> to vector<2x32xf32>
    %40 = arith.addf %38, %39 : vector<2x32xf32>
    %c1_38 = arith.constant 1 : index
    %c0_39 = arith.constant 0 : index
    %c0_40 = arith.constant 0 : index
    %41 = vector.load %arg4[%c1_38, %c0_39, %c0_40] : memref<4x1x32xf32, #tpu.memory_space<vmem>>, vector<1x1x32xf32>
    %42 = vector.shape_cast %41 : vector<1x1x32xf32> to vector<1x32xf32>
    %43 = vector.broadcast %42 : vector<1x32xf32> to vector<2x32xf32>
    %44 = arith.addf %40, %43 : vector<2x32xf32>
    %c1_41 = arith.constant 1 : index
    %c0_42 = arith.constant 0 : index
    %c0_43 = arith.constant 0 : index
    %45 = vector.load %arg3[%c1_41, %c0_42, %c0_43] : memref<4x32x32xf32, #tpu.memory_space<vmem>>, vector<1x32x32xf32>
    %46 = vector.shape_cast %45 : vector<1x32x32xf32> to vector<32x32xf32>
    %cst_44 = arith.constant dense<0.000000e+00> : vector<2x32xf32>
    %47 = tpu.matmul %25, %46, %cst_44 {dimension_numbers = #tpu.dot_dimension_numbers<[1], [0], [0], [1], [0, 0, 1, 1], [], []>} : vector<2x32xf32>, vector<32x32xf32>, vector<2x32xf32> -> vector<2x32xf32>
    %48 = arith.addf %44, %47 : vector<2x32xf32>
    %49 = vector.extract_strided_slice %9 {offsets = [0, 0], sizes = [2, 32], strides = [1, 1]} : vector<16x32xf32> to vector<2x32xf32>
    %50 = vector.extract_strided_slice %21 {offsets = [14, 0], sizes = [2, 32], strides = [1, 1]} : vector<16x32xf32> to vector<2x32xf32>
    %51 = arith.addf %49, %50 : vector<2x32xf32>
    %c2_45 = arith.constant 2 : index
    %c0_46 = arith.constant 0 : index
    %c0_47 = arith.constant 0 : index
    %52 = vector.load %arg4[%c2_45, %c0_46, %c0_47] : memref<4x1x32xf32, #tpu.memory_space<vmem>>, vector<1x1x32xf32>
    %53 = vector.shape_cast %52 : vector<1x1x32xf32> to vector<1x32xf32>
    %54 = vector.broadcast %53 : vector<1x32xf32> to vector<2x32xf32>
    %55 = arith.addf %51, %54 : vector<2x32xf32>
    %c2_48 = arith.constant 2 : index
    %c0_49 = arith.constant 0 : index
    %c0_50 = arith.constant 0 : index
    %56 = vector.load %arg3[%c2_48, %c0_49, %c0_50] : memref<4x32x32xf32, #tpu.memory_space<vmem>>, vector<1x32x32xf32>
    %57 = vector.shape_cast %56 : vector<1x32x32xf32> to vector<32x32xf32>
    %cst_51 = arith.constant dense<0.000000e+00> : vector<2x32xf32>
    %58 = tpu.matmul %25, %57, %cst_51 {dimension_numbers = #tpu.dot_dimension_numbers<[1], [0], [0], [1], [0, 0, 1, 1], [], []>} : vector<2x32xf32>, vector<32x32xf32>, vector<2x32xf32> -> vector<2x32xf32>
    %59 = arith.addf %55, %58 : vector<2x32xf32>
    %60 = vector.extract_strided_slice %12 {offsets = [0, 0], sizes = [2, 32], strides = [1, 1]} : vector<16x32xf32> to vector<2x32xf32>
    %61 = vector.extract_strided_slice %24 {offsets = [14, 0], sizes = [2, 32], strides = [1, 1]} : vector<16x32xf32> to vector<2x32xf32>
    %62 = arith.addf %60, %61 : vector<2x32xf32>
    %c3_52 = arith.constant 3 : index
    %c0_53 = arith.constant 0 : index
    %c0_54 = arith.constant 0 : index
    %63 = vector.load %arg4[%c3_52, %c0_53, %c0_54] : memref<4x1x32xf32, #tpu.memory_space<vmem>>, vector<1x1x32xf32>
    %64 = vector.shape_cast %63 : vector<1x1x32xf32> to vector<1x32xf32>
    %65 = vector.broadcast %64 : vector<1x32xf32> to vector<2x32xf32>
    %66 = arith.addf %62, %65 : vector<2x32xf32>
    %c3_55 = arith.constant 3 : index
    %c0_56 = arith.constant 0 : index
    %c0_57 = arith.constant 0 : index
    %67 = vector.load %arg3[%c3_55, %c0_56, %c0_57] : memref<4x32x32xf32, #tpu.memory_space<vmem>>, vector<1x32x32xf32>
    %68 = vector.shape_cast %67 : vector<1x32x32xf32> to vector<32x32xf32>
    %cst_58 = arith.constant dense<0.000000e+00> : vector<2x32xf32>
    %69 = tpu.matmul %25, %68, %cst_58 {dimension_numbers = #tpu.dot_dimension_numbers<[1], [0], [0], [1], [0, 0, 1, 1], [], []>} : vector<2x32xf32>, vector<32x32xf32>, vector<2x32xf32> -> vector<2x32xf32>
    %70 = arith.addf %66, %69 : vector<2x32xf32>
    %71 = arith.negf %37 : vector<2x32xf32>
    %72 = math.exp %71 : vector<2x32xf32>
    %cst_59 = arith.constant 1.000000e+00 : f32
    %73 = vector.broadcast %cst_59 : f32 to vector<2x32xf32>
    %74 = arith.addf %73, %72 : vector<2x32xf32>
    %75 = arith.divf %73, %74 : vector<2x32xf32>
    %76 = arith.negf %48 : vector<2x32xf32>
    %77 = math.exp %76 : vector<2x32xf32>
    %cst_60 = arith.constant 1.000000e+00 : f32
    %78 = vector.broadcast %cst_60 : f32 to vector<2x32xf32>
    %79 = arith.addf %78, %77 : vector<2x32xf32>
    %80 = arith.divf %78, %79 : vector<2x32xf32>
    %81 = math.tanh %59 : vector<2x32xf32>
    %82 = arith.negf %70 : vector<2x32xf32>
    %83 = math.exp %82 : vector<2x32xf32>
    %cst_61 = arith.constant 1.000000e+00 : f32
    %84 = vector.broadcast %cst_61 : f32 to vector<2x32xf32>
    %85 = arith.addf %84, %83 : vector<2x32xf32>
    %86 = arith.divf %84, %85 : vector<2x32xf32>
    %87 = arith.mulf %80, %26 : vector<2x32xf32>
    %88 = arith.mulf %75, %81 : vector<2x32xf32>
    %89 = arith.addf %87, %88 : vector<2x32xf32>
    %90 = math.tanh %89 : vector<2x32xf32>
    %91 = arith.mulf %86, %90 : vector<2x32xf32>
    %92 = vector.extract_strided_slice %3 {offsets = [2, 0], sizes = [2, 32], strides = [1, 1]} : vector<16x32xf32> to vector<2x32xf32>
    %93 = vector.extract_strided_slice %15 {offsets = [12, 0], sizes = [2, 32], strides = [1, 1]} : vector<16x32xf32> to vector<2x32xf32>
    %94 = arith.addf %92, %93 : vector<2x32xf32>
    %c0_62 = arith.constant 0 : index
    %c0_63 = arith.constant 0 : index
    %c0_64 = arith.constant 0 : index
    %95 = vector.load %arg4[%c0_62, %c0_63, %c0_64] : memref<4x1x32xf32, #tpu.memory_space<vmem>>, vector<1x1x32xf32>
    %96 = vector.shape_cast %95 : vector<1x1x32xf32> to vector<1x32xf32>
    %97 = vector.broadcast %96 : vector<1x32xf32> to vector<2x32xf32>
    %98 = arith.addf %94, %97 : vector<2x32xf32>
    %c0_65 = arith.constant 0 : index
    %c0_66 = arith.constant 0 : index
    %c0_67 = arith.constant 0 : index
    %99 = vector.load %arg3[%c0_65, %c0_66, %c0_67] : memref<4x32x32xf32, #tpu.memory_space<vmem>>, vector<1x32x32xf32>
    %100 = vector.shape_cast %99 : vector<1x32x32xf32> to vector<32x32xf32>
    %cst_68 = arith.constant dense<0.000000e+00> : vector<2x32xf32>
    %101 = tpu.matmul %91, %100, %cst_68 {dimension_numbers = #tpu.dot_dimension_numbers<[1], [0], [0], [1], [0, 0, 1, 1], [], []>} : vector<2x32xf32>, vector<32x32xf32>, vector<2x32xf32> -> vector<2x32xf32>
    %102 = arith.addf %98, %101 : vector<2x32xf32>
    %103 = vector.extract_strided_slice %6 {offsets = [2, 0], sizes = [2, 32], strides = [1, 1]} : vector<16x32xf32> to vector<2x32xf32>
    %104 = vector.extract_strided_slice %18 {offsets = [12, 0], sizes = [2, 32], strides = [1, 1]} : vector<16x32xf32> to vector<2x32xf32>
    %105 = arith.addf %103, %104 : vector<2x32xf32>
    %c1_69 = arith.constant 1 : index
    %c0_70 = arith.constant 0 : index
    %c0_71 = arith.constant 0 : index
    %106 = vector.load %arg4[%c1_69, %c0_70, %c0_71] : memref<4x1x32xf32, #tpu.memory_space<vmem>>, vector<1x1x32xf32>
    %107 = vector.shape_cast %106 : vector<1x1x32xf32> to vector<1x32xf32>
    %108 = vector.broadcast %107 : vector<1x32xf32> to vector<2x32xf32>
    %109 = arith.addf %105, %108 : vector<2x32xf32>
    %c1_72 = arith.constant 1 : index
    %c0_73 = arith.constant 0 : index
    %c0_74 = arith.constant 0 : index
    %110 = vector.load %arg3[%c1_72, %c0_73, %c0_74] : memref<4x32x32xf32, #tpu.memory_space<vmem>>, vector<1x32x32xf32>
    %111 = vector.shape_cast %110 : vector<1x32x32xf32> to vector<32x32xf32>
    %cst_75 = arith.constant dense<0.000000e+00> : vector<2x32xf32>
    %112 = tpu.matmul %91, %111, %cst_75 {dimension_numbers = #tpu.dot_dimension_numbers<[1], [0], [0], [1], [0, 0, 1, 1], [], []>} : vector<2x32xf32>, vector<32x32xf32>, vector<2x32xf32> -> vector<2x32xf32>
    %113 = arith.addf %109, %112 : vector<2x32xf32>
    %114 = vector.extract_strided_slice %9 {offsets = [2, 0], sizes = [2, 32], strides = [1, 1]} : vector<16x32xf32> to vector<2x32xf32>
    %115 = vector.extract_strided_slice %21 {offsets = [12, 0], sizes = [2, 32], strides = [1, 1]} : vector<16x32xf32> to vector<2x32xf32>
    %116 = arith.addf %114, %115 : vector<2x32xf32>
    %c2_76 = arith.constant 2 : index
    %c0_77 = arith.constant 0 : index
    %c0_78 = arith.constant 0 : index
    %117 = vector.load %arg4[%c2_76, %c0_77, %c0_78] : memref<4x1x32xf32, #tpu.memory_space<vmem>>, vector<1x1x32xf32>
    %118 = vector.shape_cast %117 : vector<1x1x32xf32> to vector<1x32xf32>
    %119 = vector.broadcast %118 : vector<1x32xf32> to vector<2x32xf32>
    %120 = arith.addf %116, %119 : vector<2x32xf32>
    %c2_79 = arith.constant 2 : index
    %c0_80 = arith.constant 0 : index
    %c0_81 = arith.constant 0 : index
    %121 = vector.load %arg3[%c2_79, %c0_80, %c0_81] : memref<4x32x32xf32, #tpu.memory_space<vmem>>, vector<1x32x32xf32>
    %122 = vector.shape_cast %121 : vector<1x32x32xf32> to vector<32x32xf32>
    %cst_82 = arith.constant dense<0.000000e+00> : vector<2x32xf32>
    %123 = tpu.matmul %91, %122, %cst_82 {dimension_numbers = #tpu.dot_dimension_numbers<[1], [0], [0], [1], [0, 0, 1, 1], [], []>} : vector<2x32xf32>, vector<32x32xf32>, vector<2x32xf32> -> vector<2x32xf32>
    %124 = arith.addf %120, %123 : vector<2x32xf32>
    %125 = vector.extract_strided_slice %12 {offsets = [2, 0], sizes = [2, 32], strides = [1, 1]} : vector<16x32xf32> to vector<2x32xf32>
    %126 = vector.extract_strided_slice %24 {offsets = [12, 0], sizes = [2, 32], strides = [1, 1]} : vector<16x32xf32> to vector<2x32xf32>
    %127 = arith.addf %125, %126 : vector<2x32xf32>
    %c3_83 = arith.constant 3 : index
    %c0_84 = arith.constant 0 : index
    %c0_85 = arith.constant 0 : index
    %128 = vector.load %arg4[%c3_83, %c0_84, %c0_85] : memref<4x1x32xf32, #tpu.memory_space<vmem>>, vector<1x1x32xf32>
    %129 = vector.shape_cast %128 : vector<1x1x32xf32> to vector<1x32xf32>
    %130 = vector.broadcast %129 : vector<1x32xf32> to vector<2x32xf32>
    %131 = arith.addf %127, %130 : vector<2x32xf32>
    %c3_86 = arith.constant 3 : index
    %c0_87 = arith.constant 0 : index
    %c0_88 = arith.constant 0 : index
    %132 = vector.load %arg3[%c3_86, %c0_87, %c0_88] : memref<4x32x32xf32, #tpu.memory_space<vmem>>, vector<1x32x32xf32>
    %133 = vector.shape_cast %132 : vector<1x32x32xf32> to vector<32x32xf32>
    %cst_89 = arith.constant dense<0.000000e+00> : vector<2x32xf32>
    %134 = tpu.matmul %91, %133, %cst_89 {dimension_numbers = #tpu.dot_dimension_numbers<[1], [0], [0], [1], [0, 0, 1, 1], [], []>} : vector<2x32xf32>, vector<32x32xf32>, vector<2x32xf32> -> vector<2x32xf32>
    %135 = arith.addf %131, %134 : vector<2x32xf32>
    %136 = arith.negf %102 : vector<2x32xf32>
    %137 = math.exp %136 : vector<2x32xf32>
    %cst_90 = arith.constant 1.000000e+00 : f32
    %138 = vector.broadcast %cst_90 : f32 to vector<2x32xf32>
    %139 = arith.addf %138, %137 : vector<2x32xf32>
    %140 = arith.divf %138, %139 : vector<2x32xf32>
    %141 = arith.negf %113 : vector<2x32xf32>
    %142 = math.exp %141 : vector<2x32xf32>
    %cst_91 = arith.constant 1.000000e+00 : f32
    %143 = vector.broadcast %cst_91 : f32 to vector<2x32xf32>
    %144 = arith.addf %143, %142 : vector<2x32xf32>
    %145 = arith.divf %143, %144 : vector<2x32xf32>
    %146 = math.tanh %124 : vector<2x32xf32>
    %147 = arith.negf %135 : vector<2x32xf32>
    %148 = math.exp %147 : vector<2x32xf32>
    %cst_92 = arith.constant 1.000000e+00 : f32
    %149 = vector.broadcast %cst_92 : f32 to vector<2x32xf32>
    %150 = arith.addf %149, %148 : vector<2x32xf32>
    %151 = arith.divf %149, %150 : vector<2x32xf32>
    %152 = arith.mulf %145, %89 : vector<2x32xf32>
    %153 = arith.mulf %140, %146 : vector<2x32xf32>
    %154 = arith.addf %152, %153 : vector<2x32xf32>
    %155 = math.tanh %154 : vector<2x32xf32>
    %156 = arith.mulf %151, %155 : vector<2x32xf32>
    %157 = vector.extract_strided_slice %3 {offsets = [4, 0], sizes = [2, 32], strides = [1, 1]} : vector<16x32xf32> to vector<2x32xf32>
    %158 = vector.extract_strided_slice %15 {offsets = [10, 0], sizes = [2, 32], strides = [1, 1]} : vector<16x32xf32> to vector<2x32xf32>
    %159 = arith.addf %157, %158 : vector<2x32xf32>
    %c0_93 = arith.constant 0 : index
    %c0_94 = arith.constant 0 : index
    %c0_95 = arith.constant 0 : index
    %160 = vector.load %arg4[%c0_93, %c0_94, %c0_95] : memref<4x1x32xf32, #tpu.memory_space<vmem>>, vector<1x1x32xf32>
    %161 = vector.shape_cast %160 : vector<1x1x32xf32> to vector<1x32xf32>
    %162 = vector.broadcast %161 : vector<1x32xf32> to vector<2x32xf32>
    %163 = arith.addf %159, %162 : vector<2x32xf32>
    %c0_96 = arith.constant 0 : index
    %c0_97 = arith.constant 0 : index
    %c0_98 = arith.constant 0 : index
    %164 = vector.load %arg3[%c0_96, %c0_97, %c0_98] : memref<4x32x32xf32, #tpu.memory_space<vmem>>, vector<1x32x32xf32>
    %165 = vector.shape_cast %164 : vector<1x32x32xf32> to vector<32x32xf32>
    %cst_99 = arith.constant dense<0.000000e+00> : vector<2x32xf32>
    %166 = tpu.matmul %156, %165, %cst_99 {dimension_numbers = #tpu.dot_dimension_numbers<[1], [0], [0], [1], [0, 0, 1, 1], [], []>} : vector<2x32xf32>, vector<32x32xf32>, vector<2x32xf32> -> vector<2x32xf32>
    %167 = arith.addf %163, %166 : vector<2x32xf32>
    %168 = vector.extract_strided_slice %6 {offsets = [4, 0], sizes = [2, 32], strides = [1, 1]} : vector<16x32xf32> to vector<2x32xf32>
    %169 = vector.extract_strided_slice %18 {offsets = [10, 0], sizes = [2, 32], strides = [1, 1]} : vector<16x32xf32> to vector<2x32xf32>
    %170 = arith.addf %168, %169 : vector<2x32xf32>
    %c1_100 = arith.constant 1 : index
    %c0_101 = arith.constant 0 : index
    %c0_102 = arith.constant 0 : index
    %171 = vector.load %arg4[%c1_100, %c0_101, %c0_102] : memref<4x1x32xf32, #tpu.memory_space<vmem>>, vector<1x1x32xf32>
    %172 = vector.shape_cast %171 : vector<1x1x32xf32> to vector<1x32xf32>
    %173 = vector.broadcast %172 : vector<1x32xf32> to vector<2x32xf32>
    %174 = arith.addf %170, %173 : vector<2x32xf32>
    %c1_103 = arith.constant 1 : index
    %c0_104 = arith.constant 0 : index
    %c0_105 = arith.constant 0 : index
    %175 = vector.load %arg3[%c1_103, %c0_104, %c0_105] : memref<4x32x32xf32, #tpu.memory_space<vmem>>, vector<1x32x32xf32>
    %176 = vector.shape_cast %175 : vector<1x32x32xf32> to vector<32x32xf32>
    %cst_106 = arith.constant dense<0.000000e+00> : vector<2x32xf32>
    %177 = tpu.matmul %156, %176, %cst_106 {dimension_numbers = #tpu.dot_dimension_numbers<[1], [0], [0], [1], [0, 0, 1, 1], [], []>} : vector<2x32xf32>, vector<32x32xf32>, vector<2x32xf32> -> vector<2x32xf32>
    %178 = arith.addf %174, %177 : vector<2x32xf32>
    %179 = vector.extract_strided_slice %9 {offsets = [4, 0], sizes = [2, 32], strides = [1, 1]} : vector<16x32xf32> to vector<2x32xf32>
    %180 = vector.extract_strided_slice %21 {offsets = [10, 0], sizes = [2, 32], strides = [1, 1]} : vector<16x32xf32> to vector<2x32xf32>
    %181 = arith.addf %179, %180 : vector<2x32xf32>
    %c2_107 = arith.constant 2 : index
    %c0_108 = arith.constant 0 : index
    %c0_109 = arith.constant 0 : index
    %182 = vector.load %arg4[%c2_107, %c0_108, %c0_109] : memref<4x1x32xf32, #tpu.memory_space<vmem>>, vector<1x1x32xf32>
    %183 = vector.shape_cast %182 : vector<1x1x32xf32> to vector<1x32xf32>
    %184 = vector.broadcast %183 : vector<1x32xf32> to vector<2x32xf32>
    %185 = arith.addf %181, %184 : vector<2x32xf32>
    %c2_110 = arith.constant 2 : index
    %c0_111 = arith.constant 0 : index
    %c0_112 = arith.constant 0 : index
    %186 = vector.load %arg3[%c2_110, %c0_111, %c0_112] : memref<4x32x32xf32, #tpu.memory_space<vmem>>, vector<1x32x32xf32>
    %187 = vector.shape_cast %186 : vector<1x32x32xf32> to vector<32x32xf32>
    %cst_113 = arith.constant dense<0.000000e+00> : vector<2x32xf32>
    %188 = tpu.matmul %156, %187, %cst_113 {dimension_numbers = #tpu.dot_dimension_numbers<[1], [0], [0], [1], [0, 0, 1, 1], [], []>} : vector<2x32xf32>, vector<32x32xf32>, vector<2x32xf32> -> vector<2x32xf32>
    %189 = arith.addf %185, %188 : vector<2x32xf32>
    %190 = vector.extract_strided_slice %12 {offsets = [4, 0], sizes = [2, 32], strides = [1, 1]} : vector<16x32xf32> to vector<2x32xf32>
    %191 = vector.extract_strided_slice %24 {offsets = [10, 0], sizes = [2, 32], strides = [1, 1]} : vector<16x32xf32> to vector<2x32xf32>
    %192 = arith.addf %190, %191 : vector<2x32xf32>
    %c3_114 = arith.constant 3 : index
    %c0_115 = arith.constant 0 : index
    %c0_116 = arith.constant 0 : index
    %193 = vector.load %arg4[%c3_114, %c0_115, %c0_116] : memref<4x1x32xf32, #tpu.memory_space<vmem>>, vector<1x1x32xf32>
    %194 = vector.shape_cast %193 : vector<1x1x32xf32> to vector<1x32xf32>
    %195 = vector.broadcast %194 : vector<1x32xf32> to vector<2x32xf32>
    %196 = arith.addf %192, %195 : vector<2x32xf32>
    %c3_117 = arith.constant 3 : index
    %c0_118 = arith.constant 0 : index
    %c0_119 = arith.constant 0 : index
    %197 = vector.load %arg3[%c3_117, %c0_118, %c0_119] : memref<4x32x32xf32, #tpu.memory_space<vmem>>, vector<1x32x32xf32>
    %198 = vector.shape_cast %197 : vector<1x32x32xf32> to vector<32x32xf32>
    %cst_120 = arith.constant dense<0.000000e+00> : vector<2x32xf32>
    %199 = tpu.matmul %156, %198, %cst_120 {dimension_numbers = #tpu.dot_dimension_numbers<[1], [0], [0], [1], [0, 0, 1, 1], [], []>} : vector<2x32xf32>, vector<32x32xf32>, vector<2x32xf32> -> vector<2x32xf32>
    %200 = arith.addf %196, %199 : vector<2x32xf32>
    %201 = arith.negf %167 : vector<2x32xf32>
    %202 = math.exp %201 : vector<2x32xf32>
    %cst_121 = arith.constant 1.000000e+00 : f32
    %203 = vector.broadcast %cst_121 : f32 to vector<2x32xf32>
    %204 = arith.addf %203, %202 : vector<2x32xf32>
    %205 = arith.divf %203, %204 : vector<2x32xf32>
    %206 = arith.negf %178 : vector<2x32xf32>
    %207 = math.exp %206 : vector<2x32xf32>
    %cst_122 = arith.constant 1.000000e+00 : f32
    %208 = vector.broadcast %cst_122 : f32 to vector<2x32xf32>
    %209 = arith.addf %208, %207 : vector<2x32xf32>
    %210 = arith.divf %208, %209 : vector<2x32xf32>
    %211 = math.tanh %189 : vector<2x32xf32>
    %212 = arith.negf %200 : vector<2x32xf32>
    %213 = math.exp %212 : vector<2x32xf32>
    %cst_123 = arith.constant 1.000000e+00 : f32
    %214 = vector.broadcast %cst_123 : f32 to vector<2x32xf32>
    %215 = arith.addf %214, %213 : vector<2x32xf32>
    %216 = arith.divf %214, %215 : vector<2x32xf32>
    %217 = arith.mulf %210, %154 : vector<2x32xf32>
    %218 = arith.mulf %205, %211 : vector<2x32xf32>
    %219 = arith.addf %217, %218 : vector<2x32xf32>
    %220 = math.tanh %219 : vector<2x32xf32>
    %221 = arith.mulf %216, %220 : vector<2x32xf32>
    %222 = vector.extract_strided_slice %3 {offsets = [6, 0], sizes = [2, 32], strides = [1, 1]} : vector<16x32xf32> to vector<2x32xf32>
    %223 = vector.extract_strided_slice %15 {offsets = [8, 0], sizes = [2, 32], strides = [1, 1]} : vector<16x32xf32> to vector<2x32xf32>
    %224 = arith.addf %222, %223 : vector<2x32xf32>
    %c0_124 = arith.constant 0 : index
    %c0_125 = arith.constant 0 : index
    %c0_126 = arith.constant 0 : index
    %225 = vector.load %arg4[%c0_124, %c0_125, %c0_126] : memref<4x1x32xf32, #tpu.memory_space<vmem>>, vector<1x1x32xf32>
    %226 = vector.shape_cast %225 : vector<1x1x32xf32> to vector<1x32xf32>
    %227 = vector.broadcast %226 : vector<1x32xf32> to vector<2x32xf32>
    %228 = arith.addf %224, %227 : vector<2x32xf32>
    %c0_127 = arith.constant 0 : index
    %c0_128 = arith.constant 0 : index
    %c0_129 = arith.constant 0 : index
    %229 = vector.load %arg3[%c0_127, %c0_128, %c0_129] : memref<4x32x32xf32, #tpu.memory_space<vmem>>, vector<1x32x32xf32>
    %230 = vector.shape_cast %229 : vector<1x32x32xf32> to vector<32x32xf32>
    %cst_130 = arith.constant dense<0.000000e+00> : vector<2x32xf32>
    %231 = tpu.matmul %221, %230, %cst_130 {dimension_numbers = #tpu.dot_dimension_numbers<[1], [0], [0], [1], [0, 0, 1, 1], [], []>} : vector<2x32xf32>, vector<32x32xf32>, vector<2x32xf32> -> vector<2x32xf32>
    %232 = arith.addf %228, %231 : vector<2x32xf32>
    %233 = vector.extract_strided_slice %6 {offsets = [6, 0], sizes = [2, 32], strides = [1, 1]} : vector<16x32xf32> to vector<2x32xf32>
    %234 = vector.extract_strided_slice %18 {offsets = [8, 0], sizes = [2, 32], strides = [1, 1]} : vector<16x32xf32> to vector<2x32xf32>
    %235 = arith.addf %233, %234 : vector<2x32xf32>
    %c1_131 = arith.constant 1 : index
    %c0_132 = arith.constant 0 : index
    %c0_133 = arith.constant 0 : index
    %236 = vector.load %arg4[%c1_131, %c0_132, %c0_133] : memref<4x1x32xf32, #tpu.memory_space<vmem>>, vector<1x1x32xf32>
    %237 = vector.shape_cast %236 : vector<1x1x32xf32> to vector<1x32xf32>
    %238 = vector.broadcast %237 : vector<1x32xf32> to vector<2x32xf32>
    %239 = arith.addf %235, %238 : vector<2x32xf32>
    %c1_134 = arith.constant 1 : index
    %c0_135 = arith.constant 0 : index
    %c0_136 = arith.constant 0 : index
    %240 = vector.load %arg3[%c1_134, %c0_135, %c0_136] : memref<4x32x32xf32, #tpu.memory_space<vmem>>, vector<1x32x32xf32>
    %241 = vector.shape_cast %240 : vector<1x32x32xf32> to vector<32x32xf32>
    %cst_137 = arith.constant dense<0.000000e+00> : vector<2x32xf32>
    %242 = tpu.matmul %221, %241, %cst_137 {dimension_numbers = #tpu.dot_dimension_numbers<[1], [0], [0], [1], [0, 0, 1, 1], [], []>} : vector<2x32xf32>, vector<32x32xf32>, vector<2x32xf32> -> vector<2x32xf32>
    %243 = arith.addf %239, %242 : vector<2x32xf32>
    %244 = vector.extract_strided_slice %9 {offsets = [6, 0], sizes = [2, 32], strides = [1, 1]} : vector<16x32xf32> to vector<2x32xf32>
    %245 = vector.extract_strided_slice %21 {offsets = [8, 0], sizes = [2, 32], strides = [1, 1]} : vector<16x32xf32> to vector<2x32xf32>
    %246 = arith.addf %244, %245 : vector<2x32xf32>
    %c2_138 = arith.constant 2 : index
    %c0_139 = arith.constant 0 : index
    %c0_140 = arith.constant 0 : index
    %247 = vector.load %arg4[%c2_138, %c0_139, %c0_140] : memref<4x1x32xf32, #tpu.memory_space<vmem>>, vector<1x1x32xf32>
    %248 = vector.shape_cast %247 : vector<1x1x32xf32> to vector<1x32xf32>
    %249 = vector.broadcast %248 : vector<1x32xf32> to vector<2x32xf32>
    %250 = arith.addf %246, %249 : vector<2x32xf32>
    %c2_141 = arith.constant 2 : index
    %c0_142 = arith.constant 0 : index
    %c0_143 = arith.constant 0 : index
    %251 = vector.load %arg3[%c2_141, %c0_142, %c0_143] : memref<4x32x32xf32, #tpu.memory_space<vmem>>, vector<1x32x32xf32>
    %252 = vector.shape_cast %251 : vector<1x32x32xf32> to vector<32x32xf32>
    %cst_144 = arith.constant dense<0.000000e+00> : vector<2x32xf32>
    %253 = tpu.matmul %221, %252, %cst_144 {dimension_numbers = #tpu.dot_dimension_numbers<[1], [0], [0], [1], [0, 0, 1, 1], [], []>} : vector<2x32xf32>, vector<32x32xf32>, vector<2x32xf32> -> vector<2x32xf32>
    %254 = arith.addf %250, %253 : vector<2x32xf32>
    %255 = vector.extract_strided_slice %12 {offsets = [6, 0], sizes = [2, 32], strides = [1, 1]} : vector<16x32xf32> to vector<2x32xf32>
    %256 = vector.extract_strided_slice %24 {offsets = [8, 0], sizes = [2, 32], strides = [1, 1]} : vector<16x32xf32> to vector<2x32xf32>
    %257 = arith.addf %255, %256 : vector<2x32xf32>
    %c3_145 = arith.constant 3 : index
    %c0_146 = arith.constant 0 : index
    %c0_147 = arith.constant 0 : index
    %258 = vector.load %arg4[%c3_145, %c0_146, %c0_147] : memref<4x1x32xf32, #tpu.memory_space<vmem>>, vector<1x1x32xf32>
    %259 = vector.shape_cast %258 : vector<1x1x32xf32> to vector<1x32xf32>
    %260 = vector.broadcast %259 : vector<1x32xf32> to vector<2x32xf32>
    %261 = arith.addf %257, %260 : vector<2x32xf32>
    %c3_148 = arith.constant 3 : index
    %c0_149 = arith.constant 0 : index
    %c0_150 = arith.constant 0 : index
    %262 = vector.load %arg3[%c3_148, %c0_149, %c0_150] : memref<4x32x32xf32, #tpu.memory_space<vmem>>, vector<1x32x32xf32>
    %263 = vector.shape_cast %262 : vector<1x32x32xf32> to vector<32x32xf32>
    %cst_151 = arith.constant dense<0.000000e+00> : vector<2x32xf32>
    %264 = tpu.matmul %221, %263, %cst_151 {dimension_numbers = #tpu.dot_dimension_numbers<[1], [0], [0], [1], [0, 0, 1, 1], [], []>} : vector<2x32xf32>, vector<32x32xf32>, vector<2x32xf32> -> vector<2x32xf32>
    %265 = arith.addf %261, %264 : vector<2x32xf32>
    %266 = arith.negf %232 : vector<2x32xf32>
    %267 = math.exp %266 : vector<2x32xf32>
    %cst_152 = arith.constant 1.000000e+00 : f32
    %268 = vector.broadcast %cst_152 : f32 to vector<2x32xf32>
    %269 = arith.addf %268, %267 : vector<2x32xf32>
    %270 = arith.divf %268, %269 : vector<2x32xf32>
    %271 = arith.negf %243 : vector<2x32xf32>
    %272 = math.exp %271 : vector<2x32xf32>
    %cst_153 = arith.constant 1.000000e+00 : f32
    %273 = vector.broadcast %cst_153 : f32 to vector<2x32xf32>
    %274 = arith.addf %273, %272 : vector<2x32xf32>
    %275 = arith.divf %273, %274 : vector<2x32xf32>
    %276 = math.tanh %254 : vector<2x32xf32>
    %277 = arith.negf %265 : vector<2x32xf32>
    %278 = math.exp %277 : vector<2x32xf32>
    %cst_154 = arith.constant 1.000000e+00 : f32
    %279 = vector.broadcast %cst_154 : f32 to vector<2x32xf32>
    %280 = arith.addf %279, %278 : vector<2x32xf32>
    %281 = arith.divf %279, %280 : vector<2x32xf32>
    %282 = arith.mulf %275, %219 : vector<2x32xf32>
    %283 = arith.mulf %270, %276 : vector<2x32xf32>
    %284 = arith.addf %282, %283 : vector<2x32xf32>
    %285 = math.tanh %284 : vector<2x32xf32>
    %286 = arith.mulf %281, %285 : vector<2x32xf32>
    %287 = vector.extract_strided_slice %3 {offsets = [8, 0], sizes = [2, 32], strides = [1, 1]} : vector<16x32xf32> to vector<2x32xf32>
    %288 = vector.extract_strided_slice %15 {offsets = [6, 0], sizes = [2, 32], strides = [1, 1]} : vector<16x32xf32> to vector<2x32xf32>
    %289 = arith.addf %287, %288 : vector<2x32xf32>
    %c0_155 = arith.constant 0 : index
    %c0_156 = arith.constant 0 : index
    %c0_157 = arith.constant 0 : index
    %290 = vector.load %arg4[%c0_155, %c0_156, %c0_157] : memref<4x1x32xf32, #tpu.memory_space<vmem>>, vector<1x1x32xf32>
    %291 = vector.shape_cast %290 : vector<1x1x32xf32> to vector<1x32xf32>
    %292 = vector.broadcast %291 : vector<1x32xf32> to vector<2x32xf32>
    %293 = arith.addf %289, %292 : vector<2x32xf32>
    %c0_158 = arith.constant 0 : index
    %c0_159 = arith.constant 0 : index
    %c0_160 = arith.constant 0 : index
    %294 = vector.load %arg3[%c0_158, %c0_159, %c0_160] : memref<4x32x32xf32, #tpu.memory_space<vmem>>, vector<1x32x32xf32>
    %295 = vector.shape_cast %294 : vector<1x32x32xf32> to vector<32x32xf32>
    %cst_161 = arith.constant dense<0.000000e+00> : vector<2x32xf32>
    %296 = tpu.matmul %286, %295, %cst_161 {dimension_numbers = #tpu.dot_dimension_numbers<[1], [0], [0], [1], [0, 0, 1, 1], [], []>} : vector<2x32xf32>, vector<32x32xf32>, vector<2x32xf32> -> vector<2x32xf32>
    %297 = arith.addf %293, %296 : vector<2x32xf32>
    %298 = vector.extract_strided_slice %6 {offsets = [8, 0], sizes = [2, 32], strides = [1, 1]} : vector<16x32xf32> to vector<2x32xf32>
    %299 = vector.extract_strided_slice %18 {offsets = [6, 0], sizes = [2, 32], strides = [1, 1]} : vector<16x32xf32> to vector<2x32xf32>
    %300 = arith.addf %298, %299 : vector<2x32xf32>
    %c1_162 = arith.constant 1 : index
    %c0_163 = arith.constant 0 : index
    %c0_164 = arith.constant 0 : index
    %301 = vector.load %arg4[%c1_162, %c0_163, %c0_164] : memref<4x1x32xf32, #tpu.memory_space<vmem>>, vector<1x1x32xf32>
    %302 = vector.shape_cast %301 : vector<1x1x32xf32> to vector<1x32xf32>
    %303 = vector.broadcast %302 : vector<1x32xf32> to vector<2x32xf32>
    %304 = arith.addf %300, %303 : vector<2x32xf32>
    %c1_165 = arith.constant 1 : index
    %c0_166 = arith.constant 0 : index
    %c0_167 = arith.constant 0 : index
    %305 = vector.load %arg3[%c1_165, %c0_166, %c0_167] : memref<4x32x32xf32, #tpu.memory_space<vmem>>, vector<1x32x32xf32>
    %306 = vector.shape_cast %305 : vector<1x32x32xf32> to vector<32x32xf32>
    %cst_168 = arith.constant dense<0.000000e+00> : vector<2x32xf32>
    %307 = tpu.matmul %286, %306, %cst_168 {dimension_numbers = #tpu.dot_dimension_numbers<[1], [0], [0], [1], [0, 0, 1, 1], [], []>} : vector<2x32xf32>, vector<32x32xf32>, vector<2x32xf32> -> vector<2x32xf32>
    %308 = arith.addf %304, %307 : vector<2x32xf32>
    %309 = vector.extract_strided_slice %9 {offsets = [8, 0], sizes = [2, 32], strides = [1, 1]} : vector<16x32xf32> to vector<2x32xf32>
    %310 = vector.extract_strided_slice %21 {offsets = [6, 0], sizes = [2, 32], strides = [1, 1]} : vector<16x32xf32> to vector<2x32xf32>
    %311 = arith.addf %309, %310 : vector<2x32xf32>
    %c2_169 = arith.constant 2 : index
    %c0_170 = arith.constant 0 : index
    %c0_171 = arith.constant 0 : index
    %312 = vector.load %arg4[%c2_169, %c0_170, %c0_171] : memref<4x1x32xf32, #tpu.memory_space<vmem>>, vector<1x1x32xf32>
    %313 = vector.shape_cast %312 : vector<1x1x32xf32> to vector<1x32xf32>
    %314 = vector.broadcast %313 : vector<1x32xf32> to vector<2x32xf32>
    %315 = arith.addf %311, %314 : vector<2x32xf32>
    %c2_172 = arith.constant 2 : index
    %c0_173 = arith.constant 0 : index
    %c0_174 = arith.constant 0 : index
    %316 = vector.load %arg3[%c2_172, %c0_173, %c0_174] : memref<4x32x32xf32, #tpu.memory_space<vmem>>, vector<1x32x32xf32>
    %317 = vector.shape_cast %316 : vector<1x32x32xf32> to vector<32x32xf32>
    %cst_175 = arith.constant dense<0.000000e+00> : vector<2x32xf32>
    %318 = tpu.matmul %286, %317, %cst_175 {dimension_numbers = #tpu.dot_dimension_numbers<[1], [0], [0], [1], [0, 0, 1, 1], [], []>} : vector<2x32xf32>, vector<32x32xf32>, vector<2x32xf32> -> vector<2x32xf32>
    %319 = arith.addf %315, %318 : vector<2x32xf32>
    %320 = vector.extract_strided_slice %12 {offsets = [8, 0], sizes = [2, 32], strides = [1, 1]} : vector<16x32xf32> to vector<2x32xf32>
    %321 = vector.extract_strided_slice %24 {offsets = [6, 0], sizes = [2, 32], strides = [1, 1]} : vector<16x32xf32> to vector<2x32xf32>
    %322 = arith.addf %320, %321 : vector<2x32xf32>
    %c3_176 = arith.constant 3 : index
    %c0_177 = arith.constant 0 : index
    %c0_178 = arith.constant 0 : index
    %323 = vector.load %arg4[%c3_176, %c0_177, %c0_178] : memref<4x1x32xf32, #tpu.memory_space<vmem>>, vector<1x1x32xf32>
    %324 = vector.shape_cast %323 : vector<1x1x32xf32> to vector<1x32xf32>
    %325 = vector.broadcast %324 : vector<1x32xf32> to vector<2x32xf32>
    %326 = arith.addf %322, %325 : vector<2x32xf32>
    %c3_179 = arith.constant 3 : index
    %c0_180 = arith.constant 0 : index
    %c0_181 = arith.constant 0 : index
    %327 = vector.load %arg3[%c3_179, %c0_180, %c0_181] : memref<4x32x32xf32, #tpu.memory_space<vmem>>, vector<1x32x32xf32>
    %328 = vector.shape_cast %327 : vector<1x32x32xf32> to vector<32x32xf32>
    %cst_182 = arith.constant dense<0.000000e+00> : vector<2x32xf32>
    %329 = tpu.matmul %286, %328, %cst_182 {dimension_numbers = #tpu.dot_dimension_numbers<[1], [0], [0], [1], [0, 0, 1, 1], [], []>} : vector<2x32xf32>, vector<32x32xf32>, vector<2x32xf32> -> vector<2x32xf32>
    %330 = arith.addf %326, %329 : vector<2x32xf32>
    %331 = arith.negf %297 : vector<2x32xf32>
    %332 = math.exp %331 : vector<2x32xf32>
    %cst_183 = arith.constant 1.000000e+00 : f32
    %333 = vector.broadcast %cst_183 : f32 to vector<2x32xf32>
    %334 = arith.addf %333, %332 : vector<2x32xf32>
    %335 = arith.divf %333, %334 : vector<2x32xf32>
    %336 = arith.negf %308 : vector<2x32xf32>
    %337 = math.exp %336 : vector<2x32xf32>
    %cst_184 = arith.constant 1.000000e+00 : f32
    %338 = vector.broadcast %cst_184 : f32 to vector<2x32xf32>
    %339 = arith.addf %338, %337 : vector<2x32xf32>
    %340 = arith.divf %338, %339 : vector<2x32xf32>
    %341 = math.tanh %319 : vector<2x32xf32>
    %342 = arith.negf %330 : vector<2x32xf32>
    %343 = math.exp %342 : vector<2x32xf32>
    %cst_185 = arith.constant 1.000000e+00 : f32
    %344 = vector.broadcast %cst_185 : f32 to vector<2x32xf32>
    %345 = arith.addf %344, %343 : vector<2x32xf32>
    %346 = arith.divf %344, %345 : vector<2x32xf32>
    %347 = arith.mulf %340, %284 : vector<2x32xf32>
    %348 = arith.mulf %335, %341 : vector<2x32xf32>
    %349 = arith.addf %347, %348 : vector<2x32xf32>
    %350 = math.tanh %349 : vector<2x32xf32>
    %351 = arith.mulf %346, %350 : vector<2x32xf32>
    %352 = vector.extract_strided_slice %3 {offsets = [10, 0], sizes = [2, 32], strides = [1, 1]} : vector<16x32xf32> to vector<2x32xf32>
    %353 = vector.extract_strided_slice %15 {offsets = [4, 0], sizes = [2, 32], strides = [1, 1]} : vector<16x32xf32> to vector<2x32xf32>
    %354 = arith.addf %352, %353 : vector<2x32xf32>
    %c0_186 = arith.constant 0 : index
    %c0_187 = arith.constant 0 : index
    %c0_188 = arith.constant 0 : index
    %355 = vector.load %arg4[%c0_186, %c0_187, %c0_188] : memref<4x1x32xf32, #tpu.memory_space<vmem>>, vector<1x1x32xf32>
    %356 = vector.shape_cast %355 : vector<1x1x32xf32> to vector<1x32xf32>
    %357 = vector.broadcast %356 : vector<1x32xf32> to vector<2x32xf32>
    %358 = arith.addf %354, %357 : vector<2x32xf32>
    %c0_189 = arith.constant 0 : index
    %c0_190 = arith.constant 0 : index
    %c0_191 = arith.constant 0 : index
    %359 = vector.load %arg3[%c0_189, %c0_190, %c0_191] : memref<4x32x32xf32, #tpu.memory_space<vmem>>, vector<1x32x32xf32>
    %360 = vector.shape_cast %359 : vector<1x32x32xf32> to vector<32x32xf32>
    %cst_192 = arith.constant dense<0.000000e+00> : vector<2x32xf32>
    %361 = tpu.matmul %351, %360, %cst_192 {dimension_numbers = #tpu.dot_dimension_numbers<[1], [0], [0], [1], [0, 0, 1, 1], [], []>} : vector<2x32xf32>, vector<32x32xf32>, vector<2x32xf32> -> vector<2x32xf32>
    %362 = arith.addf %358, %361 : vector<2x32xf32>
    %363 = vector.extract_strided_slice %6 {offsets = [10, 0], sizes = [2, 32], strides = [1, 1]} : vector<16x32xf32> to vector<2x32xf32>
    %364 = vector.extract_strided_slice %18 {offsets = [4, 0], sizes = [2, 32], strides = [1, 1]} : vector<16x32xf32> to vector<2x32xf32>
    %365 = arith.addf %363, %364 : vector<2x32xf32>
    %c1_193 = arith.constant 1 : index
    %c0_194 = arith.constant 0 : index
    %c0_195 = arith.constant 0 : index
    %366 = vector.load %arg4[%c1_193, %c0_194, %c0_195] : memref<4x1x32xf32, #tpu.memory_space<vmem>>, vector<1x1x32xf32>
    %367 = vector.shape_cast %366 : vector<1x1x32xf32> to vector<1x32xf32>
    %368 = vector.broadcast %367 : vector<1x32xf32> to vector<2x32xf32>
    %369 = arith.addf %365, %368 : vector<2x32xf32>
    %c1_196 = arith.constant 1 : index
    %c0_197 = arith.constant 0 : index
    %c0_198 = arith.constant 0 : index
    %370 = vector.load %arg3[%c1_196, %c0_197, %c0_198] : memref<4x32x32xf32, #tpu.memory_space<vmem>>, vector<1x32x32xf32>
    %371 = vector.shape_cast %370 : vector<1x32x32xf32> to vector<32x32xf32>
    %cst_199 = arith.constant dense<0.000000e+00> : vector<2x32xf32>
    %372 = tpu.matmul %351, %371, %cst_199 {dimension_numbers = #tpu.dot_dimension_numbers<[1], [0], [0], [1], [0, 0, 1, 1], [], []>} : vector<2x32xf32>, vector<32x32xf32>, vector<2x32xf32> -> vector<2x32xf32>
    %373 = arith.addf %369, %372 : vector<2x32xf32>
    %374 = vector.extract_strided_slice %9 {offsets = [10, 0], sizes = [2, 32], strides = [1, 1]} : vector<16x32xf32> to vector<2x32xf32>
    %375 = vector.extract_strided_slice %21 {offsets = [4, 0], sizes = [2, 32], strides = [1, 1]} : vector<16x32xf32> to vector<2x32xf32>
    %376 = arith.addf %374, %375 : vector<2x32xf32>
    %c2_200 = arith.constant 2 : index
    %c0_201 = arith.constant 0 : index
    %c0_202 = arith.constant 0 : index
    %377 = vector.load %arg4[%c2_200, %c0_201, %c0_202] : memref<4x1x32xf32, #tpu.memory_space<vmem>>, vector<1x1x32xf32>
    %378 = vector.shape_cast %377 : vector<1x1x32xf32> to vector<1x32xf32>
    %379 = vector.broadcast %378 : vector<1x32xf32> to vector<2x32xf32>
    %380 = arith.addf %376, %379 : vector<2x32xf32>
    %c2_203 = arith.constant 2 : index
    %c0_204 = arith.constant 0 : index
    %c0_205 = arith.constant 0 : index
    %381 = vector.load %arg3[%c2_203, %c0_204, %c0_205] : memref<4x32x32xf32, #tpu.memory_space<vmem>>, vector<1x32x32xf32>
    %382 = vector.shape_cast %381 : vector<1x32x32xf32> to vector<32x32xf32>
    %cst_206 = arith.constant dense<0.000000e+00> : vector<2x32xf32>
    %383 = tpu.matmul %351, %382, %cst_206 {dimension_numbers = #tpu.dot_dimension_numbers<[1], [0], [0], [1], [0, 0, 1, 1], [], []>} : vector<2x32xf32>, vector<32x32xf32>, vector<2x32xf32> -> vector<2x32xf32>
    %384 = arith.addf %380, %383 : vector<2x32xf32>
    %385 = vector.extract_strided_slice %12 {offsets = [10, 0], sizes = [2, 32], strides = [1, 1]} : vector<16x32xf32> to vector<2x32xf32>
    %386 = vector.extract_strided_slice %24 {offsets = [4, 0], sizes = [2, 32], strides = [1, 1]} : vector<16x32xf32> to vector<2x32xf32>
    %387 = arith.addf %385, %386 : vector<2x32xf32>
    %c3_207 = arith.constant 3 : index
    %c0_208 = arith.constant 0 : index
    %c0_209 = arith.constant 0 : index
    %388 = vector.load %arg4[%c3_207, %c0_208, %c0_209] : memref<4x1x32xf32, #tpu.memory_space<vmem>>, vector<1x1x32xf32>
    %389 = vector.shape_cast %388 : vector<1x1x32xf32> to vector<1x32xf32>
    %390 = vector.broadcast %389 : vector<1x32xf32> to vector<2x32xf32>
    %391 = arith.addf %387, %390 : vector<2x32xf32>
    %c3_210 = arith.constant 3 : index
    %c0_211 = arith.constant 0 : index
    %c0_212 = arith.constant 0 : index
    %392 = vector.load %arg3[%c3_210, %c0_211, %c0_212] : memref<4x32x32xf32, #tpu.memory_space<vmem>>, vector<1x32x32xf32>
    %393 = vector.shape_cast %392 : vector<1x32x32xf32> to vector<32x32xf32>
    %cst_213 = arith.constant dense<0.000000e+00> : vector<2x32xf32>
    %394 = tpu.matmul %351, %393, %cst_213 {dimension_numbers = #tpu.dot_dimension_numbers<[1], [0], [0], [1], [0, 0, 1, 1], [], []>} : vector<2x32xf32>, vector<32x32xf32>, vector<2x32xf32> -> vector<2x32xf32>
    %395 = arith.addf %391, %394 : vector<2x32xf32>
    %396 = arith.negf %362 : vector<2x32xf32>
    %397 = math.exp %396 : vector<2x32xf32>
    %cst_214 = arith.constant 1.000000e+00 : f32
    %398 = vector.broadcast %cst_214 : f32 to vector<2x32xf32>
    %399 = arith.addf %398, %397 : vector<2x32xf32>
    %400 = arith.divf %398, %399 : vector<2x32xf32>
    %401 = arith.negf %373 : vector<2x32xf32>
    %402 = math.exp %401 : vector<2x32xf32>
    %cst_215 = arith.constant 1.000000e+00 : f32
    %403 = vector.broadcast %cst_215 : f32 to vector<2x32xf32>
    %404 = arith.addf %403, %402 : vector<2x32xf32>
    %405 = arith.divf %403, %404 : vector<2x32xf32>
    %406 = math.tanh %384 : vector<2x32xf32>
    %407 = arith.negf %395 : vector<2x32xf32>
    %408 = math.exp %407 : vector<2x32xf32>
    %cst_216 = arith.constant 1.000000e+00 : f32
    %409 = vector.broadcast %cst_216 : f32 to vector<2x32xf32>
    %410 = arith.addf %409, %408 : vector<2x32xf32>
    %411 = arith.divf %409, %410 : vector<2x32xf32>
    %412 = arith.mulf %405, %349 : vector<2x32xf32>
    %413 = arith.mulf %400, %406 : vector<2x32xf32>
    %414 = arith.addf %412, %413 : vector<2x32xf32>
    %415 = math.tanh %414 : vector<2x32xf32>
    %416 = arith.mulf %411, %415 : vector<2x32xf32>
    %417 = vector.extract_strided_slice %3 {offsets = [12, 0], sizes = [2, 32], strides = [1, 1]} : vector<16x32xf32> to vector<2x32xf32>
    %418 = vector.extract_strided_slice %15 {offsets = [2, 0], sizes = [2, 32], strides = [1, 1]} : vector<16x32xf32> to vector<2x32xf32>
    %419 = arith.addf %417, %418 : vector<2x32xf32>
    %c0_217 = arith.constant 0 : index
    %c0_218 = arith.constant 0 : index
    %c0_219 = arith.constant 0 : index
    %420 = vector.load %arg4[%c0_217, %c0_218, %c0_219] : memref<4x1x32xf32, #tpu.memory_space<vmem>>, vector<1x1x32xf32>
    %421 = vector.shape_cast %420 : vector<1x1x32xf32> to vector<1x32xf32>
    %422 = vector.broadcast %421 : vector<1x32xf32> to vector<2x32xf32>
    %423 = arith.addf %419, %422 : vector<2x32xf32>
    %c0_220 = arith.constant 0 : index
    %c0_221 = arith.constant 0 : index
    %c0_222 = arith.constant 0 : index
    %424 = vector.load %arg3[%c0_220, %c0_221, %c0_222] : memref<4x32x32xf32, #tpu.memory_space<vmem>>, vector<1x32x32xf32>
    %425 = vector.shape_cast %424 : vector<1x32x32xf32> to vector<32x32xf32>
    %cst_223 = arith.constant dense<0.000000e+00> : vector<2x32xf32>
    %426 = tpu.matmul %416, %425, %cst_223 {dimension_numbers = #tpu.dot_dimension_numbers<[1], [0], [0], [1], [0, 0, 1, 1], [], []>} : vector<2x32xf32>, vector<32x32xf32>, vector<2x32xf32> -> vector<2x32xf32>
    %427 = arith.addf %423, %426 : vector<2x32xf32>
    %428 = vector.extract_strided_slice %6 {offsets = [12, 0], sizes = [2, 32], strides = [1, 1]} : vector<16x32xf32> to vector<2x32xf32>
    %429 = vector.extract_strided_slice %18 {offsets = [2, 0], sizes = [2, 32], strides = [1, 1]} : vector<16x32xf32> to vector<2x32xf32>
    %430 = arith.addf %428, %429 : vector<2x32xf32>
    %c1_224 = arith.constant 1 : index
    %c0_225 = arith.constant 0 : index
    %c0_226 = arith.constant 0 : index
    %431 = vector.load %arg4[%c1_224, %c0_225, %c0_226] : memref<4x1x32xf32, #tpu.memory_space<vmem>>, vector<1x1x32xf32>
    %432 = vector.shape_cast %431 : vector<1x1x32xf32> to vector<1x32xf32>
    %433 = vector.broadcast %432 : vector<1x32xf32> to vector<2x32xf32>
    %434 = arith.addf %430, %433 : vector<2x32xf32>
    %c1_227 = arith.constant 1 : index
    %c0_228 = arith.constant 0 : index
    %c0_229 = arith.constant 0 : index
    %435 = vector.load %arg3[%c1_227, %c0_228, %c0_229] : memref<4x32x32xf32, #tpu.memory_space<vmem>>, vector<1x32x32xf32>
    %436 = vector.shape_cast %435 : vector<1x32x32xf32> to vector<32x32xf32>
    %cst_230 = arith.constant dense<0.000000e+00> : vector<2x32xf32>
    %437 = tpu.matmul %416, %436, %cst_230 {dimension_numbers = #tpu.dot_dimension_numbers<[1], [0], [0], [1], [0, 0, 1, 1], [], []>} : vector<2x32xf32>, vector<32x32xf32>, vector<2x32xf32> -> vector<2x32xf32>
    %438 = arith.addf %434, %437 : vector<2x32xf32>
    %439 = vector.extract_strided_slice %9 {offsets = [12, 0], sizes = [2, 32], strides = [1, 1]} : vector<16x32xf32> to vector<2x32xf32>
    %440 = vector.extract_strided_slice %21 {offsets = [2, 0], sizes = [2, 32], strides = [1, 1]} : vector<16x32xf32> to vector<2x32xf32>
    %441 = arith.addf %439, %440 : vector<2x32xf32>
    %c2_231 = arith.constant 2 : index
    %c0_232 = arith.constant 0 : index
    %c0_233 = arith.constant 0 : index
    %442 = vector.load %arg4[%c2_231, %c0_232, %c0_233] : memref<4x1x32xf32, #tpu.memory_space<vmem>>, vector<1x1x32xf32>
    %443 = vector.shape_cast %442 : vector<1x1x32xf32> to vector<1x32xf32>
    %444 = vector.broadcast %443 : vector<1x32xf32> to vector<2x32xf32>
    %445 = arith.addf %441, %444 : vector<2x32xf32>
    %c2_234 = arith.constant 2 : index
    %c0_235 = arith.constant 0 : index
    %c0_236 = arith.constant 0 : index
    %446 = vector.load %arg3[%c2_234, %c0_235, %c0_236] : memref<4x32x32xf32, #tpu.memory_space<vmem>>, vector<1x32x32xf32>
    %447 = vector.shape_cast %446 : vector<1x32x32xf32> to vector<32x32xf32>
    %cst_237 = arith.constant dense<0.000000e+00> : vector<2x32xf32>
    %448 = tpu.matmul %416, %447, %cst_237 {dimension_numbers = #tpu.dot_dimension_numbers<[1], [0], [0], [1], [0, 0, 1, 1], [], []>} : vector<2x32xf32>, vector<32x32xf32>, vector<2x32xf32> -> vector<2x32xf32>
    %449 = arith.addf %445, %448 : vector<2x32xf32>
    %450 = vector.extract_strided_slice %12 {offsets = [12, 0], sizes = [2, 32], strides = [1, 1]} : vector<16x32xf32> to vector<2x32xf32>
    %451 = vector.extract_strided_slice %24 {offsets = [2, 0], sizes = [2, 32], strides = [1, 1]} : vector<16x32xf32> to vector<2x32xf32>
    %452 = arith.addf %450, %451 : vector<2x32xf32>
    %c3_238 = arith.constant 3 : index
    %c0_239 = arith.constant 0 : index
    %c0_240 = arith.constant 0 : index
    %453 = vector.load %arg4[%c3_238, %c0_239, %c0_240] : memref<4x1x32xf32, #tpu.memory_space<vmem>>, vector<1x1x32xf32>
    %454 = vector.shape_cast %453 : vector<1x1x32xf32> to vector<1x32xf32>
    %455 = vector.broadcast %454 : vector<1x32xf32> to vector<2x32xf32>
    %456 = arith.addf %452, %455 : vector<2x32xf32>
    %c3_241 = arith.constant 3 : index
    %c0_242 = arith.constant 0 : index
    %c0_243 = arith.constant 0 : index
    %457 = vector.load %arg3[%c3_241, %c0_242, %c0_243] : memref<4x32x32xf32, #tpu.memory_space<vmem>>, vector<1x32x32xf32>
    %458 = vector.shape_cast %457 : vector<1x32x32xf32> to vector<32x32xf32>
    %cst_244 = arith.constant dense<0.000000e+00> : vector<2x32xf32>
    %459 = tpu.matmul %416, %458, %cst_244 {dimension_numbers = #tpu.dot_dimension_numbers<[1], [0], [0], [1], [0, 0, 1, 1], [], []>} : vector<2x32xf32>, vector<32x32xf32>, vector<2x32xf32> -> vector<2x32xf32>
    %460 = arith.addf %456, %459 : vector<2x32xf32>
    %461 = arith.negf %427 : vector<2x32xf32>
    %462 = math.exp %461 : vector<2x32xf32>
    %cst_245 = arith.constant 1.000000e+00 : f32
    %463 = vector.broadcast %cst_245 : f32 to vector<2x32xf32>
    %464 = arith.addf %463, %462 : vector<2x32xf32>
    %465 = arith.divf %463, %464 : vector<2x32xf32>
    %466 = arith.negf %438 : vector<2x32xf32>
    %467 = math.exp %466 : vector<2x32xf32>
    %cst_246 = arith.constant 1.000000e+00 : f32
    %468 = vector.broadcast %cst_246 : f32 to vector<2x32xf32>
    %469 = arith.addf %468, %467 : vector<2x32xf32>
    %470 = arith.divf %468, %469 : vector<2x32xf32>
    %471 = math.tanh %449 : vector<2x32xf32>
    %472 = arith.negf %460 : vector<2x32xf32>
    %473 = math.exp %472 : vector<2x32xf32>
    %cst_247 = arith.constant 1.000000e+00 : f32
    %474 = vector.broadcast %cst_247 : f32 to vector<2x32xf32>
    %475 = arith.addf %474, %473 : vector<2x32xf32>
    %476 = arith.divf %474, %475 : vector<2x32xf32>
    %477 = arith.mulf %470, %414 : vector<2x32xf32>
    %478 = arith.mulf %465, %471 : vector<2x32xf32>
    %479 = arith.addf %477, %478 : vector<2x32xf32>
    %480 = math.tanh %479 : vector<2x32xf32>
    %481 = arith.mulf %476, %480 : vector<2x32xf32>
    %482 = vector.extract_strided_slice %3 {offsets = [14, 0], sizes = [2, 32], strides = [1, 1]} : vector<16x32xf32> to vector<2x32xf32>
    %483 = vector.extract_strided_slice %15 {offsets = [0, 0], sizes = [2, 32], strides = [1, 1]} : vector<16x32xf32> to vector<2x32xf32>
    %484 = arith.addf %482, %483 : vector<2x32xf32>
    %c0_248 = arith.constant 0 : index
    %c0_249 = arith.constant 0 : index
    %c0_250 = arith.constant 0 : index
    %485 = vector.load %arg4[%c0_248, %c0_249, %c0_250] : memref<4x1x32xf32, #tpu.memory_space<vmem>>, vector<1x1x32xf32>
    %486 = vector.shape_cast %485 : vector<1x1x32xf32> to vector<1x32xf32>
    %487 = vector.broadcast %486 : vector<1x32xf32> to vector<2x32xf32>
    %488 = arith.addf %484, %487 : vector<2x32xf32>
    %c0_251 = arith.constant 0 : index
    %c0_252 = arith.constant 0 : index
    %c0_253 = arith.constant 0 : index
    %489 = vector.load %arg3[%c0_251, %c0_252, %c0_253] : memref<4x32x32xf32, #tpu.memory_space<vmem>>, vector<1x32x32xf32>
    %490 = vector.shape_cast %489 : vector<1x32x32xf32> to vector<32x32xf32>
    %cst_254 = arith.constant dense<0.000000e+00> : vector<2x32xf32>
    %491 = tpu.matmul %481, %490, %cst_254 {dimension_numbers = #tpu.dot_dimension_numbers<[1], [0], [0], [1], [0, 0, 1, 1], [], []>} : vector<2x32xf32>, vector<32x32xf32>, vector<2x32xf32> -> vector<2x32xf32>
    %492 = arith.addf %488, %491 : vector<2x32xf32>
    %493 = vector.extract_strided_slice %6 {offsets = [14, 0], sizes = [2, 32], strides = [1, 1]} : vector<16x32xf32> to vector<2x32xf32>
    %494 = vector.extract_strided_slice %18 {offsets = [0, 0], sizes = [2, 32], strides = [1, 1]} : vector<16x32xf32> to vector<2x32xf32>
    %495 = arith.addf %493, %494 : vector<2x32xf32>
    %c1_255 = arith.constant 1 : index
    %c0_256 = arith.constant 0 : index
    %c0_257 = arith.constant 0 : index
    %496 = vector.load %arg4[%c1_255, %c0_256, %c0_257] : memref<4x1x32xf32, #tpu.memory_space<vmem>>, vector<1x1x32xf32>
    %497 = vector.shape_cast %496 : vector<1x1x32xf32> to vector<1x32xf32>
    %498 = vector.broadcast %497 : vector<1x32xf32> to vector<2x32xf32>
    %499 = arith.addf %495, %498 : vector<2x32xf32>
    %c1_258 = arith.constant 1 : index
    %c0_259 = arith.constant 0 : index
    %c0_260 = arith.constant 0 : index
    %500 = vector.load %arg3[%c1_258, %c0_259, %c0_260] : memref<4x32x32xf32, #tpu.memory_space<vmem>>, vector<1x32x32xf32>
    %501 = vector.shape_cast %500 : vector<1x32x32xf32> to vector<32x32xf32>
    %cst_261 = arith.constant dense<0.000000e+00> : vector<2x32xf32>
    %502 = tpu.matmul %481, %501, %cst_261 {dimension_numbers = #tpu.dot_dimension_numbers<[1], [0], [0], [1], [0, 0, 1, 1], [], []>} : vector<2x32xf32>, vector<32x32xf32>, vector<2x32xf32> -> vector<2x32xf32>
    %503 = arith.addf %499, %502 : vector<2x32xf32>
    %504 = vector.extract_strided_slice %9 {offsets = [14, 0], sizes = [2, 32], strides = [1, 1]} : vector<16x32xf32> to vector<2x32xf32>
    %505 = vector.extract_strided_slice %21 {offsets = [0, 0], sizes = [2, 32], strides = [1, 1]} : vector<16x32xf32> to vector<2x32xf32>
    %506 = arith.addf %504, %505 : vector<2x32xf32>
    %c2_262 = arith.constant 2 : index
    %c0_263 = arith.constant 0 : index
    %c0_264 = arith.constant 0 : index
    %507 = vector.load %arg4[%c2_262, %c0_263, %c0_264] : memref<4x1x32xf32, #tpu.memory_space<vmem>>, vector<1x1x32xf32>
    %508 = vector.shape_cast %507 : vector<1x1x32xf32> to vector<1x32xf32>
    %509 = vector.broadcast %508 : vector<1x32xf32> to vector<2x32xf32>
    %510 = arith.addf %506, %509 : vector<2x32xf32>
    %c2_265 = arith.constant 2 : index
    %c0_266 = arith.constant 0 : index
    %c0_267 = arith.constant 0 : index
    %511 = vector.load %arg3[%c2_265, %c0_266, %c0_267] : memref<4x32x32xf32, #tpu.memory_space<vmem>>, vector<1x32x32xf32>
    %512 = vector.shape_cast %511 : vector<1x32x32xf32> to vector<32x32xf32>
    %cst_268 = arith.constant dense<0.000000e+00> : vector<2x32xf32>
    %513 = tpu.matmul %481, %512, %cst_268 {dimension_numbers = #tpu.dot_dimension_numbers<[1], [0], [0], [1], [0, 0, 1, 1], [], []>} : vector<2x32xf32>, vector<32x32xf32>, vector<2x32xf32> -> vector<2x32xf32>
    %514 = arith.addf %510, %513 : vector<2x32xf32>
    %515 = vector.extract_strided_slice %12 {offsets = [14, 0], sizes = [2, 32], strides = [1, 1]} : vector<16x32xf32> to vector<2x32xf32>
    %516 = vector.extract_strided_slice %24 {offsets = [0, 0], sizes = [2, 32], strides = [1, 1]} : vector<16x32xf32> to vector<2x32xf32>
    %517 = arith.addf %515, %516 : vector<2x32xf32>
    %c3_269 = arith.constant 3 : index
    %c0_270 = arith.constant 0 : index
    %c0_271 = arith.constant 0 : index
    %518 = vector.load %arg4[%c3_269, %c0_270, %c0_271] : memref<4x1x32xf32, #tpu.memory_space<vmem>>, vector<1x1x32xf32>
    %519 = vector.shape_cast %518 : vector<1x1x32xf32> to vector<1x32xf32>
    %520 = vector.broadcast %519 : vector<1x32xf32> to vector<2x32xf32>
    %521 = arith.addf %517, %520 : vector<2x32xf32>
    %c3_272 = arith.constant 3 : index
    %c0_273 = arith.constant 0 : index
    %c0_274 = arith.constant 0 : index
    %522 = vector.load %arg3[%c3_272, %c0_273, %c0_274] : memref<4x32x32xf32, #tpu.memory_space<vmem>>, vector<1x32x32xf32>
    %523 = vector.shape_cast %522 : vector<1x32x32xf32> to vector<32x32xf32>
    %cst_275 = arith.constant dense<0.000000e+00> : vector<2x32xf32>
    %524 = tpu.matmul %481, %523, %cst_275 {dimension_numbers = #tpu.dot_dimension_numbers<[1], [0], [0], [1], [0, 0, 1, 1], [], []>} : vector<2x32xf32>, vector<32x32xf32>, vector<2x32xf32> -> vector<2x32xf32>
    %525 = arith.addf %521, %524 : vector<2x32xf32>
    %526 = arith.negf %492 : vector<2x32xf32>
    %527 = math.exp %526 : vector<2x32xf32>
    %cst_276 = arith.constant 1.000000e+00 : f32
    %528 = vector.broadcast %cst_276 : f32 to vector<2x32xf32>
    %529 = arith.addf %528, %527 : vector<2x32xf32>
    %530 = arith.divf %528, %529 : vector<2x32xf32>
    %531 = arith.negf %503 : vector<2x32xf32>
    %532 = math.exp %531 : vector<2x32xf32>
    %cst_277 = arith.constant 1.000000e+00 : f32
    %533 = vector.broadcast %cst_277 : f32 to vector<2x32xf32>
    %534 = arith.addf %533, %532 : vector<2x32xf32>
    %535 = arith.divf %533, %534 : vector<2x32xf32>
    %536 = math.tanh %514 : vector<2x32xf32>
    %537 = arith.negf %525 : vector<2x32xf32>
    %538 = math.exp %537 : vector<2x32xf32>
    %cst_278 = arith.constant 1.000000e+00 : f32
    %539 = vector.broadcast %cst_278 : f32 to vector<2x32xf32>
    %540 = arith.addf %539, %538 : vector<2x32xf32>
    %541 = arith.divf %539, %540 : vector<2x32xf32>
    %542 = arith.mulf %535, %479 : vector<2x32xf32>
    %543 = arith.mulf %530, %536 : vector<2x32xf32>
    %544 = arith.addf %542, %543 : vector<2x32xf32>
    %545 = math.tanh %544 : vector<2x32xf32>
    %546 = arith.mulf %541, %545 : vector<2x32xf32>
    %c0_279 = arith.constant 0 : index
    %c0_280 = arith.constant 0 : index
    %547 = vector.load %arg5[%c0_279, %c0_280] : memref<32x64xf32, #tpu.memory_space<vmem>>, vector<32x64xf32>
    %cst_281 = arith.constant dense<0.000000e+00> : vector<2x64xf32>
    %548 = tpu.matmul %546, %547, %cst_281 {dimension_numbers = #tpu.dot_dimension_numbers<[1], [0], [0], [1], [0, 0, 1, 1], [], []>} : vector<2x32xf32>, vector<32x64xf32>, vector<2x64xf32> -> vector<2x64xf32>
    %c0_282 = arith.constant 0 : index
    %c0_283 = arith.constant 0 : index
    %549 = vector.load %arg6[%c0_282, %c0_283] : memref<1x64xf32, #tpu.memory_space<vmem>>, vector<1x64xf32>
    %550 = vector.broadcast %549 : vector<1x64xf32> to vector<2x64xf32>
    %551 = arith.addf %548, %550 : vector<2x64xf32>
    %cst_284 = arith.constant 0.000000e+00 : f32
    %552 = vector.broadcast %cst_284 : f32 to vector<2x64xf32>
    %553 = arith.maximumf %551, %552 : vector<2x64xf32>
    %c0_285 = arith.constant 0 : index
    %c0_286 = arith.constant 0 : index
    %554 = vector.load %arg7[%c0_285, %c0_286] : memref<64x32xf32, #tpu.memory_space<vmem>>, vector<64x32xf32>
    %cst_287 = arith.constant dense<0.000000e+00> : vector<2x32xf32>
    %555 = tpu.matmul %553, %554, %cst_287 {dimension_numbers = #tpu.dot_dimension_numbers<[1], [0], [0], [1], [0, 0, 1, 1], [], []>} : vector<2x64xf32>, vector<64x32xf32>, vector<2x32xf32> -> vector<2x32xf32>
    %c0_288 = arith.constant 0 : index
    %c0_289 = arith.constant 0 : index
    %556 = vector.load %arg8[%c0_288, %c0_289] : memref<1x32xf32, #tpu.memory_space<vmem>>, vector<1x32xf32>
    %557 = vector.broadcast %556 : vector<1x32xf32> to vector<2x32xf32>
    %558 = arith.addf %555, %557 : vector<2x32xf32>
    %c0_290 = arith.constant 0 : index
    %c0_291 = arith.constant 0 : index
    %559 = vector.load %arg9[%c0_290, %c0_291] : memref<2x32xf32, #tpu.memory_space<vmem>>, vector<2x32xf32>
    tpu.vector_store %arg9[%c0_290, %c0_291], %558 {strides = array<i32>} : memref<2x32xf32, #tpu.memory_space<vmem>>, vector<2x32xf32>,
    return
  }
}

module attributes {stable_mosaic.version = 11 : i64} {
  func.func @_decoders_kernel(%arg0: memref<2x32xf32, #tpu.memory_space<vmem>>, %arg1: memref<2x32xf32, #tpu.memory_space<vmem>>, %arg2: memref<2x32xf32, #tpu.memory_space<vmem>>, %arg3: memref<32x128xf32, #tpu.memory_space<vmem>>, %arg4: memref<1x128xf32, #tpu.memory_space<vmem>>, %arg5: memref<128x256xf32, #tpu.memory_space<vmem>>, %arg6: memref<256x512xf32, #tpu.memory_space<vmem>>, %arg7: memref<32x64xf32, #tpu.memory_space<vmem>>, %arg8: memref<1x64xf32, #tpu.memory_space<vmem>>, %arg9: memref<1x64xf32, #tpu.memory_space<vmem>>, %arg10: memref<1x64xf32, #tpu.memory_space<vmem>>, %arg11: memref<64x6xf32, #tpu.memory_space<vmem>>, %arg12: memref<1x6xf32, #tpu.memory_space<vmem>>, %arg13: memref<2x32xf32, #tpu.memory_space<vmem>>, %arg14: memref<2x512xf32, #tpu.memory_space<vmem>>, %arg15: memref<2x6xf32, #tpu.memory_space<vmem>>) attributes {dimension_semantics = [], scalar_prefetch = 0 : i64, scratch_operands = 0 : i64, tpu.core_type = #tpu.core_type<tc>} {
    %c0 = arith.constant 0 : index
    %c0_0 = arith.constant 0 : index
    %0 = vector.load %arg0[%c0, %c0_0] : memref<2x32xf32, #tpu.memory_space<vmem>>, vector<2x32xf32>
    %c0_1 = arith.constant 0 : index
    %c0_2 = arith.constant 0 : index
    %1 = vector.load %arg1[%c0_1, %c0_2] : memref<2x32xf32, #tpu.memory_space<vmem>>, vector<2x32xf32>
    %cst = arith.constant 5.000000e-01 : f32
    %2 = vector.broadcast %cst : f32 to vector<2x32xf32>
    %3 = arith.mulf %2, %1 : vector<2x32xf32>
    %4 = math.exp %3 : vector<2x32xf32>
    %c0_3 = arith.constant 0 : index
    %c0_4 = arith.constant 0 : index
    %5 = vector.load %arg2[%c0_3, %c0_4] : memref<2x32xf32, #tpu.memory_space<vmem>>, vector<2x32xf32>
    %6 = arith.mulf %4, %5 : vector<2x32xf32>
    %7 = arith.addf %0, %6 : vector<2x32xf32>
    %c0_5 = arith.constant 0 : index
    %c0_6 = arith.constant 0 : index
    %8 = vector.load %arg13[%c0_5, %c0_6] : memref<2x32xf32, #tpu.memory_space<vmem>>, vector<2x32xf32>
    tpu.vector_store %arg13[%c0_5, %c0_6], %7 {strides = array<i32>} : memref<2x32xf32, #tpu.memory_space<vmem>>, vector<2x32xf32>,
    %c0_7 = arith.constant 0 : index
    %c0_8 = arith.constant 0 : index
    %9 = vector.load %arg3[%c0_7, %c0_8] : memref<32x128xf32, #tpu.memory_space<vmem>>, vector<32x128xf32>
    %cst_9 = arith.constant dense<0.000000e+00> : vector<2x128xf32>
    %10 = tpu.matmul %7, %9, %cst_9 {dimension_numbers = #tpu.dot_dimension_numbers<[1], [0], [0], [1], [0, 0, 1, 1], [], []>} : vector<2x32xf32>, vector<32x128xf32>, vector<2x128xf32> -> vector<2x128xf32>
    %c0_10 = arith.constant 0 : index
    %c0_11 = arith.constant 0 : index
    %11 = vector.load %arg4[%c0_10, %c0_11] : memref<1x128xf32, #tpu.memory_space<vmem>>, vector<1x128xf32>
    %12 = vector.broadcast %11 : vector<1x128xf32> to vector<2x128xf32>
    %13 = arith.addf %10, %12 : vector<2x128xf32>
    %c0_12 = arith.constant 0 : index
    %c0_13 = arith.constant 0 : index
    %14 = vector.load %arg5[%c0_12, %c0_13] : memref<128x256xf32, #tpu.memory_space<vmem>>, vector<128x256xf32>
    %cst_14 = arith.constant dense<0.000000e+00> : vector<2x256xf32>
    %15 = tpu.matmul %13, %14, %cst_14 {dimension_numbers = #tpu.dot_dimension_numbers<[1], [0], [0], [1], [0, 0, 1, 1], [], []>} : vector<2x128xf32>, vector<128x256xf32>, vector<2x256xf32> -> vector<2x256xf32>
    %cst_15 = arith.constant 0.000000e+00 : f32
    %16 = vector.broadcast %cst_15 : f32 to vector<2x256xf32>
    %17 = arith.cmpf oge, %15, %16 : vector<2x256xf32>
    %cst_16 = arith.constant 1.000000e-01 : f32
    %18 = vector.broadcast %cst_16 : f32 to vector<2x256xf32>
    %19 = arith.mulf %18, %15 : vector<2x256xf32>
    %20 = arith.select %17, %15, %19 : vector<2x256xi1>, vector<2x256xf32>
    %c0_17 = arith.constant 0 : index
    %c0_18 = arith.constant 0 : index
    %21 = vector.load %arg6[%c0_17, %c0_18] : memref<256x512xf32, #tpu.memory_space<vmem>>, vector<256x512xf32>
    %cst_19 = arith.constant dense<0.000000e+00> : vector<2x512xf32>
    %22 = tpu.matmul %20, %21, %cst_19 {dimension_numbers = #tpu.dot_dimension_numbers<[1], [0], [0], [1], [0, 0, 1, 1], [], []>} : vector<2x256xf32>, vector<256x512xf32>, vector<2x512xf32> -> vector<2x512xf32>
    %cst_20 = arith.constant 0.000000e+00 : f32
    %23 = vector.broadcast %cst_20 : f32 to vector<2x512xf32>
    %24 = arith.cmpf oge, %22, %23 : vector<2x512xf32>
    %cst_21 = arith.constant 1.000000e-01 : f32
    %25 = vector.broadcast %cst_21 : f32 to vector<2x512xf32>
    %26 = arith.mulf %25, %22 : vector<2x512xf32>
    %27 = arith.select %24, %22, %26 : vector<2x512xi1>, vector<2x512xf32>
    %c0_22 = arith.constant 0 : index
    %c0_23 = arith.constant 0 : index
    %28 = vector.load %arg14[%c0_22, %c0_23] : memref<2x512xf32, #tpu.memory_space<vmem>>, vector<2x512xf32>
    tpu.vector_store %arg14[%c0_22, %c0_23], %27 {strides = array<i32>} : memref<2x512xf32, #tpu.memory_space<vmem>>, vector<2x512xf32>,
    %c0_24 = arith.constant 0 : index
    %c0_25 = arith.constant 0 : index
    %29 = vector.load %arg7[%c0_24, %c0_25] : memref<32x64xf32, #tpu.memory_space<vmem>>, vector<32x64xf32>
    %cst_26 = arith.constant dense<0.000000e+00> : vector<2x64xf32>
    %30 = tpu.matmul %7, %29, %cst_26 {dimension_numbers = #tpu.dot_dimension_numbers<[1], [0], [0], [1], [0, 0, 1, 1], [], []>} : vector<2x32xf32>, vector<32x64xf32>, vector<2x64xf32> -> vector<2x64xf32>
    %c0_27 = arith.constant 0 : index
    %c0_28 = arith.constant 0 : index
    %31 = vector.load %arg8[%c0_27, %c0_28] : memref<1x64xf32, #tpu.memory_space<vmem>>, vector<1x64xf32>
    %32 = vector.broadcast %31 : vector<1x64xf32> to vector<2x64xf32>
    %33 = arith.addf %30, %32 : vector<2x64xf32>
    %cst_29 = arith.constant 0.000000e+00 : f32
    %34 = vector.broadcast %cst_29 : f32 to vector<2x64xf32>
    %35 = arith.maximumf %33, %34 : vector<2x64xf32>
    %cst_30 = arith.constant dense<0.000000e+00> : vector<2xf32>
    %36 = vector.multi_reduction <add>, %35, %cst_30 [1] : vector<2x64xf32> to vector<2xf32>
    %37 = vector.shape_cast %36 : vector<2xf32> to vector<2x1xf32>
    %cst_31 = arith.constant 6.400000e+01 : f32
    %38 = vector.broadcast %cst_31 : f32 to vector<2x1xf32>
    %39 = arith.divf %37, %38 : vector<2x1xf32>
    %40 = vector.broadcast %39 : vector<2x1xf32> to vector<2x64xf32>
    %41 = arith.subf %35, %40 : vector<2x64xf32>
    %42 = arith.mulf %41, %41 : vector<2x64xf32>
    %cst_32 = arith.constant dense<0.000000e+00> : vector<2xf32>
    %43 = vector.multi_reduction <add>, %42, %cst_32 [1] : vector<2x64xf32> to vector<2xf32>
    %44 = vector.shape_cast %43 : vector<2xf32> to vector<2x1xf32>
    %cst_33 = arith.constant 6.400000e+01 : f32
    %45 = vector.broadcast %cst_33 : f32 to vector<2x1xf32>
    %46 = arith.divf %44, %45 : vector<2x1xf32>
    %47 = vector.broadcast %39 : vector<2x1xf32> to vector<2x64xf32>
    %48 = arith.subf %35, %47 : vector<2x64xf32>
    %cst_34 = arith.constant 9.99999974E-6 : f32
    %49 = vector.broadcast %cst_34 : f32 to vector<2x1xf32>
    %50 = arith.addf %46, %49 : vector<2x1xf32>
    %51 = math.rsqrt %50 : vector<2x1xf32>
    %52 = vector.broadcast %51 : vector<2x1xf32> to vector<2x64xf32>
    %53 = arith.mulf %48, %52 : vector<2x64xf32>
    %c0_35 = arith.constant 0 : index
    %c0_36 = arith.constant 0 : index
    %54 = vector.load %arg9[%c0_35, %c0_36] : memref<1x64xf32, #tpu.memory_space<vmem>>, vector<1x64xf32>
    %55 = vector.broadcast %54 : vector<1x64xf32> to vector<2x64xf32>
    %56 = arith.mulf %53, %55 : vector<2x64xf32>
    %c0_37 = arith.constant 0 : index
    %c0_38 = arith.constant 0 : index
    %57 = vector.load %arg10[%c0_37, %c0_38] : memref<1x64xf32, #tpu.memory_space<vmem>>, vector<1x64xf32>
    %58 = vector.broadcast %57 : vector<1x64xf32> to vector<2x64xf32>
    %59 = arith.addf %56, %58 : vector<2x64xf32>
    %c0_39 = arith.constant 0 : index
    %c0_40 = arith.constant 0 : index
    %60 = vector.load %arg11[%c0_39, %c0_40] : memref<64x6xf32, #tpu.memory_space<vmem>>, vector<64x6xf32>
    %cst_41 = arith.constant dense<0.000000e+00> : vector<2x6xf32>
    %61 = tpu.matmul %59, %60, %cst_41 {dimension_numbers = #tpu.dot_dimension_numbers<[1], [0], [0], [1], [0, 0, 1, 1], [], []>} : vector<2x64xf32>, vector<64x6xf32>, vector<2x6xf32> -> vector<2x6xf32>
    %c0_42 = arith.constant 0 : index
    %c0_43 = arith.constant 0 : index
    %62 = vector.load %arg12[%c0_42, %c0_43] : memref<1x6xf32, #tpu.memory_space<vmem>>, vector<1x6xf32>
    %63 = vector.broadcast %62 : vector<1x6xf32> to vector<2x6xf32>
    %64 = arith.addf %61, %63 : vector<2x6xf32>
    %cst_44 = arith.constant 0.000000e+00 : f32
    %65 = vector.broadcast %cst_44 : f32 to vector<2x6xf32>
    %66 = arith.maximumf %64, %65 : vector<2x6xf32>
    %67 = math.absf %64 : vector<2x6xf32>
    %cst_45 = arith.constant 0.000000e+00 : f32
    %68 = vector.broadcast %cst_45 : f32 to vector<2x6xf32>
    %69 = arith.subf %68, %67 : vector<2x6xf32>
    %70 = math.exp %69 : vector<2x6xf32>
    %71 = math.log1p %70 : vector<2x6xf32>
    %72 = arith.addf %66, %71 : vector<2x6xf32>
    %c0_46 = arith.constant 0 : index
    %c0_47 = arith.constant 0 : index
    %73 = vector.load %arg15[%c0_46, %c0_47] : memref<2x6xf32, #tpu.memory_space<vmem>>, vector<2x6xf32>
    tpu.vector_store %arg15[%c0_46, %c0_47], %72 {strides = array<i32>} : memref<2x6xf32, #tpu.memory_space<vmem>>, vector<2x6xf32>,
    return
  }
}

</mosaic_0001>

<bundles_post_ra>
// kernel: run.4
= control target key start
LH: loop header
LB: loop body
LE: loop exit
PB: predicated region body
PF: predicated region fallthrough
CT: control target
= control target key end

     0   :  { %vm42_vm0 = vcmask 1045504   ;;  %vm35_vm1 = vcmask 48128   ;;  %v4441_v10 = vmov 0.0   ;;  %vm4442_vm2 = vmmov 0   ;;  %s5237_s1 = inlined_call_operand.vmem [shape: f32[4,6,32], index: 1, kind: input, shape index: {}]   ;;  %s5238_s0 = inlined_call_operand.vmem [shape: f32[16,6], index: 0, kind: input, shape index: {}]   ;;  %s5239_s2 = inlined_call_operand.vmem [shape: f32[4,6,32], index: 2, kind: input, shape index: {}]   ;;  %s5240_s3 = inlined_call_operand.vmem [shape: f32[4,32,32], index: 3, kind: input, shape index: {}]   ;;  %s5241_s4 = inlined_call_operand.vmem [shape: f32[4,1,32], index: 4, kind: input, shape index: {}]   ;;  %s5242_s5 = inlined_call_operand.vmem [shape: f32[32,64], index: 5, kind: input, shape index: {}]   ;;  %s5243_s7 = inlined_call_operand.vmem [shape: f32[64,32], index: 7, kind: input, shape index: {}]   ;;  %s5244_s6 = inlined_call_operand.vmem [shape: f32[1,64], index: 6, kind: input, shape index: {}]   ;;  %s5245_s8 = inlined_call_operand.vmem [shape: f32[1,32], index: 8, kind: input, shape index: {}]   ;;  %s5246_s9 = inlined_call_operand.vmem [shape: f32[2,32], index: 9, kind: output, shape index: {}]  }
   0x1   :  { %v34_v0 = vld [vmem:[%s5237_s1] sm:$0x3f]  ;;  %v3581_v1 = vld [vmem:[%s5237_s1 + $0x18] sm:$0x3f]  ;;  %v33_v3 = vld [vmem:[%s5238_s0 + $0x8] sm:$0xff]  ;;  %vm696_vm3 = vcmask 261120  }
   0x2   :  { %v32_v2 = vld [vmem:[%s5238_s0] sm:$0xff]  ;;  %3873 = vmatprep.subr.msk.mxu0 %vm42_vm0, %v34_v0  ;;  %3888 = vmatprep.subr.msk.mxu1 %vm42_vm0, %v3581_v1  ;;  %v3573_v4 = vld [vmem:[%s5237_s1 + $0x8] sm:$0x3f]  ;;  %v3577_v6 = vld [vmem:[%s5237_s1 + $0x10] sm:$0x3f]  ;;  %vm3490_vm4 = vcmask 523264  }
   0x3   :  { %3874 = vmatpush3.msk.msra.mxu0 %vm42_vm0, %v34_v0  ;;  %3875 = vmatprep.mubr.msk.f32.mxu0 %vm35_vm1, %v32_v2  ;;  %v3588_v5 = vld [vmem:[%s5239_s2 + $0x8] sm:$0x3f]  ;;  %v3596_v7 = vld [vmem:[%s5239_s2 + $0x18] sm:$0x3f]  ;;  %v361_v8 = vld [vmem:[%s5239_s2] sm:$0x3f] }
   0x4   :  { %3889 = vmatpush3.msk.msra.mxu1 %vm42_vm0, %v3581_v1  ;;  %3890 = vmatprep.mubr.msk.f32.mxu1 %vm35_vm1, %v32_v2  ;;  %v4545_v9 = vld [vmem:[%s5240_s3 + $0x38] sm:$0xff]  ;;  %v4554_v11 = vld [vmem:[%s5240_s3 + $0x30] sm:$0xff]  ;;  %v4566_v13 = vld [vmem:[%s5240_s3 + $0x28] sm:$0xff]  ;;  %vm3564_vm5 = vcmask 254976  }
   0x5   :  { %3876 = vmatmul.mubr.msk.f32.vlgmr.msra.gmra.mxu0 %vm35_vm1, %v33_v3  ;;  %3878 = vmatprep.subr.msk.mxu0 %vm42_vm0, %v3573_v4  ;;  %v3592_v12 = vld [vmem:[%s5239_s2 + $0x10] sm:$0x3f]  ;;  %v4575_v14 = vld [vmem:[%s5240_s3 + $0x20] sm:$0xff]  ;;  %v4587_v15 = vld [vmem:[%s5240_s3 + $0x18] sm:$0xff] }
   0x6   :  { %3891 = vmatmul.mubr.msk.f32.vlgmr.msra.gmra.mxu1 %vm35_vm1, %v33_v3  ;;  %3879 = vmatpush3.msk.msra.mxu0 %vm42_vm0, %v3573_v4  ;;  %v4592_v16 = vld [vmem:[%s5240_s3 + $0x78] sm:$0xff]  ;;  %v4601_v17 = vld [vmem:[%s5240_s3 + $0x10] sm:$0xff]  ;;  %v4615_v19 = vld [vmem:[%s5240_s3 + $0x8] sm:$0xff] }
   0x7   :  { %3898 = vmatprep.subr.msk.mxu1 %vm42_vm0, %v3588_v5  ;;  %3880 = vmatprep.mubr.msk.f32.mxu0 %vm35_vm1, %v32_v2  ;;  %v4606_v18 = vld [vmem:[%s5240_s3 + $0x70] sm:$0xff]  ;;  %v4620_v20 = vld [vmem:[%s5240_s3 + $0x68] sm:$0xff]  ;;  %v4629_v21 = vld [vmem:[%s5240_s3] sm:$0xff] }
   0x8   :  { %3899 = vmatpush3.msk.msra.mxu1 %vm42_vm0, %v3588_v5  ;;  %3900 = vmatprep.mubr.msk.f32.mxu1 %vm35_vm1, %v32_v2  ;;  %v4636_v22 = vld [vmem:[%s5240_s3 + $0x60] sm:$0xff]  ;;  %v4646_v23 = vld [vmem:[%s5240_s3 + $0x58] sm:$0xff]  ;;  %v4656_v24 = vld [vmem:[%s5240_s3 + $0x50] sm:$0xff] }
   0x9   :  { %3881 = vmatmul.mubr.msk.f32.vlgmr.msra.gmra.mxu0 %vm35_vm1, %v33_v3  ;;  %3883 = vmatprep.subr.msk.mxu0 %vm42_vm0, %v3577_v6  ;;  %v4664_v25 = vld [vmem:[%s5240_s3 + $0x48] sm:$0xff]  ;;  %v4674_v26 = vld [vmem:[%s5240_s3 + $0x40] sm:$0xff] }
   0xa   :  { %3901 = vmatmul.mubr.msk.f32.vlgmr.msra.gmra.mxu1 %vm35_vm1, %v33_v3  ;;  %3884 = vmatpush3.msk.msra.mxu0 %vm42_vm0, %v3577_v6  ;;  %v3602_v35 = vld [vmem:[%s5241_s4 + $0x1] ss:$0 sm:$0xff]  ;;  %v3614_v56 = vld [vmem:[%s5241_s4 + $0x3] ss:$0 sm:$0xff]  ;;  %v3600_v61 = vld [vmem:[%s5241_s4] ss:$0 sm:$0xff] }
   0xb   :  { %3908 = vmatprep.subr.msk.mxu1 %vm42_vm0, %v3596_v7  ;;  %3885 = vmatprep.mubr.msk.f32.mxu0 %vm35_vm1, %v32_v2 }
   0xc   :  { %3909 = vmatpush3.msk.msra.mxu1 %vm42_vm0, %v3596_v7  ;;  %3910 = vmatprep.mubr.msk.f32.mxu1 %vm35_vm1, %v32_v2 }
   0xd   :  { %3924 = vmatprep.subr.mxu1 %v4441_v10  ;;  %3886 = vmatmul.mubr.msk.f32.vlgmr.msra.gmra.mxu0 %vm35_vm1, %v33_v3 }
   0xe   :  { %3893 = vmatprep.subr.msk.mxu0 %vm42_vm0, %v361_v8  ;;  %3911 = vmatmul.mubr.msk.f32.vlgmr.msra.gmra.mxu1 %vm35_vm1, %v33_v3 }
   0xf   :  { %3925 = vmatpush3.msra.mxu1 %v4545_v9  ;;  %3894 = vmatpush3.msk.msra.mxu0 %vm42_vm0, %v361_v8 }
  0x10   :  { %3926 = vmatprep.subr.mxu1 %v4441_v10  ;;  %3895 = vmatprep.mubr.msk.f32.mxu0 %vm35_vm1, %v32_v2 }
  0x11   :  { %3927 = vmatpush3.msra.mxu1 %v4554_v11  ;;  %3896 = vmatmul.mubr.msk.f32.vlgmr.msra.gmra.mxu0 %vm35_vm1, %v33_v3 }
  0x12   :  { %3928 = vmatprep.subr.mxu1 %v4441_v10  ;;  %3903 = vmatprep.subr.msk.mxu0 %vm42_vm0, %v3592_v12 }
  0x13   :  { %3929 = vmatpush3.msra.mxu1 %v4566_v13  ;;  %3904 = vmatpush3.msk.msra.mxu0 %vm42_vm0, %v3592_v12 }
  0x14   :  { %3930 = vmatprep.subr.mxu1 %v4441_v10  ;;  %3932 = vmatprep.mubr.msk.f32.mxu1 %vm4442_vm2, %v4441_v10 }
  0x15   :  { %3931 = vmatpush3.msra.mxu1 %v4575_v14  ;;  %3905 = vmatprep.mubr.msk.f32.mxu0 %vm35_vm1, %v32_v2 }
  0x16   :  { %3913 = vmatprep.subr.mxu0 %v4441_v10  ;;  %3933 = vmatmul.mubr.f32.vlgmr.msra.gmra.mxu1 %v4441_v10 }
  0x17   :  { %3946 = vmatprep.subr.mxu1 %v4441_v10  ;;  %3906 = vmatmul.mubr.msk.f32.vlgmr.msra.gmra.mxu0 %vm35_vm1, %v33_v3 }
  0x18   :  { %3914 = vmatpush3.msra.mxu0 %v4587_v15  ;;  %3947 = vmatpush3.msra.mxu1 %v4592_v16 }
  0x19   :  { %3915 = vmatprep.subr.mxu0 %v4441_v10  ;;  %3948 = vmatprep.subr.mxu1 %v4441_v10 }
  0x1a   :  { %3916 = vmatpush3.msra.mxu0 %v4601_v17  ;;  %3949 = vmatpush3.msra.mxu1 %v4606_v18 }
  0x1b   :  { %3917 = vmatprep.subr.mxu0 %v4441_v10  ;;  %3950 = vmatprep.subr.mxu1 %v4441_v10 }
  0x1c   :  { %3918 = vmatpush3.msra.mxu0 %v4615_v19  ;;  %3951 = vmatpush3.msra.mxu1 %v4620_v20 }
  0x1d   :  { %3919 = vmatprep.subr.mxu0 %v4441_v10  ;;  %3952 = vmatprep.subr.mxu1 %v4441_v10 }
  0x1e   :  { %3920 = vmatpush3.msra.mxu0 %v4629_v21  ;;  %3921 = vmatprep.mubr.msk.f32.mxu0 %vm4442_vm2, %v4441_v10 }
  0x1f   :  { %3953 = vmatpush3.msra.mxu1 %v4636_v22  ;;  %3954 = vmatprep.mubr.msk.f32.mxu1 %vm4442_vm2, %v4441_v10 }
  0x20   :  { %3922 = vmatmul.mubr.f32.vlgmr.msra.gmra.mxu0 %v4441_v10  ;;  %3935 = vmatprep.subr.mxu0 %v4441_v10 }
  0x21   :  { %3955 = vmatmul.mubr.f32.vlgmr.msra.gmra.mxu1 %v4441_v10  ;;  %3936 = vmatpush3.msra.mxu0 %v4646_v23 }
  0x22   :  { %3937 = vmatprep.subr.mxu0 %v4441_v10  ;;  %3943 = vmatprep.mubr.msk.f32.mxu0 %vm4442_vm2, %v4441_v10 }
  0x23   :  { %3938 = vmatpush3.msra.mxu0 %v4656_v24  ;;  %3968 = vmatprep.subr.mxu1 %v4441_v10 }
  0x24   :  { %3939 = vmatprep.subr.mxu0 %v4441_v10  ;;  %3969 = vmatpush3.msra.mxu1 %v4545_v9 }
  0x25   :  { %3940 = vmatpush3.msra.mxu0 %v4664_v25  ;;  %3970 = vmatprep.subr.mxu1 %v4441_v10 }
  0x26   :  { %3941 = vmatprep.subr.mxu0 %v4441_v10  ;;  %3971 = vmatpush3.msra.mxu1 %v4554_v11 }
  0x27   :  { %3942 = vmatpush3.msra.mxu0 %v4674_v26  ;;  %3972 = vmatprep.subr.mxu1 %v4441_v10 }
  0x28   :  { %3944 = vmatmul.mubr.f32.vlgmr.msra.gmra.mxu0 %v4441_v10  ;;  %3957 = vmatprep.subr.mxu0 %v4441_v10 }
  0x29   :  { %3958 = vmatpush3.msra.mxu0 %v4587_v15  ;;  %3973 = vmatpush3.msra.mxu1 %v4566_v13 }
  0x2a   :  { %3959 = vmatprep.subr.mxu0 %v4441_v10  ;;  %3974 = vmatprep.subr.mxu1 %v4441_v10 }
  0x2b   :  { %3960 = vmatpush3.msra.mxu0 %v4601_v17  ;;  %3975 = vmatpush3.msra.mxu1 %v4575_v14 }
  0x2c   :  { %3961 = vmatprep.subr.mxu0 %v4441_v10  ;;  %3965 = vmatprep.mubr.msk.f32.mxu0 %vm4442_vm2, %v4441_v10 }
  0x2d   :  { %3962 = vmatpush3.msra.mxu0 %v4615_v19  ;;  %3976 = vmatprep.mubr.msk.f32.mxu1 %vm4442_vm2, %v4441_v10 }
  0x2e   :  { %3963 = vmatprep.subr.mxu0 %v4441_v10  ;;  %3990 = vmatprep.subr.mxu1 %v4441_v10 }
  0x2f   :  { %3964 = vmatpush3.msra.mxu0 %v4629_v21 }
  0x30   :  { %3979 = vmatprep.subr.mxu0 %v4441_v10 }
  0xc5   :  { %v3877_v27 = vpop.f32.mrf.mxu0 }
  0xc6   :  { %v3892_v28 = vpop.f32.mrf.mxu1 }
  0xc7   :  { %v112_v29 = vpop.f32.mrf.mxu0 }
  0xc8   :  { %v4701_v30 = vpop.f32.mrf.mxu1 }
  0xc9   :  { %v3882_v31 = vpop.f32.mrf.mxu0 }
  0xca   :  { %v3902_v32 = vpop.f32.mrf.mxu1 }
  0xcb   :  { %v1143_v33 = vrot.slane %v3902_v32, 2  ;;  %v192_v34 = vpop.f32.mrf.mxu0  ;;  %v772_v37 = vrot.slane %v3902_v32, 6 }
  0xcc   :  { %v511_v36 = vpop.f32.mrf.mxu1 }
  0xcd   :  { %v1145_v38 = vadd.f32 %v1143_v33, %v192_v34  ;;  %v2139_v39 = vrot.slane %v511_v36, 6  ;;  %v2474_v40 = vrot.slane %v511_v36, 2  ;;  %v3887_v41 = vpop.f32.mrf.mxu0  ;;  %v774_v49 = vadd.f32 %v772_v37, %v192_v34  ;;  %v3608_v37 = vld [vmem:[%s5241_s4 + $0x2] ss:$0 sm:$0xff] }
  0xce   :  { %v3912_v42 = vpop.f32.mrf.mxu1 }
  0xcf   :  { %v4706_v43 = vadd.f32 %v3602_v35, %v1145_v38  ;;  %v2141_v44 = vadd.f32 %v3882_v31, %v2139_v39  ;;  %v2476_v45 = vadd.f32 %v3882_v31, %v2474_v40  ;;  %v272_v46 = vpop.f32.mrf.mxu0  ;;  %v1299_v47 = vrot.slane %v3912_v42, 2 }
  0xd0   :  { %v671_v48 = vpop.f32.mrf.mxu1  ;;  %v4719_v1 = vadd.f32 %v3602_v35, %v774_v49 }
  0xd1   :  { %v2291_v50 = vrot.slane %v671_v48, 6  ;;  %v2630_v51 = vrot.slane %v671_v48, 2  ;;  %v3897_v52 = vpop.f32.mrf.mxu0  ;;  %v4708_v53 = vadd.f32 %v3602_v35, %v2141_v44  ;;  %v1301_v54 = vadd.f32 %v1299_v47, %v4701_v30 }
  0xd2   :  { %v1062_v55 = vrot.slane %v3897_v52, 2  ;;  %v4714_v57 = vadd.f32 %v3602_v35, %v2476_v45  ;;  %v681_v12 = vrot.slane %v3897_v52, 6  ;;  %v950_v52 = vrot.slane %v3912_v42, 6 }
  0xd3   :  { %v2293_v58 = vadd.f32 %v3892_v28, %v2291_v50  ;;  %v2632_v59 = vadd.f32 %v3892_v28, %v2630_v51  ;;  %v431_v60 = vpop.f32.mrf.mxu0  ;;  %v4721_v2 = vadd.f32 %v3614_v56, %v1301_v54 }
  0xd4   :  { %v1064_v62 = vadd.f32 %v1062_v55, %v112_v29  ;;  %v2059_v63 = vrot.slane %v431_v60, 6  ;;  %v2393_v0 = vrot.slane %v431_v60, 2  ;;  %v683_v40 = vadd.f32 %v681_v12, %v112_v29 }
  0xd5   :  { %v4723_v3 = vadd.f32 %v3614_v56, %v2293_v58  ;;  %v4725_v4 = vadd.f32 %v3614_v56, %v2632_v59 }
  0xd6   :  { %v2061_v5 = vadd.f32 %v3877_v27, %v2059_v63  ;;  %v2395_v6 = vadd.f32 %v3877_v27, %v2393_v0  ;;  %v855_v7 = vpop.f32.mrf.mxu1  ;;  %v4727_v8 = vadd.f32 %v3600_v61, %v1064_v62  ;;  %v4743_v51 = vadd.f32 %v3600_v61, %v683_v40 }
  0xd7   :  { %v859_v28 = vadd.f32 %v855_v7, %v4719_v1  ;;  %v3907_v31 = vpop.f32.mrf.mxu0  ;;  %v952_v62 = vadd.f32 %v950_v52, %v4701_v30 }
  0xd8   :  { %v1221_v32 = vrot.slane %v3907_v31, 2  ;;  %v3934_v33 = vpop.f32.mrf.mxu1  ;;  %v4730_v34 = vadd.f32 %v3600_v61, %v2061_v5  ;;  %v4732_v35 = vadd.f32 %v3600_v61, %v2395_v6 }
  0xd9   :  { %v591_v36 = vpop.f32.mrf.mxu0  ;;  %v3620_v44 = vmul.f32 -1.442695, %v859_v28  ;;  %v4747_v63 = vadd.f32 %v3614_v56, %v952_v62 }
  0xda   :  { %v1223_v38 = vadd.f32 %v1221_v32, %v272_v46  ;;  %v2215_v27 = vrot.slane %v591_v36, 6  ;;  %v2552_v39 = vrot.slane %v591_v36, 2 }
  0xdb   :  { %4297 = vpow2.f32 %v3620_v44 }
  0xdc   :  { %v2217_v45 = vadd.f32 %v3887_v41, %v2215_v27  ;;  %v2554_v47 = vadd.f32 %v3887_v41, %v2552_v39  ;;  %v4737_v48 = vadd.f32 %v3608_v37, %v1223_v38  ;;  %v861_v41 = vrot.slane %v3907_v31, 6 }
  0xde   :  { %v4739_v49 = vadd.f32 %v3608_v37, %v2217_v45  ;;  %v4741_v50 = vadd.f32 %v3608_v37, %v2554_v47  ;;  %v863_v5 = vadd.f32 %v861_v41, %v272_v46 }
  0xe0   :  { %v766_v54 = vpop.f32.mrf.mxu0  ;;  %v4750_v12 = vadd.f32 %v3608_v37, %v863_v5 }
  0xe1   :  { %v770_v55 = vadd.f32 %v766_v54, %v4743_v51  ;;  %v1033_v58 = vpop.f32.mrf.mxu1 }
  0xe2   :  { %v3923_v59 = vpop.f32.mrf.mxu0  ;;  %v1037_v6 = vadd.f32 %v1033_v58, %v4747_v63 }
  0xe3   :  { %v3619_v60 = vmul.f32 -1.442695, %v770_v55  ;;  %v3956_v29 = vpop.f32.mrf.mxu1 }
  0xe4   :  { %v3621_v42 = vmul.f32 -1.442695, %v1037_v6 }
  0xe5   :  { %4299 = vpow2.f32 %v3619_v60 }
  0xe6   :  { %4301 = vpow2.f32 %v3621_v42 }
  0xe8   :  { %v944_v0 = vpop.f32.mrf.mxu0  ;;  %v4298_v7 = vpop.eup %4297 }
  0xe9   :  { %v1047_v28 = vadd.f32 1.0, %v4298_v7  ;;  %v948_v32 = vadd.f32 %v944_v0, %v4750_v12 }
  0xea   :  { %v3945_v61 = vpop.f32.mrf.mxu0 }
  0xeb   :  { %4303 = vrcp.f32 %v1047_v28 }
  0xec   :  { %4305 = vtanh.f32 %v948_v32 }
  0xf2   :  { %v4300_v33 = vpop.eup %4299 }
  0xf3   :  { %v1041_v30 = vadd.f32 1.0, %v4300_v33  ;;  %v4302_v56 = vpop.eup %4301 }
  0xf4   :  { %v1054_v38 = vadd.f32 1.0, %v4302_v56 }
  0xf5   :  { %4307 = vrcp.f32 %v1041_v30 }
  0xf6   :  { %4309 = vrcp.f32 %v1054_v38 }
  0xf8   :  { %v4304_v31 = vpop.eup %4303 }
  0xf9   :  { %v4306_v36 = vpop.eup %4305  ;;  %v1057_v27 = vmul.f32 0.0, %v4304_v31 }
 0x102   :  { %v4308_v46 = vpop.eup %4307 }
 0x103   :  { %v1058_v39 = vmul.f32 %v4308_v46, %v4306_v36  ;;  %v4310_v37 = vpop.eup %4309 }
 0x105   :  { %v4753_v40 = vadd.f32 %v1058_v39, %v1057_v27 }
 0x107   :  { %4311 = vtanh.f32 %v4753_v40  ;;  %v1397_v39 = vrot.slane %v4753_v40, 6 }
 0x114   :  { %v4312_v44 = vpop.eup %4311 }
 0x115   :  { %v1061_v45 = vmul.f32 %v4312_v44, %v4310_v37 }
 0x117   :  { %3966 = vmatmul.mubr.msk.f32.vlgmr.msra.gmra.mxu0 %vm696_vm3, %v1061_v45  ;;  %3977 = vmatmul.mubr.msk.f32.vlgmr.msra.gmra.mxu1 %vm696_vm3, %v1061_v45 }
 0x118   :  { %3980 = vmatpush3.msra.mxu0 %v4646_v23  ;;  %3991 = vmatpush3.msra.mxu1 %v4592_v16 }
 0x119   :  { %3981 = vmatprep.subr.mxu0 %v4441_v10  ;;  %3992 = vmatprep.subr.mxu1 %v4441_v10 }
 0x11a   :  { %3982 = vmatpush3.msra.mxu0 %v4656_v24  ;;  %3993 = vmatpush3.msra.mxu1 %v4606_v18 }
 0x11b   :  { %3983 = vmatprep.subr.mxu0 %v4441_v10  ;;  %3994 = vmatprep.subr.mxu1 %v4441_v10 }
 0x11c   :  { %3984 = vmatpush3.msra.mxu0 %v4664_v25  ;;  %3995 = vmatpush3.msra.mxu1 %v4620_v20 }
 0x11d   :  { %3985 = vmatprep.subr.mxu0 %v4441_v10  ;;  %3996 = vmatprep.subr.mxu1 %v4441_v10 }
 0x11e   :  { %3986 = vmatpush3.msra.mxu0 %v4674_v26  ;;  %3987 = vmatprep.mubr.msk.f32.mxu0 %vm4442_vm2, %v4441_v10 }
 0x11f   :  { %3997 = vmatpush3.msra.mxu1 %v4636_v22  ;;  %3998 = vmatprep.mubr.msk.f32.mxu1 %vm4442_vm2, %v4441_v10 }
 0x120   :  { %3988 = vmatmul.mubr.msk.f32.vlgmr.msra.gmra.mxu0 %vm696_vm3, %v1061_v45  ;;  %3999 = vmatmul.mubr.msk.f32.vlgmr.msra.gmra.mxu1 %vm696_vm3, %v1061_v45 }
 0x121   :  { %4001 = vmatprep.subr.mxu0 %v4441_v10  ;;  %4012 = vmatprep.subr.mxu1 %v4441_v10 }
 0x122   :  { %4002 = vmatpush3.msra.mxu0 %v4587_v15  ;;  %4013 = vmatpush3.msra.mxu1 %v4545_v9 }
 0x123   :  { %4003 = vmatprep.subr.mxu0 %v4441_v10  ;;  %4014 = vmatprep.subr.mxu1 %v4441_v10 }
 0x124   :  { %4004 = vmatpush3.msra.mxu0 %v4601_v17  ;;  %4015 = vmatpush3.msra.mxu1 %v4554_v11 }
 0x125   :  { %4005 = vmatprep.subr.mxu0 %v4441_v10  ;;  %4016 = vmatprep.subr.mxu1 %v4441_v10 }
 0x126   :  { %4006 = vmatpush3.msra.mxu0 %v4615_v19  ;;  %4017 = vmatpush3.msra.mxu1 %v4566_v13 }
 0x127   :  { %4007 = vmatprep.subr.mxu0 %v4441_v10  ;;  %4018 = vmatprep.subr.mxu1 %v4441_v10 }
 0x128   :  { %4008 = vmatpush3.msra.mxu0 %v4629_v21  ;;  %4019 = vmatpush3.msra.mxu1 %v4575_v14 }
 0x129   :  { %4009 = vmatprep.mubr.msk.f32.mxu0 %vm4442_vm2, %v4441_v10  ;;  %4020 = vmatprep.mubr.msk.f32.mxu1 %vm4442_vm2, %v4441_v10 }
 0x12a   :  { %4023 = vmatprep.subr.mxu0 %v4441_v10  ;;  %4034 = vmatprep.subr.mxu1 %v4441_v10 }
 0x1d7   :  { %v1135_v47 = vpop.f32.mrf.mxu0  ;;  %v1213_v52 = vpop.f32.mrf.mxu1 }
 0x1d8   :  { %v1140_v54 = vrot.slane %v1135_v47, 6  ;;  %v1218_v55 = vrot.slane %v1213_v52, 6 }
 0x1d9   :  { %v3967_v58 = vpop.f32.mrf.mxu0  ;;  %v3978_v59 = vpop.f32.mrf.mxu1 }
 0x1da   :  { %v1142_v60 = vadd.f32 %v1140_v54, %v4727_v8  ;;  %v1220_v29 = vadd.f32 %v1218_v55, %v4706_v43 }
 0x1dc   :  { %v3626_v62 = vmul.f32 -1.442695, %v1142_v60  ;;  %v3627_v41 = vmul.f32 -1.442695, %v1220_v29 }
 0x1de   :  { %4313 = vpow2.f32 %v3626_v62 }
 0x1df   :  { %4315 = vpow2.f32 %v3627_v41 }
 0x1e0   :  { %v1291_v0 = vpop.f32.mrf.mxu0  ;;  %v1369_v5 = vpop.f32.mrf.mxu1 }
 0x1e1   :  { %v1374_v6 = vrot.slane %v1369_v5, 6  ;;  %v1296_v28 = vrot.slane %v1291_v0, 6 }
 0x1e2   :  { %v3989_v61 = vpop.f32.mrf.mxu0  ;;  %v4000_v7 = vpop.f32.mrf.mxu1 }
 0x1e3   :  { %v1376_v42 = vadd.f32 %v1374_v6, %v4721_v2  ;;  %v1298_v33 = vadd.f32 %v1296_v28, %v4737_v48 }
 0x1e5   :  { %v3628_v32 = vmul.f32 -1.442695, %v1376_v42 }
 0x1e7   :  { %4317 = vpow2.f32 %v3628_v32 }
 0x1e8   :  { %4319 = vtanh.f32 %v1298_v33 }
 0x1eb   :  { %v4314_v30 = vpop.eup %4313 }
 0x1ec   :  { %v4316_v56 = vpop.eup %4315  ;;  %v1380_v31 = vadd.f32 1.0, %v4314_v30 }
 0x1ed   :  { %v1386_v36 = vadd.f32 1.0, %v4316_v56 }
 0x1ee   :  { %4321 = vrcp.f32 %v1380_v31 }
 0x1ef   :  { %4323 = vrcp.f32 %v1386_v36 }
 0x1f4   :  { %v4318_v46 = vpop.eup %4317 }
 0x1f5   :  { %v4320_v38 = vpop.eup %4319  ;;  %v1393_v45 = vadd.f32 1.0, %v4318_v46 }
 0x1f7   :  { %4325 = vrcp.f32 %v1393_v45 }
 0x1fb   :  { %v4322_v27 = vpop.eup %4321 }
 0x1fc   :  { %v4324_v37 = vpop.eup %4323  ;;  %v1400_v44 = vmul.f32 %v4322_v27, %v4320_v38 }
 0x1fd   :  { %v1399_v47 = vmul.f32 %v4324_v37, %v1397_v39 }
 0x1ff   :  { %v4805_v52 = vadd.f32 %v1400_v44, %v1399_v47 }
 0x201   :  { %4327 = vtanh.f32 %v4805_v52  ;;  %v1724_v45 = vrot.slane %v4805_v52, 6 }
 0x204   :  { %v4326_v54 = vpop.eup %4325 }
 0x20e   :  { %v4328_v55 = vpop.eup %4327 }
 0x20f   :  { %v1403_v58 = vmul.f32 %v4328_v55, %v4326_v54 }
 0x211   :  { %v1405_v59 = vrot.slane %v1403_v58, 2 }
 0x213   :  { %4010 = vmatmul.mubr.msk.f32.vlgmr.msra.gmra.mxu0 %vm696_vm3, %v1405_v59  ;;  %4021 = vmatmul.mubr.msk.f32.vlgmr.msra.gmra.mxu1 %vm696_vm3, %v1405_v59 }
 0x214   :  { %4024 = vmatpush3.msra.mxu0 %v4646_v23  ;;  %4035 = vmatpush3.msra.mxu1 %v4592_v16 }
 0x215   :  { %4025 = vmatprep.subr.mxu0 %v4441_v10  ;;  %4036 = vmatprep.subr.mxu1 %v4441_v10 }
 0x216   :  { %4026 = vmatpush3.msra.mxu0 %v4656_v24  ;;  %4037 = vmatpush3.msra.mxu1 %v4606_v18 }
 0x217   :  { %4027 = vmatprep.subr.mxu0 %v4441_v10  ;;  %4038 = vmatprep.subr.mxu1 %v4441_v10 }
 0x218   :  { %4028 = vmatpush3.msra.mxu0 %v4664_v25  ;;  %4039 = vmatpush3.msra.mxu1 %v4620_v20 }
 0x219   :  { %4029 = vmatprep.subr.mxu0 %v4441_v10  ;;  %4040 = vmatprep.subr.mxu1 %v4441_v10 }
 0x21a   :  { %4030 = vmatpush3.msra.mxu0 %v4674_v26  ;;  %4031 = vmatprep.mubr.msk.f32.mxu0 %vm4442_vm2, %v4441_v10 }
 0x21b   :  { %4041 = vmatpush3.msra.mxu1 %v4636_v22  ;;  %4042 = vmatprep.mubr.msk.f32.mxu1 %vm4442_vm2, %v4441_v10 }
 0x21c   :  { %4032 = vmatmul.mubr.msk.f32.vlgmr.msra.gmra.mxu0 %vm696_vm3, %v1405_v59  ;;  %4043 = vmatmul.mubr.msk.f32.vlgmr.msra.gmra.mxu1 %vm696_vm3, %v1405_v59 }
 0x21d   :  { %4045 = vmatprep.subr.mxu0 %v4441_v10  ;;  %4056 = vmatprep.subr.mxu1 %v4441_v10 }
 0x21e   :  { %4046 = vmatpush3.msra.mxu0 %v4587_v15  ;;  %4057 = vmatpush3.msra.mxu1 %v4545_v9 }
 0x21f   :  { %4047 = vmatprep.subr.mxu0 %v4441_v10  ;;  %4058 = vmatprep.subr.mxu1 %v4441_v10 }
 0x220   :  { %4048 = vmatpush3.msra.mxu0 %v4601_v17  ;;  %4059 = vmatpush3.msra.mxu1 %v4554_v11 }
 0x221   :  { %4049 = vmatprep.subr.mxu0 %v4441_v10  ;;  %4060 = vmatprep.subr.mxu1 %v4441_v10 }
 0x222   :  { %4050 = vmatpush3.msra.mxu0 %v4615_v19  ;;  %4061 = vmatpush3.msra.mxu1 %v4566_v13 }
 0x223   :  { %4051 = vmatprep.subr.mxu0 %v4441_v10  ;;  %4062 = vmatprep.subr.mxu1 %v4441_v10 }
 0x224   :  { %4052 = vmatpush3.msra.mxu0 %v4629_v21  ;;  %4063 = vmatpush3.msra.mxu1 %v4575_v14 }
 0x225   :  { %4053 = vmatprep.mubr.msk.f32.mxu0 %vm4442_vm2, %v4441_v10  ;;  %4064 = vmatprep.mubr.msk.f32.mxu1 %vm4442_vm2, %v4441_v10 }
 0x226   :  { %4067 = vmatprep.subr.mxu0 %v4441_v10  ;;  %4078 = vmatprep.subr.mxu1 %v4441_v10 }
 0x2d3   :  { %v1474_v40 = vpop.f32.mrf.mxu0  ;;  %v1548_v60 = vpop.f32.mrf.mxu1 }
 0x2d4   :  { %v1479_v29 = vrot.slane %v1474_v40, 4  ;;  %v1553_v62 = vrot.slane %v1548_v60, 4 }
 0x2d5   :  { %v4011_v41 = vpop.f32.mrf.mxu0  ;;  %v4022_v0 = vpop.f32.mrf.mxu1 }
 0x2d6   :  { %v1481_v5 = vadd.f32 %v1479_v29, %v4743_v51  ;;  %v1555_v6 = vadd.f32 %v1553_v62, %v4719_v1 }
 0x2d8   :  { %v3633_v61 = vmul.f32 -1.442695, %v1481_v5  ;;  %v3634_v7 = vmul.f32 -1.442695, %v1555_v6 }
 0x2da   :  { %4329 = vpow2.f32 %v3633_v61 }
 0x2db   :  { %4331 = vpow2.f32 %v3634_v7 }
 0x2dc   :  { %v1622_v42 = vpop.f32.mrf.mxu0  ;;  %v1696_v28 = vpop.f32.mrf.mxu1 }
 0x2dd   :  { %v1701_v32 = vrot.slane %v1696_v28, 4  ;;  %v1627_v31 = vrot.slane %v1622_v42, 4 }
 0x2de   :  { %v4033_v33 = vpop.f32.mrf.mxu0  ;;  %v4044_v30 = vpop.f32.mrf.mxu1 }
 0x2df   :  { %v1703_v56 = vadd.f32 %v1701_v32, %v4747_v63  ;;  %v1629_v46 = vadd.f32 %v1627_v31, %v4750_v12 }
 0x2e1   :  { %v3635_v36 = vmul.f32 -1.442695, %v1703_v56 }
 0x2e3   :  { %4333 = vpow2.f32 %v3635_v36 }
 0x2e4   :  { %4335 = vtanh.f32 %v1629_v46 }
 0x2e7   :  { %v4330_v38 = vpop.eup %4329 }
 0x2e8   :  { %v4332_v27 = vpop.eup %4331  ;;  %v1707_v51 = vadd.f32 1.0, %v4330_v38 }
 0x2e9   :  { %v1713_v1 = vadd.f32 1.0, %v4332_v27 }
 0x2ea   :  { %4337 = vrcp.f32 %v1707_v51 }
 0x2eb   :  { %4339 = vrcp.f32 %v1713_v1 }
 0x2f0   :  { %v4334_v39 = vpop.eup %4333 }
 0x2f1   :  { %v4336_v37 = vpop.eup %4335  ;;  %v1720_v63 = vadd.f32 1.0, %v4334_v39 }
 0x2f3   :  { %4341 = vrcp.f32 %v1720_v63 }
 0x2f7   :  { %v4338_v44 = vpop.eup %4337 }
 0x2f8   :  { %v4340_v47 = vpop.eup %4339  ;;  %v1727_v54 = vmul.f32 %v4338_v44, %v4336_v37 }
 0x2f9   :  { %v1726_v55 = vmul.f32 %v4340_v47, %v1724_v45 }
 0x2fb   :  { %v4857_v58 = vadd.f32 %v1727_v54, %v1726_v55 }
 0x2fd   :  { %4343 = vtanh.f32 %v4857_v58  ;;  %v2051_v44 = vrot.slane %v4857_v58, 6 }
 0x300   :  { %v4342_v12 = vpop.eup %4341 }
 0x30a   :  { %v4344_v59 = vpop.eup %4343 }
 0x30b   :  { %v1730_v40 = vmul.f32 %v4344_v59, %v4342_v12 }
 0x30d   :  { %v1732_v60 = vrot.slane %v1730_v40, 4 }
 0x30f   :  { %4054 = vmatmul.mubr.msk.f32.vlgmr.msra.gmra.mxu0 %vm696_vm3, %v1732_v60  ;;  %4065 = vmatmul.mubr.msk.f32.vlgmr.msra.gmra.mxu1 %vm696_vm3, %v1732_v60 }
 0x310   :  { %4068 = vmatpush3.msra.mxu0 %v4646_v23  ;;  %4079 = vmatpush3.msra.mxu1 %v4592_v16 }
 0x311   :  { %4069 = vmatprep.subr.mxu0 %v4441_v10  ;;  %4080 = vmatprep.subr.mxu1 %v4441_v10 }
 0x312   :  { %4070 = vmatpush3.msra.mxu0 %v4656_v24  ;;  %4081 = vmatpush3.msra.mxu1 %v4606_v18 }
 0x313   :  { %4071 = vmatprep.subr.mxu0 %v4441_v10  ;;  %4082 = vmatprep.subr.mxu1 %v4441_v10 }
 0x314   :  { %4072 = vmatpush3.msra.mxu0 %v4664_v25  ;;  %4083 = vmatpush3.msra.mxu1 %v4620_v20 }
 0x315   :  { %4073 = vmatprep.subr.mxu0 %v4441_v10  ;;  %4084 = vmatprep.subr.mxu1 %v4441_v10 }
 0x316   :  { %4074 = vmatpush3.msra.mxu0 %v4674_v26  ;;  %4075 = vmatprep.mubr.msk.f32.mxu0 %vm4442_vm2, %v4441_v10 }
 0x317   :  { %4085 = vmatpush3.msra.mxu1 %v4636_v22  ;;  %4086 = vmatprep.mubr.msk.f32.mxu1 %vm4442_vm2, %v4441_v10 }
 0x318   :  { %4076 = vmatmul.mubr.msk.f32.vlgmr.msra.gmra.mxu0 %vm696_vm3, %v1732_v60  ;;  %4087 = vmatmul.mubr.msk.f32.vlgmr.msra.gmra.mxu1 %vm696_vm3, %v1732_v60 }
 0x319   :  { %4089 = vmatprep.subr.mxu0 %v4441_v10  ;;  %4100 = vmatprep.subr.mxu1 %v4441_v10 }
 0x31a   :  { %4090 = vmatpush3.msra.mxu0 %v4587_v15  ;;  %4101 = vmatpush3.msra.mxu1 %v4545_v9 }
 0x31b   :  { %4091 = vmatprep.subr.mxu0 %v4441_v10  ;;  %4102 = vmatprep.subr.mxu1 %v4441_v10 }
 0x31c   :  { %4092 = vmatpush3.msra.mxu0 %v4601_v17  ;;  %4103 = vmatpush3.msra.mxu1 %v4554_v11 }
 0x31d   :  { %4093 = vmatprep.subr.mxu0 %v4441_v10  ;;  %4104 = vmatprep.subr.mxu1 %v4441_v10 }
 0x31e   :  { %4094 = vmatpush3.msra.mxu0 %v4615_v19  ;;  %4105 = vmatpush3.msra.mxu1 %v4566_v13 }
 0x31f   :  { %4095 = vmatprep.subr.mxu0 %v4441_v10  ;;  %4106 = vmatprep.subr.mxu1 %v4441_v10 }
 0x320   :  { %4096 = vmatpush3.msra.mxu0 %v4629_v21  ;;  %4107 = vmatpush3.msra.mxu1 %v4575_v14 }
 0x321   :  { %4097 = vmatprep.mubr.msk.f32.mxu0 %vm4442_vm2, %v4441_v10  ;;  %4108 = vmatprep.mubr.msk.f32.mxu1 %vm4442_vm2, %v4441_v10 }
 0x322   :  { %4111 = vmatprep.subr.mxu0 %v4441_v10  ;;  %4122 = vmatprep.subr.mxu1 %v4441_v10 }
 0x3cf   :  { %v1801_v52 = vpop.f32.mrf.mxu0  ;;  %v1875_v29 = vpop.f32.mrf.mxu1 }
 0x3d0   :  { %v1806_v62 = vrot.slane %v1801_v52, 2  ;;  %v1880_v41 = vrot.slane %v1875_v29, 2 }
 0x3d1   :  { %v4055_v0 = vpop.f32.mrf.mxu0  ;;  %v4066_v5 = vpop.f32.mrf.mxu1 }
 0x3d2   :  { %v1808_v6 = vadd.f32 %v1806_v62, %v4727_v8  ;;  %v1882_v61 = vadd.f32 %v1880_v41, %v4706_v43 }
 0x3d4   :  { %v3640_v7 = vmul.f32 -1.442695, %v1808_v6  ;;  %v3641_v42 = vmul.f32 -1.442695, %v1882_v61 }
 0x3d6   :  { %4345 = vpow2.f32 %v3640_v7 }
 0x3d7   :  { %4347 = vpow2.f32 %v3641_v42 }
 0x3d8   :  { %v1949_v28 = vpop.f32.mrf.mxu0  ;;  %v2023_v32 = vpop.f32.mrf.mxu1 }
 0x3d9   :  { %v2028_v33 = vrot.slane %v2023_v32, 2  ;;  %v1954_v36 = vrot.slane %v1949_v28, 2 }
 0x3da   :  { %v4077_v30 = vpop.f32.mrf.mxu0  ;;  %v4088_v56 = vpop.f32.mrf.mxu1 }
 0x3db   :  { %v2030_v31 = vadd.f32 %v2028_v33, %v4721_v2  ;;  %v1956_v38 = vadd.f32 %v1954_v36, %v4737_v48 }
 0x3dd   :  { %v3642_v46 = vmul.f32 -1.442695, %v2030_v31 }
 0x3df   :  { %4349 = vpow2.f32 %v3642_v46 }
 0x3e0   :  { %4351 = vtanh.f32 %v1956_v38 }
 0x3e3   :  { %v4346_v27 = vpop.eup %4345 }
 0x3e4   :  { %v4348_v51 = vpop.eup %4347  ;;  %v2034_v8 = vadd.f32 1.0, %v4346_v27 }
 0x3e5   :  { %v2040_v43 = vadd.f32 1.0, %v4348_v51 }
 0x3e6   :  { %4353 = vrcp.f32 %v2034_v8 }
 0x3e7   :  { %4355 = vrcp.f32 %v2040_v43 }
 0x3ec   :  { %v4350_v1 = vpop.eup %4349 }
 0x3ed   :  { %v4352_v39 = vpop.eup %4351  ;;  %v2047_v2 = vadd.f32 1.0, %v4350_v1 }
 0x3ef   :  { %4357 = vrcp.f32 %v2047_v2 }
 0x3f3   :  { %v4354_v37 = vpop.eup %4353 }
 0x3f4   :  { %v4356_v45 = vpop.eup %4355  ;;  %v2054_v47 = vmul.f32 %v4354_v37, %v4352_v39 }
 0x3f5   :  { %v2053_v54 = vmul.f32 %v4356_v45, %v2051_v44 }
 0x3f7   :  { %v4909_v63 = vadd.f32 %v2054_v47, %v2053_v54 }
 0x3f9   :  { %4359 = vtanh.f32 %v4909_v63  ;;  %v2386_v32 = vrot.slane %v4909_v63, 6 }
 0x3fc   :  { %v4358_v48 = vpop.eup %4357 }
 0x406   :  { %v4360_v55 = vpop.eup %4359 }
 0x407   :  { %v2057_v12 = vmul.f32 %v4360_v55, %v4358_v48 }
 0x409   :  { %v2064_v59 = vrot.slane %v2057_v12, 6 }
 0x40b   :  { %4098 = vmatmul.mubr.msk.f32.vlgmr.msra.gmra.mxu0 %vm696_vm3, %v2064_v59  ;;  %4109 = vmatmul.mubr.msk.f32.vlgmr.msra.gmra.mxu1 %vm696_vm3, %v2064_v59 }
 0x40c   :  { %4112 = vmatpush3.msra.mxu0 %v4646_v23  ;;  %4123 = vmatpush3.msra.mxu1 %v4592_v16 }
 0x40d   :  { %4113 = vmatprep.subr.mxu0 %v4441_v10  ;;  %4124 = vmatprep.subr.mxu1 %v4441_v10 }
 0x40e   :  { %4114 = vmatpush3.msra.mxu0 %v4656_v24  ;;  %4125 = vmatpush3.msra.mxu1 %v4606_v18 }
 0x40f   :  { %4115 = vmatprep.subr.mxu0 %v4441_v10  ;;  %4126 = vmatprep.subr.mxu1 %v4441_v10 }
 0x410   :  { %4116 = vmatpush3.msra.mxu0 %v4664_v25  ;;  %4127 = vmatpush3.msra.mxu1 %v4620_v20 }
 0x411   :  { %4117 = vmatprep.subr.mxu0 %v4441_v10  ;;  %4128 = vmatprep.subr.mxu1 %v4441_v10 }
 0x412   :  { %4118 = vmatpush3.msra.mxu0 %v4674_v26  ;;  %4119 = vmatprep.mubr.msk.f32.mxu0 %vm4442_vm2, %v4441_v10 }
 0x413   :  { %4129 = vmatpush3.msra.mxu1 %v4636_v22  ;;  %4130 = vmatprep.mubr.msk.f32.mxu1 %vm4442_vm2, %v4441_v10 }
 0x414   :  { %4120 = vmatmul.mubr.msk.f32.vlgmr.msra.gmra.mxu0 %vm696_vm3, %v2064_v59  ;;  %4131 = vmatmul.mubr.msk.f32.vlgmr.msra.gmra.mxu1 %vm696_vm3, %v2064_v59 }
 0x415   :  { %4133 = vmatprep.subr.mxu0 %v4441_v10  ;;  %4144 = vmatprep.subr.mxu1 %v4441_v10 }
 0x416   :  { %4134 = vmatpush3.msra.mxu0 %v4587_v15  ;;  %4145 = vmatpush3.msra.mxu1 %v4545_v9 }
 0x417   :  { %4135 = vmatprep.subr.mxu0 %v4441_v10  ;;  %4146 = vmatprep.subr.mxu1 %v4441_v10 }
 0x418   :  { %4136 = vmatpush3.msra.mxu0 %v4601_v17  ;;  %4147 = vmatpush3.msra.mxu1 %v4554_v11 }
 0x419   :  { %4137 = vmatprep.subr.mxu0 %v4441_v10  ;;  %4148 = vmatprep.subr.mxu1 %v4441_v10 }
 0x41a   :  { %4138 = vmatpush3.msra.mxu0 %v4615_v19  ;;  %4149 = vmatpush3.msra.mxu1 %v4566_v13 }
 0x41b   :  { %4139 = vmatprep.subr.mxu0 %v4441_v10  ;;  %4150 = vmatprep.subr.mxu1 %v4441_v10 }
 0x41c   :  { %4140 = vmatpush3.msra.mxu0 %v4629_v21  ;;  %4151 = vmatpush3.msra.mxu1 %v4575_v14 }
 0x41d   :  { %4141 = vmatprep.mubr.msk.f32.mxu0 %vm4442_vm2, %v4441_v10  ;;  %4152 = vmatprep.mubr.msk.f32.mxu1 %vm4442_vm2, %v4441_v10 }
 0x41e   :  { %4155 = vmatprep.subr.mxu0 %v4441_v10  ;;  %4166 = vmatprep.subr.mxu1 %v4441_v10 }
 0x4cb   :  { %v2133_v9 = vpop.f32.mrf.mxu0  ;;  %v2209_v11 = vpop.f32.mrf.mxu1 }
 0x4cc   :  { %v2137_v13 = vadd.f32 %v2133_v9, %v4730_v34  ;;  %v2213_v15 = vadd.f32 %v2209_v11, %v4708_v53 }
 0x4cd   :  { %v4099_v17 = vpop.f32.mrf.mxu0  ;;  %v4110_v19 = vpop.f32.mrf.mxu1 }
 0x4ce   :  { %v3647_v21 = vmul.f32 -1.442695, %v2137_v13  ;;  %v3648_v14 = vmul.f32 -1.442695, %v2213_v15 }
 0x4d0   :  { %4361 = vpow2.f32 %v3647_v21 }
 0x4d1   :  { %4363 = vpow2.f32 %v3648_v14 }
 0x4d4   :  { %v2285_v58 = vpop.f32.mrf.mxu0  ;;  %v2361_v40 = vpop.f32.mrf.mxu1 }
 0x4d5   :  { %v2365_v60 = vadd.f32 %v2361_v40, %v4723_v3  ;;  %v2289_v41 = vadd.f32 %v2285_v58, %v4739_v49 }
 0x4d6   :  { %v4121_v52 = vpop.f32.mrf.mxu0  ;;  %v4132_v29 = vpop.f32.mrf.mxu1 }
 0x4d7   :  { %v3649_v62 = vmul.f32 -1.442695, %v2365_v60 }
 0x4d9   :  { %4365 = vpow2.f32 %v3649_v62 }
 0x4da   :  { %4367 = vtanh.f32 %v2289_v41 }
 0x4dd   :  { %v4362_v0 = vpop.eup %4361 }
 0x4de   :  { %v4364_v5 = vpop.eup %4363  ;;  %v2369_v6 = vadd.f32 1.0, %v4362_v0 }
 0x4df   :  { %v2375_v61 = vadd.f32 1.0, %v4364_v5 }
 0x4e0   :  { %4369 = vrcp.f32 %v2369_v6 }
 0x4e1   :  { %4371 = vrcp.f32 %v2375_v61 }
 0x4e6   :  { %v4366_v7 = vpop.eup %4365 }
 0x4e7   :  { %v4368_v42 = vpop.eup %4367  ;;  %v2382_v56 = vadd.f32 1.0, %v4366_v7 }
 0x4e9   :  { %4373 = vrcp.f32 %v2382_v56  ;;  %v5095_v56 = vld [vmem:[%s5240_s3 + $0x68] sm:$0xff] }
 0x4ed   :  { %v4370_v28 = vpop.eup %4369 }
 0x4ee   :  { %v4372_v33 = vpop.eup %4371  ;;  %v2389_v30 = vmul.f32 %v4370_v28, %v4368_v42  ;;  %v5061_v42 = vld [vmem:[%s5240_s3 + $0x58] sm:$0xff] }
 0x4ef   :  { %v2388_v31 = vmul.f32 %v4372_v33, %v2386_v32  ;;  %v5067_v28 = vld [vmem:[%s5240_s3 + $0x78] sm:$0xff]  ;;  %v5075_v32 = vld [vmem:[%s5240_s3 + $0x50] sm:$0xff] }
 0x4f0   :  { %v5081_v33 = vld [vmem:[%s5240_s3 + $0x70] sm:$0xff] }
 0x4f1   :  { %v4961_v36 = vadd.f32 %v2389_v30, %v2388_v31  ;;  %v5089_v30 = vld [vmem:[%s5240_s3 + $0x48] sm:$0xff]  ;;  %v5103_v31 = vld [vmem:[%s5240_s3 + $0x40] sm:$0xff] }
 0x4f3   :  { %4375 = vtanh.f32 %v4961_v36  ;;  %v2728_v60 = vrot.slane %v4961_v36, 6  ;;  %v5111_v36 = vld [vmem:[%s5240_s3 + $0x60] sm:$0xff] }
 0x4f6   :  { %v4374_v46 = vpop.eup %4373 }
 0x500   :  { %v4376_v38 = vpop.eup %4375 }
 0x501   :  { %v2392_v27 = vmul.f32 %v4376_v38, %v4374_v46 }
 0x503   :  { %4142 = vmatmul.mubr.msk.f32.vlgmr.msra.gmra.mxu0 %vm696_vm3, %v2392_v27  ;;  %4153 = vmatmul.mubr.msk.f32.vlgmr.msra.gmra.mxu1 %vm696_vm3, %v2392_v27 }
 0x504   :  { %4156 = vmatpush3.msra.mxu0 %v4646_v23  ;;  %4167 = vmatpush3.msra.mxu1 %v4592_v16  ;;  %v4991_v16 = vld [vmem:[%s5240_s3 + $0x18] sm:$0xff]  ;;  %v5019_v23 = vld [vmem:[%s5240_s3 + $0x8] sm:$0xff] }
 0x505   :  { %4157 = vmatprep.subr.mxu0 %v4441_v10  ;;  %4168 = vmatprep.subr.mxu1 %v4441_v10 }
 0x506   :  { %4158 = vmatpush3.msra.mxu0 %v4656_v24  ;;  %4169 = vmatpush3.msra.mxu1 %v4606_v18  ;;  %v4997_v18 = vld [vmem:[%s5240_s3 + $0x38] sm:$0xff]  ;;  %v5025_v24 = vld [vmem:[%s5240_s3 + $0x28] sm:$0xff] }
 0x507   :  { %4159 = vmatprep.subr.mxu0 %v4441_v10  ;;  %4170 = vmatprep.subr.mxu1 %v4441_v10 }
 0x508   :  { %4160 = vmatpush3.msra.mxu0 %v4664_v25  ;;  %4171 = vmatpush3.msra.mxu1 %v4620_v20  ;;  %v5005_v20 = vld [vmem:[%s5240_s3 + $0x10] sm:$0xff]  ;;  %v5033_v25 = vld [vmem:[%s5240_s3] sm:$0xff] }
 0x509   :  { %4161 = vmatprep.subr.mxu0 %v4441_v10  ;;  %4172 = vmatprep.subr.mxu1 %v4441_v10 }
 0x50a   :  { %4162 = vmatpush3.msra.mxu0 %v4674_v26  ;;  %4163 = vmatprep.mubr.msk.f32.mxu0 %vm4442_vm2, %v4441_v10  ;;  %v5039_v26 = vld [vmem:[%s5240_s3 + $0x20] sm:$0xff] }
 0x50b   :  { %4173 = vmatpush3.msra.mxu1 %v4636_v22  ;;  %4174 = vmatprep.mubr.msk.f32.mxu1 %vm4442_vm2, %v4441_v10  ;;  %v5011_v22 = vld [vmem:[%s5240_s3 + $0x30] sm:$0xff] }
 0x50c   :  { %4164 = vmatmul.mubr.msk.f32.vlgmr.msra.gmra.mxu0 %vm696_vm3, %v2392_v27  ;;  %4175 = vmatmul.mubr.msk.f32.vlgmr.msra.gmra.mxu1 %vm696_vm3, %v2392_v27 }
 0x50d   :  { %4177 = vmatprep.subr.mxu0 %v4441_v10  ;;  %4188 = vmatprep.subr.mxu1 %v4441_v10 }
 0x50e   :  { %4178 = vmatpush3.msra.mxu0 %v4991_v16  ;;  %4189 = vmatpush3.msra.mxu1 %v4997_v18 }
 0x50f   :  { %4179 = vmatprep.subr.mxu0 %v4441_v10  ;;  %4190 = vmatprep.subr.mxu1 %v4441_v10 }
 0x510   :  { %4180 = vmatpush3.msra.mxu0 %v5005_v20  ;;  %4191 = vmatpush3.msra.mxu1 %v5011_v22 }
 0x511   :  { %4181 = vmatprep.subr.mxu0 %v4441_v10  ;;  %4192 = vmatprep.subr.mxu1 %v4441_v10 }
 0x512   :  { %4182 = vmatpush3.msra.mxu0 %v5019_v23  ;;  %4193 = vmatpush3.msra.mxu1 %v5025_v24 }
 0x513   :  { %4183 = vmatprep.subr.mxu0 %v4441_v10  ;;  %4194 = vmatprep.subr.mxu1 %v4441_v10 }
 0x514   :  { %4184 = vmatpush3.msra.mxu0 %v5033_v25  ;;  %4195 = vmatpush3.msra.mxu1 %v5039_v26 }
 0x515   :  { %4185 = vmatprep.mubr.msk.f32.mxu0 %vm4442_vm2, %v4441_v10  ;;  %4196 = vmatprep.mubr.msk.f32.mxu1 %vm4442_vm2, %v4441_v10 }
 0x516   :  { %4199 = vmatprep.subr.mxu0 %v4441_v10  ;;  %4210 = vmatprep.subr.mxu1 %v4441_v10 }
 0x5c3   :  { %v2466_v51 = vpop.f32.mrf.mxu0  ;;  %v2544_v8 = vpop.f32.mrf.mxu1 }
 0x5c4   :  { %v2471_v43 = vrot.slane %v2466_v51, 6  ;;  %v2549_v1 = vrot.slane %v2544_v8, 6 }
 0x5c5   :  { %v4143_v39 = vpop.f32.mrf.mxu0  ;;  %v4154_v37 = vpop.f32.mrf.mxu1 }
 0x5c6   :  { %v2473_v44 = vadd.f32 %v2471_v43, %v4732_v35  ;;  %v2551_v45 = vadd.f32 %v2549_v1, %v4714_v57 }
 0x5c8   :  { %v3654_v47 = vmul.f32 -1.442695, %v2473_v44  ;;  %v3655_v2 = vmul.f32 -1.442695, %v2551_v45 }
 0x5ca   :  { %4377 = vpow2.f32 %v3654_v47 }
 0x5cb   :  { %4379 = vpow2.f32 %v3655_v2 }
 0x5cc   :  { %v2622_v54 = vpop.f32.mrf.mxu0  ;;  %v2700_v63 = vpop.f32.mrf.mxu1 }
 0x5cd   :  { %v2705_v48 = vrot.slane %v2700_v63, 6  ;;  %v2627_v9 = vrot.slane %v2622_v54, 6 }
 0x5ce   :  { %v4165_v55 = vpop.f32.mrf.mxu0  ;;  %v4176_v12 = vpop.f32.mrf.mxu1 }
 0x5cf   :  { %v2707_v59 = vadd.f32 %v2705_v48, %v4725_v4  ;;  %v2629_v13 = vadd.f32 %v2627_v9, %v4741_v50 }
 0x5d1   :  { %v3656_v11 = vmul.f32 -1.442695, %v2707_v59 }
 0x5d3   :  { %4381 = vpow2.f32 %v3656_v11 }
 0x5d4   :  { %4383 = vtanh.f32 %v2629_v13 }
 0x5d7   :  { %v4378_v15 = vpop.eup %4377 }
 0x5d8   :  { %v4380_v17 = vpop.eup %4379  ;;  %v2711_v19 = vadd.f32 1.0, %v4378_v15 }
 0x5d9   :  { %v2717_v21 = vadd.f32 1.0, %v4380_v17 }
 0x5da   :  { %4385 = vrcp.f32 %v2711_v19  ;;  %v3392_v19 = vld [vmem:[%s5242_s5 + $0x18] sm:$0xff] }
 0x5db   :  { %4387 = vrcp.f32 %v2717_v21  ;;  %v3391_v21 = vld [vmem:[%s5242_s5 + $0x10] sm:$0xff] }
 0x5e0   :  { %v4382_v14 = vpop.eup %4381 }
 0x5e1   :  { %v4384_v58 = vpop.eup %4383  ;;  %v2724_v62 = vadd.f32 1.0, %v4382_v14  ;;  %v3390_v14 = vld [vmem:[%s5242_s5 + $0x8] sm:$0xff] }
 0x5e3   :  { %4389 = vrcp.f32 %v2724_v62  ;;  %v3478_v62 = vld [vmem:[%s5243_s7 + $0x18] sm:$0xff] }
 0x5e7   :  { %v4386_v40 = vpop.eup %4385 }
 0x5e8   :  { %v4388_v52 = vpop.eup %4387  ;;  %v2731_v29 = vmul.f32 %v4386_v40, %v4384_v58  ;;  %v3389_v58 = vld [vmem:[%s5242_s5] sm:$0xff]  ;;  %v3482_v40 = vld [vmem:[%s5243_s7 + $0x38] sm:$0xff] }
 0x5e9   :  { %v2730_v41 = vmul.f32 %v4388_v52, %v2728_v60  ;;  %v3481_v60 = vld [vmem:[%s5243_s7 + $0x30] sm:$0xff]  ;;  %v3480_v52 = vld [vmem:[%s5243_s7 + $0x28] sm:$0xff] }
 0x5eb   :  { %v5053_v0 = vadd.f32 %v2731_v29, %v2730_v41  ;;  %v3479_v29 = vld [vmem:[%s5243_s7 + $0x20] sm:$0xff] }
 0x5ed   :  { %4391 = vtanh.f32 %v5053_v0  ;;  %v3055_v55 = vrot.slane %v5053_v0, 6 }
 0x5f0   :  { %v4390_v5 = vpop.eup %4389 }
 0x5fa   :  { %v4392_v6 = vpop.eup %4391 }
 0x5fb   :  { %v2734_v61 = vmul.f32 %v4392_v6, %v4390_v5 }
 0x5fd   :  { %v2736_v7 = vrot.slane %v2734_v61, 2 }
 0x5ff   :  { %4186 = vmatmul.mubr.msk.f32.vlgmr.msra.gmra.mxu0 %vm696_vm3, %v2736_v7  ;;  %4197 = vmatmul.mubr.msk.f32.vlgmr.msra.gmra.mxu1 %vm696_vm3, %v2736_v7 }
 0x600   :  { %4200 = vmatpush3.msra.mxu0 %v5061_v42  ;;  %4211 = vmatpush3.msra.mxu1 %v5067_v28 }
 0x601   :  { %4201 = vmatprep.subr.mxu0 %v4441_v10  ;;  %4212 = vmatprep.subr.mxu1 %v4441_v10 }
 0x602   :  { %4202 = vmatpush3.msra.mxu0 %v5075_v32  ;;  %4213 = vmatpush3.msra.mxu1 %v5081_v33 }
 0x603   :  { %4203 = vmatprep.subr.mxu0 %v4441_v10  ;;  %4214 = vmatprep.subr.mxu1 %v4441_v10 }
 0x604   :  { %4204 = vmatpush3.msra.mxu0 %v5089_v30  ;;  %4215 = vmatpush3.msra.mxu1 %v5095_v56 }
 0x605   :  { %4205 = vmatprep.subr.mxu0 %v4441_v10  ;;  %4216 = vmatprep.subr.mxu1 %v4441_v10 }
 0x606   :  { %4206 = vmatpush3.msra.mxu0 %v5103_v31  ;;  %4207 = vmatprep.mubr.msk.f32.mxu0 %vm4442_vm2, %v4441_v10 }
 0x607   :  { %4217 = vmatpush3.msra.mxu1 %v5111_v36  ;;  %4218 = vmatprep.mubr.msk.f32.mxu1 %vm4442_vm2, %v4441_v10 }
 0x608   :  { %4208 = vmatmul.mubr.msk.f32.vlgmr.msra.gmra.mxu0 %vm696_vm3, %v2736_v7  ;;  %4219 = vmatmul.mubr.msk.f32.vlgmr.msra.gmra.mxu1 %vm696_vm3, %v2736_v7 }
 0x609   :  { %4221 = vmatprep.subr.mxu0 %v4441_v10  ;;  %4232 = vmatprep.subr.mxu1 %v4441_v10 }
 0x60a   :  { %4222 = vmatpush3.msra.mxu0 %v4991_v16  ;;  %4233 = vmatpush3.msra.mxu1 %v4997_v18 }
 0x60b   :  { %4223 = vmatprep.subr.mxu0 %v4441_v10  ;;  %4234 = vmatprep.subr.mxu1 %v4441_v10 }
 0x60c   :  { %4224 = vmatpush3.msra.mxu0 %v5005_v20  ;;  %4235 = vmatpush3.msra.mxu1 %v5011_v22 }
 0x60d   :  { %4225 = vmatprep.subr.mxu0 %v4441_v10  ;;  %4236 = vmatprep.subr.mxu1 %v4441_v10 }
 0x60e   :  { %4226 = vmatpush3.msra.mxu0 %v5019_v23  ;;  %4237 = vmatpush3.msra.mxu1 %v5025_v24 }
 0x60f   :  { %4227 = vmatprep.subr.mxu0 %v4441_v10  ;;  %4238 = vmatprep.subr.mxu1 %v4441_v10 }
 0x610   :  { %4228 = vmatpush3.msra.mxu0 %v5033_v25  ;;  %4239 = vmatpush3.msra.mxu1 %v5039_v26 }
 0x611   :  { %4229 = vmatprep.mubr.msk.f32.mxu0 %vm4442_vm2, %v4441_v10  ;;  %4240 = vmatprep.mubr.msk.f32.mxu1 %vm4442_vm2, %v4441_v10 }
 0x612   :  { %4243 = vmatprep.subr.mxu0 %v4441_v10  ;;  %4254 = vmatprep.subr.mxu1 %v4441_v10 }
 0x6bf   :  { %v2805_v46 = vpop.f32.mrf.mxu0  ;;  %v2879_v38 = vpop.f32.mrf.mxu1 }
 0x6c0   :  { %v2810_v27 = vrot.slane %v2805_v46, 4  ;;  %v2884_v16 = vrot.slane %v2879_v38, 4 }
 0x6c1   :  { %v4187_v18 = vpop.f32.mrf.mxu0  ;;  %v4198_v20 = vpop.f32.mrf.mxu1 }
 0x6c2   :  { %v2812_v22 = vadd.f32 %v2810_v27, %v4730_v34  ;;  %v2886_v23 = vadd.f32 %v2884_v16, %v4708_v53 }
 0x6c4   :  { %v3661_v24 = vmul.f32 -1.442695, %v2812_v22  ;;  %v3662_v25 = vmul.f32 -1.442695, %v2886_v23 }
 0x6c6   :  { %4393 = vpow2.f32 %v3661_v24 }
 0x6c7   :  { %4395 = vpow2.f32 %v3662_v25 }
 0x6c8   :  { %v2953_v26 = vpop.f32.mrf.mxu0  ;;  %v3027_v51 = vpop.f32.mrf.mxu1 }
 0x6c9   :  { %v3032_v8 = vrot.slane %v3027_v51, 4  ;;  %v2958_v37 = vrot.slane %v2953_v26, 4 }
 0x6ca   :  { %v4209_v43 = vpop.f32.mrf.mxu0  ;;  %v4220_v1 = vpop.f32.mrf.mxu1 }
 0x6cb   :  { %v3034_v39 = vadd.f32 %v3032_v8, %v4723_v3  ;;  %v2960_v45 = vadd.f32 %v2958_v37, %v4739_v49 }
 0x6cd   :  { %v3663_v44 = vmul.f32 -1.442695, %v3034_v39 }
 0x6cf   :  { %4397 = vpow2.f32 %v3663_v44 }
 0x6d0   :  { %4399 = vtanh.f32 %v2960_v45  ;;  %v3477_v45 = vld [vmem:[%s5243_s7 + $0x10] sm:$0xff] }
 0x6d3   :  { %v4394_v47 = vpop.eup %4393 }
 0x6d4   :  { %v4396_v2 = vpop.eup %4395  ;;  %v3038_v34 = vadd.f32 1.0, %v4394_v47  ;;  %v3476_v47 = vld [vmem:[%s5243_s7 + $0x8] sm:$0xff] }
 0x6d5   :  { %v3044_v53 = vadd.f32 1.0, %v4396_v2  ;;  %v3475_v2 = vld [vmem:[%s5243_s7] sm:$0xff] }
 0x6d6   :  { %4401 = vrcp.f32 %v3038_v34  ;;  %v3671_v34 = vld [vmem:[%s5244_s6] ss:$0 sm:$0xff] }
 0x6d7   :  { %4403 = vrcp.f32 %v3044_v53 }
 0x6dc   :  { %v4398_v54 = vpop.eup %4397 }
 0x6dd   :  { %v4400_v63 = vpop.eup %4399  ;;  %v3051_v3 = vadd.f32 1.0, %v4398_v54 }
 0x6df   :  { %4405 = vrcp.f32 %v3051_v3 }
 0x6e3   :  { %v4402_v48 = vpop.eup %4401 }
 0x6e4   :  { %v4404_v12 = vpop.eup %4403  ;;  %v3058_v59 = vmul.f32 %v4402_v48, %v4400_v63 }
 0x6e5   :  { %v3057_v9 = vmul.f32 %v4404_v12, %v3055_v55  ;;  %v3673_v55 = vld [vmem:[%s5245_s8] ss:$0 sm:$0xff] }
 0x6e7   :  { %v5145_v11 = vadd.f32 %v3058_v59, %v3057_v9 }
 0x6e9   :  { %4407 = vtanh.f32 %v5145_v11  ;;  %v3382_v26 = vrot.slane %v5145_v11, 6 }
 0x6ec   :  { %v4406_v49 = vpop.eup %4405 }
 0x6f6   :  { %v4408_v13 = vpop.eup %4407 }
 0x6f7   :  { %v3061_v15 = vmul.f32 %v4408_v13, %v4406_v49 }
 0x6f9   :  { %v3063_v17 = vrot.slane %v3061_v15, 4 }
 0x6fb   :  { %4230 = vmatmul.mubr.msk.f32.vlgmr.msra.gmra.mxu0 %vm696_vm3, %v3063_v17  ;;  %4241 = vmatmul.mubr.msk.f32.vlgmr.msra.gmra.mxu1 %vm696_vm3, %v3063_v17 }
 0x6fc   :  { %4244 = vmatpush3.msra.mxu0 %v5061_v42  ;;  %4255 = vmatpush3.msra.mxu1 %v5067_v28 }
 0x6fd   :  { %4245 = vmatprep.subr.mxu0 %v4441_v10  ;;  %4256 = vmatprep.subr.mxu1 %v4441_v10 }
 0x6fe   :  { %4246 = vmatpush3.msra.mxu0 %v5075_v32  ;;  %4257 = vmatpush3.msra.mxu1 %v5081_v33 }
 0x6ff   :  { %4247 = vmatprep.subr.mxu0 %v4441_v10  ;;  %4258 = vmatprep.subr.mxu1 %v4441_v10 }
 0x700   :  { %4248 = vmatpush3.msra.mxu0 %v5089_v30  ;;  %4259 = vmatpush3.msra.mxu1 %v5095_v56 }
 0x701   :  { %4249 = vmatprep.subr.mxu0 %v4441_v10  ;;  %4260 = vmatprep.subr.mxu1 %v4441_v10 }
 0x702   :  { %4250 = vmatpush3.msra.mxu0 %v5103_v31  ;;  %4251 = vmatprep.mubr.msk.f32.mxu0 %vm4442_vm2, %v4441_v10 }
 0x703   :  { %4261 = vmatpush3.msra.mxu1 %v5111_v36  ;;  %4262 = vmatprep.mubr.msk.f32.mxu1 %vm4442_vm2, %v4441_v10 }
 0x704   :  { %4252 = vmatmul.mubr.msk.f32.vlgmr.msra.gmra.mxu0 %vm696_vm3, %v3063_v17  ;;  %4263 = vmatmul.mubr.msk.f32.vlgmr.msra.gmra.mxu1 %vm696_vm3, %v3063_v17 }
 0x705   :  { %4265 = vmatprep.subr.mxu0 %v4441_v10  ;;  %4273 = vmatprep.mubr.msk.f32.mxu0 %vm4442_vm2, %v4441_v10 }
 0x706   :  { %4276 = vmatprep.subr.mxu1 %v4441_v10  ;;  %4292 = vmatprep.mubr.msk.f32.mxu1 %vm4442_vm2, %v4441_v10 }
 0x707   :  { %4266 = vmatpush3.msra.mxu0 %v3392_v19  ;;  %4277 = vmatpush3.msra.mxu1 %v3482_v40 }
 0x708   :  { %4267 = vmatprep.subr.mxu0 %v4441_v10  ;;  %4278 = vmatprep.subr.mxu1 %v4441_v10 }
 0x709   :  { %4268 = vmatpush3.msra.mxu0 %v3391_v21  ;;  %4279 = vmatpush3.msra.mxu1 %v3481_v60 }
 0x70a   :  { %4269 = vmatprep.subr.mxu0 %v4441_v10  ;;  %4280 = vmatprep.subr.mxu1 %v4441_v10 }
 0x70b   :  { %4270 = vmatpush3.msra.mxu0 %v3390_v14  ;;  %4281 = vmatpush3.msra.mxu1 %v3480_v52 }
 0x70c   :  { %4271 = vmatprep.subr.mxu0 %v4441_v10  ;;  %4282 = vmatprep.subr.mxu1 %v4441_v10 }
 0x70d   :  { %4272 = vmatpush3.msra.mxu0 %v3389_v58  ;;  %4283 = vmatpush3.msra.mxu1 %v3479_v29 }
 0x70e   :  { %4284 = vmatprep.subr.mxu1 %v4441_v10 }
 0x70f   :  { %4285 = vmatpush3.msra.mxu1 %v3478_v62 }
 0x710   :  { %4286 = vmatprep.subr.mxu1 %v4441_v10 }
 0x711   :  { %4287 = vmatpush3.msra.mxu1 %v3477_v45 }
 0x712   :  { %4288 = vmatprep.subr.mxu1 %v4441_v10 }
 0x713   :  { %4289 = vmatpush3.msra.mxu1 %v3476_v47 }
 0x714   :  { %4290 = vmatprep.subr.mxu1 %v4441_v10 }
 0x715   :  { %4291 = vmatpush3.msra.mxu1 %v3475_v2 }
 0x7bb   :  { %v3132_v41 = vpop.f32.mrf.mxu0  ;;  %v3206_v0 = vpop.f32.mrf.mxu1 }
 0x7bc   :  { %v3137_v5 = vrot.slane %v3132_v41, 2  ;;  %v3211_v6 = vrot.slane %v3206_v0, 2 }
 0x7bd   :  { %v4231_v61 = vpop.f32.mrf.mxu0  ;;  %v4242_v7 = vpop.f32.mrf.mxu1 }
 0x7be   :  { %v3139_v42 = vadd.f32 %v3137_v5, %v4732_v35  ;;  %v3213_v28 = vadd.f32 %v3211_v6, %v4714_v57 }
 0x7c0   :  { %v3668_v32 = vmul.f32 -1.442695, %v3139_v42  ;;  %v3669_v33 = vmul.f32 -1.442695, %v3213_v28 }
 0x7c2   :  { %4409 = vpow2.f32 %v3668_v32 }
 0x7c3   :  { %4411 = vpow2.f32 %v3669_v33 }
 0x7c4   :  { %v3280_v30 = vpop.f32.mrf.mxu0  ;;  %v3354_v56 = vpop.f32.mrf.mxu1 }
 0x7c5   :  { %v3359_v31 = vrot.slane %v3354_v56, 2  ;;  %v3285_v27 = vrot.slane %v3280_v30, 2 }
 0x7c6   :  { %v4253_v36 = vpop.f32.mrf.mxu0  ;;  %v4264_v46 = vpop.f32.mrf.mxu1 }
 0x7c7   :  { %v3361_v38 = vadd.f32 %v3359_v31, %v4725_v4  ;;  %v3287_v18 = vadd.f32 %v3285_v27, %v4741_v50 }
 0x7c9   :  { %v3670_v16 = vmul.f32 -1.442695, %v3361_v38 }
 0x7cb   :  { %4413 = vpow2.f32 %v3670_v16 }
 0x7cc   :  { %4415 = vtanh.f32 %v3287_v18 }
 0x7cf   :  { %v4410_v20 = vpop.eup %4409 }
 0x7d0   :  { %v4412_v22 = vpop.eup %4411  ;;  %v3365_v35 = vadd.f32 1.0, %v4410_v20 }
 0x7d1   :  { %v3371_v57 = vadd.f32 1.0, %v4412_v22 }
 0x7d2   :  { %4417 = vrcp.f32 %v3365_v35 }
 0x7d3   :  { %4419 = vrcp.f32 %v3371_v57 }
 0x7d8   :  { %v4414_v23 = vpop.eup %4413 }
 0x7d9   :  { %v4416_v24 = vpop.eup %4415  ;;  %v3378_v4 = vadd.f32 1.0, %v4414_v23 }
 0x7db   :  { %4421 = vrcp.f32 %v3378_v4 }
 0x7df   :  { %v4418_v25 = vpop.eup %4417 }
 0x7e0   :  { %v4420_v51 = vpop.eup %4419  ;;  %v3385_v8 = vmul.f32 %v4418_v25, %v4416_v24 }
 0x7e1   :  { %v3384_v43 = vmul.f32 %v4420_v51, %v3382_v26 }
 0x7e3   :  { %v3386_v1 = vadd.f32 %v3385_v8, %v3384_v43 }
 0x7e5   :  { %4423 = vtanh.f32 %v3386_v1 }
 0x7e8   :  { %v4422_v50 = vpop.eup %4421 }
 0x7f2   :  { %v4424_v39 = vpop.eup %4423 }
 0x7f3   :  { %v3388_v37 = vmul.f32 %v4424_v39, %v4422_v50 }
 0x7f5   :  { %v3401_v44 = vrot.slane %v3388_v37, 6 }
 0x7f7   :  { %4274 = vmatmul.mubr.msk.f32.vlgmr.msra.gmra.mxu0 %vm696_vm3, %v3401_v44 }
 0x8b7   :  { %v3470_v53 = vpop.f32.mrf.mxu0 }
 0x8b8   :  { %v3471_v54 = vadd.f32 %v3671_v34, %v3470_v53 }
 0x8b9   :  { %v4275_v63 = vpop.f32.mrf.mxu0 }
 0x8ba   :  { %v3474_v48 = vmax.f32 %v3471_v54, 0.0 }
 0x8bc   :  { %4293 = vmatmul.mubr.msk.f32.vlgmr.msra.gmra.mxu1 %vm3490_vm4, %v3474_v48 }
 0x97c   :  { %v3560_v12 = vpop.f32.mrf.mxu1 }
 0x97d   :  { %v3561_v59 = vadd.f32 %v3673_v55, %v3560_v12 }
 0x97e   :  { %v4294_v3 = vpop.f32.mrf.mxu1 }
 0x97f   :  { %3565 = vst.msk [vmem:[%s5246_s9] sm:$0x3] %vm3564_vm5, %v3561_v59 }

// kernel: run.3
= control target key start
LH: loop header
LB: loop body
LE: loop exit
PB: predicated region body
PF: predicated region fallthrough
CT: control target
= control target key end

     0   :  { %v6066_v3 = vmov 0.0   ;;  %vm97_vm0 = vcmask 588800   ;;  %v6067_v42 = vmov 0   ;;  %vm1157_vm9 = vcmask 130048   ;;  %s8644_s0 = inlined_call_operand.vmem [shape: f32[72,512], index: 0, kind: input, shape index: {}]   ;;  %s8645_s1 = inlined_call_operand.vmem [shape: f32[16,72], index: 1, kind: input, shape index: {}]   ;;  %s8646_s3 = inlined_call_operand.vmem [shape: f32[512,16], index: 3, kind: input, shape index: {}]   ;;  %s8647_s2 = inlined_call_operand.vmem [shape: f32[16,1], index: 2, kind: input, shape index: {}]   ;;  %s8648_s5 = inlined_call_operand.vmem [shape: f32[512,64], index: 5, kind: input, shape index: {}]   ;;  %s8649_s6 = inlined_call_operand.vmem [shape: f32[8,512,64], index: 6, kind: input, shape index: {}]   ;;  %s8650_s7 = inlined_call_operand.vmem [shape: f32[8,16,16], index: 7, kind: input, shape index: {}]   ;;  %s8651_s4 = inlined_call_operand.vmem [shape: f32[1,16], index: 4, kind: input, shape index: {}]   ;;  %s8652_s8 = inlined_call_operand.vmem [shape: f32[16,1], index: 8, kind: input, shape index: {}]   ;;  %s8653_s9 = inlined_call_operand.vmem [shape: f32[64,16], index: 9, kind: input, shape index: {}]   ;;  %s8654_s11 = inlined_call_operand.vmem [shape: f32[8,16,32], index: 11, kind: input, shape index: {}]   ;;  %s8655_s12 = inlined_call_operand.vmem [shape: f32[8,16,32], index: 12, kind: input, shape index: {}]   ;;  %s8656_s10 = inlined_call_operand.vmem [shape: f32[1,16], index: 10, kind: input, shape index: {}]   ;;  %s8657_s13 = inlined_call_operand.vmem [shape: f32[1,32], index: 13, kind: input, shape index: {}]   ;;  %s8658_s14 = inlined_call_operand.vmem [shape: f32[2,32], index: 14, kind: output, shape index: {}]  }
   0x1   :  { %v82_v0 = vld [vmem:[%s8644_s0 + $0x108] sm:$0xff]  ;;  %v84_v1 = vld [vmem:[%s8644_s0 + $0x118] sm:$0xff]  ;;  %v81_v2 = vld [vmem:[%s8644_s0 + $0x100] sm:$0xff]  ;;  %168 = vmatprep.mubr.f32.mxu0 %v6066_v3  ;;  %245 = vmatprep.mubr.f32.mxu1 %v6066_v3  ;;  %vm6068_vm10 = vmmov 0   ;;  %vm3163_vm14 = vcmask 523264  }
   0x2   :  { %118 = vmatprep.subr.mxu0 %v82_v0  ;;  %195 = vmatprep.subr.mxu1 %v84_v1  ;;  %v83_v4 = vld [vmem:[%s8644_s0 + $0x110] sm:$0xff]  ;;  %v78_v5 = vld [vmem:[%s8644_s0 + $0xe8] sm:$0xff]  ;;  %v80_v6 = vld [vmem:[%s8644_s0 + $0xf8] sm:$0xff] }
   0x3   :  { %119 = vmatpush1.msra.mxu0 %v81_v2  ;;  %196 = vmatpush1.msra.mxu1 %v83_v4  ;;  %v77_v7 = vld [vmem:[%s8644_s0 + $0xe0] sm:$0xff]  ;;  %v79_v8 = vld [vmem:[%s8644_s0 + $0xf0] sm:$0xff]  ;;  %v74_v9 = vld [vmem:[%s8644_s0 + $0xc8] sm:$0xff] }
   0x4   :  { %120 = vmatprep.subr.mxu0 %v78_v5  ;;  %197 = vmatprep.subr.mxu1 %v80_v6  ;;  %v76_v10 = vld [vmem:[%s8644_s0 + $0xd8] sm:$0xff]  ;;  %v73_v11 = vld [vmem:[%s8644_s0 + $0xc0] sm:$0xff]  ;;  %v75_v12 = vld [vmem:[%s8644_s0 + $0xd0] sm:$0xff] }
   0x5   :  { %121 = vmatpush1.msra.mxu0 %v77_v7  ;;  %198 = vmatpush1.msra.mxu1 %v79_v8  ;;  %v70_v13 = vld [vmem:[%s8644_s0 + $0xa8] sm:$0xff]  ;;  %v72_v14 = vld [vmem:[%s8644_s0 + $0xb8] sm:$0xff]  ;;  %v69_v15 = vld [vmem:[%s8644_s0 + $0xa0] sm:$0xff] }
   0x6   :  { %122 = vmatprep.subr.mxu0 %v74_v9  ;;  %199 = vmatprep.subr.mxu1 %v76_v10  ;;  %v71_v16 = vld [vmem:[%s8644_s0 + $0xb0] sm:$0xff]  ;;  %v66_v17 = vld [vmem:[%s8644_s0 + $0x88] sm:$0xff]  ;;  %v68_v18 = vld [vmem:[%s8644_s0 + $0x98] sm:$0xff] }
   0x7   :  { %123 = vmatpush1.msra.mxu0 %v73_v11  ;;  %200 = vmatpush1.msra.mxu1 %v75_v12  ;;  %v65_v19 = vld [vmem:[%s8644_s0 + $0x80] sm:$0xff]  ;;  %v67_v20 = vld [vmem:[%s8644_s0 + $0x90] sm:$0xff]  ;;  %v62_v21 = vld [vmem:[%s8644_s0 + $0x68] sm:$0xff] }
   0x8   :  { %124 = vmatprep.subr.mxu0 %v70_v13  ;;  %201 = vmatprep.subr.mxu1 %v72_v14  ;;  %v64_v22 = vld [vmem:[%s8644_s0 + $0x78] sm:$0xff]  ;;  %v61_v23 = vld [vmem:[%s8644_s0 + $0x60] sm:$0xff]  ;;  %v63_v24 = vld [vmem:[%s8644_s0 + $0x70] sm:$0xff] }
   0x9   :  { %125 = vmatpush1.msra.mxu0 %v69_v15  ;;  %202 = vmatpush1.msra.mxu1 %v71_v16  ;;  %v58_v25 = vld [vmem:[%s8644_s0 + $0x48] sm:$0xff]  ;;  %v60_v26 = vld [vmem:[%s8644_s0 + $0x58] sm:$0xff]  ;;  %v57_v27 = vld [vmem:[%s8644_s0 + $0x40] sm:$0xff] }
   0xa   :  { %126 = vmatprep.subr.mxu0 %v66_v17  ;;  %203 = vmatprep.subr.mxu1 %v68_v18  ;;  %v59_v28 = vld [vmem:[%s8644_s0 + $0x50] sm:$0xff]  ;;  %v54_v29 = vld [vmem:[%s8644_s0 + $0x28] sm:$0xff]  ;;  %v56_v30 = vld [vmem:[%s8644_s0 + $0x38] sm:$0xff] }
   0xb   :  { %127 = vmatpush1.msra.mxu0 %v65_v19  ;;  %204 = vmatpush1.msra.mxu1 %v67_v20  ;;  %v53_v31 = vld [vmem:[%s8644_s0 + $0x20] sm:$0xff]  ;;  %v55_v32 = vld [vmem:[%s8644_s0 + $0x30] sm:$0xff]  ;;  %v50_v33 = vld [vmem:[%s8644_s0 + $0x8] sm:$0xff] }
   0xc   :  { %128 = vmatprep.subr.mxu0 %v62_v21  ;;  %205 = vmatprep.subr.mxu1 %v64_v22  ;;  %v52_v34 = vld [vmem:[%s8644_s0 + $0x18] sm:$0xff]  ;;  %v49_v35 = vld [vmem:[%s8644_s0] sm:$0xff]  ;;  %v51_v36 = vld [vmem:[%s8644_s0 + $0x10] sm:$0xff] }
   0xd   :  { %129 = vmatpush1.msra.mxu0 %v61_v23  ;;  %206 = vmatpush1.msra.mxu1 %v63_v24  ;;  %v47_v37 = vld [vmem:[%s8645_s1] sm:$0xff]  ;;  %v313_v38 = vld [vmem:[%s8646_s3 + $0xf8] sm:$0xff]  ;;  %v48_v41 = vld [vmem:[%s8645_s1 + $0x8] sm:$0xff] }
   0xe   :  { %130 = vmatprep.subr.mxu0 %v58_v25  ;;  %207 = vmatprep.subr.mxu1 %v60_v26  ;;  %v85_v39 = vld [vmem:[%s8647_s2] sm:$0xff]  ;;  %v345_v40 = vld [vmem:[%s8646_s3 + $0x1f8] sm:$0xff]  ;;  %v312_v45 = vld [vmem:[%s8646_s3 + $0xf0] sm:$0xff] }
   0xf   :  { %131 = vmatpush1.msra.mxu0 %v57_v27  ;;  %208 = vmatpush1.msra.mxu1 %v59_v28  ;;  %v297_v43 = vld [vmem:[%s8646_s3 + $0x78] sm:$0xff]  ;;  %v344_v46 = vld [vmem:[%s8646_s3 + $0x1f0] sm:$0xff]  ;;  %v86_v47 = vld [vmem:[%s8647_s2 + $0x8] sm:$0xff] }
  0x10   :  { %132 = vmatprep.subr.mxu0 %v54_v29  ;;  %209 = vmatprep.subr.mxu1 %v56_v30  ;;  %v329_v44 = vld [vmem:[%s8646_s3 + $0x178] sm:$0xff]  ;;  %v296_v48 = vld [vmem:[%s8646_s3 + $0x70] sm:$0xff]  ;;  %v311_v50 = vld [vmem:[%s8646_s3 + $0xe8] sm:$0xff] }
  0x11   :  { %133 = vmatpush1.msra.mxu0 %v53_v31  ;;  %210 = vmatpush1.msra.mxu1 %v55_v32  ;;  %v328_v49 = vld [vmem:[%s8646_s3 + $0x170] sm:$0xff]  ;;  %v343_v51 = vld [vmem:[%s8646_s3 + $0x1e8] sm:$0xff]  ;;  %v310_v54 = vld [vmem:[%s8646_s3 + $0xe0] sm:$0xff] }
  0x12   :  { %134 = vmatprep.subr.mxu0 %v50_v33  ;;  %211 = vmatprep.subr.mxu1 %v52_v34  ;;  %v295_v52 = vld [vmem:[%s8646_s3 + $0x68] sm:$0xff]  ;;  %v342_v55 = vld [vmem:[%s8646_s3 + $0x1e0] sm:$0xff]  ;;  %v309_v58 = vld [vmem:[%s8646_s3 + $0xd8] sm:$0xff] }
  0x13   :  { %135 = vmatpush1.msra.mxu0 %v49_v35  ;;  %212 = vmatpush1.msra.mxu1 %v51_v36  ;;  %v327_v53 = vld [vmem:[%s8646_s3 + $0x168] sm:$0xff]  ;;  %v294_v56 = vld [vmem:[%s8646_s3 + $0x60] sm:$0xff]  ;;  %v341_v59 = vld [vmem:[%s8646_s3 + $0x1d8] sm:$0xff] }
  0x14   :  { %4493 = vmatmul.mubr.msk.f32.vlgmr.msra.gmra.mxu0 %vm97_vm0, %v47_v37  ;;  %4495 = vmatmul.mubr.msk.f32.vlgmr.msra.gmra.mxu1 %vm97_vm0, %v47_v37  ;;  %v326_v57 = vld [vmem:[%s8646_s3 + $0x160] sm:$0xff]  ;;  %v293_v60 = vld [vmem:[%s8646_s3 + $0x58] sm:$0xff]  ;;  %v308_v62 = vld [vmem:[%s8646_s3 + $0xd0] sm:$0xff] }
  0x15   :  { %174 = vmatprep.mubr.f32.mxu0 %v6066_v3  ;;  %251 = vmatprep.mubr.f32.mxu1 %v6066_v3  ;;  %v325_v61 = vld [vmem:[%s8646_s3 + $0x158] sm:$0xff]  ;;  %v340_v63 = vld [vmem:[%s8646_s3 + $0x1d0] sm:$0xff]  ;;  %v307_v2 = vld [vmem:[%s8646_s3 + $0xc8] sm:$0xff] }
  0x16   :  { %6064 = vset.pattern.permute.xlu0 %v6067_v42  ;;  %5024 = vmatprep.subr.mxu0 %v313_v38  ;;  %v292_v0 = vld [vmem:[%s8646_s3 + $0x50] sm:$0xff]  ;;  %v339_v4 = vld [vmem:[%s8646_s3 + $0x1c8] sm:$0xff]  ;;  %v306_v7 = vld [vmem:[%s8646_s3 + $0xc0] sm:$0xff] }
  0x17   :  { %89 = vperm.xlu0 %6064, %v85_v39   ;;  %5062 = vmatprep.subr.mxu1 %v345_v40  ;;  %v324_v1 = vld [vmem:[%s8646_s3 + $0x150] sm:$0xff]  ;;  %v291_v5 = vld [vmem:[%s8646_s3 + $0x48] sm:$0xff]  ;;  %v338_v8 = vld [vmem:[%s8646_s3 + $0x1c0] sm:$0xff] }
  0x18   :  { %4494 = vmatmul.mubr.msk.f32.gmra.mxu0 %vm97_vm0, %v48_v41  ;;  %4496 = vmatmul.mubr.msk.f32.gmra.mxu1 %vm97_vm0, %v48_v41  ;;  %v323_v6 = vld [vmem:[%s8646_s3 + $0x148] sm:$0xff]  ;;  %v290_v9 = vld [vmem:[%s8646_s3 + $0x40] sm:$0xff]  ;;  %v305_v11 = vld [vmem:[%s8646_s3 + $0xb8] sm:$0xff] }
  0x19   :  { %5025 = vmatpush3.msra.mxu0 %v297_v43  ;;  %5063 = vmatpush3.msra.mxu1 %v329_v44  ;;  %v322_v10 = vld [vmem:[%s8646_s3 + $0x140] sm:$0xff]  ;;  %v337_v12 = vld [vmem:[%s8646_s3 + $0x1b8] sm:$0xff]  ;;  %v304_v15 = vld [vmem:[%s8646_s3 + $0xb0] sm:$0xff] }
  0x1a   :  { %5026 = vmatprep.subr.mxu0 %v312_v45  ;;  %5064 = vmatprep.subr.mxu1 %v344_v46  ;;  %v289_v13 = vld [vmem:[%s8646_s3 + $0x38] sm:$0xff]  ;;  %v336_v16 = vld [vmem:[%s8646_s3 + $0x1b0] sm:$0xff]  ;;  %v303_v19 = vld [vmem:[%s8646_s3 + $0xa8] sm:$0xff] }
  0x1b   :  { %94 = vperm.xlu0 %6064, %v86_v47   ;;  %5027 = vmatpush3.msra.mxu0 %v296_v48  ;;  %v321_v14 = vld [vmem:[%s8646_s3 + $0x138] sm:$0xff]  ;;  %v288_v17 = vld [vmem:[%s8646_s3 + $0x30] sm:$0xff]  ;;  %v335_v20 = vld [vmem:[%s8646_s3 + $0x1a8] sm:$0xff] }
  0x1c   :  { %5065 = vmatpush3.msra.mxu1 %v328_v49  ;;  %5028 = vmatprep.subr.mxu0 %v311_v50  ;;  %v320_v18 = vld [vmem:[%s8646_s3 + $0x130] sm:$0xff]  ;;  %v287_v21 = vld [vmem:[%s8646_s3 + $0x28] sm:$0xff]  ;;  %v302_v23 = vld [vmem:[%s8646_s3 + $0xa0] sm:$0xff] }
  0x1d   :  { %5066 = vmatprep.subr.mxu1 %v343_v51  ;;  %5029 = vmatpush3.msra.mxu0 %v295_v52  ;;  %v319_v22 = vld [vmem:[%s8646_s3 + $0x128] sm:$0xff]  ;;  %v334_v24 = vld [vmem:[%s8646_s3 + $0x1a0] sm:$0xff]  ;;  %v301_v27 = vld [vmem:[%s8646_s3 + $0x98] sm:$0xff] }
  0x1e   :  { %5067 = vmatpush3.msra.mxu1 %v327_v53  ;;  %5030 = vmatprep.subr.mxu0 %v310_v54  ;;  %v286_v25 = vld [vmem:[%s8646_s3 + $0x20] sm:$0xff]  ;;  %v333_v28 = vld [vmem:[%s8646_s3 + $0x198] sm:$0xff]  ;;  %v300_v31 = vld [vmem:[%s8646_s3 + $0x90] sm:$0xff] }
  0x1f   :  { %5068 = vmatprep.subr.mxu1 %v342_v55  ;;  %5031 = vmatpush3.msra.mxu0 %v294_v56  ;;  %v318_v26 = vld [vmem:[%s8646_s3 + $0x120] sm:$0xff]  ;;  %v285_v29 = vld [vmem:[%s8646_s3 + $0x18] sm:$0xff]  ;;  %v332_v32 = vld [vmem:[%s8646_s3 + $0x190] sm:$0xff] }
  0x20   :  { %5069 = vmatpush3.msra.mxu1 %v326_v57  ;;  %5032 = vmatprep.subr.mxu0 %v309_v58  ;;  %v317_v30 = vld [vmem:[%s8646_s3 + $0x118] sm:$0xff]  ;;  %v284_v33 = vld [vmem:[%s8646_s3 + $0x10] sm:$0xff]  ;;  %v299_v35 = vld [vmem:[%s8646_s3 + $0x88] sm:$0xff] }
  0x21   :  { %5070 = vmatprep.subr.mxu1 %v341_v59  ;;  %5033 = vmatpush3.msra.mxu0 %v293_v60  ;;  %v316_v34 = vld [vmem:[%s8646_s3 + $0x110] sm:$0xff]  ;;  %v331_v36 = vld [vmem:[%s8646_s3 + $0x188] sm:$0xff]  ;;  %v298_v39 = vld [vmem:[%s8646_s3 + $0x80] sm:$0xff] }
  0x22   :  { %5071 = vmatpush3.msra.mxu1 %v325_v61  ;;  %5034 = vmatprep.subr.mxu0 %v308_v62  ;;  %v283_v37 = vld [vmem:[%s8646_s3 + $0x8] sm:$0xff]  ;;  %v330_v40 = vld [vmem:[%s8646_s3 + $0x180] sm:$0xff]  ;;  %v540_v43 = vld [vmem:[%s8648_s5 + $0xf8] sm:$0xff] }
  0x23   :  { %5072 = vmatprep.subr.mxu1 %v340_v63  ;;  %5035 = vmatpush3.msra.mxu0 %v292_v0  ;;  %v315_v38 = vld [vmem:[%s8646_s3 + $0x108] sm:$0xff]  ;;  %v282_v41 = vld [vmem:[%s8646_s3] sm:$0xff]  ;;  %v572_v44 = vld [vmem:[%s8648_s5 + $0x1f8] sm:$0xff] }
  0x24   :  { %5073 = vmatpush3.msra.mxu1 %v324_v1  ;;  %5036 = vmatprep.subr.mxu0 %v307_v2 }
  0x25   :  { %5074 = vmatprep.subr.mxu1 %v339_v4  ;;  %5037 = vmatpush3.msra.mxu0 %v291_v5 }
  0x26   :  { %5075 = vmatpush3.msra.mxu1 %v323_v6  ;;  %5038 = vmatprep.subr.mxu0 %v306_v7  ;;  %v524_v6 = vld [vmem:[%s8648_s5 + $0x78] sm:$0xff] }
  0x27   :  { %5076 = vmatprep.subr.mxu1 %v338_v8  ;;  %5039 = vmatpush3.msra.mxu0 %v290_v9  ;;  %v556_v7 = vld [vmem:[%s8648_s5 + $0x178] sm:$0xff]  ;;  %v539_v8 = vld [vmem:[%s8648_s5 + $0xf0] sm:$0xff] }
  0x28   :  { %5077 = vmatpush3.msra.mxu1 %v322_v10  ;;  %5040 = vmatprep.subr.mxu0 %v305_v11  ;;  %v571_v11 = vld [vmem:[%s8648_s5 + $0x1f0] sm:$0xff] }
  0x29   :  { %5078 = vmatprep.subr.mxu1 %v337_v12  ;;  %5041 = vmatpush3.msra.mxu0 %v289_v13  ;;  %v523_v12 = vld [vmem:[%s8648_s5 + $0x70] sm:$0xff] }
  0x2a   :  { %5079 = vmatpush3.msra.mxu1 %v321_v14  ;;  %5042 = vmatprep.subr.mxu0 %v304_v15  ;;  %v555_v13 = vld [vmem:[%s8648_s5 + $0x170] sm:$0xff] }
  0x2b   :  { %5080 = vmatprep.subr.mxu1 %v336_v16  ;;  %5043 = vmatpush3.msra.mxu0 %v288_v17 }
  0x2c   :  { %5081 = vmatpush3.msra.mxu1 %v320_v18  ;;  %5044 = vmatprep.subr.mxu0 %v303_v19 }
  0x2d   :  { %5082 = vmatprep.subr.mxu1 %v335_v20  ;;  %5045 = vmatpush3.msra.mxu0 %v287_v21  ;;  %v538_v20 = vld [vmem:[%s8648_s5 + $0xe8] sm:$0xff] }
  0x2e   :  { %5083 = vmatpush3.msra.mxu1 %v319_v22  ;;  %5046 = vmatprep.subr.mxu0 %v302_v23  ;;  %v570_v21 = vld [vmem:[%s8648_s5 + $0x1e8] sm:$0xff] }
  0x2f   :  { %5084 = vmatprep.subr.mxu1 %v334_v24  ;;  %5047 = vmatpush3.msra.mxu0 %v286_v25  ;;  %v522_v22 = vld [vmem:[%s8648_s5 + $0x68] sm:$0xff] }
  0x30   :  { %5085 = vmatpush3.msra.mxu1 %v318_v26  ;;  %6065 = vset.pattern.permute.xlu1 %v6067_v42  ;;  %v314_v42 = vld [vmem:[%s8646_s3 + $0x100] sm:$0xff]  ;;  %v554_v23 = vld [vmem:[%s8648_s5 + $0x168] sm:$0xff] }
  0x31   :  { %5048 = vmatprep.subr.mxu0 %v301_v27  ;;  %5086 = vmatprep.subr.mxu1 %v333_v28  ;;  %v537_v26 = vld [vmem:[%s8648_s5 + $0xe0] sm:$0xff] }
  0x32   :  { %5049 = vmatpush3.msra.mxu0 %v285_v29  ;;  %5087 = vmatpush3.msra.mxu1 %v317_v30  ;;  %v569_v27 = vld [vmem:[%s8648_s5 + $0x1e0] sm:$0xff]  ;;  %v536_v30 = vld [vmem:[%s8648_s5 + $0xd8] sm:$0xff] }
  0x33   :  { %5050 = vmatprep.subr.mxu0 %v300_v31  ;;  %5088 = vmatprep.subr.mxu1 %v332_v32  ;;  %v521_v28 = vld [vmem:[%s8648_s5 + $0x60] sm:$0xff]  ;;  %v568_v31 = vld [vmem:[%s8648_s5 + $0x1d8] sm:$0xff] }
  0x34   :  { %5051 = vmatpush3.msra.mxu0 %v284_v33  ;;  %5089 = vmatpush3.msra.mxu1 %v316_v34  ;;  %v553_v29 = vld [vmem:[%s8648_s5 + $0x160] sm:$0xff]  ;;  %v520_v32 = vld [vmem:[%s8648_s5 + $0x58] sm:$0xff]  ;;  %v535_v34 = vld [vmem:[%s8648_s5 + $0xd0] sm:$0xff] }
  0x35   :  { %5052 = vmatprep.subr.mxu0 %v299_v35  ;;  %5090 = vmatprep.subr.mxu1 %v331_v36  ;;  %v552_v33 = vld [vmem:[%s8648_s5 + $0x158] sm:$0xff]  ;;  %v567_v35 = vld [vmem:[%s8648_s5 + $0x1d0] sm:$0xff] }
  0x36   :  { %5053 = vmatpush3.msra.mxu0 %v283_v37  ;;  %5091 = vmatpush3.msra.mxu1 %v315_v38  ;;  %v519_v36 = vld [vmem:[%s8648_s5 + $0x50] sm:$0xff]  ;;  %v534_v38 = vld [vmem:[%s8648_s5 + $0xc8] sm:$0xff] }
  0x37   :  { %5054 = vmatprep.subr.mxu0 %v298_v39  ;;  %5092 = vmatprep.subr.mxu1 %v330_v40  ;;  %v551_v37 = vld [vmem:[%s8648_s5 + $0x150] sm:$0xff]  ;;  %v566_v39 = vld [vmem:[%s8648_s5 + $0x1c8] sm:$0xff] }
  0x38   :  { %5055 = vmatpush3.msra.mxu0 %v282_v41  ;;  %5093 = vmatpush3.msra.mxu1 %v314_v42  ;;  %v518_v40 = vld [vmem:[%s8648_s5 + $0x48] sm:$0xff]  ;;  %v533_v42 = vld [vmem:[%s8648_s5 + $0xc0] sm:$0xff] }
  0x39   :  { %5100 = vmatprep.subr.mxu0 %v540_v43  ;;  %5138 = vmatprep.subr.mxu1 %v572_v44  ;;  %v550_v41 = vld [vmem:[%s8648_s5 + $0x148] sm:$0xff]  ;;  %v565_v43 = vld [vmem:[%s8648_s5 + $0x1c0] sm:$0xff] }
  0x3a   :  { %v517_v44 = vld [vmem:[%s8648_s5 + $0x40] sm:$0xff] }
  0x92   :  { %v90_v45 = vpop.permute.xlu0 %89 }
  0x96   :  { %v95_v58 = vpop.permute.xlu0 %94 }
  0xd4   :  { %v170_v46 = vpop.f32.mrf.mxu0  ;;  %v247_v47 = vpop.f32.mrf.mxu1 }
  0xd5   :  { %v171_v48 = vadd.f32 %v170_v46, %v90_v45  ;;  %v248_v49 = vadd.f32 %v247_v47, %v90_v45  ;;  %v532_v46 = vld [vmem:[%s8648_s5 + $0xb8] sm:$0xff] }
  0xd6   :  { %v172_v50 = vpop.f32.mrf.mxu0  ;;  %v249_v51 = vpop.f32.mrf.mxu1  ;;  %v564_v47 = vld [vmem:[%s8648_s5 + $0x1b8] sm:$0xff] }
  0xd7   :  { %v173_v52 = vadd.f32 %v172_v50, %v90_v45  ;;  %v250_v53 = vadd.f32 %v249_v51, %v90_v45  ;;  %vm258_vm1 = vcmp.ge.f32.partialorder %v171_v48, 0.0  ;;  %v266_v56 = vmul.f32 0.1, %v171_v48  ;;  %v549_v45 = vld [vmem:[%s8648_s5 + $0x140] sm:$0xff]  ;;  %v531_v50 = vld [vmem:[%s8648_s5 + $0xb0] sm:$0xff] }
  0xd8   :  { %v176_v54 = vpop.f32.mrf.mxu0  ;;  %v253_v55 = vpop.f32.mrf.mxu1  ;;  %vm260_vm2 = vcmp.ge.f32.partialorder %v248_v49, 0.0  ;;  %v268_v57 = vmul.f32 0.1, %v248_v49  ;;  %v563_v51 = vld [vmem:[%s8648_s5 + $0x1b0] sm:$0xff] }
  0xd9   :  { %vm259_vm3 = vcmp.ge.f32.partialorder %v173_v52, 0.0  ;;  %v267_v59 = vmul.f32 0.1, %v173_v52  ;;  %vm261_vm4 = vcmp.ge.f32.partialorder %v250_v53, 0.0  ;;  %v269_v60 = vmul.f32 0.1, %v250_v53 }
  0xda   :  { %v178_v61 = vpop.f32.mrf.mxu0  ;;  %v255_v62 = vpop.f32.mrf.mxu1  ;;  %v177_v63 = vadd.f32 %v176_v54, %v95_v58  ;;  %v254_v0 = vadd.f32 %v253_v55, %v95_v58  ;;  %v6486_v9 = vsel %vm258_vm1, %v171_v48, %v266_v56  ;;  %v6489_v10 = vsel %vm260_vm2, %v248_v49, %v268_v57  ;;  %v516_v48 = vld [vmem:[%s8648_s5 + $0x38] sm:$0xff]  ;;  %v530_v54 = vld [vmem:[%s8648_s5 + $0xa8] sm:$0xff] }
  0xdb   :  { %v6472_v1 = vsel %vm259_vm3, %v173_v52, %v267_v59  ;;  %v6474_v2 = vsel %vm261_vm4, %v250_v53, %v269_v60  ;;  %v179_v4 = vadd.f32 %v178_v61, %v95_v58  ;;  %v256_v5 = vadd.f32 %v255_v62, %v95_v58  ;;  %v548_v49 = vld [vmem:[%s8648_s5 + $0x138] sm:$0xff]  ;;  %v515_v52 = vld [vmem:[%s8648_s5 + $0x30] sm:$0xff]  ;;  %v562_v55 = vld [vmem:[%s8648_s5 + $0x1a8] sm:$0xff] }
  0xdc   :  { %417 = vmatprep.mubr.f32.mxu0 %v6472_v1  ;;  %492 = vmatprep.mubr.f32.mxu1 %v6474_v2  ;;  %v270_v16 = vmul.f32 0.1, %v177_v63  ;;  %v272_v17 = vmul.f32 0.1, %v254_v0  ;;  %vm262_vm7 = vcmp.ge.f32.partialorder %v177_v63, 0.0  ;;  %vm264_vm8 = vcmp.ge.f32.partialorder %v254_v0, 0.0 }
  0xdd   :  { %vm263_vm5 = vcmp.ge.f32.partialorder %v179_v4, 0.0  ;;  %v271_v14 = vmul.f32 0.1, %v179_v4  ;;  %vm265_vm6 = vcmp.ge.f32.partialorder %v256_v5, 0.0  ;;  %v273_v15 = vmul.f32 0.1, %v256_v5  ;;  %418 = vmatmul.mubr.f32.vlgmr.msra.gmra.mxu0 %v6486_v9  ;;  %493 = vmatmul.mubr.f32.vlgmr.msra.gmra.mxu1 %v6489_v10 }
  0xde   :  { %5101 = vmatpush3.msra.mxu0 %v524_v6  ;;  %5139 = vmatpush3.msra.mxu1 %v556_v7  ;;  %v6522_v24 = vsel %vm262_vm7, %v177_v63, %v270_v16  ;;  %v6524_v25 = vsel %vm264_vm8, %v254_v0, %v272_v17  ;;  %v547_v53 = vld [vmem:[%s8648_s5 + $0x130] sm:$0xff]  ;;  %v514_v56 = vld [vmem:[%s8648_s5 + $0x28] sm:$0xff]  ;;  %v529_v58 = vld [vmem:[%s8648_s5 + $0xa0] sm:$0xff]  ;;  %vm4487_vm2 = vcmask 254976  }
  0xdf   :  { %v6504_v18 = vsel %vm263_vm5, %v179_v4, %v271_v14  ;;  %v6506_v19 = vsel %vm265_vm6, %v256_v5, %v273_v15  ;;  %5102 = vmatprep.subr.mxu0 %v539_v8  ;;  %5140 = vmatprep.subr.mxu1 %v571_v11  ;;  %v546_v57 = vld [vmem:[%s8648_s5 + $0x128] sm:$0xff]  ;;  %v561_v59 = vld [vmem:[%s8648_s5 + $0x1a0] sm:$0xff]  ;;  %v528_v62 = vld [vmem:[%s8648_s5 + $0x98] sm:$0xff] }
  0xe0   :  { %5103 = vmatpush3.msra.mxu0 %v523_v12  ;;  %5141 = vmatpush3.msra.mxu1 %v555_v13  ;;  %v513_v60 = vld [vmem:[%s8648_s5 + $0x20] sm:$0xff]  ;;  %v560_v63 = vld [vmem:[%s8648_s5 + $0x198] sm:$0xff]  ;;  %v527_v5 = vld [vmem:[%s8648_s5 + $0x90] sm:$0xff] }
  0xe1   :  { %422 = vmatprep.mubr.f32.mxu0 %v6504_v18  ;;  %497 = vmatprep.mubr.f32.mxu1 %v6506_v19  ;;  %v545_v61 = vld [vmem:[%s8648_s5 + $0x120] sm:$0xff]  ;;  %v512_v0 = vld [vmem:[%s8648_s5 + $0x18] sm:$0xff]  ;;  %v559_v6 = vld [vmem:[%s8648_s5 + $0x190] sm:$0xff] }
  0xe2   :  { %5104 = vmatprep.subr.mxu0 %v538_v20  ;;  %5142 = vmatprep.subr.mxu1 %v570_v21  ;;  %v544_v4 = vld [vmem:[%s8648_s5 + $0x118] sm:$0xff]  ;;  %v511_v7 = vld [vmem:[%s8648_s5 + $0x10] sm:$0xff]  ;;  %v526_v11 = vld [vmem:[%s8648_s5 + $0x88] sm:$0xff] }
  0xe3   :  { %423 = vmatmul.mubr.f32.gmra.mxu0 %v6522_v24  ;;  %498 = vmatmul.mubr.f32.gmra.mxu1 %v6524_v25  ;;  %v543_v8 = vld [vmem:[%s8648_s5 + $0x110] sm:$0xff]  ;;  %v558_v12 = vld [vmem:[%s8648_s5 + $0x188] sm:$0xff]  ;;  %v525_v15 = vld [vmem:[%s8648_s5 + $0x80] sm:$0xff] }
  0xe4   :  { %5105 = vmatpush3.msra.mxu0 %v522_v22  ;;  %5143 = vmatpush3.msra.mxu1 %v554_v23  ;;  %v510_v13 = vld [vmem:[%s8648_s5 + $0x8] sm:$0xff]  ;;  %v557_v16 = vld [vmem:[%s8648_s5 + $0x180] sm:$0xff]  ;;  %v754_v21 = vld [vmem:[%s8649_s6 + $0xf8] sm:$0xff] }
  0xe5   :  { %5106 = vmatprep.subr.mxu0 %v537_v26  ;;  %637 = vmatprep.mubr.f32.mxu0 %v6472_v1  ;;  %v542_v14 = vld [vmem:[%s8648_s5 + $0x108] sm:$0xff]  ;;  %v509_v17 = vld [vmem:[%s8648_s5] sm:$0xff]  ;;  %v786_v22 = vld [vmem:[%s8649_s6 + $0x1f8] sm:$0xff] }
  0xe6   :  { %5144 = vmatprep.subr.mxu1 %v569_v27  ;;  %712 = vmatprep.mubr.f32.mxu1 %v6474_v2  ;;  %v541_v20 = vld [vmem:[%s8648_s5 + $0x100] sm:$0xff]  ;;  %v738_v23 = vld [vmem:[%s8649_s6 + $0x78] sm:$0xff]  ;;  %v753_v27 = vld [vmem:[%s8649_s6 + $0xf0] sm:$0xff] }
  0xe7   :  { %5107 = vmatpush3.msra.mxu0 %v521_v28  ;;  %5145 = vmatpush3.msra.mxu1 %v553_v29  ;;  %v770_v26 = vld [vmem:[%s8649_s6 + $0x178] sm:$0xff]  ;;  %v785_v28 = vld [vmem:[%s8649_s6 + $0x1f0] sm:$0xff] }
  0xe8   :  { %5108 = vmatprep.subr.mxu0 %v536_v30  ;;  %5146 = vmatprep.subr.mxu1 %v568_v31  ;;  %v737_v29 = vld [vmem:[%s8649_s6 + $0x70] sm:$0xff]  ;;  %v752_v31 = vld [vmem:[%s8649_s6 + $0xe8] sm:$0xff] }
  0xe9   :  { %5109 = vmatpush3.msra.mxu0 %v520_v32  ;;  %5147 = vmatpush3.msra.mxu1 %v552_v33  ;;  %v769_v30 = vld [vmem:[%s8649_s6 + $0x170] sm:$0xff]  ;;  %v784_v32 = vld [vmem:[%s8649_s6 + $0x1e8] sm:$0xff] }
  0xea   :  { %5110 = vmatprep.subr.mxu0 %v535_v34  ;;  %5148 = vmatprep.subr.mxu1 %v567_v35  ;;  %v736_v33 = vld [vmem:[%s8649_s6 + $0x68] sm:$0xff]  ;;  %v751_v35 = vld [vmem:[%s8649_s6 + $0xe0] sm:$0xff] }
  0xeb   :  { %5111 = vmatpush3.msra.mxu0 %v519_v36  ;;  %5149 = vmatpush3.msra.mxu1 %v551_v37  ;;  %v768_v34 = vld [vmem:[%s8649_s6 + $0x168] sm:$0xff]  ;;  %v783_v36 = vld [vmem:[%s8649_s6 + $0x1e0] sm:$0xff] }
  0xec   :  { %5112 = vmatprep.subr.mxu0 %v534_v38  ;;  %5150 = vmatprep.subr.mxu1 %v566_v39  ;;  %v735_v37 = vld [vmem:[%s8649_s6 + $0x60] sm:$0xff]  ;;  %v750_v39 = vld [vmem:[%s8649_s6 + $0xd8] sm:$0xff] }
  0xed   :  { %5113 = vmatpush3.msra.mxu0 %v518_v40  ;;  %5151 = vmatpush3.msra.mxu1 %v550_v41  ;;  %v767_v38 = vld [vmem:[%s8649_s6 + $0x160] sm:$0xff]  ;;  %v782_v40 = vld [vmem:[%s8649_s6 + $0x1d8] sm:$0xff] }
  0xee   :  { %5114 = vmatprep.subr.mxu0 %v533_v42  ;;  %5152 = vmatprep.subr.mxu1 %v565_v43  ;;  %v734_v41 = vld [vmem:[%s8649_s6 + $0x58] sm:$0xff]  ;;  %v749_v43 = vld [vmem:[%s8649_s6 + $0xd0] sm:$0xff] }
  0xef   :  { %5115 = vmatpush3.msra.mxu0 %v517_v44  ;;  %5153 = vmatpush3.msra.mxu1 %v549_v45  ;;  %v766_v42 = vld [vmem:[%s8649_s6 + $0x158] sm:$0xff]  ;;  %v781_v44 = vld [vmem:[%s8649_s6 + $0x1d0] sm:$0xff] }
  0xf0   :  { %5116 = vmatprep.subr.mxu0 %v532_v46  ;;  %5154 = vmatprep.subr.mxu1 %v564_v47  ;;  %v733_v45 = vld [vmem:[%s8649_s6 + $0x50] sm:$0xff]  ;;  %v748_v47 = vld [vmem:[%s8649_s6 + $0xc8] sm:$0xff] }
  0xf1   :  { %5117 = vmatpush3.msra.mxu0 %v516_v48  ;;  %5155 = vmatpush3.msra.mxu1 %v548_v49  ;;  %v765_v46 = vld [vmem:[%s8649_s6 + $0x150] sm:$0xff]  ;;  %v780_v48 = vld [vmem:[%s8649_s6 + $0x1c8] sm:$0xff] }
  0xf2   :  { %5118 = vmatprep.subr.mxu0 %v531_v50  ;;  %5156 = vmatprep.subr.mxu1 %v563_v51  ;;  %v732_v49 = vld [vmem:[%s8649_s6 + $0x48] sm:$0xff]  ;;  %v747_v51 = vld [vmem:[%s8649_s6 + $0xc0] sm:$0xff] }
  0xf3   :  { %5119 = vmatpush3.msra.mxu0 %v515_v52  ;;  %5157 = vmatpush3.msra.mxu1 %v547_v53  ;;  %v764_v50 = vld [vmem:[%s8649_s6 + $0x148] sm:$0xff]  ;;  %v779_v52 = vld [vmem:[%s8649_s6 + $0x1c0] sm:$0xff] }
  0xf4   :  { %5120 = vmatprep.subr.mxu0 %v530_v54  ;;  %5158 = vmatprep.subr.mxu1 %v562_v55  ;;  %v731_v53 = vld [vmem:[%s8649_s6 + $0x40] sm:$0xff]  ;;  %v746_v55 = vld [vmem:[%s8649_s6 + $0xb8] sm:$0xff] }
  0xf5   :  { %5121 = vmatpush3.msra.mxu0 %v514_v56  ;;  %5159 = vmatpush3.msra.mxu1 %v546_v57  ;;  %v763_v54 = vld [vmem:[%s8649_s6 + $0x140] sm:$0xff]  ;;  %v778_v56 = vld [vmem:[%s8649_s6 + $0x1b8] sm:$0xff] }
  0xf6   :  { %5122 = vmatprep.subr.mxu0 %v529_v58  ;;  %5160 = vmatprep.subr.mxu1 %v561_v59  ;;  %v730_v57 = vld [vmem:[%s8649_s6 + $0x38] sm:$0xff]  ;;  %v745_v59 = vld [vmem:[%s8649_s6 + $0xb0] sm:$0xff] }
  0xf7   :  { %5123 = vmatpush3.msra.mxu0 %v513_v60  ;;  %5161 = vmatpush3.msra.mxu1 %v545_v61  ;;  %v762_v58 = vld [vmem:[%s8649_s6 + $0x138] sm:$0xff]  ;;  %v777_v60 = vld [vmem:[%s8649_s6 + $0x1b0] sm:$0xff] }
  0xf8   :  { %5124 = vmatprep.subr.mxu0 %v528_v62  ;;  %5162 = vmatprep.subr.mxu1 %v560_v63  ;;  %v729_v61 = vld [vmem:[%s8649_s6 + $0x30] sm:$0xff]  ;;  %v744_v63 = vld [vmem:[%s8649_s6 + $0xa8] sm:$0xff] }
  0xf9   :  { %5125 = vmatpush3.msra.mxu0 %v512_v0  ;;  %5163 = vmatpush3.msra.mxu1 %v544_v4  ;;  %v761_v62 = vld [vmem:[%s8649_s6 + $0x130] sm:$0xff]  ;;  %v776_v0 = vld [vmem:[%s8649_s6 + $0x1a8] sm:$0xff] }
  0xfa   :  { %5126 = vmatprep.subr.mxu0 %v527_v5  ;;  %5164 = vmatprep.subr.mxu1 %v559_v6  ;;  %v728_v4 = vld [vmem:[%s8649_s6 + $0x28] sm:$0xff]  ;;  %v743_v6 = vld [vmem:[%s8649_s6 + $0xa0] sm:$0xff] }
  0xfb   :  { %5127 = vmatpush3.msra.mxu0 %v511_v7  ;;  %5165 = vmatpush3.msra.mxu1 %v543_v8  ;;  %v760_v5 = vld [vmem:[%s8649_s6 + $0x128] sm:$0xff]  ;;  %v775_v7 = vld [vmem:[%s8649_s6 + $0x1a0] sm:$0xff] }
  0xfc   :  { %5128 = vmatprep.subr.mxu0 %v526_v11  ;;  %5166 = vmatprep.subr.mxu1 %v558_v12  ;;  %v727_v8 = vld [vmem:[%s8649_s6 + $0x20] sm:$0xff]  ;;  %v742_v12 = vld [vmem:[%s8649_s6 + $0x98] sm:$0xff] }
  0xfd   :  { %5129 = vmatpush3.msra.mxu0 %v510_v13  ;;  %5167 = vmatpush3.msra.mxu1 %v542_v14  ;;  %v759_v11 = vld [vmem:[%s8649_s6 + $0x120] sm:$0xff]  ;;  %v774_v13 = vld [vmem:[%s8649_s6 + $0x198] sm:$0xff] }
  0xfe   :  { %5130 = vmatprep.subr.mxu0 %v525_v15  ;;  %5168 = vmatprep.subr.mxu1 %v557_v16  ;;  %v726_v14 = vld [vmem:[%s8649_s6 + $0x18] sm:$0xff]  ;;  %v741_v16 = vld [vmem:[%s8649_s6 + $0x90] sm:$0xff] }
  0xff   :  { %5131 = vmatpush3.msra.mxu0 %v509_v17  ;;  %5169 = vmatpush3.msra.mxu1 %v541_v20  ;;  %v758_v15 = vld [vmem:[%s8649_s6 + $0x118] sm:$0xff]  ;;  %v773_v17 = vld [vmem:[%s8649_s6 + $0x190] sm:$0xff] }
 0x100   :  { %638 = vmatmul.mubr.f32.vlgmr.msra.gmra.mxu0 %v6486_v9  ;;  %713 = vmatmul.mubr.f32.vlgmr.msra.gmra.mxu1 %v6489_v10  ;;  %v725_v20 = vld [vmem:[%s8649_s6 + $0x10] sm:$0xff] }
 0x101   :  { %5176 = vmatprep.subr.mxu0 %v754_v21  ;;  %5214 = vmatprep.subr.mxu1 %v786_v22  ;;  %v757_v21 = vld [vmem:[%s8649_s6 + $0x110] sm:$0xff]  ;;  %v740_v22 = vld [vmem:[%s8649_s6 + $0x88] sm:$0xff] }
 0x102   :  { %642 = vmatprep.mubr.f32.mxu0 %v6504_v18  ;;  %717 = vmatprep.mubr.f32.mxu1 %v6506_v19 }
 0x103   :  { %5177 = vmatpush3.msra.mxu0 %v738_v23  ;;  %5215 = vmatpush3.msra.mxu1 %v770_v26  ;;  %v772_v23 = vld [vmem:[%s8649_s6 + $0x188] sm:$0xff] }
 0x104   :  { %5178 = vmatprep.subr.mxu0 %v753_v27  ;;  %5216 = vmatprep.subr.mxu1 %v785_v28  ;;  %v724_v26 = vld [vmem:[%s8649_s6 + $0x8] sm:$0xff]  ;;  %v739_v28 = vld [vmem:[%s8649_s6 + $0x80] sm:$0xff] }
 0x105   :  { %5179 = vmatpush3.msra.mxu0 %v737_v29  ;;  %5217 = vmatpush3.msra.mxu1 %v769_v30  ;;  %v756_v27 = vld [vmem:[%s8649_s6 + $0x108] sm:$0xff]  ;;  %v771_v29 = vld [vmem:[%s8649_s6 + $0x180] sm:$0xff] }
 0x106   :  { %643 = vmatmul.mubr.f32.gmra.mxu0 %v6522_v24  ;;  %718 = vmatmul.mubr.f32.gmra.mxu1 %v6524_v25  ;;  %v723_v30 = vld [vmem:[%s8649_s6] sm:$0xff] }
 0x107   :  { %5180 = vmatprep.subr.mxu0 %v752_v31  ;;  %5218 = vmatprep.subr.mxu1 %v784_v32  ;;  %v755_v31 = vld [vmem:[%s8649_s6 + $0x100] sm:$0xff]  ;;  %v4529_v32 = vld [vmem:[%s8649_s6 + $0x2f8] sm:$0xff] }
 0x108   :  { %5181 = vmatpush3.msra.mxu0 %v736_v33  ;;  %851 = vmatprep.mubr.f32.mxu0 %v6472_v1  ;;  %v4561_v33 = vld [vmem:[%s8649_s6 + $0x3f8] sm:$0xff] }
 0x109   :  { %5219 = vmatpush3.msra.mxu1 %v768_v34  ;;  %926 = vmatprep.mubr.f32.mxu1 %v6474_v2  ;;  %v4513_v34 = vld [vmem:[%s8649_s6 + $0x278] sm:$0xff] }
 0x10a   :  { %5182 = vmatprep.subr.mxu0 %v751_v35  ;;  %5220 = vmatprep.subr.mxu1 %v783_v36  ;;  %v4545_v35 = vld [vmem:[%s8649_s6 + $0x378] sm:$0xff]  ;;  %v4528_v36 = vld [vmem:[%s8649_s6 + $0x2f0] sm:$0xff] }
 0x10b   :  { %5183 = vmatpush3.msra.mxu0 %v735_v37  ;;  %5221 = vmatpush3.msra.mxu1 %v767_v38  ;;  %v4560_v37 = vld [vmem:[%s8649_s6 + $0x3f0] sm:$0xff] }
 0x10c   :  { %5184 = vmatprep.subr.mxu0 %v750_v39  ;;  %5222 = vmatprep.subr.mxu1 %v782_v40  ;;  %v4512_v38 = vld [vmem:[%s8649_s6 + $0x270] sm:$0xff]  ;;  %v4527_v40 = vld [vmem:[%s8649_s6 + $0x2e8] sm:$0xff] }
 0x10d   :  { %5185 = vmatpush3.msra.mxu0 %v734_v41  ;;  %5223 = vmatpush3.msra.mxu1 %v766_v42  ;;  %v4544_v39 = vld [vmem:[%s8649_s6 + $0x370] sm:$0xff]  ;;  %v4559_v41 = vld [vmem:[%s8649_s6 + $0x3e8] sm:$0xff] }
 0x10e   :  { %5186 = vmatprep.subr.mxu0 %v749_v43  ;;  %5224 = vmatprep.subr.mxu1 %v781_v44  ;;  %v4511_v42 = vld [vmem:[%s8649_s6 + $0x268] sm:$0xff]  ;;  %v4526_v44 = vld [vmem:[%s8649_s6 + $0x2e0] sm:$0xff] }
 0x10f   :  { %5187 = vmatpush3.msra.mxu0 %v733_v45  ;;  %5225 = vmatpush3.msra.mxu1 %v765_v46  ;;  %v4543_v43 = vld [vmem:[%s8649_s6 + $0x368] sm:$0xff]  ;;  %v4558_v45 = vld [vmem:[%s8649_s6 + $0x3e0] sm:$0xff] }
 0x110   :  { %5188 = vmatprep.subr.mxu0 %v748_v47  ;;  %5226 = vmatprep.subr.mxu1 %v780_v48  ;;  %v4510_v46 = vld [vmem:[%s8649_s6 + $0x260] sm:$0xff]  ;;  %v4525_v48 = vld [vmem:[%s8649_s6 + $0x2d8] sm:$0xff] }
 0x111   :  { %5189 = vmatpush3.msra.mxu0 %v732_v49  ;;  %5227 = vmatpush3.msra.mxu1 %v764_v50  ;;  %v4542_v47 = vld [vmem:[%s8649_s6 + $0x360] sm:$0xff]  ;;  %v4557_v49 = vld [vmem:[%s8649_s6 + $0x3d8] sm:$0xff] }
 0x112   :  { %5190 = vmatprep.subr.mxu0 %v747_v51  ;;  %5228 = vmatprep.subr.mxu1 %v779_v52  ;;  %v4509_v50 = vld [vmem:[%s8649_s6 + $0x258] sm:$0xff]  ;;  %v4524_v52 = vld [vmem:[%s8649_s6 + $0x2d0] sm:$0xff] }
 0x113   :  { %5191 = vmatpush3.msra.mxu0 %v731_v53  ;;  %5229 = vmatpush3.msra.mxu1 %v763_v54  ;;  %v4541_v51 = vld [vmem:[%s8649_s6 + $0x358] sm:$0xff]  ;;  %v4556_v53 = vld [vmem:[%s8649_s6 + $0x3d0] sm:$0xff] }
 0x114   :  { %5192 = vmatprep.subr.mxu0 %v746_v55  ;;  %5230 = vmatprep.subr.mxu1 %v778_v56  ;;  %v4508_v54 = vld [vmem:[%s8649_s6 + $0x250] sm:$0xff]  ;;  %v4523_v56 = vld [vmem:[%s8649_s6 + $0x2c8] sm:$0xff] }
 0x115   :  { %5193 = vmatpush3.msra.mxu0 %v730_v57  ;;  %5231 = vmatpush3.msra.mxu1 %v762_v58  ;;  %v4540_v55 = vld [vmem:[%s8649_s6 + $0x350] sm:$0xff]  ;;  %v4555_v57 = vld [vmem:[%s8649_s6 + $0x3c8] sm:$0xff] }
 0x116   :  { %5194 = vmatprep.subr.mxu0 %v745_v59  ;;  %5232 = vmatprep.subr.mxu1 %v777_v60  ;;  %v4507_v58 = vld [vmem:[%s8649_s6 + $0x248] sm:$0xff]  ;;  %v4522_v60 = vld [vmem:[%s8649_s6 + $0x2c0] sm:$0xff] }
 0x117   :  { %5195 = vmatpush3.msra.mxu0 %v729_v61  ;;  %5233 = vmatpush3.msra.mxu1 %v761_v62  ;;  %v4539_v59 = vld [vmem:[%s8649_s6 + $0x348] sm:$0xff]  ;;  %v4554_v61 = vld [vmem:[%s8649_s6 + $0x3c0] sm:$0xff] }
 0x118   :  { %5196 = vmatprep.subr.mxu0 %v744_v63  ;;  %5234 = vmatprep.subr.mxu1 %v776_v0  ;;  %v4506_v62 = vld [vmem:[%s8649_s6 + $0x240] sm:$0xff]  ;;  %v4521_v0 = vld [vmem:[%s8649_s6 + $0x2b8] sm:$0xff] }
 0x119   :  { %5197 = vmatpush3.msra.mxu0 %v728_v4  ;;  %5235 = vmatpush3.msra.mxu1 %v760_v5  ;;  %v4538_v63 = vld [vmem:[%s8649_s6 + $0x340] sm:$0xff]  ;;  %v4553_v4 = vld [vmem:[%s8649_s6 + $0x3b8] sm:$0xff] }
 0x11a   :  { %5198 = vmatprep.subr.mxu0 %v743_v6  ;;  %5236 = vmatprep.subr.mxu1 %v775_v7  ;;  %v4505_v5 = vld [vmem:[%s8649_s6 + $0x238] sm:$0xff]  ;;  %v4520_v7 = vld [vmem:[%s8649_s6 + $0x2b0] sm:$0xff] }
 0x11b   :  { %5199 = vmatpush3.msra.mxu0 %v727_v8  ;;  %5237 = vmatpush3.msra.mxu1 %v759_v11  ;;  %v4537_v6 = vld [vmem:[%s8649_s6 + $0x338] sm:$0xff]  ;;  %v4552_v8 = vld [vmem:[%s8649_s6 + $0x3b0] sm:$0xff] }
 0x11c   :  { %5200 = vmatprep.subr.mxu0 %v742_v12  ;;  %5238 = vmatprep.subr.mxu1 %v774_v13  ;;  %v4504_v11 = vld [vmem:[%s8649_s6 + $0x230] sm:$0xff]  ;;  %v4519_v13 = vld [vmem:[%s8649_s6 + $0x2a8] sm:$0xff] }
 0x11d   :  { %5201 = vmatpush3.msra.mxu0 %v726_v14  ;;  %5239 = vmatpush3.msra.mxu1 %v758_v15  ;;  %v4536_v12 = vld [vmem:[%s8649_s6 + $0x330] sm:$0xff]  ;;  %v4551_v14 = vld [vmem:[%s8649_s6 + $0x3a8] sm:$0xff] }
 0x11e   :  { %5202 = vmatprep.subr.mxu0 %v741_v16  ;;  %5240 = vmatprep.subr.mxu1 %v773_v17  ;;  %v4503_v15 = vld [vmem:[%s8649_s6 + $0x228] sm:$0xff]  ;;  %v4518_v17 = vld [vmem:[%s8649_s6 + $0x2a0] sm:$0xff] }
 0x11f   :  { %5203 = vmatpush3.msra.mxu0 %v725_v20  ;;  %5241 = vmatpush3.msra.mxu1 %v757_v21  ;;  %v4535_v16 = vld [vmem:[%s8649_s6 + $0x328] sm:$0xff]  ;;  %v4550_v20 = vld [vmem:[%s8649_s6 + $0x3a0] sm:$0xff] }
 0x120   :  { %5204 = vmatprep.subr.mxu0 %v740_v22  ;;  %5242 = vmatprep.subr.mxu1 %v772_v23  ;;  %v4502_v21 = vld [vmem:[%s8649_s6 + $0x220] sm:$0xff]  ;;  %v4517_v23 = vld [vmem:[%s8649_s6 + $0x298] sm:$0xff] }
 0x121   :  { %5205 = vmatpush3.msra.mxu0 %v724_v26  ;;  %5243 = vmatpush3.msra.mxu1 %v756_v27  ;;  %v4534_v22 = vld [vmem:[%s8649_s6 + $0x320] sm:$0xff]  ;;  %v4549_v26 = vld [vmem:[%s8649_s6 + $0x398] sm:$0xff] }
 0x122   :  { %5206 = vmatprep.subr.mxu0 %v739_v28  ;;  %5244 = vmatprep.subr.mxu1 %v771_v29  ;;  %v4501_v27 = vld [vmem:[%s8649_s6 + $0x218] sm:$0xff]  ;;  %v4516_v29 = vld [vmem:[%s8649_s6 + $0x290] sm:$0xff] }
 0x123   :  { %5207 = vmatpush3.msra.mxu0 %v723_v30  ;;  %5245 = vmatpush3.msra.mxu1 %v755_v31  ;;  %v4533_v28 = vld [vmem:[%s8649_s6 + $0x318] sm:$0xff]  ;;  %v4548_v30 = vld [vmem:[%s8649_s6 + $0x390] sm:$0xff] }
 0x124   :  { %852 = vmatmul.mubr.f32.vlgmr.msra.gmra.mxu0 %v6486_v9  ;;  %927 = vmatmul.mubr.f32.vlgmr.msra.gmra.mxu1 %v6489_v10  ;;  %v4500_v31 = vld [vmem:[%s8649_s6 + $0x210] sm:$0xff] }
 0x125   :  { %5252 = vmatprep.subr.mxu0 %v4529_v32  ;;  %5290 = vmatprep.subr.mxu1 %v4561_v33  ;;  %v4532_v32 = vld [vmem:[%s8649_s6 + $0x310] sm:$0xff]  ;;  %v4515_v33 = vld [vmem:[%s8649_s6 + $0x288] sm:$0xff] }
 0x126   :  { %856 = vmatprep.mubr.f32.mxu0 %v6504_v18  ;;  %931 = vmatprep.mubr.f32.mxu1 %v6506_v19 }
 0x127   :  { %5253 = vmatpush3.msra.mxu0 %v4513_v34  ;;  %5291 = vmatpush3.msra.mxu1 %v4545_v35  ;;  %v4547_v34 = vld [vmem:[%s8649_s6 + $0x388] sm:$0xff] }
 0x128   :  { %5254 = vmatprep.subr.mxu0 %v4528_v36  ;;  %5292 = vmatprep.subr.mxu1 %v4560_v37  ;;  %v4499_v35 = vld [vmem:[%s8649_s6 + $0x208] sm:$0xff]  ;;  %v4514_v37 = vld [vmem:[%s8649_s6 + $0x280] sm:$0xff] }
 0x129   :  { %5255 = vmatpush3.msra.mxu0 %v4512_v38  ;;  %5293 = vmatpush3.msra.mxu1 %v4544_v39  ;;  %v4531_v36 = vld [vmem:[%s8649_s6 + $0x308] sm:$0xff]  ;;  %v4546_v38 = vld [vmem:[%s8649_s6 + $0x380] sm:$0xff] }
 0x12a   :  { %857 = vmatmul.mubr.f32.gmra.mxu0 %v6522_v24  ;;  %932 = vmatmul.mubr.f32.gmra.mxu1 %v6524_v25  ;;  %v4498_v39 = vld [vmem:[%s8649_s6 + $0x200] sm:$0xff] }
 0x12b   :  { %5256 = vmatprep.subr.mxu0 %v4527_v40  ;;  %5294 = vmatprep.subr.mxu1 %v4559_v41  ;;  %v4530_v40 = vld [vmem:[%s8649_s6 + $0x300] sm:$0xff] }
 0x12c   :  { %5257 = vmatpush3.msra.mxu0 %v4511_v42  ;;  %1068 = vmatprep.mubr.f32.mxu0 %v6472_v1  ;;  %v937_v41 = vld [vmem:[%s8650_s7] sm:$0xff]  ;;  %v4562_v42 = vld [vmem:[%s8650_s7 + $0x10] sm:$0xff] }
 0x12d   :  { %5295 = vmatpush3.msra.mxu1 %v4543_v43  ;;  %1143 = vmatprep.mubr.f32.mxu1 %v6474_v2 }
 0x12e   :  { %5258 = vmatprep.subr.mxu0 %v4526_v44  ;;  %5296 = vmatprep.subr.mxu1 %v4558_v45  ;;  %v4497_v45 = vld [vmem:[%s8651_s4] ss:$0 sm:$0xff] }
 0x12f   :  { %5259 = vmatpush3.msra.mxu0 %v4510_v46  ;;  %5297 = vmatpush3.msra.mxu1 %v4542_v47 }
 0x130   :  { %5260 = vmatprep.subr.mxu0 %v4525_v48  ;;  %5298 = vmatprep.subr.mxu1 %v4557_v49 }
 0x131   :  { %5261 = vmatpush3.msra.mxu0 %v4509_v50  ;;  %5299 = vmatpush3.msra.mxu1 %v4541_v51 }
 0x132   :  { %5262 = vmatprep.subr.mxu0 %v4524_v52  ;;  %5300 = vmatprep.subr.mxu1 %v4556_v53 }
 0x133   :  { %5263 = vmatpush3.msra.mxu0 %v4508_v54  ;;  %5301 = vmatpush3.msra.mxu1 %v4540_v55 }
 0x134   :  { %5264 = vmatprep.subr.mxu0 %v4523_v56  ;;  %5302 = vmatprep.subr.mxu1 %v4555_v57 }
 0x135   :  { %5265 = vmatpush3.msra.mxu0 %v4507_v58  ;;  %5303 = vmatpush3.msra.mxu1 %v4539_v59 }
 0x136   :  { %5266 = vmatprep.subr.mxu0 %v4522_v60  ;;  %5304 = vmatprep.subr.mxu1 %v4554_v61 }
 0x137   :  { %5267 = vmatpush3.msra.mxu0 %v4506_v62  ;;  %5305 = vmatpush3.msra.mxu1 %v4538_v63 }
 0x138   :  { %5268 = vmatprep.subr.mxu0 %v4521_v0  ;;  %5306 = vmatprep.subr.mxu1 %v4553_v4 }
 0x139   :  { %5269 = vmatpush3.msra.mxu0 %v4505_v5  ;;  %5307 = vmatpush3.msra.mxu1 %v4537_v6 }
 0x13a   :  { %5270 = vmatprep.subr.mxu0 %v4520_v7  ;;  %5308 = vmatprep.subr.mxu1 %v4552_v8 }
 0x13b   :  { %5271 = vmatpush3.msra.mxu0 %v4504_v11  ;;  %5309 = vmatpush3.msra.mxu1 %v4536_v12 }
 0x13c   :  { %5272 = vmatprep.subr.mxu0 %v4519_v13  ;;  %5310 = vmatprep.subr.mxu1 %v4551_v14 }
 0x13d   :  { %5273 = vmatpush3.msra.mxu0 %v4503_v15  ;;  %5311 = vmatpush3.msra.mxu1 %v4535_v16 }
 0x13e   :  { %5274 = vmatprep.subr.mxu0 %v4518_v17  ;;  %5312 = vmatprep.subr.mxu1 %v4550_v20 }
 0x13f   :  { %5275 = vmatpush3.msra.mxu0 %v4502_v21  ;;  %5313 = vmatpush3.msra.mxu1 %v4534_v22 }
 0x140   :  { %5276 = vmatprep.subr.mxu0 %v4517_v23  ;;  %5314 = vmatprep.subr.mxu1 %v4549_v26 }
 0x141   :  { %5277 = vmatpush3.msra.mxu0 %v4501_v27  ;;  %5315 = vmatpush3.msra.mxu1 %v4533_v28 }
 0x142   :  { %5278 = vmatprep.subr.mxu0 %v4516_v29  ;;  %5316 = vmatprep.subr.mxu1 %v4548_v30 }
 0x143   :  { %5279 = vmatpush3.msra.mxu0 %v4500_v31  ;;  %5317 = vmatpush3.msra.mxu1 %v4532_v32 }
 0x144   :  { %5280 = vmatprep.subr.mxu0 %v4515_v33  ;;  %5318 = vmatprep.subr.mxu1 %v4547_v34  ;;  %v938_v33 = vld [vmem:[%s8650_s7 + $0x8] sm:$0xff]  ;;  %v4631_v34 = vld [vmem:[%s8649_s6 + $0x5f8] sm:$0xff] }
 0x145   :  { %5281 = vmatpush3.msra.mxu0 %v4499_v35  ;;  %5319 = vmatpush3.msra.mxu1 %v4531_v36  ;;  %v4615_v35 = vld [vmem:[%s8649_s6 + $0x578] sm:$0xff]  ;;  %v4630_v36 = vld [vmem:[%s8649_s6 + $0x5f0] sm:$0xff] }
 0x146   :  { %5282 = vmatprep.subr.mxu0 %v4514_v37  ;;  %5320 = vmatprep.subr.mxu1 %v4546_v38  ;;  %v4614_v37 = vld [vmem:[%s8649_s6 + $0x570] sm:$0xff]  ;;  %v4629_v38 = vld [vmem:[%s8649_s6 + $0x5e8] sm:$0xff] }
 0x147   :  { %5283 = vmatpush3.msra.mxu0 %v4498_v39  ;;  %5321 = vmatpush3.msra.mxu1 %v4530_v40  ;;  %v4613_v39 = vld [vmem:[%s8649_s6 + $0x568] sm:$0xff]  ;;  %v4628_v40 = vld [vmem:[%s8649_s6 + $0x5e0] sm:$0xff] }
 0x148   :  { %1069 = vmatmul.mubr.f32.vlgmr.msra.gmra.mxu0 %v6486_v9  ;;  %1144 = vmatmul.mubr.f32.vlgmr.msra.gmra.mxu1 %v6489_v10 }
 0x149   :  { %1073 = vmatprep.mubr.f32.mxu0 %v6504_v18  ;;  %1148 = vmatprep.mubr.f32.mxu1 %v6506_v19 }
 0x14c   :  { %1074 = vmatmul.mubr.f32.gmra.mxu0 %v6522_v24  ;;  %1149 = vmatmul.mubr.f32.gmra.mxu1 %v6524_v25 }
 0x14d   :  { %5885 = vmatprep.mubr.msk.f32.mxu1 %vm1157_vm9, %v937_v41  ;;  %5878 = vmatprep.mubr.msk.f32.mxu0 %vm1157_vm9, %v4562_v42  ;;  %v4612_v41 = vld [vmem:[%s8649_s6 + $0x560] sm:$0xff]  ;;  %v4627_v42 = vld [vmem:[%s8649_s6 + $0x5d8] sm:$0xff] }
 0x19d   :  { %v5056_v43 = vpop.f32.mrf.mxu0  ;;  %v5094_v44 = vpop.f32.mrf.mxu1 }
 0x19f   :  { %v5057_v46 = vpop.f32.mrf.mxu0  ;;  %v5095_v47 = vpop.f32.mrf.mxu1 }
 0x1a0   :  { %v5058_v48 = vadd.f32 %v5057_v46, %v5056_v43  ;;  %v5096_v49 = vadd.f32 %v5095_v47, %v5094_v44  ;;  %v4611_v43 = vld [vmem:[%s8649_s6 + $0x558] sm:$0xff]  ;;  %v4626_v44 = vld [vmem:[%s8649_s6 + $0x5d0] sm:$0xff]  ;;  %v4625_v46 = vld [vmem:[%s8649_s6 + $0x5c8] sm:$0xff] }
 0x1a1   :  { %v4609_v47 = vld [vmem:[%s8649_s6 + $0x548] sm:$0xff] }
 0x1a2   :  { %v420_v50 = vadd.f32 %v5058_v48, %v4497_v45  ;;  %v4624_v48 = vld [vmem:[%s8649_s6 + $0x5c0] sm:$0xff] }
 0x1a3   :  { %v5059_v51 = vpop.f32.mrf.mxu0  ;;  %v5097_v52 = vpop.f32.mrf.mxu1 }
 0x1a4   :  { %v7103_v53 = vadd.f32 %v5096_v49, %v420_v50  ;;  %v4608_v49 = vld [vmem:[%s8649_s6 + $0x540] sm:$0xff]  ;;  %v4623_v50 = vld [vmem:[%s8649_s6 + $0x5b8] sm:$0xff] }
 0x1a5   :  { %v5060_v54 = vpop.f32.mrf.mxu0  ;;  %v5098_v55 = vpop.f32.mrf.mxu1 }
 0x1a6   :  { %v5061_v56 = vadd.f32 %v5060_v54, %v5059_v51  ;;  %v5099_v57 = vadd.f32 %v5098_v55, %v5097_v52  ;;  %v4607_v51 = vld [vmem:[%s8649_s6 + $0x538] sm:$0xff]  ;;  %v4622_v52 = vld [vmem:[%s8649_s6 + $0x5b0] sm:$0xff]  ;;  %v4621_v55 = vld [vmem:[%s8649_s6 + $0x5a8] sm:$0xff]  ;;  %vm503_vm11 = vcmp.ge.f32.partialorder %v7103_v53, 0.0 }
 0x1a7   :  { %v4606_v54 = vld [vmem:[%s8649_s6 + $0x530] sm:$0xff] }
 0x1a8   :  { %v425_v58 = vadd.f32 %v5061_v56, %v4497_v45  ;;  %v4610_v45 = vld [vmem:[%s8649_s6 + $0x550] sm:$0xff]  ;;  %v4605_v56 = vld [vmem:[%s8649_s6 + $0x528] sm:$0xff] }
 0x1aa   :  { %v7105_v59 = vadd.f32 %v5099_v57, %v425_v58 }
 0x1ac   :  { %vm504_vm15 = vcmp.ge.f32.partialorder %v7105_v59, 0.0 }
 0x1c0   :  { %v5132_v60 = vpop.f32.mrf.mxu0  ;;  %v5170_v61 = vpop.f32.mrf.mxu1 }
 0x1c2   :  { %v5133_v62 = vpop.f32.mrf.mxu0  ;;  %v5171_v63 = vpop.f32.mrf.mxu1 }
 0x1c3   :  { %v5134_v0 = vadd.f32 %v5133_v62, %v5132_v60  ;;  %v5172_v4 = vadd.f32 %v5171_v63, %v5170_v61  ;;  %v4620_v60 = vld [vmem:[%s8649_s6 + $0x5a0] sm:$0xff] }
 0x1c4   :  { %v4604_v61 = vld [vmem:[%s8649_s6 + $0x520] sm:$0xff] }
 0x1c5   :  { %v7107_v5 = vadd.f32 %v5172_v4, %v5134_v0  ;;  %v4619_v0 = vld [vmem:[%s8649_s6 + $0x598] sm:$0xff] }
 0x1c6   :  { %v5135_v6 = vpop.f32.mrf.mxu0  ;;  %v5173_v7 = vpop.f32.mrf.mxu1  ;;  %v4603_v4 = vld [vmem:[%s8649_s6 + $0x518] sm:$0xff] }
 0x1c8   :  { %v5136_v8 = vpop.f32.mrf.mxu0  ;;  %v5174_v11 = vpop.f32.mrf.mxu1 }
 0x1c9   :  { %v5137_v12 = vadd.f32 %v5136_v8, %v5135_v6  ;;  %v5175_v13 = vadd.f32 %v5174_v11, %v5173_v7  ;;  %v4618_v8 = vld [vmem:[%s8649_s6 + $0x590] sm:$0xff] }
 0x1ca   :  { %v4602_v11 = vld [vmem:[%s8649_s6 + $0x510] sm:$0xff] }
 0x1cb   :  { %v7109_v14 = vadd.f32 %v5175_v13, %v5137_v12 }
 0x1e4   :  { %v5208_v15 = vpop.f32.mrf.mxu0  ;;  %v5246_v16 = vpop.f32.mrf.mxu1 }
 0x1e6   :  { %v5209_v17 = vpop.f32.mrf.mxu0  ;;  %v5247_v20 = vpop.f32.mrf.mxu1 }
 0x1e7   :  { %v5210_v27 = vadd.f32 %v5209_v17, %v5208_v15  ;;  %v5248_v28 = vadd.f32 %v5247_v20, %v5246_v16  ;;  %v4617_v15 = vld [vmem:[%s8649_s6 + $0x588] sm:$0xff] }
 0x1e9   :  { %v929_v32 = vadd.f32 %v5248_v28, %v5210_v27  ;;  %v4600_v27 = vld [vmem:[%s8649_s6 + $0x500] sm:$0xff] }
 0x1ea   :  { %v5211_v21 = vpop.f32.mrf.mxu0  ;;  %v5249_v22 = vpop.f32.mrf.mxu1 }
 0x1ec   :  { %v5212_v23 = vpop.f32.mrf.mxu0  ;;  %v5250_v26 = vpop.f32.mrf.mxu1 }
 0x1ed   :  { %v5213_v29 = vadd.f32 %v5212_v23, %v5211_v21  ;;  %v5251_v30 = vadd.f32 %v5250_v26, %v5249_v22  ;;  %v4601_v22 = vld [vmem:[%s8649_s6 + $0x508] sm:$0xff]  ;;  %v4616_v23 = vld [vmem:[%s8649_s6 + $0x580] sm:$0xff] }
 0x1ef   :  { %v934_v31 = vadd.f32 %v5251_v30, %v5213_v29  ;;  %v4667_v29 = vld [vmem:[%s8649_s6 + $0x6f8] sm:$0xff] }
 0x1f0   :  { %v4563_v30 = vld [vmem:[%s8650_s7 + $0x18] sm:$0xff] }
 0x1f1   :  { %5881 = vmatprep.subr.mxu1 %v934_v31 }
 0x1f2   :  { %5882 = vmatpush3.msra.mxu1 %v934_v31  ;;  %v4599_v31 = vld [vmem:[%s8649_s6 + $0x4f8] sm:$0xff] }
 0x1f3   :  { %5883 = vmatprep.subr.mxu1 %v929_v32 }
 0x1f4   :  { %5884 = vmatpush3.msra.mxu1 %v929_v32  ;;  %v4583_v32 = vld [vmem:[%s8649_s6 + $0x478] sm:$0xff] }
 0x1f5   :  { %5886 = vmatmul.mubr.msk.f32.vlgmr.msra.gmra.mxu1 %vm1157_vm9, %v938_v33  ;;  %5374 = vmatprep.subr.mxu1 %v4631_v34  ;;  %v4651_v33 = vld [vmem:[%s8649_s6 + $0x678] sm:$0xff]  ;;  %v4598_v34 = vld [vmem:[%s8649_s6 + $0x4f0] sm:$0xff] }
 0x1f6   :  { %5375 = vmatpush3.msra.mxu1 %v4615_v35  ;;  %1524 = vmatprep.mubr.f32.mxu1 %v6474_v2  ;;  %v4666_v35 = vld [vmem:[%s8649_s6 + $0x6f0] sm:$0xff] }
 0x1f7   :  { %5376 = vmatprep.subr.mxu1 %v4630_v36  ;;  %v4582_v36 = vld [vmem:[%s8649_s6 + $0x470] sm:$0xff] }
 0x1f8   :  { %5377 = vmatpush3.msra.mxu1 %v4614_v37  ;;  %v4650_v37 = vld [vmem:[%s8649_s6 + $0x670] sm:$0xff] }
 0x1f9   :  { %5378 = vmatprep.subr.mxu1 %v4629_v38  ;;  %v4597_v38 = vld [vmem:[%s8649_s6 + $0x4e8] sm:$0xff] }
 0x1fa   :  { %5379 = vmatpush3.msra.mxu1 %v4613_v39  ;;  %v4665_v39 = vld [vmem:[%s8649_s6 + $0x6e8] sm:$0xff] }
 0x1fb   :  { %5380 = vmatprep.subr.mxu1 %v4628_v40  ;;  %v4581_v40 = vld [vmem:[%s8649_s6 + $0x468] sm:$0xff] }
 0x1fc   :  { %5381 = vmatpush3.msra.mxu1 %v4612_v41  ;;  %v4649_v41 = vld [vmem:[%s8649_s6 + $0x668] sm:$0xff] }
 0x1fd   :  { %5382 = vmatprep.subr.mxu1 %v4627_v42  ;;  %v4596_v42 = vld [vmem:[%s8649_s6 + $0x4e0] sm:$0xff] }
 0x1fe   :  { %5383 = vmatpush3.msra.mxu1 %v4611_v43  ;;  %v4664_v43 = vld [vmem:[%s8649_s6 + $0x6e0] sm:$0xff] }
 0x1ff   :  { %5384 = vmatprep.subr.mxu1 %v4626_v44  ;;  %v4580_v44 = vld [vmem:[%s8649_s6 + $0x460] sm:$0xff] }
 0x200   :  { %5385 = vmatpush3.msra.mxu1 %v4610_v45  ;;  %v4648_v45 = vld [vmem:[%s8649_s6 + $0x660] sm:$0xff] }
 0x201   :  { %5386 = vmatprep.subr.mxu1 %v4625_v46  ;;  %v4595_v46 = vld [vmem:[%s8649_s6 + $0x4d8] sm:$0xff] }
 0x202   :  { %5387 = vmatpush3.msra.mxu1 %v4609_v47  ;;  %v4663_v47 = vld [vmem:[%s8649_s6 + $0x6d8] sm:$0xff] }
 0x203   :  { %5388 = vmatprep.subr.mxu1 %v4624_v48  ;;  %v4579_v48 = vld [vmem:[%s8649_s6 + $0x458] sm:$0xff] }
 0x204   :  { %5389 = vmatpush3.msra.mxu1 %v4608_v49  ;;  %v4647_v49 = vld [vmem:[%s8649_s6 + $0x658] sm:$0xff] }
 0x205   :  { %5390 = vmatprep.subr.mxu1 %v4623_v50  ;;  %v4594_v50 = vld [vmem:[%s8649_s6 + $0x4d0] sm:$0xff] }
 0x206   :  { %5391 = vmatpush3.msra.mxu1 %v4607_v51  ;;  %v4662_v51 = vld [vmem:[%s8649_s6 + $0x6d0] sm:$0xff] }
 0x207   :  { %5392 = vmatprep.subr.mxu1 %v4622_v52  ;;  %v4578_v52 = vld [vmem:[%s8649_s6 + $0x450] sm:$0xff] }
 0x208   :  { %v5284_v57 = vpop.f32.mrf.mxu0  ;;  %v5322_v58 = vpop.f32.mrf.mxu1  ;;  %5393 = vmatpush3.msra.mxu1 %v4606_v54  ;;  %v4646_v54 = vld [vmem:[%s8649_s6 + $0x650] sm:$0xff] }
 0x209   :  { %5394 = vmatprep.subr.mxu1 %v4621_v55  ;;  %v4593_v55 = vld [vmem:[%s8649_s6 + $0x4c8] sm:$0xff] }
 0x20a   :  { %v5285_v62 = vpop.f32.mrf.mxu0  ;;  %v5323_v63 = vpop.f32.mrf.mxu1  ;;  %5395 = vmatpush3.msra.mxu1 %v4605_v56  ;;  %v4661_v56 = vld [vmem:[%s8649_s6 + $0x6c8] sm:$0xff] }
 0x20b   :  { %5396 = vmatprep.subr.mxu1 %v4620_v60  ;;  %v5286_v16 = vadd.f32 %v5285_v62, %v5284_v57  ;;  %v5324_v17 = vadd.f32 %v5323_v63, %v5322_v58  ;;  %v4577_v57 = vld [vmem:[%s8649_s6 + $0x448] sm:$0xff]  ;;  %v4592_v60 = vld [vmem:[%s8649_s6 + $0x4c0] sm:$0xff] }
 0x20c   :  { %v5287_v6 = vpop.f32.mrf.mxu0  ;;  %v5325_v7 = vpop.f32.mrf.mxu1  ;;  %5397 = vmatpush3.msra.mxu1 %v4604_v61  ;;  %v4645_v58 = vld [vmem:[%s8649_s6 + $0x648] sm:$0xff]  ;;  %v4660_v61 = vld [vmem:[%s8649_s6 + $0x6c0] sm:$0xff] }
 0x20d   :  { %5398 = vmatprep.subr.mxu1 %v4619_v0  ;;  %v1146_v28 = vadd.f32 %v5324_v17, %v5286_v16  ;;  %v4576_v62 = vld [vmem:[%s8649_s6 + $0x440] sm:$0xff]  ;;  %v4591_v0 = vld [vmem:[%s8649_s6 + $0x4b8] sm:$0xff]  ;;  %v4657_v16 = vld [vmem:[%s8649_s6 + $0x6a8] sm:$0xff] }
 0x20e   :  { %v5288_v12 = vpop.f32.mrf.mxu0  ;;  %v5326_v13 = vpop.f32.mrf.mxu1  ;;  %5399 = vmatpush3.msra.mxu1 %v4603_v4  ;;  %v4644_v63 = vld [vmem:[%s8649_s6 + $0x640] sm:$0xff]  ;;  %v4659_v4 = vld [vmem:[%s8649_s6 + $0x6b8] sm:$0xff]  ;;  %v4573_v17 = vld [vmem:[%s8649_s6 + $0x428] sm:$0xff] }
 0x20f   :  { %v5289_v20 = vadd.f32 %v5288_v12, %v5287_v6  ;;  %v5327_v21 = vadd.f32 %v5326_v13, %v5325_v7  ;;  %5400 = vmatprep.subr.mxu1 %v4618_v8  ;;  %v4575_v6 = vld [vmem:[%s8649_s6 + $0x438] sm:$0xff]  ;;  %v4590_v8 = vld [vmem:[%s8649_s6 + $0x4b0] sm:$0xff] }
 0x210   :  { %5401 = vmatpush3.msra.mxu1 %v4602_v11  ;;  %v4643_v7 = vld [vmem:[%s8649_s6 + $0x638] sm:$0xff]  ;;  %v4658_v11 = vld [vmem:[%s8649_s6 + $0x6b0] sm:$0xff] }
 0x211   :  { %v1151_v26 = vadd.f32 %v5327_v21, %v5289_v20  ;;  %5402 = vmatprep.subr.mxu1 %v4617_v15  ;;  %v4574_v12 = vld [vmem:[%s8649_s6 + $0x430] sm:$0xff]  ;;  %v4589_v15 = vld [vmem:[%s8649_s6 + $0x4a8] sm:$0xff]  ;;  %v4588_v21 = vld [vmem:[%s8649_s6 + $0x4a0] sm:$0xff] }
 0x212   :  { %5403 = vmatpush3.msra.mxu1 %v4601_v22  ;;  %v4642_v13 = vld [vmem:[%s8649_s6 + $0x630] sm:$0xff]  ;;  %v4641_v20 = vld [vmem:[%s8649_s6 + $0x628] sm:$0xff]  ;;  %v4656_v22 = vld [vmem:[%s8649_s6 + $0x6a0] sm:$0xff] }
 0x213   :  { %5874 = vmatprep.subr.mxu0 %v1151_v26  ;;  %5404 = vmatprep.subr.mxu1 %v4616_v23  ;;  %v4572_v23 = vld [vmem:[%s8649_s6 + $0x420] sm:$0xff] }
 0x214   :  { %5875 = vmatpush3.msra.mxu0 %v1151_v26  ;;  %5405 = vmatpush3.msra.mxu1 %v4600_v27  ;;  %v4640_v26 = vld [vmem:[%s8649_s6 + $0x620] sm:$0xff]  ;;  %v4587_v27 = vld [vmem:[%s8649_s6 + $0x498] sm:$0xff] }
 0x215   :  { %5876 = vmatprep.subr.mxu0 %v1146_v28  ;;  %1525 = vmatmul.mubr.f32.vlgmr.msra.gmra.mxu1 %v6489_v10 }
 0x216   :  { %5877 = vmatpush3.msra.mxu0 %v1146_v28  ;;  %5416 = vmatprep.subr.mxu1 %v4667_v29  ;;  %v4655_v28 = vld [vmem:[%s8649_s6 + $0x698] sm:$0xff] }
 0x217   :  { %5879 = vmatmul.mubr.msk.f32.vlgmr.msra.gmra.mxu0 %vm1157_vm9, %v4563_v30  ;;  %5336 = vmatprep.subr.mxu0 %v4599_v31  ;;  %v4571_v29 = vld [vmem:[%s8649_s6 + $0x418] sm:$0xff]  ;;  %v4586_v31 = vld [vmem:[%s8649_s6 + $0x490] sm:$0xff] }
 0x218   :  { %5337 = vmatpush3.msra.mxu0 %v4583_v32  ;;  %1449 = vmatprep.mubr.f32.mxu0 %v6472_v1  ;;  %v4639_v30 = vld [vmem:[%s8649_s6 + $0x618] sm:$0xff]  ;;  %v4654_v32 = vld [vmem:[%s8649_s6 + $0x690] sm:$0xff] }
 0x219   :  { %1529 = vmatprep.mubr.f32.mxu1 %v6506_v19  ;;  %5417 = vmatpush3.msra.mxu1 %v4651_v33  ;;  %v4570_v33 = vld [vmem:[%s8649_s6 + $0x410] sm:$0xff] }
 0x21a   :  { %5338 = vmatprep.subr.mxu0 %v4598_v34  ;;  %5418 = vmatprep.subr.mxu1 %v4666_v35  ;;  %v4638_v34 = vld [vmem:[%s8649_s6 + $0x610] sm:$0xff]  ;;  %v4585_v35 = vld [vmem:[%s8649_s6 + $0x488] sm:$0xff] }
 0x21b   :  { %5339 = vmatpush3.msra.mxu0 %v4582_v36  ;;  %5419 = vmatpush3.msra.mxu1 %v4650_v37  ;;  %v4653_v36 = vld [vmem:[%s8649_s6 + $0x688] sm:$0xff] }
 0x21c   :  { %5340 = vmatprep.subr.mxu0 %v4597_v38  ;;  %1530 = vmatmul.mubr.f32.gmra.mxu1 %v6524_v25  ;;  %v4569_v37 = vld [vmem:[%s8649_s6 + $0x408] sm:$0xff] }
 0x21d   :  { %5420 = vmatprep.subr.mxu1 %v4665_v39  ;;  %5341 = vmatpush3.msra.mxu0 %v4581_v40  ;;  %v4637_v38 = vld [vmem:[%s8649_s6 + $0x608] sm:$0xff]  ;;  %v4584_v39 = vld [vmem:[%s8649_s6 + $0x480] sm:$0xff] }
 0x21e   :  { %5421 = vmatpush3.msra.mxu1 %v4649_v41  ;;  %1750 = vmatprep.mubr.f32.mxu1 %v6472_v1  ;;  %v4652_v40 = vld [vmem:[%s8649_s6 + $0x680] sm:$0xff] }
 0x21f   :  { %5342 = vmatprep.subr.mxu0 %v4596_v42  ;;  %5422 = vmatprep.subr.mxu1 %v4664_v43  ;;  %v4568_v41 = vld [vmem:[%s8649_s6 + $0x400] sm:$0xff] }
 0x220   :  { %5343 = vmatpush3.msra.mxu0 %v4580_v44  ;;  %5423 = vmatpush3.msra.mxu1 %v4648_v45  ;;  %v4636_v42 = vld [vmem:[%s8649_s6 + $0x600] sm:$0xff] }
 0x221   :  { %5344 = vmatprep.subr.mxu0 %v4595_v46  ;;  %5424 = vmatprep.subr.mxu1 %v4663_v47  ;;  %v4632_v43 = vld [vmem:[%s8650_s7 + $0x20] sm:$0xff] }
 0x222   :  { %5345 = vmatpush3.msra.mxu0 %v4579_v48  ;;  %5425 = vmatpush3.msra.mxu1 %v4647_v49 }
 0x223   :  { %5346 = vmatprep.subr.mxu0 %v4594_v50  ;;  %5426 = vmatprep.subr.mxu1 %v4662_v51 }
 0x224   :  { %5347 = vmatpush3.msra.mxu0 %v4578_v52  ;;  %5427 = vmatpush3.msra.mxu1 %v4646_v54 }
 0x225   :  { %5348 = vmatprep.subr.mxu0 %v4593_v55  ;;  %5428 = vmatprep.subr.mxu1 %v4661_v56 }
 0x226   :  { %5349 = vmatpush3.msra.mxu0 %v4577_v57  ;;  %5429 = vmatpush3.msra.mxu1 %v4645_v58 }
 0x227   :  { %5350 = vmatprep.subr.mxu0 %v4592_v60  ;;  %5430 = vmatprep.subr.mxu1 %v4660_v61 }
 0x228   :  { %5351 = vmatpush3.msra.mxu0 %v4576_v62  ;;  %5431 = vmatpush3.msra.mxu1 %v4644_v63 }
 0x229   :  { %5352 = vmatprep.subr.mxu0 %v4591_v0  ;;  %5432 = vmatprep.subr.mxu1 %v4659_v4 }
 0x22a   :  { %5353 = vmatpush3.msra.mxu0 %v4575_v6  ;;  %5433 = vmatpush3.msra.mxu1 %v4643_v7  ;;  %v4633_v6 = vld [vmem:[%s8650_s7 + $0x28] sm:$0xff]  ;;  %v4699_v7 = vld [vmem:[%s8649_s6 + $0x7f8] sm:$0xff] }
 0x22b   :  { %5354 = vmatprep.subr.mxu0 %v4590_v8  ;;  %5434 = vmatprep.subr.mxu1 %v4658_v11  ;;  %v4683_v8 = vld [vmem:[%s8649_s6 + $0x778] sm:$0xff]  ;;  %v4698_v11 = vld [vmem:[%s8649_s6 + $0x7f0] sm:$0xff] }
 0x22c   :  { %5355 = vmatpush3.msra.mxu0 %v4574_v12  ;;  %5435 = vmatpush3.msra.mxu1 %v4642_v13  ;;  %v4682_v12 = vld [vmem:[%s8649_s6 + $0x770] sm:$0xff]  ;;  %v4697_v13 = vld [vmem:[%s8649_s6 + $0x7e8] sm:$0xff] }
 0x22d   :  { %5356 = vmatprep.subr.mxu0 %v4589_v15  ;;  %5436 = vmatprep.subr.mxu1 %v4657_v16  ;;  %v4681_v15 = vld [vmem:[%s8649_s6 + $0x768] sm:$0xff]  ;;  %v4696_v16 = vld [vmem:[%s8649_s6 + $0x7e0] sm:$0xff] }
 0x22e   :  { %5357 = vmatpush3.msra.mxu0 %v4573_v17  ;;  %5437 = vmatpush3.msra.mxu1 %v4641_v20  ;;  %v4680_v17 = vld [vmem:[%s8649_s6 + $0x760] sm:$0xff]  ;;  %v4695_v20 = vld [vmem:[%s8649_s6 + $0x7d8] sm:$0xff] }
 0x22f   :  { %5358 = vmatprep.subr.mxu0 %v4588_v21  ;;  %5438 = vmatprep.subr.mxu1 %v4656_v22  ;;  %v4679_v21 = vld [vmem:[%s8649_s6 + $0x758] sm:$0xff]  ;;  %v4694_v22 = vld [vmem:[%s8649_s6 + $0x7d0] sm:$0xff] }
 0x230   :  { %5359 = vmatpush3.msra.mxu0 %v4572_v23  ;;  %5439 = vmatpush3.msra.mxu1 %v4640_v26  ;;  %v4678_v23 = vld [vmem:[%s8649_s6 + $0x750] sm:$0xff]  ;;  %v4693_v26 = vld [vmem:[%s8649_s6 + $0x7c8] sm:$0xff] }
 0x231   :  { %5360 = vmatprep.subr.mxu0 %v4587_v27  ;;  %5440 = vmatprep.subr.mxu1 %v4655_v28  ;;  %v4677_v27 = vld [vmem:[%s8649_s6 + $0x748] sm:$0xff]  ;;  %v4692_v28 = vld [vmem:[%s8649_s6 + $0x7c0] sm:$0xff] }
 0x232   :  { %5361 = vmatpush3.msra.mxu0 %v4571_v29  ;;  %5441 = vmatpush3.msra.mxu1 %v4639_v30  ;;  %v4676_v29 = vld [vmem:[%s8649_s6 + $0x740] sm:$0xff]  ;;  %v4691_v30 = vld [vmem:[%s8649_s6 + $0x7b8] sm:$0xff] }
 0x233   :  { %5362 = vmatprep.subr.mxu0 %v4586_v31  ;;  %5442 = vmatprep.subr.mxu1 %v4654_v32  ;;  %v4675_v31 = vld [vmem:[%s8649_s6 + $0x738] sm:$0xff]  ;;  %v4690_v32 = vld [vmem:[%s8649_s6 + $0x7b0] sm:$0xff] }
 0x234   :  { %5363 = vmatpush3.msra.mxu0 %v4570_v33  ;;  %5443 = vmatpush3.msra.mxu1 %v4638_v34  ;;  %v4674_v33 = vld [vmem:[%s8649_s6 + $0x730] sm:$0xff]  ;;  %v4689_v34 = vld [vmem:[%s8649_s6 + $0x7a8] sm:$0xff] }
 0x235   :  { %5364 = vmatprep.subr.mxu0 %v4585_v35  ;;  %5444 = vmatprep.subr.mxu1 %v4653_v36  ;;  %v4673_v35 = vld [vmem:[%s8649_s6 + $0x728] sm:$0xff]  ;;  %v4688_v36 = vld [vmem:[%s8649_s6 + $0x7a0] sm:$0xff] }
 0x236   :  { %5365 = vmatpush3.msra.mxu0 %v4569_v37  ;;  %5445 = vmatpush3.msra.mxu1 %v4637_v38  ;;  %v4672_v37 = vld [vmem:[%s8649_s6 + $0x720] sm:$0xff]  ;;  %v4687_v38 = vld [vmem:[%s8649_s6 + $0x798] sm:$0xff] }
 0x237   :  { %5366 = vmatprep.subr.mxu0 %v4584_v39  ;;  %5446 = vmatprep.subr.mxu1 %v4652_v40  ;;  %v4671_v39 = vld [vmem:[%s8649_s6 + $0x718] sm:$0xff]  ;;  %v4686_v40 = vld [vmem:[%s8649_s6 + $0x790] sm:$0xff] }
 0x238   :  { %5367 = vmatpush3.msra.mxu0 %v4568_v41  ;;  %5447 = vmatpush3.msra.mxu1 %v4636_v42  ;;  %v4670_v41 = vld [vmem:[%s8649_s6 + $0x710] sm:$0xff]  ;;  %v4685_v42 = vld [vmem:[%s8649_s6 + $0x788] sm:$0xff] }
 0x239   :  { %1450 = vmatmul.mubr.f32.vlgmr.msra.gmra.mxu0 %v6486_v9  ;;  %1751 = vmatmul.mubr.f32.vlgmr.msra.gmra.mxu1 %v6486_v9 }
 0x23a   :  { %1454 = vmatprep.mubr.f32.mxu0 %v6504_v18  ;;  %1755 = vmatprep.mubr.f32.mxu1 %v6504_v18 }
 0x23d   :  { %1455 = vmatmul.mubr.f32.gmra.mxu0 %v6522_v24  ;;  %1756 = vmatmul.mubr.f32.gmra.mxu1 %v6522_v24 }
 0x23e   :  { %5892 = vmatprep.mubr.msk.f32.mxu0 %vm1157_vm9, %v4632_v43  ;;  %v4669_v43 = vld [vmem:[%s8649_s6 + $0x708] sm:$0xff] }
 0x2b5   :  { %v5887_v44 = vpop.f32.mrf.mxu1 }
 0x2b7   :  { %v1311_v47 = vpop.f32.mrf.mxu1 }
 0x2d5   :  { %v5406_v50 = vpop.f32.mrf.mxu1 }
 0x2d7   :  { %v5880_v45 = vpop.f32.mrf.mxu0  ;;  %v5407_v51 = vpop.f32.mrf.mxu1 }
 0x2d8   :  { %v7423_v46 = vadd.f32 %v5887_v44, %v5880_v45  ;;  %v5408_v63 = vadd.f32 %v5407_v51, %v5406_v50  ;;  %v4684_v44 = vld [vmem:[%s8649_s6 + $0x780] sm:$0xff]  ;;  %v4734_v50 = vld [vmem:[%s8649_s6 + $0x8f0] sm:$0xff] }
 0x2d9   :  { %v1230_v48 = vpop.f32.mrf.mxu0  ;;  %v4668_v45 = vld [vmem:[%s8649_s6 + $0x700] sm:$0xff]  ;;  %v4718_v51 = vld [vmem:[%s8649_s6 + $0x870] sm:$0xff] }
 0x2da   :  { %v7425_v49 = vadd.f32 %v1311_v47, %v1230_v48  ;;  %v4735_v47 = vld [vmem:[%s8649_s6 + $0x8f8] sm:$0xff] }
 0x2db   :  { %v4719_v48 = vld [vmem:[%s8649_s6 + $0x878] sm:$0xff] }
 0x2dc   :  { %v5409_v52 = vpop.f32.mrf.mxu1 }
 0x2de   :  { %v5410_v56 = vpop.f32.mrf.mxu1 }
 0x2df   :  { %v5411_v60 = vadd.f32 %v5410_v56, %v5409_v52  ;;  %v4733_v52 = vld [vmem:[%s8649_s6 + $0x8e8] sm:$0xff]  ;;  %v4716_v56 = vld [vmem:[%s8649_s6 + $0x860] sm:$0xff] }
 0x2f9   :  { %v5368_v54 = vpop.f32.mrf.mxu0 }
 0x2fb   :  { %v5369_v55 = vpop.f32.mrf.mxu0 }
 0x2fc   :  { %v5370_v61 = vadd.f32 %v5369_v55, %v5368_v54  ;;  %v4717_v54 = vld [vmem:[%s8649_s6 + $0x868] sm:$0xff]  ;;  %v4732_v55 = vld [vmem:[%s8649_s6 + $0x8e0] sm:$0xff] }
 0x2fd   :  { %v5371_v57 = vpop.f32.mrf.mxu0 }
 0x2fe   :  { %v1527_v4 = vadd.f32 %v5408_v63, %v5370_v61  ;;  %v4714_v61 = vld [vmem:[%s8649_s6 + $0x850] sm:$0xff]  ;;  %v4713_v63 = vld [vmem:[%s8649_s6 + $0x848] sm:$0xff] }
 0x2ff   :  { %v5372_v58 = vpop.f32.mrf.mxu0 }
 0x300   :  { %v5373_v62 = vadd.f32 %v5372_v58, %v5371_v57  ;;  %v4731_v57 = vld [vmem:[%s8649_s6 + $0x8d8] sm:$0xff] }
 0x301   :  { %v4715_v58 = vld [vmem:[%s8649_s6 + $0x858] sm:$0xff] }
 0x302   :  { %v1532_v0 = vadd.f32 %v5411_v60, %v5373_v62  ;;  %v4730_v60 = vld [vmem:[%s8649_s6 + $0x8d0] sm:$0xff]  ;;  %v4729_v62 = vld [vmem:[%s8649_s6 + $0x8c8] sm:$0xff] }
 0x304   :  { %5888 = vmatprep.subr.mxu0 %v1532_v0 }
 0x305   :  { %5889 = vmatpush3.msra.mxu0 %v1532_v0  ;;  %v4728_v0 = vld [vmem:[%s8649_s6 + $0x8c0] sm:$0xff] }
 0x306   :  { %5890 = vmatprep.subr.mxu0 %v1527_v4 }
 0x307   :  { %5891 = vmatpush3.msra.mxu0 %v1527_v4  ;;  %v4712_v4 = vld [vmem:[%s8649_s6 + $0x840] sm:$0xff] }
 0x308   :  { %5893 = vmatmul.mubr.msk.f32.vlgmr.msra.gmra.mxu0 %vm1157_vm9, %v4633_v6  ;;  %5454 = vmatprep.subr.mxu0 %v4699_v7  ;;  %v4727_v6 = vld [vmem:[%s8649_s6 + $0x8b8] sm:$0xff] }
 0x309   :  { %5455 = vmatpush3.msra.mxu0 %v4683_v8  ;;  %1825 = vmatprep.mubr.f32.mxu0 %v6474_v2  ;;  %v4711_v7 = vld [vmem:[%s8649_s6 + $0x838] sm:$0xff]  ;;  %v4726_v8 = vld [vmem:[%s8649_s6 + $0x8b0] sm:$0xff] }
 0x30a   :  { %5456 = vmatprep.subr.mxu0 %v4698_v11  ;;  %v4710_v11 = vld [vmem:[%s8649_s6 + $0x830] sm:$0xff] }
 0x30b   :  { %5457 = vmatpush3.msra.mxu0 %v4682_v12  ;;  %v4725_v12 = vld [vmem:[%s8649_s6 + $0x8a8] sm:$0xff] }
 0x30c   :  { %5458 = vmatprep.subr.mxu0 %v4697_v13  ;;  %v4709_v13 = vld [vmem:[%s8649_s6 + $0x828] sm:$0xff] }
 0x30d   :  { %5459 = vmatpush3.msra.mxu0 %v4681_v15  ;;  %v4724_v15 = vld [vmem:[%s8649_s6 + $0x8a0] sm:$0xff] }
 0x30e   :  { %5460 = vmatprep.subr.mxu0 %v4696_v16  ;;  %v4708_v16 = vld [vmem:[%s8649_s6 + $0x820] sm:$0xff] }
 0x30f   :  { %5461 = vmatpush3.msra.mxu0 %v4680_v17  ;;  %v4723_v17 = vld [vmem:[%s8649_s6 + $0x898] sm:$0xff] }
 0x310   :  { %5462 = vmatprep.subr.mxu0 %v4695_v20  ;;  %v4707_v20 = vld [vmem:[%s8649_s6 + $0x818] sm:$0xff] }
 0x311   :  { %5463 = vmatpush3.msra.mxu0 %v4679_v21  ;;  %v4722_v21 = vld [vmem:[%s8649_s6 + $0x890] sm:$0xff] }
 0x312   :  { %5464 = vmatprep.subr.mxu0 %v4694_v22  ;;  %v4706_v22 = vld [vmem:[%s8649_s6 + $0x810] sm:$0xff] }
 0x313   :  { %5465 = vmatpush3.msra.mxu0 %v4678_v23  ;;  %v4721_v23 = vld [vmem:[%s8649_s6 + $0x888] sm:$0xff] }
 0x314   :  { %5466 = vmatprep.subr.mxu0 %v4693_v26  ;;  %v4705_v26 = vld [vmem:[%s8649_s6 + $0x808] sm:$0xff] }
 0x315   :  { %5467 = vmatpush3.msra.mxu0 %v4677_v27  ;;  %v4720_v27 = vld [vmem:[%s8649_s6 + $0x880] sm:$0xff] }
 0x316   :  { %5468 = vmatprep.subr.mxu0 %v4692_v28  ;;  %v4704_v28 = vld [vmem:[%s8649_s6 + $0x800] sm:$0xff] }
 0x317   :  { %5469 = vmatpush3.msra.mxu0 %v4676_v29  ;;  %v4700_v29 = vld [vmem:[%s8650_s7 + $0x30] sm:$0xff] }
 0x318   :  { %5470 = vmatprep.subr.mxu0 %v4691_v30  ;;  %5899 = vmatprep.mubr.msk.f32.mxu1 %vm1157_vm9, %v4700_v29  ;;  %v4736_v29 = vld [vmem:[%s8649_s6 + $0x900] sm:$0xff] }
 0x319   :  { %5471 = vmatpush3.msra.mxu0 %v4675_v31 }
 0x31a   :  { %5472 = vmatprep.subr.mxu0 %v4690_v32 }
 0x31b   :  { %5473 = vmatpush3.msra.mxu0 %v4674_v33 }
 0x31c   :  { %5474 = vmatprep.subr.mxu0 %v4689_v34  ;;  %v5448_v34 = vpop.f32.mrf.mxu1 }
 0x31d   :  { %5475 = vmatpush3.msra.mxu0 %v4673_v35 }
 0x31e   :  { %5476 = vmatprep.subr.mxu0 %v4688_v36  ;;  %v5449_v35 = vpop.f32.mrf.mxu1 }
 0x31f   :  { %5477 = vmatpush3.msra.mxu0 %v4672_v37 }
 0x320   :  { %5478 = vmatprep.subr.mxu0 %v4687_v38  ;;  %v5451_v36 = vpop.f32.mrf.mxu1 }
 0x321   :  { %5479 = vmatpush3.msra.mxu0 %v4671_v39 }
 0x322   :  { %5480 = vmatprep.subr.mxu0 %v4686_v40  ;;  %v5452_v39 = vpop.f32.mrf.mxu1 }
 0x323   :  { %5481 = vmatpush3.msra.mxu0 %v4670_v41 }
 0x324   :  { %5482 = vmatprep.subr.mxu0 %v4685_v42  ;;  %v5453_v42 = vadd.f32 %v5452_v39, %v5451_v36  ;;  %v4801_v36 = vld [vmem:[%s8649_s6 + $0xae8] sm:$0xff]  ;;  %v4784_v39 = vld [vmem:[%s8649_s6 + $0xa60] sm:$0xff] }
 0x325   :  { %5483 = vmatpush3.msra.mxu0 %v4669_v43 }
 0x326   :  { %5484 = vmatprep.subr.mxu0 %v4684_v44 }
 0x327   :  { %5485 = vmatpush3.msra.mxu0 %v4668_v45  ;;  %v5450_v45 = vadd.f32 %v5449_v35, %v5448_v34  ;;  %v4802_v34 = vld [vmem:[%s8649_s6 + $0xaf0] sm:$0xff] }
 0x328   :  { %1826 = vmatmul.mubr.f32.vlgmr.msra.gmra.mxu0 %v6489_v10  ;;  %5496 = vmatprep.subr.mxu0 %v4735_v47  ;;  %v4786_v35 = vld [vmem:[%s8649_s6 + $0xa70] sm:$0xff] }
 0x329   :  { %1830 = vmatprep.mubr.f32.mxu0 %v6506_v19  ;;  %5497 = vmatpush3.msra.mxu0 %v4719_v48 }
 0x32a   :  { %5498 = vmatprep.subr.mxu0 %v4734_v50  ;;  %v4751_v50 = vld [vmem:[%s8649_s6 + $0x978] sm:$0xff] }
 0x32b   :  { %5499 = vmatpush3.msra.mxu0 %v4718_v51  ;;  %v4766_v51 = vld [vmem:[%s8649_s6 + $0x9f0] sm:$0xff] }
 0x32c   :  { %1831 = vmatmul.mubr.f32.gmra.mxu0 %v6524_v25  ;;  %5500 = vmatprep.subr.mxu0 %v4733_v52  ;;  %v4750_v52 = vld [vmem:[%s8649_s6 + $0x970] sm:$0xff] }
 0x32d   :  { %5501 = vmatpush3.msra.mxu0 %v4717_v54  ;;  %2051 = vmatprep.mubr.f32.mxu0 %v6472_v1  ;;  %v4765_v54 = vld [vmem:[%s8649_s6 + $0x9e8] sm:$0xff] }
 0x32e   :  { %5502 = vmatprep.subr.mxu0 %v4732_v55  ;;  %v4749_v55 = vld [vmem:[%s8649_s6 + $0x968] sm:$0xff] }
 0x32f   :  { %5503 = vmatpush3.msra.mxu0 %v4716_v56  ;;  %v4764_v56 = vld [vmem:[%s8649_s6 + $0x9e0] sm:$0xff] }
 0x330   :  { %5504 = vmatprep.subr.mxu0 %v4731_v57  ;;  %v4748_v57 = vld [vmem:[%s8649_s6 + $0x960] sm:$0xff] }
 0x331   :  { %5505 = vmatpush3.msra.mxu0 %v4715_v58  ;;  %v4763_v58 = vld [vmem:[%s8649_s6 + $0x9d8] sm:$0xff] }
 0x332   :  { %5506 = vmatprep.subr.mxu0 %v4730_v60  ;;  %v4747_v60 = vld [vmem:[%s8649_s6 + $0x958] sm:$0xff] }
 0x333   :  { %5507 = vmatpush3.msra.mxu0 %v4714_v61  ;;  %v4762_v61 = vld [vmem:[%s8649_s6 + $0x9d0] sm:$0xff] }
 0x334   :  { %5508 = vmatprep.subr.mxu0 %v4729_v62  ;;  %v4746_v62 = vld [vmem:[%s8649_s6 + $0x950] sm:$0xff] }
 0x335   :  { %5509 = vmatpush3.msra.mxu0 %v4713_v63  ;;  %v4761_v63 = vld [vmem:[%s8649_s6 + $0x9c8] sm:$0xff] }
 0x336   :  { %5510 = vmatprep.subr.mxu0 %v4728_v0  ;;  %v4745_v0 = vld [vmem:[%s8649_s6 + $0x948] sm:$0xff] }
 0x337   :  { %5511 = vmatpush3.msra.mxu0 %v4712_v4  ;;  %v4760_v4 = vld [vmem:[%s8649_s6 + $0x9c0] sm:$0xff] }
 0x338   :  { %5512 = vmatprep.subr.mxu0 %v4727_v6  ;;  %v4744_v6 = vld [vmem:[%s8649_s6 + $0x940] sm:$0xff] }
 0x339   :  { %5513 = vmatpush3.msra.mxu0 %v4711_v7  ;;  %v4759_v7 = vld [vmem:[%s8649_s6 + $0x9b8] sm:$0xff] }
 0x33a   :  { %5514 = vmatprep.subr.mxu0 %v4726_v8  ;;  %v4743_v8 = vld [vmem:[%s8649_s6 + $0x938] sm:$0xff] }
 0x33b   :  { %5515 = vmatpush3.msra.mxu0 %v4710_v11  ;;  %v4758_v11 = vld [vmem:[%s8649_s6 + $0x9b0] sm:$0xff] }
 0x33c   :  { %5516 = vmatprep.subr.mxu0 %v4725_v12  ;;  %v4742_v12 = vld [vmem:[%s8649_s6 + $0x930] sm:$0xff] }
 0x33d   :  { %5517 = vmatpush3.msra.mxu0 %v4709_v13  ;;  %v4757_v13 = vld [vmem:[%s8649_s6 + $0x9a8] sm:$0xff] }
 0x33e   :  { %5518 = vmatprep.subr.mxu0 %v4724_v15  ;;  %v4741_v15 = vld [vmem:[%s8649_s6 + $0x928] sm:$0xff] }
 0x33f   :  { %5519 = vmatpush3.msra.mxu0 %v4708_v16  ;;  %v4756_v16 = vld [vmem:[%s8649_s6 + $0x9a0] sm:$0xff] }
 0x340   :  { %5520 = vmatprep.subr.mxu0 %v4723_v17  ;;  %v4740_v17 = vld [vmem:[%s8649_s6 + $0x920] sm:$0xff] }
 0x341   :  { %5521 = vmatpush3.msra.mxu0 %v4707_v20  ;;  %v4755_v20 = vld [vmem:[%s8649_s6 + $0x998] sm:$0xff] }
 0x342   :  { %5522 = vmatprep.subr.mxu0 %v4722_v21  ;;  %v4739_v21 = vld [vmem:[%s8649_s6 + $0x918] sm:$0xff] }
 0x343   :  { %5523 = vmatpush3.msra.mxu0 %v4706_v22  ;;  %v4754_v22 = vld [vmem:[%s8649_s6 + $0x990] sm:$0xff] }
 0x344   :  { %5524 = vmatprep.subr.mxu0 %v4721_v23  ;;  %v4738_v23 = vld [vmem:[%s8649_s6 + $0x910] sm:$0xff] }
 0x345   :  { %5525 = vmatpush3.msra.mxu0 %v4705_v26  ;;  %v4753_v26 = vld [vmem:[%s8649_s6 + $0x988] sm:$0xff] }
 0x346   :  { %5526 = vmatprep.subr.mxu0 %v4720_v27  ;;  %v4737_v27 = vld [vmem:[%s8649_s6 + $0x908] sm:$0xff] }
 0x347   :  { %5527 = vmatpush3.msra.mxu0 %v4704_v28  ;;  %v4752_v28 = vld [vmem:[%s8649_s6 + $0x980] sm:$0xff] }
 0x348   :  { %2052 = vmatmul.mubr.f32.vlgmr.msra.gmra.mxu0 %v6486_v9 }
 0x349   :  { %2056 = vmatprep.mubr.f32.mxu0 %v6504_v18 }
 0x34c   :  { %2057 = vmatmul.mubr.f32.gmra.mxu0 %v6522_v24 }
 0x3c8   :  { %v5894_v30 = vpop.f32.mrf.mxu0 }
 0x3c9   :  { %v7636_v31 = vadd.f32 %v5894_v30, %v7423_v46  ;;  %v4701_v46 = vld [vmem:[%s8650_s7 + $0x38] sm:$0xff] }
 0x3ca   :  { %v1610_v32 = vpop.f32.mrf.mxu0  ;;  %v4803_v30 = vld [vmem:[%s8649_s6 + $0xaf8] sm:$0xff] }
 0x3cb   :  { %v7639_v33 = vadd.f32 %v1610_v32, %v7425_v49  ;;  %v4767_v49 = vld [vmem:[%s8649_s6 + $0x9f8] sm:$0xff] }
 0x3cc   :  { %v4787_v32 = vld [vmem:[%s8649_s6 + $0xa78] sm:$0xff] }
 0x3e8   :  { %v5486_v37 = vpop.f32.mrf.mxu0 }
 0x3ea   :  { %v5487_v38 = vpop.f32.mrf.mxu0 }
 0x3eb   :  { %v5488_v43 = vadd.f32 %v5487_v38, %v5486_v37  ;;  %v4785_v37 = vld [vmem:[%s8649_s6 + $0xa68] sm:$0xff]  ;;  %v4800_v38 = vld [vmem:[%s8649_s6 + $0xae0] sm:$0xff] }
 0x3ec   :  { %v5489_v40 = vpop.f32.mrf.mxu0 }
 0x3ed   :  { %v1828_v48 = vadd.f32 %v5488_v43, %v5450_v45  ;;  %v4782_v43 = vld [vmem:[%s8649_s6 + $0xa50] sm:$0xff]  ;;  %v4781_v45 = vld [vmem:[%s8649_s6 + $0xa48] sm:$0xff] }
 0x3ee   :  { %v5490_v41 = vpop.f32.mrf.mxu0 }
 0x3ef   :  { %v5491_v44 = vadd.f32 %v5490_v41, %v5489_v40  ;;  %v4799_v40 = vld [vmem:[%s8649_s6 + $0xad8] sm:$0xff] }
 0x3f0   :  { %v4783_v41 = vld [vmem:[%s8649_s6 + $0xa58] sm:$0xff] }
 0x3f1   :  { %v1833_v47 = vadd.f32 %v5491_v44, %v5453_v42  ;;  %v4798_v42 = vld [vmem:[%s8649_s6 + $0xad0] sm:$0xff]  ;;  %v4797_v44 = vld [vmem:[%s8649_s6 + $0xac8] sm:$0xff] }
 0x3f3   :  { %5895 = vmatprep.subr.mxu1 %v1833_v47 }
 0x3f4   :  { %5896 = vmatpush3.msra.mxu1 %v1833_v47  ;;  %v4796_v47 = vld [vmem:[%s8649_s6 + $0xac0] sm:$0xff] }
 0x3f5   :  { %5897 = vmatprep.subr.mxu1 %v1828_v48 }
 0x3f6   :  { %5898 = vmatpush3.msra.mxu1 %v1828_v48  ;;  %v4780_v48 = vld [vmem:[%s8649_s6 + $0xa40] sm:$0xff] }
 0x3f7   :  { %5900 = vmatmul.mubr.msk.f32.vlgmr.msra.gmra.mxu1 %vm1157_vm9, %v4701_v46  ;;  %5534 = vmatprep.subr.mxu1 %v4767_v49  ;;  %v4795_v46 = vld [vmem:[%s8649_s6 + $0xab8] sm:$0xff] }
 0x3f8   :  { %5535 = vmatpush3.msra.mxu1 %v4751_v50  ;;  %2126 = vmatprep.mubr.f32.mxu1 %v6474_v2  ;;  %v4779_v49 = vld [vmem:[%s8649_s6 + $0xa38] sm:$0xff]  ;;  %v4794_v50 = vld [vmem:[%s8649_s6 + $0xab0] sm:$0xff] }
 0x3f9   :  { %5536 = vmatprep.subr.mxu1 %v4766_v51  ;;  %v4778_v51 = vld [vmem:[%s8649_s6 + $0xa30] sm:$0xff] }
 0x3fa   :  { %5537 = vmatpush3.msra.mxu1 %v4750_v52  ;;  %v4793_v52 = vld [vmem:[%s8649_s6 + $0xaa8] sm:$0xff] }
 0x3fb   :  { %5538 = vmatprep.subr.mxu1 %v4765_v54  ;;  %v4777_v54 = vld [vmem:[%s8649_s6 + $0xa28] sm:$0xff] }
 0x3fc   :  { %5539 = vmatpush3.msra.mxu1 %v4749_v55  ;;  %v4792_v55 = vld [vmem:[%s8649_s6 + $0xaa0] sm:$0xff] }
 0x3fd   :  { %5540 = vmatprep.subr.mxu1 %v4764_v56  ;;  %v4776_v56 = vld [vmem:[%s8649_s6 + $0xa20] sm:$0xff] }
 0x3fe   :  { %5541 = vmatpush3.msra.mxu1 %v4748_v57  ;;  %v4791_v57 = vld [vmem:[%s8649_s6 + $0xa98] sm:$0xff] }
 0x3ff   :  { %5542 = vmatprep.subr.mxu1 %v4763_v58  ;;  %v4775_v58 = vld [vmem:[%s8649_s6 + $0xa18] sm:$0xff] }
 0x400   :  { %5543 = vmatpush3.msra.mxu1 %v4747_v60  ;;  %v4790_v60 = vld [vmem:[%s8649_s6 + $0xa90] sm:$0xff] }
 0x401   :  { %5544 = vmatprep.subr.mxu1 %v4762_v61  ;;  %v4774_v61 = vld [vmem:[%s8649_s6 + $0xa10] sm:$0xff] }
 0x402   :  { %5545 = vmatpush3.msra.mxu1 %v4746_v62  ;;  %v4789_v62 = vld [vmem:[%s8649_s6 + $0xa88] sm:$0xff] }
 0x403   :  { %5546 = vmatprep.subr.mxu1 %v4761_v63  ;;  %v4773_v63 = vld [vmem:[%s8649_s6 + $0xa08] sm:$0xff] }
 0x404   :  { %5547 = vmatpush3.msra.mxu1 %v4745_v0  ;;  %v4788_v0 = vld [vmem:[%s8649_s6 + $0xa80] sm:$0xff] }
 0x405   :  { %5548 = vmatprep.subr.mxu1 %v4760_v4  ;;  %v4772_v4 = vld [vmem:[%s8649_s6 + $0xa00] sm:$0xff] }
 0x406   :  { %5549 = vmatpush3.msra.mxu1 %v4744_v6  ;;  %v4768_v6 = vld [vmem:[%s8650_s7 + $0x40] sm:$0xff] }
 0x407   :  { %5550 = vmatprep.subr.mxu1 %v4759_v7  ;;  %5906 = vmatprep.mubr.msk.f32.mxu0 %vm1157_vm9, %v4768_v6  ;;  %v4804_v6 = vld [vmem:[%s8649_s6 + $0xb00] sm:$0xff] }
 0x408   :  { %5551 = vmatpush3.msra.mxu1 %v4743_v8 }
 0x409   :  { %5552 = vmatprep.subr.mxu1 %v4758_v11 }
 0x40a   :  { %5553 = vmatpush3.msra.mxu1 %v4742_v12 }
 0x40b   :  { %5554 = vmatprep.subr.mxu1 %v4757_v13  ;;  %v5528_v13 = vpop.f32.mrf.mxu0 }
 0x40c   :  { %5555 = vmatpush3.msra.mxu1 %v4741_v15 }
 0x40d   :  { %5556 = vmatprep.subr.mxu1 %v4756_v16  ;;  %v5529_v15 = vpop.f32.mrf.mxu0 }
 0x40e   :  { %5557 = vmatpush3.msra.mxu1 %v4740_v17 }
 0x40f   :  { %5558 = vmatprep.subr.mxu1 %v4755_v20  ;;  %v5531_v16 = vpop.f32.mrf.mxu0 }
 0x410   :  { %5559 = vmatpush3.msra.mxu1 %v4739_v21 }
 0x411   :  { %5560 = vmatprep.subr.mxu1 %v4754_v22  ;;  %v5532_v21 = vpop.f32.mrf.mxu0 }
 0x412   :  { %5561 = vmatpush3.msra.mxu1 %v4738_v23 }
 0x413   :  { %5562 = vmatprep.subr.mxu1 %v4753_v26  ;;  %v5533_v26 = vadd.f32 %v5532_v21, %v5531_v16  ;;  %v4869_v16 = vld [vmem:[%s8649_s6 + $0xce8] sm:$0xff]  ;;  %v4852_v21 = vld [vmem:[%s8649_s6 + $0xc60] sm:$0xff] }
 0x414   :  { %5563 = vmatpush3.msra.mxu1 %v4737_v27 }
 0x415   :  { %5564 = vmatprep.subr.mxu1 %v4752_v28 }
 0x416   :  { %5565 = vmatpush3.msra.mxu1 %v4736_v29  ;;  %v5530_v29 = vadd.f32 %v5529_v15, %v5528_v13  ;;  %v4870_v13 = vld [vmem:[%s8649_s6 + $0xcf0] sm:$0xff] }
 0x417   :  { %2127 = vmatmul.mubr.f32.vlgmr.msra.gmra.mxu1 %v6489_v10  ;;  %5576 = vmatprep.subr.mxu1 %v4803_v30  ;;  %v4854_v15 = vld [vmem:[%s8649_s6 + $0xc70] sm:$0xff] }
 0x418   :  { %2131 = vmatprep.mubr.f32.mxu1 %v6506_v19  ;;  %5577 = vmatpush3.msra.mxu1 %v4787_v32 }
 0x419   :  { %5578 = vmatprep.subr.mxu1 %v4802_v34  ;;  %v4819_v34 = vld [vmem:[%s8649_s6 + $0xb78] sm:$0xff] }
 0x41a   :  { %5579 = vmatpush3.msra.mxu1 %v4786_v35  ;;  %v4834_v35 = vld [vmem:[%s8649_s6 + $0xbf0] sm:$0xff] }
 0x41b   :  { %2132 = vmatmul.mubr.f32.gmra.mxu1 %v6524_v25  ;;  %5580 = vmatprep.subr.mxu1 %v4801_v36  ;;  %v4818_v36 = vld [vmem:[%s8649_s6 + $0xb70] sm:$0xff] }
 0x41c   :  { %5581 = vmatpush3.msra.mxu1 %v4785_v37  ;;  %2352 = vmatprep.mubr.f32.mxu1 %v6472_v1  ;;  %v4833_v37 = vld [vmem:[%s8649_s6 + $0xbe8] sm:$0xff] }
 0x41d   :  { %5582 = vmatprep.subr.mxu1 %v4800_v38  ;;  %v4817_v38 = vld [vmem:[%s8649_s6 + $0xb68] sm:$0xff] }
 0x41e   :  { %5583 = vmatpush3.msra.mxu1 %v4784_v39  ;;  %v4832_v39 = vld [vmem:[%s8649_s6 + $0xbe0] sm:$0xff] }
 0x41f   :  { %5584 = vmatprep.subr.mxu1 %v4799_v40  ;;  %v4816_v40 = vld [vmem:[%s8649_s6 + $0xb60] sm:$0xff] }
 0x420   :  { %5585 = vmatpush3.msra.mxu1 %v4783_v41  ;;  %v4831_v41 = vld [vmem:[%s8649_s6 + $0xbd8] sm:$0xff] }
 0x421   :  { %5586 = vmatprep.subr.mxu1 %v4798_v42  ;;  %v4815_v42 = vld [vmem:[%s8649_s6 + $0xb58] sm:$0xff] }
 0x422   :  { %5587 = vmatpush3.msra.mxu1 %v4782_v43  ;;  %v4830_v43 = vld [vmem:[%s8649_s6 + $0xbd0] sm:$0xff] }
 0x423   :  { %5588 = vmatprep.subr.mxu1 %v4797_v44  ;;  %v4814_v44 = vld [vmem:[%s8649_s6 + $0xb50] sm:$0xff] }
 0x424   :  { %5589 = vmatpush3.msra.mxu1 %v4781_v45  ;;  %v4829_v45 = vld [vmem:[%s8649_s6 + $0xbc8] sm:$0xff] }
 0x425   :  { %5590 = vmatprep.subr.mxu1 %v4796_v47  ;;  %v4813_v47 = vld [vmem:[%s8649_s6 + $0xb48] sm:$0xff] }
 0x426   :  { %5591 = vmatpush3.msra.mxu1 %v4780_v48  ;;  %v4828_v48 = vld [vmem:[%s8649_s6 + $0xbc0] sm:$0xff] }
 0x427   :  { %5592 = vmatprep.subr.mxu1 %v4795_v46  ;;  %v4812_v46 = vld [vmem:[%s8649_s6 + $0xb40] sm:$0xff] }
 0x428   :  { %5593 = vmatpush3.msra.mxu1 %v4779_v49  ;;  %v4827_v49 = vld [vmem:[%s8649_s6 + $0xbb8] sm:$0xff] }
 0x429   :  { %5594 = vmatprep.subr.mxu1 %v4794_v50  ;;  %v4811_v50 = vld [vmem:[%s8649_s6 + $0xb38] sm:$0xff] }
 0x42a   :  { %5595 = vmatpush3.msra.mxu1 %v4778_v51  ;;  %v4826_v51 = vld [vmem:[%s8649_s6 + $0xbb0] sm:$0xff] }
 0x42b   :  { %5596 = vmatprep.subr.mxu1 %v4793_v52  ;;  %v4810_v52 = vld [vmem:[%s8649_s6 + $0xb30] sm:$0xff] }
 0x42c   :  { %5597 = vmatpush3.msra.mxu1 %v4777_v54  ;;  %v4825_v54 = vld [vmem:[%s8649_s6 + $0xba8] sm:$0xff] }
 0x42d   :  { %5598 = vmatprep.subr.mxu1 %v4792_v55  ;;  %v4809_v55 = vld [vmem:[%s8649_s6 + $0xb28] sm:$0xff] }
 0x42e   :  { %5599 = vmatpush3.msra.mxu1 %v4776_v56  ;;  %v4824_v56 = vld [vmem:[%s8649_s6 + $0xba0] sm:$0xff] }
 0x42f   :  { %5600 = vmatprep.subr.mxu1 %v4791_v57  ;;  %v4808_v57 = vld [vmem:[%s8649_s6 + $0xb20] sm:$0xff] }
 0x430   :  { %5601 = vmatpush3.msra.mxu1 %v4775_v58  ;;  %v4823_v58 = vld [vmem:[%s8649_s6 + $0xb98] sm:$0xff] }
 0x431   :  { %5602 = vmatprep.subr.mxu1 %v4790_v60  ;;  %v4807_v60 = vld [vmem:[%s8649_s6 + $0xb18] sm:$0xff] }
 0x432   :  { %5603 = vmatpush3.msra.mxu1 %v4774_v61  ;;  %v4822_v61 = vld [vmem:[%s8649_s6 + $0xb90] sm:$0xff] }
 0x433   :  { %5604 = vmatprep.subr.mxu1 %v4789_v62  ;;  %v4806_v62 = vld [vmem:[%s8649_s6 + $0xb10] sm:$0xff] }
 0x434   :  { %5605 = vmatpush3.msra.mxu1 %v4773_v63  ;;  %v4821_v63 = vld [vmem:[%s8649_s6 + $0xb88] sm:$0xff] }
 0x435   :  { %5606 = vmatprep.subr.mxu1 %v4788_v0  ;;  %v4805_v0 = vld [vmem:[%s8649_s6 + $0xb08] sm:$0xff] }
 0x436   :  { %5607 = vmatpush3.msra.mxu1 %v4772_v4  ;;  %v4820_v4 = vld [vmem:[%s8649_s6 + $0xb80] sm:$0xff] }
 0x437   :  { %2353 = vmatmul.mubr.f32.vlgmr.msra.gmra.mxu1 %v6486_v9 }
 0x438   :  { %2357 = vmatprep.mubr.f32.mxu1 %v6504_v18 }
 0x43b   :  { %2358 = vmatmul.mubr.f32.gmra.mxu1 %v6522_v24 }
 0x4b7   :  { %v5901_v7 = vpop.f32.mrf.mxu1 }
 0x4b8   :  { %v7850_v8 = vadd.f32 %v5901_v7, %v7636_v31  ;;  %v4769_v31 = vld [vmem:[%s8650_s7 + $0x48] sm:$0xff]  ;;  %v4871_v7 = vld [vmem:[%s8649_s6 + $0xcf8] sm:$0xff] }
 0x4b9   :  { %v1911_v11 = vpop.f32.mrf.mxu1 }
 0x4ba   :  { %v7853_v12 = vadd.f32 %v1911_v11, %v7639_v33  ;;  %v4835_v33 = vld [vmem:[%s8649_s6 + $0xbf8] sm:$0xff] }
 0x4bb   :  { %v4855_v11 = vld [vmem:[%s8649_s6 + $0xc78] sm:$0xff] }
 0x4d7   :  { %v5566_v17 = vpop.f32.mrf.mxu1 }
 0x4d9   :  { %v5567_v20 = vpop.f32.mrf.mxu1 }
 0x4da   :  { %v5568_v27 = vadd.f32 %v5567_v20, %v5566_v17  ;;  %v4853_v17 = vld [vmem:[%s8649_s6 + $0xc68] sm:$0xff]  ;;  %v4868_v20 = vld [vmem:[%s8649_s6 + $0xce0] sm:$0xff] }
 0x4db   :  { %v5569_v22 = vpop.f32.mrf.mxu1 }
 0x4dc   :  { %v2129_v32 = vadd.f32 %v5568_v27, %v5530_v29  ;;  %v4850_v27 = vld [vmem:[%s8649_s6 + $0xc50] sm:$0xff]  ;;  %v4849_v29 = vld [vmem:[%s8649_s6 + $0xc48] sm:$0xff] }
 0x4dd   :  { %v5570_v23 = vpop.f32.mrf.mxu1 }
 0x4de   :  { %v5571_v28 = vadd.f32 %v5570_v23, %v5569_v22  ;;  %v4867_v22 = vld [vmem:[%s8649_s6 + $0xcd8] sm:$0xff] }
 0x4df   :  { %v4851_v23 = vld [vmem:[%s8649_s6 + $0xc58] sm:$0xff] }
 0x4e0   :  { %v2134_v30 = vadd.f32 %v5571_v28, %v5533_v26  ;;  %v4866_v26 = vld [vmem:[%s8649_s6 + $0xcd0] sm:$0xff]  ;;  %v4865_v28 = vld [vmem:[%s8649_s6 + $0xcc8] sm:$0xff] }
 0x4e2   :  { %5902 = vmatprep.subr.mxu0 %v2134_v30 }
 0x4e3   :  { %5903 = vmatpush3.msra.mxu0 %v2134_v30  ;;  %v4864_v30 = vld [vmem:[%s8649_s6 + $0xcc0] sm:$0xff] }
 0x4e4   :  { %5904 = vmatprep.subr.mxu0 %v2129_v32 }
 0x4e5   :  { %5905 = vmatpush3.msra.mxu0 %v2129_v32  ;;  %v4848_v32 = vld [vmem:[%s8649_s6 + $0xc40] sm:$0xff] }
 0x4e6   :  { %5907 = vmatmul.mubr.msk.f32.vlgmr.msra.gmra.mxu0 %vm1157_vm9, %v4769_v31  ;;  %5614 = vmatprep.subr.mxu0 %v4835_v33  ;;  %v4863_v31 = vld [vmem:[%s8649_s6 + $0xcb8] sm:$0xff] }
 0x4e7   :  { %5615 = vmatpush3.msra.mxu0 %v4819_v34  ;;  %2427 = vmatprep.mubr.f32.mxu0 %v6474_v2  ;;  %v4847_v33 = vld [vmem:[%s8649_s6 + $0xc38] sm:$0xff]  ;;  %v4862_v34 = vld [vmem:[%s8649_s6 + $0xcb0] sm:$0xff] }
 0x4e8   :  { %5616 = vmatprep.subr.mxu0 %v4834_v35  ;;  %v4846_v35 = vld [vmem:[%s8649_s6 + $0xc30] sm:$0xff] }
 0x4e9   :  { %5617 = vmatpush3.msra.mxu0 %v4818_v36  ;;  %v4861_v36 = vld [vmem:[%s8649_s6 + $0xca8] sm:$0xff] }
 0x4ea   :  { %5618 = vmatprep.subr.mxu0 %v4833_v37  ;;  %v4845_v37 = vld [vmem:[%s8649_s6 + $0xc28] sm:$0xff] }
 0x4eb   :  { %5619 = vmatpush3.msra.mxu0 %v4817_v38  ;;  %v4860_v38 = vld [vmem:[%s8649_s6 + $0xca0] sm:$0xff] }
 0x4ec   :  { %5620 = vmatprep.subr.mxu0 %v4832_v39  ;;  %v4844_v39 = vld [vmem:[%s8649_s6 + $0xc20] sm:$0xff] }
 0x4ed   :  { %5621 = vmatpush3.msra.mxu0 %v4816_v40  ;;  %v4859_v40 = vld [vmem:[%s8649_s6 + $0xc98] sm:$0xff] }
 0x4ee   :  { %5622 = vmatprep.subr.mxu0 %v4831_v41  ;;  %v4843_v41 = vld [vmem:[%s8649_s6 + $0xc18] sm:$0xff] }
 0x4ef   :  { %5623 = vmatpush3.msra.mxu0 %v4815_v42  ;;  %v4858_v42 = vld [vmem:[%s8649_s6 + $0xc90] sm:$0xff] }
 0x4f0   :  { %5624 = vmatprep.subr.mxu0 %v4830_v43  ;;  %v4842_v43 = vld [vmem:[%s8649_s6 + $0xc10] sm:$0xff] }
 0x4f1   :  { %5625 = vmatpush3.msra.mxu0 %v4814_v44  ;;  %v4857_v44 = vld [vmem:[%s8649_s6 + $0xc88] sm:$0xff] }
 0x4f2   :  { %5626 = vmatprep.subr.mxu0 %v4829_v45  ;;  %v4841_v45 = vld [vmem:[%s8649_s6 + $0xc08] sm:$0xff] }
 0x4f3   :  { %5627 = vmatpush3.msra.mxu0 %v4813_v47  ;;  %v4856_v47 = vld [vmem:[%s8649_s6 + $0xc80] sm:$0xff] }
 0x4f4   :  { %5628 = vmatprep.subr.mxu0 %v4828_v48  ;;  %v4840_v48 = vld [vmem:[%s8649_s6 + $0xc00] sm:$0xff] }
 0x4f5   :  { %5629 = vmatpush3.msra.mxu0 %v4812_v46  ;;  %v4836_v46 = vld [vmem:[%s8650_s7 + $0x50] sm:$0xff] }
 0x4f6   :  { %5630 = vmatprep.subr.mxu0 %v4827_v49  ;;  %5913 = vmatprep.mubr.msk.f32.mxu1 %vm1157_vm9, %v4836_v46  ;;  %v4872_v46 = vld [vmem:[%s8649_s6 + $0xd00] sm:$0xff] }
 0x4f7   :  { %5631 = vmatpush3.msra.mxu0 %v4811_v50 }
 0x4f8   :  { %5632 = vmatprep.subr.mxu0 %v4826_v51 }
 0x4f9   :  { %5633 = vmatpush3.msra.mxu0 %v4810_v52 }
 0x4fa   :  { %5634 = vmatprep.subr.mxu0 %v4825_v54  ;;  %v5608_v54 = vpop.f32.mrf.mxu1 }
 0x4fb   :  { %5635 = vmatpush3.msra.mxu0 %v4809_v55 }
 0x4fc   :  { %5636 = vmatprep.subr.mxu0 %v4824_v56  ;;  %v5609_v55 = vpop.f32.mrf.mxu1 }
 0x4fd   :  { %5637 = vmatpush3.msra.mxu0 %v4808_v57 }
 0x4fe   :  { %5638 = vmatprep.subr.mxu0 %v4823_v58  ;;  %v5611_v56 = vpop.f32.mrf.mxu1 }
 0x4ff   :  { %5639 = vmatpush3.msra.mxu0 %v4807_v60 }
 0x500   :  { %5640 = vmatprep.subr.mxu0 %v4822_v61  ;;  %v5612_v60 = vpop.f32.mrf.mxu1 }
 0x501   :  { %5641 = vmatpush3.msra.mxu0 %v4806_v62 }
 0x502   :  { %5642 = vmatprep.subr.mxu0 %v4821_v63  ;;  %v5613_v63 = vadd.f32 %v5612_v60, %v5611_v56  ;;  %v4937_v56 = vld [vmem:[%s8649_s6 + $0xee8] sm:$0xff]  ;;  %v4920_v60 = vld [vmem:[%s8649_s6 + $0xe60] sm:$0xff] }
 0x503   :  { %5643 = vmatpush3.msra.mxu0 %v4805_v0 }
 0x504   :  { %5644 = vmatprep.subr.mxu0 %v4820_v4 }
 0x505   :  { %5645 = vmatpush3.msra.mxu0 %v4804_v6  ;;  %v5610_v6 = vadd.f32 %v5609_v55, %v5608_v54  ;;  %v4938_v54 = vld [vmem:[%s8649_s6 + $0xef0] sm:$0xff] }
 0x506   :  { %2428 = vmatmul.mubr.f32.vlgmr.msra.gmra.mxu0 %v6489_v10  ;;  %5656 = vmatprep.subr.mxu0 %v4871_v7  ;;  %v4922_v55 = vld [vmem:[%s8649_s6 + $0xe70] sm:$0xff] }
 0x507   :  { %2432 = vmatprep.mubr.f32.mxu0 %v6506_v19  ;;  %5657 = vmatpush3.msra.mxu0 %v4855_v11 }
 0x508   :  { %5658 = vmatprep.subr.mxu0 %v4870_v13  ;;  %v4887_v13 = vld [vmem:[%s8649_s6 + $0xd78] sm:$0xff] }
 0x509   :  { %5659 = vmatpush3.msra.mxu0 %v4854_v15  ;;  %v4902_v15 = vld [vmem:[%s8649_s6 + $0xdf0] sm:$0xff] }
 0x50a   :  { %2433 = vmatmul.mubr.f32.gmra.mxu0 %v6524_v25  ;;  %5660 = vmatprep.subr.mxu0 %v4869_v16  ;;  %v4886_v16 = vld [vmem:[%s8649_s6 + $0xd70] sm:$0xff] }
 0x50b   :  { %5661 = vmatpush3.msra.mxu0 %v4853_v17  ;;  %2653 = vmatprep.mubr.f32.mxu0 %v6472_v1  ;;  %v4901_v17 = vld [vmem:[%s8649_s6 + $0xde8] sm:$0xff] }
 0x50c   :  { %5662 = vmatprep.subr.mxu0 %v4868_v20  ;;  %v4885_v20 = vld [vmem:[%s8649_s6 + $0xd68] sm:$0xff] }
 0x50d   :  { %5663 = vmatpush3.msra.mxu0 %v4852_v21  ;;  %v4900_v21 = vld [vmem:[%s8649_s6 + $0xde0] sm:$0xff] }
 0x50e   :  { %5664 = vmatprep.subr.mxu0 %v4867_v22  ;;  %v4884_v22 = vld [vmem:[%s8649_s6 + $0xd60] sm:$0xff] }
 0x50f   :  { %5665 = vmatpush3.msra.mxu0 %v4851_v23  ;;  %v4899_v23 = vld [vmem:[%s8649_s6 + $0xdd8] sm:$0xff] }
 0x510   :  { %5666 = vmatprep.subr.mxu0 %v4866_v26  ;;  %v4883_v26 = vld [vmem:[%s8649_s6 + $0xd58] sm:$0xff] }
 0x511   :  { %5667 = vmatpush3.msra.mxu0 %v4850_v27  ;;  %v4898_v27 = vld [vmem:[%s8649_s6 + $0xdd0] sm:$0xff] }
 0x512   :  { %5668 = vmatprep.subr.mxu0 %v4865_v28  ;;  %v4882_v28 = vld [vmem:[%s8649_s6 + $0xd50] sm:$0xff] }
 0x513   :  { %5669 = vmatpush3.msra.mxu0 %v4849_v29  ;;  %v4897_v29 = vld [vmem:[%s8649_s6 + $0xdc8] sm:$0xff] }
 0x514   :  { %5670 = vmatprep.subr.mxu0 %v4864_v30  ;;  %v4881_v30 = vld [vmem:[%s8649_s6 + $0xd48] sm:$0xff] }
 0x515   :  { %5671 = vmatpush3.msra.mxu0 %v4848_v32  ;;  %v4896_v32 = vld [vmem:[%s8649_s6 + $0xdc0] sm:$0xff] }
 0x516   :  { %5672 = vmatprep.subr.mxu0 %v4863_v31  ;;  %v4880_v31 = vld [vmem:[%s8649_s6 + $0xd40] sm:$0xff] }
 0x517   :  { %5673 = vmatpush3.msra.mxu0 %v4847_v33  ;;  %v4895_v33 = vld [vmem:[%s8649_s6 + $0xdb8] sm:$0xff] }
 0x518   :  { %5674 = vmatprep.subr.mxu0 %v4862_v34  ;;  %v4879_v34 = vld [vmem:[%s8649_s6 + $0xd38] sm:$0xff] }
 0x519   :  { %5675 = vmatpush3.msra.mxu0 %v4846_v35  ;;  %v4894_v35 = vld [vmem:[%s8649_s6 + $0xdb0] sm:$0xff] }
 0x51a   :  { %5676 = vmatprep.subr.mxu0 %v4861_v36  ;;  %v4878_v36 = vld [vmem:[%s8649_s6 + $0xd30] sm:$0xff] }
 0x51b   :  { %5677 = vmatpush3.msra.mxu0 %v4845_v37  ;;  %v4893_v37 = vld [vmem:[%s8649_s6 + $0xda8] sm:$0xff] }
 0x51c   :  { %5678 = vmatprep.subr.mxu0 %v4860_v38  ;;  %v4877_v38 = vld [vmem:[%s8649_s6 + $0xd28] sm:$0xff] }
 0x51d   :  { %5679 = vmatpush3.msra.mxu0 %v4844_v39  ;;  %v4892_v39 = vld [vmem:[%s8649_s6 + $0xda0] sm:$0xff] }
 0x51e   :  { %5680 = vmatprep.subr.mxu0 %v4859_v40  ;;  %v4876_v40 = vld [vmem:[%s8649_s6 + $0xd20] sm:$0xff] }
 0x51f   :  { %5681 = vmatpush3.msra.mxu0 %v4843_v41  ;;  %v4891_v41 = vld [vmem:[%s8649_s6 + $0xd98] sm:$0xff] }
 0x520   :  { %5682 = vmatprep.subr.mxu0 %v4858_v42  ;;  %v4875_v42 = vld [vmem:[%s8649_s6 + $0xd18] sm:$0xff] }
 0x521   :  { %5683 = vmatpush3.msra.mxu0 %v4842_v43  ;;  %v4890_v43 = vld [vmem:[%s8649_s6 + $0xd90] sm:$0xff] }
 0x522   :  { %5684 = vmatprep.subr.mxu0 %v4857_v44  ;;  %v4874_v44 = vld [vmem:[%s8649_s6 + $0xd10] sm:$0xff] }
 0x523   :  { %5685 = vmatpush3.msra.mxu0 %v4841_v45  ;;  %v4889_v45 = vld [vmem:[%s8649_s6 + $0xd88] sm:$0xff] }
 0x524   :  { %5686 = vmatprep.subr.mxu0 %v4856_v47  ;;  %v4873_v47 = vld [vmem:[%s8649_s6 + $0xd08] sm:$0xff] }
 0x525   :  { %5687 = vmatpush3.msra.mxu0 %v4840_v48  ;;  %v4888_v48 = vld [vmem:[%s8649_s6 + $0xd80] sm:$0xff] }
 0x526   :  { %2654 = vmatmul.mubr.f32.vlgmr.msra.gmra.mxu0 %v6486_v9 }
 0x527   :  { %2658 = vmatprep.mubr.f32.mxu0 %v6504_v18 }
 0x52a   :  { %2659 = vmatmul.mubr.f32.gmra.mxu0 %v6522_v24 }
 0x5a6   :  { %v5908_v49 = vpop.f32.mrf.mxu0 }
 0x5a7   :  { %v8064_v50 = vadd.f32 %v5908_v49, %v7850_v8  ;;  %v4837_v8 = vld [vmem:[%s8650_s7 + $0x58] sm:$0xff] }
 0x5a8   :  { %v2212_v51 = vpop.f32.mrf.mxu0  ;;  %v4939_v49 = vld [vmem:[%s8649_s6 + $0xef8] sm:$0xff] }
 0x5a9   :  { %v8067_v52 = vadd.f32 %v2212_v51, %v7853_v12  ;;  %v4903_v12 = vld [vmem:[%s8649_s6 + $0xdf8] sm:$0xff] }
 0x5aa   :  { %v4923_v51 = vld [vmem:[%s8649_s6 + $0xe78] sm:$0xff] }
 0x5c6   :  { %v5646_v57 = vpop.f32.mrf.mxu0 }
 0x5c8   :  { %v5647_v58 = vpop.f32.mrf.mxu0 }
 0x5c9   :  { %v5648_v0 = vadd.f32 %v5647_v58, %v5646_v57  ;;  %v4921_v57 = vld [vmem:[%s8649_s6 + $0xe68] sm:$0xff]  ;;  %v4936_v58 = vld [vmem:[%s8649_s6 + $0xee0] sm:$0xff] }
 0x5ca   :  { %v5649_v61 = vpop.f32.mrf.mxu0 }
 0x5cb   :  { %v2430_v11 = vadd.f32 %v5648_v0, %v5610_v6  ;;  %v4918_v0 = vld [vmem:[%s8649_s6 + $0xe50] sm:$0xff]  ;;  %v4932_v6 = vld [vmem:[%s8649_s6 + $0xec0] sm:$0xff] }
 0x5cc   :  { %v5650_v62 = vpop.f32.mrf.mxu0 }
 0x5cd   :  { %v5651_v4 = vadd.f32 %v5650_v62, %v5649_v61  ;;  %v4935_v61 = vld [vmem:[%s8649_s6 + $0xed8] sm:$0xff] }
 0x5ce   :  { %v4919_v62 = vld [vmem:[%s8649_s6 + $0xe58] sm:$0xff] }
 0x5cf   :  { %v2435_v7 = vadd.f32 %v5651_v4, %v5613_v63  ;;  %v4934_v63 = vld [vmem:[%s8649_s6 + $0xed0] sm:$0xff]  ;;  %v4917_v4 = vld [vmem:[%s8649_s6 + $0xe48] sm:$0xff] }
 0x5d1   :  { %5909 = vmatprep.subr.mxu1 %v2435_v7 }
 0x5d2   :  { %5910 = vmatpush3.msra.mxu1 %v2435_v7  ;;  %v4916_v7 = vld [vmem:[%s8649_s6 + $0xe40] sm:$0xff] }
 0x5d3   :  { %5911 = vmatprep.subr.mxu1 %v2430_v11 }
 0x5d4   :  { %5912 = vmatpush3.msra.mxu1 %v2430_v11  ;;  %v4931_v11 = vld [vmem:[%s8649_s6 + $0xeb8] sm:$0xff] }
 0x5d5   :  { %5914 = vmatmul.mubr.msk.f32.vlgmr.msra.gmra.mxu1 %vm1157_vm9, %v4837_v8  ;;  %5694 = vmatprep.subr.mxu1 %v4903_v12  ;;  %v4915_v8 = vld [vmem:[%s8649_s6 + $0xe38] sm:$0xff]  ;;  %v4930_v12 = vld [vmem:[%s8649_s6 + $0xeb0] sm:$0xff] }
 0x5d6   :  { %5695 = vmatpush3.msra.mxu1 %v4887_v13  ;;  %2728 = vmatprep.mubr.f32.mxu1 %v6474_v2  ;;  %v4914_v13 = vld [vmem:[%s8649_s6 + $0xe30] sm:$0xff] }
 0x5d7   :  { %5696 = vmatprep.subr.mxu1 %v4902_v15  ;;  %v4929_v15 = vld [vmem:[%s8649_s6 + $0xea8] sm:$0xff] }
 0x5d8   :  { %5697 = vmatpush3.msra.mxu1 %v4886_v16  ;;  %v4913_v16 = vld [vmem:[%s8649_s6 + $0xe28] sm:$0xff] }
 0x5d9   :  { %5698 = vmatprep.subr.mxu1 %v4901_v17  ;;  %v4928_v17 = vld [vmem:[%s8649_s6 + $0xea0] sm:$0xff] }
 0x5da   :  { %5699 = vmatpush3.msra.mxu1 %v4885_v20  ;;  %v4912_v20 = vld [vmem:[%s8649_s6 + $0xe20] sm:$0xff] }
 0x5db   :  { %5700 = vmatprep.subr.mxu1 %v4900_v21  ;;  %v4927_v21 = vld [vmem:[%s8649_s6 + $0xe98] sm:$0xff] }
 0x5dc   :  { %5701 = vmatpush3.msra.mxu1 %v4884_v22  ;;  %v4911_v22 = vld [vmem:[%s8649_s6 + $0xe18] sm:$0xff] }
 0x5dd   :  { %5702 = vmatprep.subr.mxu1 %v4899_v23  ;;  %v4926_v23 = vld [vmem:[%s8649_s6 + $0xe90] sm:$0xff] }
 0x5de   :  { %5703 = vmatpush3.msra.mxu1 %v4883_v26  ;;  %v4910_v26 = vld [vmem:[%s8649_s6 + $0xe10] sm:$0xff] }
 0x5df   :  { %5704 = vmatprep.subr.mxu1 %v4898_v27  ;;  %v4925_v27 = vld [vmem:[%s8649_s6 + $0xe88] sm:$0xff] }
 0x5e0   :  { %5705 = vmatpush3.msra.mxu1 %v4882_v28  ;;  %v4909_v28 = vld [vmem:[%s8649_s6 + $0xe08] sm:$0xff] }
 0x5e1   :  { %5706 = vmatprep.subr.mxu1 %v4897_v29  ;;  %v4924_v29 = vld [vmem:[%s8649_s6 + $0xe80] sm:$0xff] }
 0x5e2   :  { %5707 = vmatpush3.msra.mxu1 %v4881_v30  ;;  %v4908_v30 = vld [vmem:[%s8649_s6 + $0xe00] sm:$0xff] }
 0x5e3   :  { %5708 = vmatprep.subr.mxu1 %v4896_v32  ;;  %v4904_v32 = vld [vmem:[%s8650_s7 + $0x60] sm:$0xff] }
 0x5e4   :  { %5709 = vmatpush3.msra.mxu1 %v4880_v31  ;;  %5920 = vmatprep.mubr.msk.f32.mxu0 %vm1157_vm9, %v4904_v32 }
 0x5e5   :  { %5710 = vmatprep.subr.mxu1 %v4895_v33 }
 0x5e6   :  { %5711 = vmatpush3.msra.mxu1 %v4879_v34 }
 0x5e7   :  { %5712 = vmatprep.subr.mxu1 %v4894_v35 }
 0x5e8   :  { %5713 = vmatpush3.msra.mxu1 %v4878_v36  ;;  %v5688_v36 = vpop.f32.mrf.mxu0 }
 0x5e9   :  { %5714 = vmatprep.subr.mxu1 %v4893_v37 }
 0x5ea   :  { %5715 = vmatpush3.msra.mxu1 %v4877_v38 }
 0x5eb   :  { %5716 = vmatprep.subr.mxu1 %v4892_v39 }
 0x5ec   :  { %5717 = vmatpush3.msra.mxu1 %v4876_v40 }
 0x5ed   :  { %5718 = vmatprep.subr.mxu1 %v4891_v41 }
 0x5ee   :  { %5719 = vmatpush3.msra.mxu1 %v4875_v42 }
 0x5ef   :  { %5720 = vmatprep.subr.mxu1 %v4890_v43 }
 0x5f0   :  { %5721 = vmatpush3.msra.mxu1 %v4874_v44 }
 0x5f1   :  { %5722 = vmatprep.subr.mxu1 %v4889_v45 }
 0x5f2   :  { %5723 = vmatpush3.msra.mxu1 %v4873_v47 }
 0x5f3   :  { %5724 = vmatprep.subr.mxu1 %v4888_v48  ;;  %v4955_v48 = vld [vmem:[%s8649_s6 + $0xf78] sm:$0xff] }
 0x5f4   :  { %5725 = vmatpush3.msra.mxu1 %v4872_v46  ;;  %v4970_v46 = vld [vmem:[%s8649_s6 + $0xff0] sm:$0xff] }
 0x5f5   :  { %2729 = vmatmul.mubr.f32.vlgmr.msra.gmra.mxu1 %v6489_v10  ;;  %5736 = vmatprep.subr.mxu1 %v4939_v49  ;;  %v4954_v49 = vld [vmem:[%s8649_s6 + $0xf70] sm:$0xff] }
 0x5f6   :  { %2733 = vmatprep.mubr.f32.mxu1 %v6506_v19  ;;  %5737 = vmatpush3.msra.mxu1 %v4923_v51  ;;  %v4969_v51 = vld [vmem:[%s8649_s6 + $0xfe8] sm:$0xff] }
 0x5f7   :  { %5738 = vmatprep.subr.mxu1 %v4938_v54  ;;  %v4953_v54 = vld [vmem:[%s8649_s6 + $0xf68] sm:$0xff] }
 0x5f8   :  { %5739 = vmatpush3.msra.mxu1 %v4922_v55  ;;  %v4968_v55 = vld [vmem:[%s8649_s6 + $0xfe0] sm:$0xff] }
 0x5f9   :  { %2734 = vmatmul.mubr.f32.gmra.mxu1 %v6524_v25  ;;  %5740 = vmatprep.subr.mxu1 %v4937_v56  ;;  %v4952_v56 = vld [vmem:[%s8649_s6 + $0xf60] sm:$0xff] }
 0x5fa   :  { %5741 = vmatpush3.msra.mxu1 %v4921_v57  ;;  %2954 = vmatprep.mubr.f32.mxu1 %v6472_v1  ;;  %v4933_v1 = vld [vmem:[%s8649_s6 + $0xec8] sm:$0xff]  ;;  %v4951_v57 = vld [vmem:[%s8649_s6 + $0xf58] sm:$0xff] }
 0x5fb   :  { %5742 = vmatprep.subr.mxu1 %v4936_v58  ;;  %v4966_v58 = vld [vmem:[%s8649_s6 + $0xfd0] sm:$0xff] }
 0x5fc   :  { %5743 = vmatpush3.msra.mxu1 %v4920_v60  ;;  %v4950_v60 = vld [vmem:[%s8649_s6 + $0xf50] sm:$0xff] }
 0x5fd   :  { %5744 = vmatprep.subr.mxu1 %v4935_v61  ;;  %v4965_v61 = vld [vmem:[%s8649_s6 + $0xfc8] sm:$0xff] }
 0x5fe   :  { %5745 = vmatpush3.msra.mxu1 %v4919_v62  ;;  %v4949_v62 = vld [vmem:[%s8649_s6 + $0xf48] sm:$0xff] }
 0x5ff   :  { %5746 = vmatprep.subr.mxu1 %v4934_v63  ;;  %v4964_v63 = vld [vmem:[%s8649_s6 + $0xfc0] sm:$0xff] }
 0x600   :  { %5747 = vmatpush3.msra.mxu1 %v4918_v0  ;;  %v4948_v0 = vld [vmem:[%s8649_s6 + $0xf40] sm:$0xff] }
 0x601   :  { %5748 = vmatprep.subr.mxu1 %v4933_v1  ;;  %v4963_v1 = vld [vmem:[%s8649_s6 + $0xfb8] sm:$0xff] }
 0x602   :  { %5749 = vmatpush3.msra.mxu1 %v4917_v4  ;;  %v4947_v4 = vld [vmem:[%s8649_s6 + $0xf38] sm:$0xff] }
 0x603   :  { %5750 = vmatprep.subr.mxu1 %v4932_v6  ;;  %v4962_v6 = vld [vmem:[%s8649_s6 + $0xfb0] sm:$0xff] }
 0x604   :  { %5751 = vmatpush3.msra.mxu1 %v4916_v7  ;;  %v4946_v7 = vld [vmem:[%s8649_s6 + $0xf30] sm:$0xff] }
 0x605   :  { %5752 = vmatprep.subr.mxu1 %v4931_v11  ;;  %v4961_v11 = vld [vmem:[%s8649_s6 + $0xfa8] sm:$0xff] }
 0x606   :  { %5753 = vmatpush3.msra.mxu1 %v4915_v8  ;;  %v4945_v8 = vld [vmem:[%s8649_s6 + $0xf28] sm:$0xff] }
 0x607   :  { %5754 = vmatprep.subr.mxu1 %v4930_v12  ;;  %v4960_v12 = vld [vmem:[%s8649_s6 + $0xfa0] sm:$0xff] }
 0x608   :  { %5755 = vmatpush3.msra.mxu1 %v4914_v13  ;;  %v4944_v13 = vld [vmem:[%s8649_s6 + $0xf20] sm:$0xff] }
 0x609   :  { %5756 = vmatprep.subr.mxu1 %v4929_v15  ;;  %v4959_v15 = vld [vmem:[%s8649_s6 + $0xf98] sm:$0xff] }
 0x60a   :  { %5757 = vmatpush3.msra.mxu1 %v4913_v16  ;;  %v4943_v16 = vld [vmem:[%s8649_s6 + $0xf18] sm:$0xff] }
 0x60b   :  { %5758 = vmatprep.subr.mxu1 %v4928_v17  ;;  %v4958_v17 = vld [vmem:[%s8649_s6 + $0xf90] sm:$0xff] }
 0x60c   :  { %5759 = vmatpush3.msra.mxu1 %v4912_v20  ;;  %v4942_v20 = vld [vmem:[%s8649_s6 + $0xf10] sm:$0xff] }
 0x60d   :  { %5760 = vmatprep.subr.mxu1 %v4927_v21  ;;  %v4957_v21 = vld [vmem:[%s8649_s6 + $0xf88] sm:$0xff] }
 0x60e   :  { %5761 = vmatpush3.msra.mxu1 %v4911_v22  ;;  %v4941_v22 = vld [vmem:[%s8649_s6 + $0xf08] sm:$0xff] }
 0x60f   :  { %5762 = vmatprep.subr.mxu1 %v4926_v23  ;;  %v4956_v23 = vld [vmem:[%s8649_s6 + $0xf80] sm:$0xff] }
 0x610   :  { %5763 = vmatpush3.msra.mxu1 %v4910_v26  ;;  %v4940_v26 = vld [vmem:[%s8649_s6 + $0xf00] sm:$0xff] }
 0x611   :  { %5764 = vmatprep.subr.mxu1 %v4925_v27  ;;  %v4972_v27 = vld [vmem:[%s8650_s7 + $0x70] sm:$0xff] }
 0x612   :  { %5765 = vmatpush3.msra.mxu1 %v4909_v28  ;;  %v3126_v28 = vld [vmem:[%s8652_s8] sm:$0xff] }
 0x613   :  { %5766 = vmatprep.subr.mxu1 %v4924_v29  ;;  %v3155_v29 = vld [vmem:[%s8653_s9 + $0x38] sm:$0xff]  ;;  %3130 = vperm.xlu1 %6065, %v3126_v28  }
 0x614   :  { %5767 = vmatpush3.msra.mxu1 %v4908_v30 }
 0x615   :  { %2955 = vmatmul.mubr.f32.vlgmr.msra.gmra.mxu1 %v6486_v9  ;;  %v5689_v9 = vpop.f32.mrf.mxu0 }
 0x616   :  { %2959 = vmatprep.mubr.f32.mxu1 %v6504_v18  ;;  %v5690_v44 = vadd.f32 %v5689_v9, %v5688_v36 }
 0x617   :  { %v5691_v37 = vpop.f32.mrf.mxu0 }
 0x619   :  { %2960 = vmatmul.mubr.f32.gmra.mxu1 %v6522_v24  ;;  %v5692_v24 = vpop.f32.mrf.mxu0 }
 0x61a   :  { %v5693_v41 = vadd.f32 %v5692_v24, %v5691_v37  ;;  %5927 = vmatprep.mubr.msk.f32.mxu1 %vm1157_vm9, %v4972_v27  ;;  %v5017_v27 = vld [vmem:[%s8654_s11 + $0x70] sm:$0xff] }
 0x695   :  { %v5915_v31 = vpop.f32.mrf.mxu1 }
 0x696   :  { %v8278_v33 = vadd.f32 %v5915_v31, %v8064_v50  ;;  %v4905_v50 = vld [vmem:[%s8650_s7 + $0x68] sm:$0xff] }
 0x697   :  { %v2513_v34 = vpop.f32.mrf.mxu1 }
 0x698   :  { %v8281_v35 = vadd.f32 %v2513_v34, %v8067_v52  ;;  %v4971_v52 = vld [vmem:[%s8649_s6 + $0xff8] sm:$0xff] }
 0x6b5   :  { %v5726_v18 = vpop.f32.mrf.mxu1 }
 0x6b7   :  { %v5727_v38 = vpop.f32.mrf.mxu1 }
 0x6b8   :  { %v5728_v42 = vadd.f32 %v5727_v38, %v5726_v18 }
 0x6b9   :  { %v5729_v39 = vpop.f32.mrf.mxu1 }
 0x6ba   :  { %v2731_v47 = vadd.f32 %v5728_v42, %v5690_v44 }
 0x6bb   :  { %v5730_v40 = vpop.f32.mrf.mxu1 }
 0x6bc   :  { %v5731_v43 = vadd.f32 %v5730_v40, %v5729_v39 }
 0x6be   :  { %v2736_v45 = vadd.f32 %v5731_v43, %v5693_v41 }
 0x6c0   :  { %5916 = vmatprep.subr.mxu0 %v2736_v45 }
 0x6c1   :  { %5917 = vmatpush3.msra.mxu0 %v2736_v45 }
 0x6c2   :  { %5918 = vmatprep.subr.mxu0 %v2731_v47 }
 0x6c3   :  { %5919 = vmatpush3.msra.mxu0 %v2731_v47  ;;  %v3152_v47 = vld [vmem:[%s8653_s9 + $0x20] sm:$0xff] }
 0x6c4   :  { %5921 = vmatmul.mubr.msk.f32.vlgmr.msra.gmra.mxu0 %vm1157_vm9, %v4905_v50  ;;  %5774 = vmatprep.subr.mxu0 %v4971_v52  ;;  %v3151_v50 = vld [vmem:[%s8653_s9 + $0x18] sm:$0xff]  ;;  %v3150_v52 = vld [vmem:[%s8653_s9 + $0x10] sm:$0xff] }
 0x6c5   :  { %5775 = vmatpush3.msra.mxu0 %v4955_v48  ;;  %3029 = vmatprep.mubr.f32.mxu0 %v6474_v2  ;;  %v4967_v2 = vld [vmem:[%s8649_s6 + $0xfd8] sm:$0xff]  ;;  %v3149_v48 = vld [vmem:[%s8653_s9 + $0x8] sm:$0xff] }
 0x6c6   :  { %5776 = vmatprep.subr.mxu0 %v4970_v46  ;;  %v3148_v46 = vld [vmem:[%s8653_s9] sm:$0xff] }
 0x6c7   :  { %5777 = vmatpush3.msra.mxu0 %v4954_v49  ;;  %v3131_v49 = vpop.permute.xlu1 %3130 }
 0x6c8   :  { %5778 = vmatprep.subr.mxu0 %v4969_v51 }
 0x6c9   :  { %5779 = vmatpush3.msra.mxu0 %v4953_v54 }
 0x6ca   :  { %5780 = vmatprep.subr.mxu0 %v4968_v55 }
 0x6cb   :  { %5781 = vmatpush3.msra.mxu0 %v4952_v56 }
 0x6cc   :  { %5782 = vmatprep.subr.mxu0 %v4967_v2 }
 0x6cd   :  { %5783 = vmatpush3.msra.mxu0 %v4951_v57 }
 0x6ce   :  { %5784 = vmatprep.subr.mxu0 %v4966_v58 }
 0x6cf   :  { %5785 = vmatpush3.msra.mxu0 %v4950_v60 }
 0x6d0   :  { %5786 = vmatprep.subr.mxu0 %v4965_v61 }
 0x6d1   :  { %5787 = vmatpush3.msra.mxu0 %v4949_v62  ;;  %v505_v62 = vmul.f32 0.1, %v7103_v53 }
 0x6d2   :  { %5788 = vmatprep.subr.mxu0 %v4964_v63 }
 0x6d3   :  { %5789 = vmatpush3.msra.mxu0 %v4948_v0 }
 0x6d4   :  { %5790 = vmatprep.subr.mxu0 %v4963_v1 }
 0x6d5   :  { %5791 = vmatpush3.msra.mxu0 %v4947_v4  ;;  %v5768_v34 = vpop.f32.mrf.mxu1  ;;  %v4988_v4 = vld [vmem:[%s8654_s11 + $0x28] sm:$0xff] }
 0x6d6   :  { %5792 = vmatprep.subr.mxu0 %v4962_v6  ;;  %v8439_v6 = vsel %vm503_vm11, %v7103_v53, %v505_v62  ;;  %v4994_v53 = vld [vmem:[%s8654_s11 + $0x38] sm:$0xff] }
 0x6d7   :  { %5793 = vmatpush3.msra.mxu0 %v4946_v7  ;;  %v5769_v36 = vpop.f32.mrf.mxu1  ;;  %v3558_v7 = vrot.slane %v8439_v6, 4  ;;  %v5009_v62 = vld [vmem:[%s8655_s12 + $0x58] sm:$0xff] }
 0x6d8   :  { %5794 = vmatprep.subr.mxu0 %v4961_v11  ;;  %v5770_v43 = vadd.f32 %v5769_v36, %v5768_v34  ;;  %v4993_v11 = vld [vmem:[%s8654_s11 + $0x30] sm:$0xff] }
 0x6d9   :  { %5795 = vmatpush3.msra.mxu0 %v4945_v8  ;;  %v5771_v9 = vpop.f32.mrf.mxu1  ;;  %v3712_v8 = vrot.slane %v8439_v6, 6 }
 0x6da   :  { %5796 = vmatprep.subr.mxu0 %v4960_v12  ;;  %v5000_v12 = vld [vmem:[%s8654_s11 + $0x48] sm:$0xff] }
 0x6db   :  { %5797 = vmatpush3.msra.mxu0 %v4944_v13  ;;  %v5772_v38 = vpop.f32.mrf.mxu1  ;;  %v506_v13 = vmul.f32 0.1, %v7105_v59 }
 0x6dc   :  { %5798 = vmatprep.subr.mxu0 %v4959_v15  ;;  %v5773_v40 = vadd.f32 %v5772_v38, %v5771_v9  ;;  %v4999_v15 = vld [vmem:[%s8654_s11 + $0x40] sm:$0xff]  ;;  %v3252_v9 = vld [vmem:[%s8654_s11 + $0x8] sm:$0xff] }
 0x6dd   :  { %5799 = vmatpush3.msra.mxu0 %v4943_v16  ;;  %v5006_v16 = vld [vmem:[%s8654_s11 + $0x58] sm:$0xff]  ;;  %v3251_v38 = vld [vmem:[%s8654_s11] sm:$0xff] }
 0x6de   :  { %5800 = vmatprep.subr.mxu0 %v4958_v17  ;;  %v508_v17 = vsel %vm504_vm15, %v7105_v59, %v506_v13  ;;  %v5011_v59 = vld [vmem:[%s8654_s11 + $0x60] sm:$0xff] }
 0x6df   :  { %5801 = vmatpush3.msra.mxu0 %v4942_v20  ;;  %v5005_v20 = vld [vmem:[%s8654_s11 + $0x50] sm:$0xff]  ;;  %v4328_v28 = vrot.slane %v508_v17, 6 }
 0x6e0   :  { %5802 = vmatprep.subr.mxu0 %v4957_v21  ;;  %v4020_v21 = vrot.slane %v508_v17, 2 }
 0x6e1   :  { %5803 = vmatpush3.msra.mxu0 %v4941_v22  ;;  %v5012_v22 = vld [vmem:[%s8654_s11 + $0x68] sm:$0xff] }
 0x6e2   :  { %5804 = vmatprep.subr.mxu0 %v4956_v23  ;;  %v4174_v23 = vrot.slane %v508_v17, 4 }
 0x6e3   :  { %5805 = vmatpush3.msra.mxu0 %v4940_v26  ;;  %v5018_v26 = vld [vmem:[%s8654_s11 + $0x78] sm:$0xff] }
 0x6e4   :  { %3030 = vmatmul.mubr.f32.vlgmr.msra.gmra.mxu0 %v6489_v10  ;;  %5930 = vmatprep.subr.mxu0 %v3155_v29  ;;  %v3154_v10 = vld [vmem:[%s8653_s9 + $0x30] sm:$0xff] }
 0x6e5   :  { %3034 = vmatprep.mubr.f32.mxu0 %v6506_v19  ;;  %v3127_v19 = vld [vmem:[%s8652_s8 + $0x8] sm:$0xff]  ;;  %5931 = vmatpush3.msra.mxu0 %v3155_v29 }
 0x6e6   :  { %5932 = vmatprep.subr.mxu0 %v3154_v10  ;;  %3135 = vperm.xlu1 %6065, %v3127_v19   ;;  %v3254_v29 = vld [vmem:[%s8655_s12 + $0x8] sm:$0xff] }
 0x6e7   :  { %5933 = vmatpush3.msra.mxu0 %v3154_v10  ;;  %v3253_v10 = vld [vmem:[%s8655_s12] sm:$0xff] }
 0x6e8   :  { %3035 = vmatmul.mubr.f32.gmra.mxu0 %v6524_v25 }
 0x761   :  { %v3136_v54 = vpop.permute.xlu1 %3135 }
 0x784   :  { %v5922_v25 = vpop.f32.mrf.mxu0 }
 0x785   :  { %v2824_v30 = vadd.f32 %v5922_v25, %v8278_v33  ;;  %v4973_v33 = vld [vmem:[%s8650_s7 + $0x78] sm:$0xff]  ;;  %v4976_v25 = vld [vmem:[%s8656_s10] ss:$0 sm:$0xff] }
 0x786   :  { %v2814_v32 = vpop.f32.mrf.mxu0 }
 0x787   :  { %v2823_v31 = vadd.f32 %v2814_v32, %v8281_v35  ;;  %v3153_v35 = vld [vmem:[%s8653_s9 + $0x28] sm:$0xff] }
 0x788   :  { %5934 = vmatprep.subr.mxu0 %v3153_v35 }
 0x789   :  { %5935 = vmatpush3.msra.mxu0 %v3153_v35 }
 0x78a   :  { %5936 = vmatprep.subr.mxu0 %v3152_v47 }
 0x78b   :  { %5937 = vmatpush3.msra.mxu0 %v3152_v47 }
 0x78c   :  { %5938 = vmatprep.subr.mxu0 %v3151_v50 }
 0x78d   :  { %5939 = vmatpush3.msra.mxu0 %v3151_v50  ;;  %v4991_v50 = vld [vmem:[%s8655_s12 + $0x28] sm:$0xff] }
 0x78e   :  { %5940 = vmatprep.subr.mxu0 %v3150_v52 }
 0x78f   :  { %5941 = vmatpush3.msra.mxu0 %v3150_v52 }
 0x790   :  { %5942 = vmatprep.subr.mxu0 %v3149_v48 }
 0x791   :  { %5943 = vmatpush3.msra.mxu0 %v3149_v48  ;;  %v4990_v48 = vld [vmem:[%s8655_s12 + $0x20] sm:$0xff] }
 0x792   :  { %5944 = vmatprep.subr.mxu0 %v3148_v46 }
 0x793   :  { %5945 = vmatpush3.msra.mxu0 %v3148_v46 }
 0x794   :  { %5977 = vmatprep.subr.mxu0 %v6066_v3 }
 0x7a4   :  { %v5806_v37 = vpop.f32.mrf.mxu0 }
 0x7a6   :  { %v5807_v18 = vpop.f32.mrf.mxu0 }
 0x7a7   :  { %v5808_v41 = vadd.f32 %v5807_v18, %v5806_v37 }
 0x7a8   :  { %v5809_v24 = vpop.f32.mrf.mxu0 }
 0x7a9   :  { %v3032_v45 = vadd.f32 %v5808_v41, %v5770_v43  ;;  %v4981_v41 = vld [vmem:[%s8654_s11 + $0x10] sm:$0xff] }
 0x7aa   :  { %v5810_v39 = vpop.f32.mrf.mxu0 }
 0x7ab   :  { %v5811_v42 = vadd.f32 %v5810_v39, %v5809_v24  ;;  %v4982_v39 = vld [vmem:[%s8654_s11 + $0x18] sm:$0xff] }
 0x7ad   :  { %v3037_v44 = vadd.f32 %v5811_v42, %v5773_v40  ;;  %v3404_v42 = vrot.slane %v8439_v6, 2 }
 0x7af   :  { %5923 = vmatprep.subr.mxu1 %v3037_v44 }
 0x7b0   :  { %5924 = vmatpush3.msra.mxu1 %v3037_v44  ;;  %v4985_v44 = vld [vmem:[%s8655_s12 + $0x18] sm:$0xff] }
 0x7b1   :  { %5925 = vmatprep.subr.mxu1 %v3032_v45 }
 0x7b2   :  { %5926 = vmatpush3.msra.mxu1 %v3032_v45 }
 0x7b3   :  { %5928 = vmatmul.mubr.msk.f32.vlgmr.msra.gmra.mxu1 %vm1157_vm9, %v4973_v33  ;;  %5949 = vmatprep.subr.mxu1 %v6066_v3  ;;  %v4984_v33 = vld [vmem:[%s8655_s12 + $0x10] sm:$0xff] }
 0x7b4   :  { %5953 = vmatprep.mubr.msk.f32.mxu1 %vm6068_vm10, %v6066_v3  ;;  %5950 = vmatpush3.msra.mxu1 %v3254_v29 }
 0x7b5   :  { %5951 = vmatprep.subr.mxu1 %v6066_v3 }
 0x7b6   :  { %5952 = vmatpush3.msra.mxu1 %v3253_v10 }
 0x7b7   :  { %5956 = vmatprep.subr.mxu1 %v6066_v3 }
 0x873   :  { %v5929_v51 = vpop.f32.mrf.mxu1 }
 0x874   :  { %v3125_v55 = vadd.f32 %v5929_v51, %v2824_v30  ;;  %v4997_v51 = vld [vmem:[%s8655_s12 + $0x38] sm:$0xff] }
 0x875   :  { %v3115_v56 = vpop.f32.mrf.mxu1 }
 0x876   :  { %v3139_v2 = vadd.f32 %v3136_v54, %v3125_v55  ;;  %v3124_v57 = vadd.f32 %v3115_v56, %v2823_v31  ;;  %v4996_v56 = vld [vmem:[%s8655_s12 + $0x30] sm:$0xff] }
 0x878   :  { %v3141_v58 = vadd.f32 %v3139_v2, %v7109_v14  ;;  %v3138_v60 = vadd.f32 %v3131_v49, %v3124_v57 }
 0x87a   :  { %v3140_v61 = vadd.f32 %v3138_v60, %v7107_v5  ;;  %v3145_v63 = vmul.f32 0.1, %v3141_v58  ;;  %vm3143_vm12 = vcmp.ge.f32.partialorder %v3141_v58, 0.0  ;;  %v4987_v5 = vld [vmem:[%s8654_s11 + $0x20] sm:$0xff] }
 0x87c   :  { %vm3142_vm13 = vcmp.ge.f32.partialorder %v3140_v61, 0.0  ;;  %v3144_v0 = vmul.f32 0.1, %v3140_v61  ;;  %v3147_v14 = vsel %vm3143_vm12, %v3141_v58, %v3145_v63  ;;  %v5003_v58 = vld [vmem:[%s8655_s12 + $0x48] sm:$0xff] }
 0x87e   :  { %v3146_v1 = vsel %vm3142_vm13, %v3140_v61, %v3144_v0  ;;  %v5002_v61 = vld [vmem:[%s8655_s12 + $0x40] sm:$0xff]  ;;  %v5008_v0 = vld [vmem:[%s8655_s12 + $0x50] sm:$0xff] }
 0x87f   :  { %5946 = vmatprep.mubr.msk.f32.mxu0 %vm3163_vm14, %v3146_v1 }
 0x880   :  { %5947 = vmatmul.mubr.msk.f32.vlgmr.msra.gmra.mxu0 %vm3163_vm14, %v3147_v14 }
 0x881   :  { %5978 = vmatpush3.msra.mxu0 %v4988_v4  ;;  %5981 = vmatprep.mubr.msk.f32.mxu0 %vm6068_vm10, %v6066_v3  ;;  %v5015_v4 = vld [vmem:[%s8655_s12 + $0x68] sm:$0xff] }
 0x882   :  { %5979 = vmatprep.subr.mxu0 %v6066_v3 }
 0x883   :  { %5980 = vmatpush3.msra.mxu0 %v4987_v5  ;;  %v5021_v5 = vld [vmem:[%s8655_s12 + $0x78] sm:$0xff] }
 0x884   :  { %5982 = vmatmul.mubr.msk.f32.vlgmr.msra.gmra.mxu0 %vm1157_vm9, %v3558_v7  ;;  %5991 = vmatprep.subr.mxu0 %v6066_v3  ;;  %v5020_v7 = vld [vmem:[%s8655_s12 + $0x70] sm:$0xff] }
 0x885   :  { %5992 = vmatpush3.msra.mxu0 %v4994_v53  ;;  %5995 = vmatprep.mubr.msk.f32.mxu0 %vm6068_vm10, %v6066_v3 }
 0x886   :  { %5993 = vmatprep.subr.mxu0 %v6066_v3 }
 0x887   :  { %5994 = vmatpush3.msra.mxu0 %v4993_v11 }
 0x888   :  { %5996 = vmatmul.mubr.msk.f32.vlgmr.msra.gmra.mxu0 %vm1157_vm9, %v3712_v8  ;;  %6005 = vmatprep.subr.mxu0 %v6066_v3 }
 0x889   :  { %6006 = vmatpush3.msra.mxu0 %v5000_v12  ;;  %6009 = vmatprep.mubr.msk.f32.mxu0 %vm6068_vm10, %v6066_v3 }
 0x88a   :  { %6007 = vmatprep.subr.mxu0 %v6066_v3 }
 0x88b   :  { %6008 = vmatpush3.msra.mxu0 %v4999_v15 }
 0x88c   :  { %6010 = vmatmul.mubr.msk.f32.vlgmr.msra.gmra.mxu0 %vm1157_vm9, %v508_v17  ;;  %6019 = vmatprep.subr.mxu0 %v6066_v3 }
 0x88d   :  { %6020 = vmatpush3.msra.mxu0 %v5006_v16  ;;  %6023 = vmatprep.mubr.msk.f32.mxu0 %vm6068_vm10, %v6066_v3 }
 0x88e   :  { %6021 = vmatprep.subr.mxu0 %v6066_v3 }
 0x88f   :  { %6022 = vmatpush3.msra.mxu0 %v5005_v20 }
 0x890   :  { %6024 = vmatmul.mubr.msk.f32.vlgmr.msra.gmra.mxu0 %vm1157_vm9, %v4020_v21  ;;  %6033 = vmatprep.subr.mxu0 %v6066_v3 }
 0x891   :  { %6034 = vmatpush3.msra.mxu0 %v5012_v22  ;;  %6037 = vmatprep.mubr.msk.f32.mxu0 %vm6068_vm10, %v6066_v3 }
 0x892   :  { %6035 = vmatprep.subr.mxu0 %v6066_v3 }
 0x893   :  { %6036 = vmatpush3.msra.mxu0 %v5011_v59 }
 0x894   :  { %6038 = vmatmul.mubr.msk.f32.vlgmr.msra.gmra.mxu0 %vm1157_vm9, %v4174_v23  ;;  %6047 = vmatprep.subr.mxu0 %v6066_v3 }
 0x895   :  { %6048 = vmatpush3.msra.mxu0 %v5018_v26  ;;  %6051 = vmatprep.mubr.msk.f32.mxu0 %vm6068_vm10, %v6066_v3 }
 0x896   :  { %6049 = vmatprep.subr.mxu0 %v6066_v3 }
 0x897   :  { %6050 = vmatpush3.msra.mxu0 %v5017_v27 }
 0x898   :  { %6052 = vmatmul.mubr.msk.f32.vlgmr.msra.gmra.mxu0 %vm1157_vm9, %v4328_v28 }
 0x940   :  { %v5948_v19 = vpop.f32.mrf.mxu0 }
 0x941   :  { %v3242_v54 = vadd.f32 %v5948_v19, %v4976_v25 }
 0x942   :  { %v3236_v30 = vpop.f32.mrf.mxu0 }
 0x943   :  { %v3237_v32 = vadd.f32 %v4976_v25, %v3236_v30  ;;  %v3248_v60 = vmul.f32 0.1, %v3242_v54  ;;  %vm3246_vm1 = vcmp.ge.f32.partialorder %v3242_v54, 0.0 }
 0x944   :  { %v8519_v31 = vpop.f32.mrf.mxu0 }
 0x945   :  { %vm3245_vm0 = vcmp.ge.f32.partialorder %v3237_v32, 0.0  ;;  %v3247_v34 = vmul.f32 0.1, %v3237_v32  ;;  %v3250_v63 = vsel %vm3246_vm1, %v3242_v54, %v3248_v60 }
 0x946   :  { %v5983_v36 = vpop.f32.mrf.mxu0  ;;  %v4097_v1 = vrot.slane %v3250_v63, 2  ;;  %v4251_v14 = vrot.slane %v3250_v63, 4  ;;  %v4405_v53 = vrot.slane %v3250_v63, 6 }
 0x947   :  { %v3249_v37 = vsel %vm3245_vm0, %v3237_v32, %v3247_v34 }
 0x948   :  { %5954 = vmatmul.mubr.msk.f32.vlgmr.msra.gmra.mxu1 %vm1157_vm9, %v3249_v37  ;;  %v8525_v18 = vpop.f32.mrf.mxu0  ;;  %v3481_v35 = vrot.slane %v3249_v37, 2  ;;  %v3635_v46 = vrot.slane %v3249_v37, 4  ;;  %v3789_v2 = vrot.slane %v3249_v37, 6 }
 0x949   :  { %5957 = vmatpush3.msra.mxu1 %v3252_v9  ;;  %5960 = vmatprep.mubr.msk.f32.mxu1 %vm6068_vm10, %v6066_v3 }
 0x94a   :  { %5958 = vmatprep.subr.mxu1 %v6066_v3  ;;  %v5997_v24 = vpop.f32.mrf.mxu0 }
 0x94b   :  { %5959 = vmatpush3.msra.mxu1 %v3251_v38 }
 0x94c   :  { %5961 = vmatmul.mubr.msk.f32.vlgmr.msra.gmra.mxu1 %vm1157_vm9, %v8439_v6  ;;  %5963 = vmatprep.subr.mxu1 %v6066_v3  ;;  %v8539_v40 = vpop.f32.mrf.mxu0  ;;  %v5014_v6 = vld [vmem:[%s8655_s12 + $0x60] sm:$0xff] }
 0x94d   :  { %5964 = vmatpush3.msra.mxu1 %v4982_v39  ;;  %5967 = vmatprep.mubr.msk.f32.mxu1 %vm6068_vm10, %v6066_v3 }
 0x94e   :  { %5965 = vmatprep.subr.mxu1 %v6066_v3  ;;  %v6011_v43 = vpop.f32.mrf.mxu0 }
 0x94f   :  { %5966 = vmatpush3.msra.mxu1 %v4981_v41 }
 0x950   :  { %5968 = vmatmul.mubr.msk.f32.vlgmr.msra.gmra.mxu1 %vm1157_vm9, %v3404_v42  ;;  %5970 = vmatprep.subr.mxu1 %v6066_v3  ;;  %v8553_v45 = vpop.f32.mrf.mxu0 }
 0x951   :  { %5971 = vmatpush3.msra.mxu1 %v4985_v44  ;;  %5974 = vmatprep.mubr.msk.f32.mxu1 %vm6068_vm10, %v6066_v3 }
 0x952   :  { %5972 = vmatprep.subr.mxu1 %v6066_v3  ;;  %v6025_v47 = vpop.f32.mrf.mxu0 }
 0x953   :  { %5973 = vmatpush3.msra.mxu1 %v4984_v33 }
 0x954   :  { %5975 = vmatmul.mubr.msk.f32.vlgmr.msra.gmra.mxu1 %vm1157_vm9, %v3481_v35  ;;  %5984 = vmatprep.subr.mxu1 %v6066_v3  ;;  %v8566_v52 = vpop.f32.mrf.mxu0 }
 0x955   :  { %5985 = vmatpush3.msra.mxu1 %v4991_v50  ;;  %5988 = vmatprep.mubr.msk.f32.mxu1 %vm6068_vm10, %v6066_v3 }
 0x956   :  { %5986 = vmatprep.subr.mxu1 %v6066_v3  ;;  %v6039_v49 = vpop.f32.mrf.mxu0 }
 0x957   :  { %5987 = vmatpush3.msra.mxu1 %v4990_v48 }
 0x958   :  { %5989 = vmatmul.mubr.msk.f32.vlgmr.msra.gmra.mxu1 %vm1157_vm9, %v3635_v46  ;;  %5998 = vmatprep.subr.mxu1 %v6066_v3  ;;  %v8579_v55 = vpop.f32.mrf.mxu0 }
 0x959   :  { %5999 = vmatpush3.msra.mxu1 %v4997_v51  ;;  %6002 = vmatprep.mubr.msk.f32.mxu1 %vm6068_vm10, %v6066_v3 }
 0x95a   :  { %6000 = vmatprep.subr.mxu1 %v6066_v3  ;;  %v6053_v57 = vpop.f32.mrf.mxu0 }
 0x95b   :  { %6001 = vmatpush3.msra.mxu1 %v4996_v56 }
 0x95c   :  { %6003 = vmatmul.mubr.msk.f32.vlgmr.msra.gmra.mxu1 %vm1157_vm9, %v3789_v2  ;;  %6012 = vmatprep.subr.mxu1 %v6066_v3 }
 0x95d   :  { %6013 = vmatpush3.msra.mxu1 %v5003_v58  ;;  %6016 = vmatprep.mubr.msk.f32.mxu1 %vm6068_vm10, %v6066_v3 }
 0x95e   :  { %6014 = vmatprep.subr.mxu1 %v6066_v3 }
 0x95f   :  { %6015 = vmatpush3.msra.mxu1 %v5002_v61 }
 0x960   :  { %6017 = vmatmul.mubr.msk.f32.vlgmr.msra.gmra.mxu1 %vm1157_vm9, %v3250_v63  ;;  %6026 = vmatprep.subr.mxu1 %v6066_v3 }
 0x961   :  { %6027 = vmatpush3.msra.mxu1 %v5009_v62  ;;  %6030 = vmatprep.mubr.msk.f32.mxu1 %vm6068_vm10, %v6066_v3 }
 0x962   :  { %6028 = vmatprep.subr.mxu1 %v6066_v3 }
 0x963   :  { %6029 = vmatpush3.msra.mxu1 %v5008_v0 }
 0x964   :  { %6031 = vmatmul.mubr.msk.f32.vlgmr.msra.gmra.mxu1 %vm1157_vm9, %v4097_v1  ;;  %6040 = vmatprep.subr.mxu1 %v6066_v3 }
 0x965   :  { %6041 = vmatpush3.msra.mxu1 %v5015_v4  ;;  %6044 = vmatprep.mubr.msk.f32.mxu1 %vm6068_vm10, %v6066_v3 }
 0x966   :  { %6042 = vmatprep.subr.mxu1 %v6066_v3 }
 0x967   :  { %6043 = vmatpush3.msra.mxu1 %v5014_v6 }
 0x968   :  { %6045 = vmatmul.mubr.msk.f32.vlgmr.msra.gmra.mxu1 %vm1157_vm9, %v4251_v14  ;;  %6054 = vmatprep.subr.mxu1 %v6066_v3 }
 0x969   :  { %6055 = vmatpush3.msra.mxu1 %v5021_v5  ;;  %6058 = vmatprep.mubr.msk.f32.mxu1 %vm6068_vm10, %v6066_v3 }
 0x96a   :  { %6056 = vmatprep.subr.mxu1 %v6066_v3 }
 0x96b   :  { %6057 = vmatpush3.msra.mxu1 %v5020_v7 }
 0x96c   :  { %6059 = vmatmul.mubr.msk.f32.vlgmr.msra.gmra.mxu1 %vm1157_vm9, %v4405_v53 }
 0xa08   :  { %v3324_v11 = vpop.f32.mrf.mxu1 }
 0xa0a   :  { %v5955_v8 = vpop.f32.mrf.mxu1 }
 0xa0c   :  { %v3397_v12 = vpop.f32.mrf.mxu1 }
 0xa0d   :  { %v3398_v16 = vadd.f32 %v3397_v12, %v3324_v11 }
 0xa0e   :  { %v5962_v13 = vpop.f32.mrf.mxu1 }
 0xa10   :  { %v3473_v15 = vpop.f32.mrf.mxu1 }
 0xa11   :  { %v3477_v20 = vadd.f32 %v3473_v15, %v3398_v16 }
 0xa12   :  { %v5969_v17 = vpop.f32.mrf.mxu1 }
 0xa14   :  { %v3550_v21 = vpop.f32.mrf.mxu1 }
 0xa15   :  { %v3554_v22 = vadd.f32 %v3550_v21, %v3477_v20 }
 0xa16   :  { %v5976_v59 = vpop.f32.mrf.mxu1 }
 0xa17   :  { %v3631_v23 = vadd.f32 %v8519_v31, %v3554_v22 }
 0xa18   :  { %v3704_v26 = vpop.f32.mrf.mxu1 }
 0xa19   :  { %v3708_v27 = vadd.f32 %v3704_v26, %v3631_v23 }
 0xa1a   :  { %v5990_v28 = vpop.f32.mrf.mxu1 }
 0xa1b   :  { %v3785_v3 = vadd.f32 %v8525_v18, %v3708_v27 }
 0xa1c   :  { %v3858_v29 = vpop.f32.mrf.mxu1 }
 0xa1d   :  { %v3862_v10 = vadd.f32 %v3858_v29, %v3785_v3 }
 0xa1e   :  { %v6004_v19 = vpop.f32.mrf.mxu1 }
 0xa1f   :  { %v3939_v25 = vadd.f32 %v8539_v40, %v3862_v10  ;;  %v5023_v40 = vld [vmem:[%s8657_s13] ss:$0 sm:$0xff] }
 0xa20   :  { %v4012_v30 = vpop.f32.mrf.mxu1 }
 0xa21   :  { %v4016_v32 = vadd.f32 %v4012_v30, %v3939_v25 }
 0xa22   :  { %v6018_v34 = vpop.f32.mrf.mxu1 }
 0xa23   :  { %v4093_v36 = vadd.f32 %v8553_v45, %v4016_v32 }
 0xa24   :  { %v4166_v9 = vpop.f32.mrf.mxu1 }
 0xa25   :  { %v4170_v37 = vadd.f32 %v4166_v9, %v4093_v36 }
 0xa26   :  { %v6032_v38 = vpop.f32.mrf.mxu1 }
 0xa27   :  { %v4247_v31 = vadd.f32 %v8566_v52, %v4170_v37 }
 0xa28   :  { %v4320_v24 = vpop.f32.mrf.mxu1 }
 0xa29   :  { %v4324_v39 = vadd.f32 %v4320_v24, %v4247_v31 }
 0xa2a   :  { %v6046_v41 = vpop.f32.mrf.mxu1 }
 0xa2b   :  { %v4401_v18 = vadd.f32 %v8579_v55, %v4324_v39 }
 0xa2c   :  { %v4474_v42 = vpop.f32.mrf.mxu1 }
 0xa2d   :  { %v4478_v43 = vadd.f32 %v4474_v42, %v4401_v18 }
 0xa2e   :  { %v6060_v44 = vpop.f32.mrf.mxu1 }
 0xa2f   :  { %v4486_v33 = vadd.f32 %v5023_v40, %v4478_v43 }
 0xa31   :  { %4488 = vst.msk [vmem:[%s8658_s14] sm:$0x3] %vm4487_vm2, %v4486_v33 }

// kernel: run.5
= control target key start
LH: loop header
LB: loop body
LE: loop exit
PB: predicated region body
PF: predicated region fallthrough
CT: control target
= control target key end

     0   :  { %21 = vsyncpa [#allocation3], 0  ;;  %v934_v1 = vmov 0.0   ;;  %vm935_vm0 = vmmov 0   ;;  %s1610_s0 = inlined_call_operand.vmem [shape: f32[2,32], index: 0, kind: input, shape index: {}]   ;;  %s1611_s1 = inlined_call_operand.vmem [shape: f32[2,32], index: 1, kind: input, shape index: {}]   ;;  %s1612_s2 = inlined_call_operand.vmem [shape: f32[2,32], index: 2, kind: input, shape index: {}]   ;;  %s1613_s3 = inlined_call_operand.vmem [shape: f32[32,128], index: 3, kind: input, shape index: {}]   ;;  %s1614_s4 = inlined_call_operand.vmem [shape: f32[1,128], index: 4, kind: input, shape index: {}]   ;;  %s1615_s5 = inlined_call_operand.vmem [shape: f32[128,256], index: 5, kind: input, shape index: {}]   ;;  %s1616_s6 = inlined_call_operand.vmem [shape: f32[256,512], index: 6, kind: input, shape index: {}]   ;;  %s1617_s7 = inlined_call_operand.vmem [shape: f32[32,64], index: 7, kind: input, shape index: {}]   ;;  %s1618_s8 = inlined_call_operand.vmem [shape: f32[1,64], index: 8, kind: input, shape index: {}]   ;;  %s1619_s9 = inlined_call_operand.vmem [shape: f32[1,64], index: 9, kind: input, shape index: {}]   ;;  %s1620_s10 = inlined_call_operand.vmem [shape: f32[1,64], index: 10, kind: input, shape index: {}]   ;;  %s1621_s11 = inlined_call_operand.vmem [shape: f32[64,6], index: 11, kind: input, shape index: {}]   ;;  %s1622_s12 = inlined_call_operand.vmem [shape: f32[1,6], index: 12, kind: input, shape index: {}]   ;;  %s1623_s13 = inlined_call_operand.hbm [shape: f32[2,32], index: 13, kind: output, shape index: {0}]   ;;  %s1624_s14 = inlined_call_operand.vmem [shape: f32[2,512], index: 14, kind: output, shape index: {1}]   ;;  %s1625_s15 = inlined_call_operand.hbm [shape: f32[2,6], index: 15, kind: output, shape index: {2}]  }
   0x1   :  { %v62_v0 = vld [vmem:[%s1613_s3 + $0x18] sm:$0xff]  ;;  %836 = vmatprep.subr.mxu0 %v934_v1  ;;  %v61_v2 = vld [vmem:[%s1613_s3 + $0x10] sm:$0xff]  ;;  %844 = vmatprep.mubr.msk.f32.mxu0 %vm935_vm0, %v934_v1  ;;  %v50_v3 = vld [vmem:[%s1611_s1] sm:$0x3] }
   0x2   :  { %837 = vmatpush3.msra.mxu0 %v62_v0  ;;  %v51_v4 = vmul.f32 0.5, %v50_v3  ;;  %v175_v5 = vld [vmem:[%s1615_s5 + $0xf8] sm:$0xff]  ;;  %v174_v6 = vld [vmem:[%s1615_s5 + $0xf0] sm:$0xff]  ;;  %240 = vmatprep.mubr.f32.mxu1 %v934_v1  ;;  %v60_v7 = vld [vmem:[%s1613_s3 + $0x8] sm:$0xff] }
   0x3   :  { %838 = vmatprep.subr.mxu0 %v934_v1  ;;  %176 = vmatprep.subr.mxu1 %v175_v5  ;;  %v173_v8 = vld [vmem:[%s1615_s5 + $0xe8] sm:$0xff]  ;;  %v172_v9 = vld [vmem:[%s1615_s5 + $0xe0] sm:$0xff]  ;;  %v171_v11 = vld [vmem:[%s1615_s5 + $0xd8] sm:$0xff] }
   0x4   :  { %839 = vmatpush3.msra.mxu0 %v61_v2  ;;  %v52_v10 = vmul.f32 1.442695, %v51_v4  ;;  %177 = vmatpush1.msra.mxu1 %v174_v6  ;;  %v59_v12 = vld [vmem:[%s1613_s3] sm:$0xff]  ;;  %v170_v13 = vld [vmem:[%s1615_s5 + $0xd0] sm:$0xff]  ;;  %v169_v14 = vld [vmem:[%s1615_s5 + $0xc8] sm:$0xff] }
   0x5   :  { %840 = vmatprep.subr.mxu0 %v934_v1  ;;  %178 = vmatprep.subr.mxu1 %v173_v8  ;;  %v168_v15 = vld [vmem:[%s1615_s5 + $0xc0] sm:$0xff]  ;;  %v167_v16 = vld [vmem:[%s1615_s5 + $0xb8] sm:$0xff]  ;;  %v166_v17 = vld [vmem:[%s1615_s5 + $0xb0] sm:$0xff] }
   0x6   :  { %841 = vmatpush3.msra.mxu0 %v60_v7  ;;  %882 = vpow2.f32 %v52_v10  ;;  %179 = vmatpush1.msra.mxu1 %v172_v9  ;;  %v165_v18 = vld [vmem:[%s1615_s5 + $0xa8] sm:$0xff]  ;;  %v164_v19 = vld [vmem:[%s1615_s5 + $0xa0] sm:$0xff]  ;;  %v163_v20 = vld [vmem:[%s1615_s5 + $0x98] sm:$0xff] }
   0x7   :  { %842 = vmatprep.subr.mxu0 %v934_v1  ;;  %180 = vmatprep.subr.mxu1 %v171_v11 }
   0x8   :  { %843 = vmatpush3.msra.mxu0 %v59_v12  ;;  %181 = vmatpush1.msra.mxu1 %v170_v13 }
   0x9   :  { %182 = vmatprep.subr.mxu1 %v169_v14 }
   0xa   :  { %183 = vmatpush1.msra.mxu1 %v168_v15 }
   0xb   :  { %184 = vmatprep.subr.mxu1 %v167_v16 }
   0xc   :  { %185 = vmatpush1.msra.mxu1 %v166_v17 }
   0xd   :  { %22 = vsyncpa [#allocation5], 0  ;;  %186 = vmatprep.subr.mxu1 %v165_v18  ;;  %v162_v21 = vld [vmem:[%s1615_s5 + $0x90] sm:$0xff]  ;;  %v161_v22 = vld [vmem:[%s1615_s5 + $0x88] sm:$0xff]  ;;  %vm70_vm1 = vcmask 261120   ;;  %vm640_vm8 = vcmask 517120  }
   0xe   :  { %187 = vmatpush1.msra.mxu1 %v164_v19  ;;  %v160_v23 = vld [vmem:[%s1615_s5 + $0x80] sm:$0xff]  ;;  %v159_v24 = vld [vmem:[%s1615_s5 + $0x78] sm:$0xff]  ;;  %v158_v26 = vld [vmem:[%s1615_s5 + $0x70] sm:$0xff]  ;;  %vm686_vm9 = vcmask 523264   ;;  %vm57_vm10 = vcmask 254976  }
   0xf   :  { %188 = vmatprep.subr.mxu1 %v163_v20  ;;  %v54_v25 = vld [vmem:[%s1612_s2] sm:$0x3]  ;;  %v157_v27 = vld [vmem:[%s1615_s5 + $0x68] sm:$0xff]  ;;  %v155_v32 = vld [vmem:[%s1615_s5 + $0x58] sm:$0xff] }
  0x10   :  { %189 = vmatpush1.msra.mxu1 %v162_v21  ;;  %v49_v29 = vld [vmem:[%s1610_s0] sm:$0x3]  ;;  %v154_v33 = vld [vmem:[%s1615_s5 + $0x50] sm:$0xff]  ;;  %v153_v35 = vld [vmem:[%s1615_s5 + $0x48] sm:$0xff] }
  0x11   :  { %190 = vmatprep.subr.mxu1 %v161_v22  ;;  %v156_v30 = vld [vmem:[%s1615_s5 + $0x60] sm:$0xff]  ;;  %v151_v37 = vld [vmem:[%s1615_s5 + $0x38] sm:$0xff]  ;;  %v150_v38 = vld [vmem:[%s1615_s5 + $0x30] sm:$0xff] }
  0x12   :  { %191 = vmatpush1.msra.mxu1 %v160_v23  ;;  %v152_v36 = vld [vmem:[%s1615_s5 + $0x40] sm:$0xff]  ;;  %v149_v39 = vld [vmem:[%s1615_s5 + $0x28] sm:$0xff]  ;;  %v147_v41 = vld [vmem:[%s1615_s5 + $0x18] sm:$0xff] }
  0x13   :  { %v883_v28 = vpop.eup %882  ;;  %192 = vmatprep.subr.mxu1 %v159_v24  ;;  %v148_v40 = vld [vmem:[%s1615_s5 + $0x20] sm:$0xff]  ;;  %v146_v42 = vld [vmem:[%s1615_s5 + $0x10] sm:$0xff]  ;;  %v145_v43 = vld [vmem:[%s1615_s5 + $0x8] sm:$0xff] }
  0x14   :  { %v55_v31 = vmul.f32 %v883_v28, %v54_v25  ;;  %193 = vmatpush1.msra.mxu1 %v158_v26  ;;  %v144_v44 = vld [vmem:[%s1615_s5] sm:$0xff]  ;;  %v314_v45 = vld [vmem:[%s1616_s6 + $0x1e8] sm:$0xff]  ;;  %v316_v47 = vld [vmem:[%s1616_s6 + $0x1f8] sm:$0xff] }
  0x15   :  { %194 = vmatprep.subr.mxu1 %v157_v27  ;;  %v313_v46 = vld [vmem:[%s1616_s6 + $0x1e0] sm:$0xff]  ;;  %381 = vmatprep.subr.mxu0 %v314_v45  ;;  %v310_v48 = vld [vmem:[%s1616_s6 + $0x1c8] sm:$0xff]  ;;  %v315_v45 = vld [vmem:[%s1616_s6 + $0x1f0] sm:$0xff] }
  0x16   :  { %v1113_v34 = vadd.f32 %v55_v31, %v49_v29  ;;  %195 = vmatpush1.msra.mxu1 %v156_v30  ;;  %v309_v49 = vld [vmem:[%s1616_s6 + $0x1c0] sm:$0xff]  ;;  %v306_v50 = vld [vmem:[%s1616_s6 + $0x1a8] sm:$0xff] }
  0x17   :  { %196 = vmatprep.subr.mxu1 %v155_v32  ;;  %v305_v51 = vld [vmem:[%s1616_s6 + $0x1a0] sm:$0xff]  ;;  %v302_v52 = vld [vmem:[%s1616_s6 + $0x188] sm:$0xff] }
  0x18   :  { %845 = vmatmul.mubr.msk.f32.vlgmr.msra.gmra.mxu0 %vm70_vm1, %v1113_v34  ;;  %197 = vmatpush1.msra.mxu1 %v154_v33  ;;  %v301_v53 = vld [vmem:[%s1616_s6 + $0x180] sm:$0xff]  ;;  %v298_v54 = vld [vmem:[%s1616_s6 + $0x168] sm:$0xff]  ;;  %58 = vst.msk [vmem:[#allocation2] sm:$0x3] %vm57_vm10, %v1113_v34 }
  0x19   :  { %198 = vmatprep.subr.mxu1 %v153_v35  ;;  %382 = vmatpush1.msra.mxu0 %v313_v46  ;;  %v297_v55 = vld [vmem:[%s1616_s6 + $0x160] sm:$0xff]  ;;  %v294_v56 = vld [vmem:[%s1616_s6 + $0x148] sm:$0xff] }
  0x1a   :  { %199 = vmatpush1.msra.mxu1 %v152_v36  ;;  %383 = vmatprep.subr.mxu0 %v310_v48  ;;  %v293_v57 = vld [vmem:[%s1616_s6 + $0x140] sm:$0xff]  ;;  %v290_v58 = vld [vmem:[%s1616_s6 + $0x128] sm:$0xff]  ;;  %v311_v48 = vld [vmem:[%s1616_s6 + $0x1d0] sm:$0xff] }
  0x1b   :  { %200 = vmatprep.subr.mxu1 %v151_v37  ;;  %384 = vmatpush1.msra.mxu0 %v309_v49  ;;  %v289_v59 = vld [vmem:[%s1616_s6 + $0x120] sm:$0xff]  ;;  %v286_v60 = vld [vmem:[%s1616_s6 + $0x108] sm:$0xff]  ;;  %v308_v49 = vld [vmem:[%s1616_s6 + $0x1b8] sm:$0xff] }
  0x1c   :  { %201 = vmatpush1.msra.mxu1 %v150_v38  ;;  %385 = vmatprep.subr.mxu0 %v306_v50  ;;  %v285_v61 = vld [vmem:[%s1616_s6 + $0x100] sm:$0xff]  ;;  %v282_v62 = vld [vmem:[%s1616_s6 + $0xe8] sm:$0xff]  ;;  %v307_v50 = vld [vmem:[%s1616_s6 + $0x1b0] sm:$0xff] }
  0x1d   :  { %202 = vmatprep.subr.mxu1 %v149_v39  ;;  %386 = vmatpush1.msra.mxu0 %v305_v51  ;;  %v281_v63 = vld [vmem:[%s1616_s6 + $0xe0] sm:$0xff]  ;;  %v278_v0 = vld [vmem:[%s1616_s6 + $0xc8] sm:$0xff]  ;;  %v304_v51 = vld [vmem:[%s1616_s6 + $0x198] sm:$0xff] }
  0x1e   :  { %203 = vmatpush1.msra.mxu1 %v148_v40  ;;  %387 = vmatprep.subr.mxu0 %v302_v52  ;;  %v277_v2 = vld [vmem:[%s1616_s6 + $0xc0] sm:$0xff]  ;;  %v274_v3 = vld [vmem:[%s1616_s6 + $0xa8] sm:$0xff]  ;;  %v303_v52 = vld [vmem:[%s1616_s6 + $0x190] sm:$0xff] }
  0x1f   :  { %204 = vmatprep.subr.mxu1 %v147_v41  ;;  %388 = vmatpush1.msra.mxu0 %v301_v53  ;;  %v273_v4 = vld [vmem:[%s1616_s6 + $0xa0] sm:$0xff]  ;;  %v270_v5 = vld [vmem:[%s1616_s6 + $0x88] sm:$0xff]  ;;  %v300_v53 = vld [vmem:[%s1616_s6 + $0x178] sm:$0xff] }
  0x20   :  { %205 = vmatpush1.msra.mxu1 %v146_v42  ;;  %389 = vmatprep.subr.mxu0 %v298_v54  ;;  %v269_v6 = vld [vmem:[%s1616_s6 + $0x80] sm:$0xff]  ;;  %v266_v7 = vld [vmem:[%s1616_s6 + $0x68] sm:$0xff]  ;;  %v299_v54 = vld [vmem:[%s1616_s6 + $0x170] sm:$0xff] }
  0x21   :  { %206 = vmatprep.subr.mxu1 %v145_v43  ;;  %390 = vmatpush1.msra.mxu0 %v297_v55  ;;  %v265_v8 = vld [vmem:[%s1616_s6 + $0x60] sm:$0xff]  ;;  %v262_v9 = vld [vmem:[%s1616_s6 + $0x48] sm:$0xff]  ;;  %v296_v55 = vld [vmem:[%s1616_s6 + $0x158] sm:$0xff] }
  0x22   :  { %207 = vmatpush1.msra.mxu1 %v144_v44  ;;  %391 = vmatprep.subr.mxu0 %v294_v56  ;;  %v261_v10 = vld [vmem:[%s1616_s6 + $0x40] sm:$0xff]  ;;  %v258_v11 = vld [vmem:[%s1616_s6 + $0x28] sm:$0xff]  ;;  %v295_v56 = vld [vmem:[%s1616_s6 + $0x150] sm:$0xff] }
  0x23   :  { %452 = vmatprep.subr.mxu1 %v316_v47  ;;  %392 = vmatpush1.msra.mxu0 %v293_v57  ;;  %v257_v12 = vld [vmem:[%s1616_s6 + $0x20] sm:$0xff]  ;;  %v254_v13 = vld [vmem:[%s1616_s6 + $0x8] sm:$0xff]  ;;  %v312_v47 = vld [vmem:[%s1616_s6 + $0x1d8] sm:$0xff] }
  0x24   :  { %393 = vmatprep.subr.mxu0 %v290_v58  ;;  %v253_v14 = vld [vmem:[%s1616_s6] sm:$0xff]  ;;  %v378_v15 = vld [vmem:[%s1616_s6 + $0x3e8] sm:$0xff]  ;;  %v292_v57 = vld [vmem:[%s1616_s6 + $0x138] sm:$0xff] }
  0x25   :  { %394 = vmatpush1.msra.mxu0 %v289_v59  ;;  %v377_v16 = vld [vmem:[%s1616_s6 + $0x3e0] sm:$0xff]  ;;  %v374_v17 = vld [vmem:[%s1616_s6 + $0x3c8] sm:$0xff]  ;;  %v291_v58 = vld [vmem:[%s1616_s6 + $0x130] sm:$0xff] }
  0x26   :  { %395 = vmatprep.subr.mxu0 %v286_v60  ;;  %v373_v18 = vld [vmem:[%s1616_s6 + $0x3c0] sm:$0xff]  ;;  %v370_v19 = vld [vmem:[%s1616_s6 + $0x3a8] sm:$0xff]  ;;  %v288_v59 = vld [vmem:[%s1616_s6 + $0x118] sm:$0xff] }
  0x27   :  { %396 = vmatpush1.msra.mxu0 %v285_v61  ;;  %v369_v20 = vld [vmem:[%s1616_s6 + $0x3a0] sm:$0xff]  ;;  %v366_v21 = vld [vmem:[%s1616_s6 + $0x388] sm:$0xff]  ;;  %v287_v60 = vld [vmem:[%s1616_s6 + $0x110] sm:$0xff] }
  0x28   :  { %397 = vmatprep.subr.mxu0 %v282_v62  ;;  %v365_v22 = vld [vmem:[%s1616_s6 + $0x380] sm:$0xff]  ;;  %v362_v23 = vld [vmem:[%s1616_s6 + $0x368] sm:$0xff]  ;;  %v284_v61 = vld [vmem:[%s1616_s6 + $0xf8] sm:$0xff] }
  0x29   :  { %398 = vmatpush1.msra.mxu0 %v281_v63  ;;  %v361_v24 = vld [vmem:[%s1616_s6 + $0x360] sm:$0xff]  ;;  %v358_v25 = vld [vmem:[%s1616_s6 + $0x348] sm:$0xff]  ;;  %v283_v62 = vld [vmem:[%s1616_s6 + $0xf0] sm:$0xff] }
  0x2a   :  { %399 = vmatprep.subr.mxu0 %v278_v0  ;;  %v357_v26 = vld [vmem:[%s1616_s6 + $0x340] sm:$0xff]  ;;  %v354_v27 = vld [vmem:[%s1616_s6 + $0x328] sm:$0xff]  ;;  %v280_v63 = vld [vmem:[%s1616_s6 + $0xd8] sm:$0xff] }
  0x2b   :  { %400 = vmatpush1.msra.mxu0 %v277_v2  ;;  %v353_v28 = vld [vmem:[%s1616_s6 + $0x320] sm:$0xff]  ;;  %v350_v29 = vld [vmem:[%s1616_s6 + $0x308] sm:$0xff]  ;;  %v279_v0 = vld [vmem:[%s1616_s6 + $0xd0] sm:$0xff] }
  0x2c   :  { %401 = vmatprep.subr.mxu0 %v274_v3  ;;  %v349_v30 = vld [vmem:[%s1616_s6 + $0x300] sm:$0xff]  ;;  %v346_v31 = vld [vmem:[%s1616_s6 + $0x2e8] sm:$0xff]  ;;  %v276_v2 = vld [vmem:[%s1616_s6 + $0xb8] sm:$0xff] }
  0x2d   :  { %402 = vmatpush1.msra.mxu0 %v273_v4  ;;  %v345_v32 = vld [vmem:[%s1616_s6 + $0x2e0] sm:$0xff]  ;;  %v342_v33 = vld [vmem:[%s1616_s6 + $0x2c8] sm:$0xff]  ;;  %v275_v3 = vld [vmem:[%s1616_s6 + $0xb0] sm:$0xff] }
  0x2e   :  { %403 = vmatprep.subr.mxu0 %v270_v5  ;;  %v341_v35 = vld [vmem:[%s1616_s6 + $0x2c0] sm:$0xff]  ;;  %v338_v36 = vld [vmem:[%s1616_s6 + $0x2a8] sm:$0xff]  ;;  %v272_v4 = vld [vmem:[%s1616_s6 + $0x98] sm:$0xff] }
  0x2f   :  { %404 = vmatpush1.msra.mxu0 %v269_v6  ;;  %v337_v37 = vld [vmem:[%s1616_s6 + $0x2a0] sm:$0xff]  ;;  %v334_v38 = vld [vmem:[%s1616_s6 + $0x288] sm:$0xff]  ;;  %v271_v5 = vld [vmem:[%s1616_s6 + $0x90] sm:$0xff] }
  0x30   :  { %405 = vmatprep.subr.mxu0 %v266_v7  ;;  %v333_v39 = vld [vmem:[%s1616_s6 + $0x280] sm:$0xff]  ;;  %v330_v40 = vld [vmem:[%s1616_s6 + $0x268] sm:$0xff]  ;;  %v268_v6 = vld [vmem:[%s1616_s6 + $0x78] sm:$0xff] }
  0x31   :  { %406 = vmatpush1.msra.mxu0 %v265_v8  ;;  %v329_v41 = vld [vmem:[%s1616_s6 + $0x260] sm:$0xff]  ;;  %v267_v7 = vld [vmem:[%s1616_s6 + $0x70] sm:$0xff]  ;;  %v264_v8 = vld [vmem:[%s1616_s6 + $0x58] sm:$0xff] }
  0x32   :  { %407 = vmatprep.subr.mxu0 %v262_v9  ;;  %v809_v42 = vld [vmem:[%s1614_s4] ss:$0 sm:$0xff]  ;;  %v263_v9 = vld [vmem:[%s1616_s6 + $0x50] sm:$0xff] }
  0x33   :  { %408 = vmatpush1.msra.mxu0 %v261_v10  ;;  %v260_v10 = vld [vmem:[%s1616_s6 + $0x38] sm:$0xff] }
  0x34   :  { %409 = vmatprep.subr.mxu0 %v258_v11  ;;  %v259_v11 = vld [vmem:[%s1616_s6 + $0x30] sm:$0xff] }
  0x35   :  { %410 = vmatpush1.msra.mxu0 %v257_v12  ;;  %v256_v12 = vld [vmem:[%s1616_s6 + $0x18] sm:$0xff] }
  0x36   :  { %411 = vmatprep.subr.mxu0 %v254_v13  ;;  %v255_v13 = vld [vmem:[%s1616_s6 + $0x10] sm:$0xff] }
  0x37   :  { %412 = vmatpush1.msra.mxu0 %v253_v14  ;;  %v380_v14 = vld [vmem:[%s1616_s6 + $0x3f8] sm:$0xff] }
  0x38   :  { %413 = vmatprep.subr.mxu0 %v378_v15  ;;  %v379_v15 = vld [vmem:[%s1616_s6 + $0x3f0] sm:$0xff] }
  0x39   :  { %414 = vmatpush2.msra.mxu0 %v377_v16  ;;  %v376_v16 = vld [vmem:[%s1616_s6 + $0x3d8] sm:$0xff] }
  0x3a   :  { %415 = vmatprep.subr.mxu0 %v374_v17  ;;  %v375_v17 = vld [vmem:[%s1616_s6 + $0x3d0] sm:$0xff] }
  0x3b   :  { %416 = vmatpush2.msra.mxu0 %v373_v18  ;;  %v372_v18 = vld [vmem:[%s1616_s6 + $0x3b8] sm:$0xff] }
  0x3c   :  { %417 = vmatprep.subr.mxu0 %v370_v19  ;;  %v371_v19 = vld [vmem:[%s1616_s6 + $0x3b0] sm:$0xff] }
  0x3d   :  { %418 = vmatpush2.msra.mxu0 %v369_v20  ;;  %v368_v20 = vld [vmem:[%s1616_s6 + $0x398] sm:$0xff] }
  0x3e   :  { %419 = vmatprep.subr.mxu0 %v366_v21  ;;  %v367_v21 = vld [vmem:[%s1616_s6 + $0x390] sm:$0xff] }
  0x3f   :  { %420 = vmatpush2.msra.mxu0 %v365_v22  ;;  %v364_v22 = vld [vmem:[%s1616_s6 + $0x378] sm:$0xff] }
  0x40   :  { %421 = vmatprep.subr.mxu0 %v362_v23  ;;  %v363_v23 = vld [vmem:[%s1616_s6 + $0x370] sm:$0xff] }
  0x41   :  { %422 = vmatpush2.msra.mxu0 %v361_v24  ;;  %v360_v24 = vld [vmem:[%s1616_s6 + $0x358] sm:$0xff] }
  0x42   :  { %423 = vmatprep.subr.mxu0 %v358_v25  ;;  %v359_v25 = vld [vmem:[%s1616_s6 + $0x350] sm:$0xff] }
  0x43   :  { %424 = vmatpush2.msra.mxu0 %v357_v26  ;;  %v356_v26 = vld [vmem:[%s1616_s6 + $0x338] sm:$0xff] }
  0x44   :  { %425 = vmatprep.subr.mxu0 %v354_v27  ;;  %v355_v27 = vld [vmem:[%s1616_s6 + $0x330] sm:$0xff] }
  0x45   :  { %426 = vmatpush2.msra.mxu0 %v353_v28  ;;  %v352_v28 = vld [vmem:[%s1616_s6 + $0x318] sm:$0xff] }
  0x46   :  { %427 = vmatprep.subr.mxu0 %v350_v29  ;;  %v351_v29 = vld [vmem:[%s1616_s6 + $0x310] sm:$0xff] }
  0x47   :  { %428 = vmatpush2.msra.mxu0 %v349_v30  ;;  %v348_v30 = vld [vmem:[%s1616_s6 + $0x2f8] sm:$0xff] }
  0x48   :  { %429 = vmatprep.subr.mxu0 %v346_v31  ;;  %v347_v31 = vld [vmem:[%s1616_s6 + $0x2f0] sm:$0xff] }
  0x49   :  { %430 = vmatpush2.msra.mxu0 %v345_v32  ;;  %v344_v32 = vld [vmem:[%s1616_s6 + $0x2d8] sm:$0xff] }
  0x4a   :  { %431 = vmatprep.subr.mxu0 %v342_v33  ;;  %v343_v33 = vld [vmem:[%s1616_s6 + $0x2d0] sm:$0xff] }
  0x4b   :  { %432 = vmatpush2.msra.mxu0 %v341_v35  ;;  %v340_v35 = vld [vmem:[%s1616_s6 + $0x2b8] sm:$0xff] }
  0x4c   :  { %433 = vmatprep.subr.mxu0 %v338_v36  ;;  %v339_v36 = vld [vmem:[%s1616_s6 + $0x2b0] sm:$0xff] }
  0x4d   :  { %434 = vmatpush2.msra.mxu0 %v337_v37  ;;  %v336_v37 = vld [vmem:[%s1616_s6 + $0x298] sm:$0xff] }
  0x4e   :  { %435 = vmatprep.subr.mxu0 %v334_v38  ;;  %v335_v38 = vld [vmem:[%s1616_s6 + $0x290] sm:$0xff] }
  0x4f   :  { %436 = vmatpush2.msra.mxu0 %v333_v39  ;;  %v332_v39 = vld [vmem:[%s1616_s6 + $0x278] sm:$0xff] }
  0x50   :  { %437 = vmatprep.subr.mxu0 %v330_v40  ;;  %v326_v40 = vld [vmem:[%s1616_s6 + $0x248] sm:$0xff] }
  0x51   :  { %438 = vmatpush2.msra.mxu0 %v329_v41  ;;  %v331_v41 = vld [vmem:[%s1616_s6 + $0x270] sm:$0xff] }
  0x52   :  { %439 = vmatprep.subr.mxu0 %v326_v40  ;;  %v673_v40 = vld [vmem:[%s1621_s11 + $0x10] sm:$0xff] }
  0xd8   :  { %v140_v43 = vpop.f32.mrf.mxu0 }
  0xd9   :  { %v141_v44 = vadd.f32 %v809_v42, %v140_v43  ;;  %v325_v42 = vld [vmem:[%s1616_s6 + $0x240] sm:$0xff]  ;;  %v328_v43 = vld [vmem:[%s1616_s6 + $0x258] sm:$0xff] }
  0xda   :  { %v846_v46 = vpop.f32.mrf.mxu0  ;;  %440 = vmatpush2.msra.mxu0 %v325_v42  ;;  %v671_v42 = vld [vmem:[%s1621_s11] sm:$0xff] }
  0xdb   :  { %241 = vmatmul.mubr.f32.vlgmr.msra.gmra.mxu1 %v141_v44  ;;  %v322_v44 = vld [vmem:[%s1616_s6 + $0x228] sm:$0xff]  ;;  %v321_v46 = vld [vmem:[%s1616_s6 + $0x220] sm:$0xff] }
  0xdc   :  { %453 = vmatpush1.msra.mxu1 %v315_v45  ;;  %v327_v45 = vld [vmem:[%s1616_s6 + $0x250] sm:$0xff]  ;;  %441 = vmatprep.subr.mxu0 %v322_v44 }
  0xdd   :  { %454 = vmatprep.subr.mxu1 %v312_v47  ;;  %v324_v47 = vld [vmem:[%s1616_s6 + $0x238] sm:$0xff]  ;;  %442 = vmatpush2.msra.mxu0 %v321_v46 }
  0xde   :  { %455 = vmatpush1.msra.mxu1 %v311_v48  ;;  %v318_v48 = vld [vmem:[%s1616_s6 + $0x208] sm:$0xff] }
  0xdf   :  { %456 = vmatprep.subr.mxu1 %v308_v49  ;;  %v323_v49 = vld [vmem:[%s1616_s6 + $0x230] sm:$0xff]  ;;  %443 = vmatprep.subr.mxu0 %v318_v48 }
  0xe0   :  { %457 = vmatpush1.msra.mxu1 %v307_v50  ;;  %v317_v50 = vld [vmem:[%s1616_s6 + $0x200] sm:$0xff] }
  0xe1   :  { %458 = vmatprep.subr.mxu1 %v304_v51  ;;  %v320_v51 = vld [vmem:[%s1616_s6 + $0x218] sm:$0xff]  ;;  %444 = vmatpush2.msra.mxu0 %v317_v50 }
  0xe2   :  { %459 = vmatpush1.msra.mxu1 %v303_v52  ;;  %v319_v52 = vld [vmem:[%s1616_s6 + $0x210] sm:$0xff]  ;;  %847 = vmatprep.subr.mxu0 %v934_v1 }
  0xe3   :  { %460 = vmatprep.subr.mxu1 %v300_v53 }
  0xe4   :  { %461 = vmatpush1.msra.mxu1 %v299_v54 }
  0xe5   :  { %462 = vmatprep.subr.mxu1 %v296_v55 }
  0xe6   :  { %463 = vmatpush1.msra.mxu1 %v295_v56 }
  0xe7   :  { %464 = vmatprep.subr.mxu1 %v292_v57 }
  0xe8   :  { %465 = vmatpush1.msra.mxu1 %v291_v58  ;;  %v561_v58 = vld [vmem:[%s1617_s7 + $0x18] sm:$0xff] }
  0xe9   :  { %466 = vmatprep.subr.mxu1 %v288_v59 }
  0xea   :  { %467 = vmatpush1.msra.mxu1 %v287_v60  ;;  %v560_v60 = vld [vmem:[%s1617_s7 + $0x10] sm:$0xff] }
  0xeb   :  { %468 = vmatprep.subr.mxu1 %v284_v61  ;;  %v559_v61 = vld [vmem:[%s1617_s7 + $0x8] sm:$0xff] }
  0xec   :  { %469 = vmatpush1.msra.mxu1 %v283_v62  ;;  %v558_v62 = vld [vmem:[%s1617_s7] sm:$0xff] }
  0xed   :  { %470 = vmatprep.subr.mxu1 %v280_v63  ;;  %v936_v63 = vmov 1983009808  }
  0xee   :  { %471 = vmatpush1.msra.mxu1 %v279_v0  ;;  %v542_v0 = vunpack.c.l.s4 %v936_v63 }
  0xef   :  { %472 = vmatprep.subr.mxu1 %v276_v2  ;;  %v544_v2 = vlaneseq }
  0xf0   :  { %473 = vmatpush1.msra.mxu1 %v275_v3 }
  0xf1   :  { %474 = vmatprep.subr.mxu1 %v272_v4 }
  0xf2   :  { %475 = vmatpush1.msra.mxu1 %v271_v5  ;;  %v543_v5 = vunpack.c.0.s8 %v542_v0 }
  0xf3   :  { %476 = vmatprep.subr.mxu1 %v268_v6  ;;  %v545_v6 = vshrl.u32 %v544_v2, 7 }
  0xf4   :  { %477 = vmatpush1.msra.mxu1 %v267_v7 }
  0xf5   :  { %478 = vmatprep.subr.mxu1 %v264_v8 }
  0xf6   :  { %479 = vmatpush1.msra.mxu1 %v263_v9 }
  0xf7   :  { %480 = vmatprep.subr.mxu1 %v260_v10 }
  0xf8   :  { %481 = vmatpush1.msra.mxu1 %v259_v11 }
  0xf9   :  { %482 = vmatprep.subr.mxu1 %v256_v12  ;;  %v546_v12 = vsub.s32 %v543_v5, %v545_v6 }
  0xfa   :  { %483 = vmatpush1.msra.mxu1 %v255_v13 }
  0xfb   :  { %484 = vmatprep.subr.mxu1 %v380_v14 }
  0xfc   :  { %485 = vmatpush2.msra.mxu1 %v379_v15 }
  0xfd   :  { %486 = vmatprep.subr.mxu1 %v376_v16 }
  0xfe   :  { %487 = vmatpush2.msra.mxu1 %v375_v17 }
  0xff   :  { %488 = vmatprep.subr.mxu1 %v372_v18 }
 0x100   :  { %489 = vmatpush2.msra.mxu1 %v371_v19  ;;  %v811_v19 = vld [vmem:[%s1618_s8] ss:$0 sm:$0xff] }
 0x101   :  { %490 = vmatprep.subr.mxu1 %v368_v20 }
 0x102   :  { %491 = vmatpush2.msra.mxu1 %v367_v21 }
 0x103   :  { %492 = vmatprep.subr.mxu1 %v364_v22 }
 0x104   :  { %493 = vmatpush2.msra.mxu1 %v363_v23 }
 0x105   :  { %494 = vmatprep.subr.mxu1 %v360_v24 }
 0x106   :  { %495 = vmatpush2.msra.mxu1 %v359_v25 }
 0x107   :  { %496 = vmatprep.subr.mxu1 %v356_v26 }
 0x108   :  { %497 = vmatpush2.msra.mxu1 %v355_v27 }
 0x109   :  { %498 = vmatprep.subr.mxu1 %v352_v28 }
 0x10a   :  { %499 = vmatpush2.msra.mxu1 %v351_v29 }
 0x10b   :  { %500 = vmatprep.subr.mxu1 %v348_v30 }
 0x10c   :  { %501 = vmatpush2.msra.mxu1 %v347_v31 }
 0x10d   :  { %502 = vmatprep.subr.mxu1 %v344_v32 }
 0x10e   :  { %503 = vmatpush2.msra.mxu1 %v343_v33 }
 0x10f   :  { %504 = vmatprep.subr.mxu1 %v340_v35  ;;  %v678_v35 = vld [vmem:[%s1621_s11 + $0x38] sm:$0xff] }
 0x110   :  { %505 = vmatpush2.msra.mxu1 %v339_v36  ;;  %v677_v36 = vld [vmem:[%s1621_s11 + $0x30] sm:$0xff] }
 0x111   :  { %506 = vmatprep.subr.mxu1 %v336_v37  ;;  %v676_v37 = vld [vmem:[%s1621_s11 + $0x28] sm:$0xff] }
 0x112   :  { %507 = vmatpush2.msra.mxu1 %v335_v38  ;;  %v675_v38 = vld [vmem:[%s1621_s11 + $0x20] sm:$0xff] }
 0x113   :  { %508 = vmatprep.subr.mxu1 %v332_v39  ;;  %v674_v39 = vld [vmem:[%s1621_s11 + $0x18] sm:$0xff] }
 0x114   :  { %509 = vmatpush2.msra.mxu1 %v331_v41  ;;  %v672_v41 = vld [vmem:[%s1621_s11 + $0x8] sm:$0xff]  ;;  %s937_s11 = smov [#allocation2]  }
 0x115   :  { %510 = vmatprep.subr.mxu1 %v328_v43  ;;  %s783_s23 = sshll.u32 %s937_s11, 4  ;;  %s784_s23 = int_to_ptr.vmem [resolvable:$true] %s783_s23 }
 0x116   :  { %511 = vmatpush2.msra.mxu1 %v327_v45  ;;  %s890_s7 = scalar_lea.vmem %s784_s23, 32  ;;  %p895_p1 = scmp.lt.s32.totalorder %s784_s23, %s784_s23 }
 0x117   :  { %512 = vmatprep.subr.mxu1 %v324_v47  ;;  %v813_v47 = vld [vmem:[%s1619_s9] ss:$0 sm:$0xff]  ;;  %p891_p0 = scmp.ne.s32.totalorder %s784_s23, %s890_s7  ;;  %p896_p2 = scmp.lt.s32.totalorder %s890_s7, %s890_s7 }
 0x118   :  { %513 = vmatpush2.msra.mxu1 %v323_v49  ;;  %v814_v49 = vld [vmem:[%s1620_s10] ss:$0 sm:$0xff] }
 0x119   :  { %514 = vmatprep.subr.mxu1 %v320_v51  ;;  %p897_p3 = por %p896_p2, %p895_p1 }
 0x11a   :  { %515 = vmatpush2.msra.mxu1 %v319_v52 }
 0x11b   :  { %p898_p4 = pnand %p897_p3, %p891_p0 }
 0x19b   :  { %v242_v53 = vpop.f32.mrf.mxu1 }
 0x19c   :  { %v249_v54 = vmul.f32 0.1, %v242_v53  ;;  %vm247_vm2 = vcmp.ge.f32.partialorder %v242_v53, 0.0 }
 0x19d   :  { %v244_v55 = vpop.f32.mrf.mxu1 }
 0x19e   :  { %vm248_vm3 = vcmp.ge.f32.partialorder %v244_v55, 0.0  ;;  %v250_v56 = vmul.f32 0.1, %v244_v55  ;;  %v251_v59 = vsel %vm247_vm2, %v242_v53, %v249_v54 }
 0x1a0   :  { %v252_v57 = vsel %vm248_vm3, %v244_v55, %v250_v56 }
 0x1a1   :  { %445 = vmatprep.mubr.f32.mxu0 %v252_v57  ;;  %516 = vmatprep.mubr.f32.mxu1 %v252_v57 }
 0x1a2   :  { %446 = vmatmul.mubr.f32.vlgmr.msra.gmra.mxu0 %v251_v59  ;;  %517 = vmatmul.mubr.f32.vlgmr.msra.gmra.mxu1 %v251_v59 }
 0x1a3   :  { %848 = vmatpush3.msra.mxu0 %v561_v58  ;;  %855 = vmatprep.mubr.msk.f32.mxu0 %vm935_vm0, %v934_v1 }
 0x1a4   :  { %849 = vmatprep.subr.mxu0 %v934_v1 }
 0x1a5   :  { %850 = vmatpush3.msra.mxu0 %v560_v60 }
 0x1a6   :  { %851 = vmatprep.subr.mxu0 %v934_v1 }
 0x1a7   :  { %852 = vmatpush3.msra.mxu0 %v559_v61 }
 0x1a8   :  { %853 = vmatprep.subr.mxu0 %v934_v1 }
 0x1a9   :  { %854 = vmatpush3.msra.mxu0 %v558_v62 }
 0x1aa   :  { %856 = vmatmul.mubr.msk.f32.vlgmr.msra.gmra.mxu0 %vm70_vm1, %v1113_v34  ;;  %858 = vmatprep.subr.mxu0 %v934_v1 }
 0x1ab   :  { %874 = vmatprep.mubr.msk.f32.mxu0 %vm935_vm0, %v934_v1  ;;  %859 = vmatpush3.msra.mxu0 %v678_v35 }
 0x1ac   :  { %860 = vmatprep.subr.mxu0 %v934_v1 }
 0x1ad   :  { %861 = vmatpush3.msra.mxu0 %v677_v36 }
 0x1ae   :  { %862 = vmatprep.subr.mxu0 %v934_v1 }
 0x1af   :  { %863 = vmatpush3.msra.mxu0 %v676_v37 }
 0x1b0   :  { %864 = vmatprep.subr.mxu0 %v934_v1 }
 0x1b1   :  { %865 = vmatpush3.msra.mxu0 %v675_v38 }
 0x1b2   :  { %866 = vmatprep.subr.mxu0 %v934_v1 }
 0x1b3   :  { %867 = vmatpush3.msra.mxu0 %v674_v39 }
 0x1b4   :  { %868 = vmatprep.subr.mxu0 %v934_v1 }
 0x1b5   :  { %869 = vmatpush3.msra.mxu0 %v673_v40 }
 0x1b6   :  { %870 = vmatprep.subr.mxu0 %v934_v1 }
 0x1b7   :  { %871 = vmatpush3.msra.mxu0 %v672_v41 }
 0x1b8   :  { %872 = vmatprep.subr.mxu0 %v934_v1 }
 0x1b9   :  { %873 = vmatpush3.msra.mxu0 %v671_v42 }
 0x262   :  { %v447_v3 = vpop.f32.mrf.mxu0  ;;  %v518_v4 = vpop.f32.mrf.mxu1 }
 0x263   :  { %v527_v7 = vmul.f32 0.1, %v447_v3  ;;  %vm523_vm4 = vcmp.ge.f32.partialorder %v447_v3, 0.0  ;;  %v529_v8 = vmul.f32 0.1, %v518_v4  ;;  %vm525_vm5 = vcmp.ge.f32.partialorder %v518_v4, 0.0 }
 0x264   :  { %v449_v9 = vpop.f32.mrf.mxu0  ;;  %v520_v10 = vpop.f32.mrf.mxu1 }
 0x265   :  { %vm524_vm6 = vcmp.ge.f32.partialorder %v449_v9, 0.0  ;;  %v528_v11 = vmul.f32 0.1, %v449_v9  ;;  %vm526_vm7 = vcmp.ge.f32.partialorder %v520_v10, 0.0  ;;  %v530_v13 = vmul.f32 0.1, %v520_v10 }
 0x266   :  { %v531_v14 = vsel %vm523_vm4, %v447_v3, %v527_v7  ;;  %v533_v16 = vsel %vm525_vm5, %v518_v4, %v529_v8 }
 0x267   :  { %v532_v15 = vsel %vm524_vm6, %v449_v9, %v528_v11  ;;  %v534_v18 = vsel %vm526_vm7, %v520_v10, %v530_v13 }
 0x268   :  { %v539_v17 = vcombine.low %v531_v14, %v532_v15  ;;  %v540_v20 = vcombine.low %v533_v16, %v534_v18 }
 0x26a   :  { %v547_v21 = vrot.slane %v539_v17, %v546_v12  ;;  %v635_v22 = vpop.f32.mrf.mxu0  ;;  %v554_v23 = vrot.slane %v540_v20, %v546_v12 }
 0x26b   :  { %v636_v24 = vadd.f32 %v811_v19, %v635_v22 }
 0x26c   :  { %v857_v25 = vpop.f32.mrf.mxu0  ;;  %v555_v26 = vcombine.low %v547_v21, %v554_v23 }
 0x26d   :  { %v639_v27 = vmax.f32 %v636_v24, 0.0 }
 0x26e   :  { %557 = vst [vmem:[%s1624_s14] sm:$0xff] %v555_v26 }
 0x26f   :  { %v641_v28 = vsel %vm640_vm8, %v639_v27, 0.0 }
 0x270   :  { %642 = vadd.xlane.f32.xlu0 %v641_v28 }
 0x2f9   :  { %v643_v29 = vpop.xlane.xlu0 %642 }
 0x2fa   :  { %v645_v30 = vmul.f32 0.015625, %v643_v29 }
 0x2fc   :  { %v646_v31 = vsub.f32 %v639_v27, %v645_v30 }
 0x2fe   :  { %v647_v32 = vmul.f32 %v646_v31, %v646_v31 }
 0x300   :  { %v648_v33 = vsel %vm640_vm8, %v647_v32, 0.0 }
 0x301   :  { %649 = vadd.xlane.f32.xlu0 %v648_v33 }
 0x38a   :  { %v650_v43 = vpop.xlane.xlu0 %649 }
 0x38b   :  { %v651_v44 = vmul.f32 0.015625, %v650_v43 }
 0x38d   :  { %v652_v45 = vadd.f32 1e-05, %v651_v44 }
 0x38f   :  { %884 = vrsqrt.f32 %v652_v45 }
 0x39c   :  { %v885_v46 = vpop.eup %884 }
 0x39d   :  { %v654_v48 = vmul.f32 %v885_v46, %v646_v31 }
 0x39f   :  { %v662_v50 = vmul.f32 %v813_v47, %v654_v48 }
 0x3a1   :  { %v670_v51 = vadd.f32 %v814_v49, %v662_v50 }
 0x3a3   :  { %875 = vmatmul.mubr.msk.f32.vlgmr.msra.gmra.mxu0 %vm686_vm9, %v670_v51 }
 0x3a4   :  { %901 = shalt.err (!%p898_p4)
}
 0x3a5   :  { %786 = dma.vmem_to_hbm [thread:$0]  %s784_s23, 32, %s1623_s13, [#allocation3]   ;;  %v815_v1 = vld [vmem:[%s1622_s12] ss:$0 sm:$0xff]  ;;  %vm775_vm12 = vcmask 41984  }
 0x3a6   :  { %s938_s13 = smov [#allocation4]  }
 0x3a7   :  { %s795_s25 = sshll.u32 %s938_s13, 4  ;;  %s796_s25 = int_to_ptr.vmem [resolvable:$true] %s795_s25 }
 0x3a8   :  { %s910_s12 = scalar_lea.vmem %s796_s25, 32  ;;  %p915_p6 = scmp.lt.s32.totalorder %s796_s25, %s796_s25 }
 0x3a9   :  { %p911_p5 = scmp.ne.s32.totalorder %s796_s25, %s910_s12  ;;  %p916_p7 = scmp.lt.s32.totalorder %s910_s12, %s910_s12 }
 0x3ab   :  { %p917_p8 = por %p916_p7, %p915_p6 }
 0x3ad   :  { %p918_p9 = pnand %p917_p8, %p911_p5 }
 0x463   :  { %v756_v52 = vpop.f32.mrf.mxu0 }
 0x464   :  { %v757_v34 = vadd.f32 %v815_v1, %v756_v52 }
 0x465   :  { %v876_v53 = vpop.f32.mrf.mxu0 }
 0x466   :  { %v761_v54 = vand.u32 2147483647, %v757_v34  ;;  %v760_v2 = vmax.f32 %v757_v34, 0.0 }
 0x468   :  { %v762_v55 = vsub.f32 0.0, %v761_v54 }
 0x46a   :  { %v763_v56 = vmul.f32 1.442695, %v762_v55 }
 0x46c   :  { %886 = vpow2.f32 %v763_v56 }
 0x479   :  { %v887_v57 = vpop.eup %886 }
 0x47a   :  { %v765_v58 = vadd.f32 1.0, %v887_v57  ;;  %v768_v59 = vmul.f32 -0.5, %v887_v57  ;;  %v771_v61 = vand.u32 2147483647, %v887_v57 }
 0x47c   :  { %888 = vlog2.f32 %v765_v58  ;;  %v769_v60 = vadd.f32 1.0, %v768_v59  ;;  %vm772_vm11 = vcmp.lt.f32.partialorder %v771_v61, 0.0004427343 }
 0x47e   :  { %v770_v0 = vmul.f32 %v887_v57, %v769_v60 }
 0x489   :  { %v889_v62 = vpop.eup %888 }
 0x48a   :  { %v767_v63 = vmul.f32 0.6931472, %v889_v62 }
 0x48c   :  { %v773_v3 = vsel %vm772_vm11, %v770_v0, %v767_v63 }
 0x48d   :  { %v774_v4 = vadd.f32 %v773_v3, %v760_v2 }
 0x48f   :  { %776 = vst.msk [vmem:[#allocation4] sm:$0x3] %vm775_vm12, %v774_v4 }
 0x490   :  { %921 = shalt.err (!%p918_p9)
}
 0x491   :  { %798 = dma.vmem_to_hbm [thread:$0]  %s796_s25, 32, %s1625_s15, [#allocation5]  }
 0x492   :  { %930 = dma.done.wait [#allocation3], 32  }
 0x493   :  { %931 = vsyncadd [#allocation3], 4294967264 }
 0x494   :  { %932 = dma.done.wait [#allocation5], 32  }
 0x495   :  { %933 = vsyncadd [#allocation5], 4294967264 }
 0x496   :  { %807 = vsyncpa [#allocation3], 1 }
 0x497   :  { %808 = vsyncpa [#allocation5], 1 }

</bundles_post_ra>
